<compile_context>
chip_gen: v7x
topology: tpu7x:2x2x1
jax: 0.10.0
libtpu: 0.0.40
codegen_flags: <defaults>
</compile_context>

<pallas_src>
import functools
import math

import jax
import jax.numpy as jnp
from jax import lax
from jax.experimental import pallas as pl
from jax.experimental.pallas import tpu as pltpu

_LANE = 128
_TARGET_BLOCK_BYTES = 4 * 1024 * 1024   # ~4 MiB input blocks (safe on v5e/v6e/v7x)
_MAX_PACKED_LANES = 8192                # cap W = P * n_agents (bounds the ones matrix)
_VMEM_LIMIT_CAP = 48 * 1024 * 1024      # never ask for more than ~48 MiB scoped VMEM


def _round_up(x: int, m: int) -> int:
    return ((x + m - 1) // m) * m


def _pick_pack(rows: int, n_agents: int) -> int:
    """Largest packing factor P (original rows per packed row) such that
    rows % P == 0, (P * n_agents) % 128 == 0, P <= 128 and
    P * n_agents <= _MAX_PACKED_LANES.  Returns 0 if none exists."""
    g_min = _LANE // math.gcd(n_agents, _LANE)       # minimal P making W % 128 == 0
    cap = (_MAX_PACKED_LANES // n_agents) // g_min * g_min
    p_hi = min(_LANE, max(g_min, cap))
    p = (p_hi // g_min) * g_min
    while p >= g_min:
        if rows % p == 0:
            return p
        p -= g_min
    return 0


def _vdn_segsum_kernel(x_ref, m_ref, o_ref, *, precision):
    """One row-tile:  (tile, W) @ block-diagonal ones (W, P) -> (tile, P).

    m_ref[w, j] == 1 iff lane w belongs to packed segment j (segment length
    n_agents), so the matmul computes all P per-row sums at once, lands them
    lane-dense, and accumulates in f32 on the (otherwise idle) MXU.
    """
    x = x_ref[...]
    if x.dtype == jnp.float16:
        # TODO(synk): rare path; materializes an f32 copy of the block.
        x = x.astype(jnp.float32)
    o_ref[...] = jnp.dot(
        x, m_ref[...],
        preferred_element_type=jnp.float32,
        precision=precision,
    ).astype(o_ref.dtype)


def vdn_net_forward(q: jax.Array, *,
                    target_block_bytes: int = _TARGET_BLOCK_BYTES,
                    min_pallas_elements: int = 1 << 19) -> jax.Array:
    """Pallas implementation of VDN_Net.forward: sum over last dim, keepdim."""
    orig_shape = q.shape
    n_agents = orig_shape[-1]
    out_shape = (*orig_shape[:-1], 1)
    rows = 1
    for d in orig_shape[:-1]:
        rows *= d

    # --- fast paths / fallbacks ---------------------------------------------
    if n_agents == 1:
        return q.reshape(out_shape)                       # identity
    if rows == 0 or n_agents == 0:
        return jnp.sum(q, axis=-1, keepdims=True)
    if q.dtype.name not in ("float32", "bfloat16", "float16"):
        # Integer/exotic dtypes: int32 accumulation via XLA's fused reduce.
        # (torch.sum promotes to int64; JAX defaults to int32.)
        return jnp.sum(q, axis=-1, keepdims=True)
    if q.size <= min_pallas_elements:
        # Small / mid-size inputs: XLA's fused reduce is as fast, no launch cost.
        return jnp.sum(q, axis=-1, keepdims=True)

    P = _pick_pack(rows, n_agents)
    if P == 0:
        # TODO(synk): pad rows to a multiple of 128 (keeping padded rows mapped
        # to padded output slots) instead of falling back to XLA here.
        return jnp.sum(q, axis=-1, keepdims=True)

    # --- packed, lane-dense layout (free contiguous reshape) -----------------
    W = P * n_agents                    # multiple of 128
    p_rows = rows // P
    x = q.reshape(p_rows, W)

    mat_dtype = jnp.bfloat16 if q.dtype == jnp.bfloat16 else jnp.float32
    # bf16 @ exact-ones with f32 accumulation is exact; f32 needs the
    # multi-pass decomposition for full precision.
    precision = (lax.Precision.DEFAULT if mat_dtype == jnp.bfloat16
                 else lax.Precision.HIGHEST)
    seg = jnp.arange(W, dtype=jnp.int32) // n_agents
    ones_blockdiag = (
        seg[:, None] == jnp.arange(P, dtype=jnp.int32)[None, :]
    ).astype(mat_dtype)                                   # (W, P)

    # --- tile / grid selection ------------------------------------------------
    itemsize = q.dtype.itemsize
    sub = max(8, 32 // itemsize)        # native sublane tiling: f32 8, bf16 16
    in_row_bytes = W * itemsize
    bytes_cand = max(sub, (target_block_bytes // in_row_bytes) // sub * sub)
    if p_rows <= 2 * sub:
        tile = p_rows                   # single full-extent block (tiny, forced case)
    else:
        # Cap the tile so the grid has >= 2 (target ~4) steps: keeps both v7x
        # TensorCores busy and preserves DMA/compute overlap.
        quarter = _round_up(pl.cdiv(p_rows, 4), sub)
        tile = max(sub, min(bytes_cand, quarter))
    grid = (pl.cdiv(p_rows, tile),)

    # --- VMEM budget (actual double-buffered footprint, capped) --------------
    mat_itemsize = 2 if mat_dtype == jnp.bfloat16 else 4
    in_block = tile * W * itemsize
    out_block = tile * P * itemsize
    m_bytes = W * P * mat_itemsize
    vmem_limit = int(min(_VMEM_LIMIT_CAP,
                         max(16 << 20,
                             2 * in_block + 2 * out_block + 2 * m_bytes + (4 << 20))))

    kernel = functools.partial(_vdn_segsum_kernel, precision=precision)
    out2d = pl.pallas_call(
        kernel,
        out_shape=jax.ShapeDtypeStruct((p_rows, P), q.dtype),
        grid=grid,
        in_specs=[
            pl.BlockSpec((tile, W), lambda i: (i, 0)),
            pl.BlockSpec((W, P), lambda i: (0, 0)),   # constant block: resident in VMEM
        ],
        out_specs=pl.BlockSpec((tile, P), lambda i: (i, 0)),
        compiler_params=pltpu.CompilerParams(
            dimension_semantics=("parallel",),
            vmem_limit_bytes=vmem_limit,
        ),
    )(x, ones_blockdiag)

    # (p_rows, P) row-major == original row order -> [..., 1] reshape is free.
    return out2d.reshape(out_shape)


if __name__ == "__main__":
    key = jax.random.PRNGKey(0)
    k1, k2, k3, k4, k5, k6 = jax.random.split(key, 6)

    n_agents = 32

    # 1) Clean packed path (P=128), single block, forced through Pallas.
    q1 = jax.random.normal(k1, (2, 512, n_agents), dtype=jnp.float32)
    out1 = jax.block_until_ready(vdn_net_forward(q1, min_pallas_elements=0))
    ref1 = jnp.sum(q1, axis=-1, keepdims=True)
    assert out1.shape == (2, 512, 1), out1.shape
    assert jnp.allclose(out1, ref1, atol=5e-4, rtol=1e-4)

    # 2) rows not divisible by 128 -> generalized packing (P=120), 3 grid
    #    steps with a partial (masked) boundary block.
    q2 = jax.random.normal(k2, (4, 600, n_agents), dtype=jnp.float32)
    out2 = jax.block_until_ready(vdn_net_forward(q2, min_pallas_elements=0))
    ref2 = jnp.sum(q2, axis=-1, keepdims=True)
    assert out2.shape == (4, 600, 1), out2.shape
    assert jnp.allclose(out2, ref2, atol=5e-4, rtol=1e-4)

    # 3) Multi-step parallel grid, lane-dense 128-wide output blocks.
    q3 = jax.random.normal(k3, (8, 1024, n_agents), dtype=jnp.float32)
    out3 = jax.block_until_ready(vdn_net_forward(q3, min_pallas_elements=0))
    ref3 = jnp.sum(q3, axis=-1, keepdims=True)
    assert out3.shape == (8, 1024, 1), out3.shape
    assert jnp.allclose(out3, ref3, atol=5e-4, rtol=1e-4)

    # 4) bf16 path: native bf16 MXU matmul, f32 accumulation, bf16 store.
    q4 = jax.random.normal(k4, (4, 2048, 8), dtype=jnp.bfloat16)
    out4 = jax.block_until_ready(vdn_net_forward(q4, min_pallas_elements=0))
    ref4 = jnp.sum(q4.astype(jnp.float32), axis=-1, keepdims=True)
    assert out4.shape == (4, 2048, 1), out4.shape
    assert out4.dtype == jnp.bfloat16
    assert jnp.allclose(out4.astype(jnp.float32), ref4, atol=8e-2, rtol=2e-2)

    # 5) Awkward row count (15 rows) + tiny size -> XLA fallback path.
    q5 = jax.random.normal(k5, (3, 5, n_agents), dtype=jnp.float32)
    out5 = jax.block_until_ready(vdn_net_forward(q5))
    ref5 = jnp.sum(q5, axis=-1, keepdims=True)
    assert out5.shape == (3, 5, 1), out5.shape
    assert jnp.allclose(out5, ref5, atol=1e-5, rtol=1e-5)

    # 6) n_agents == 1 identity fast path.
    q6 = jax.random.normal(k6, (2, 8, 1), dtype=jnp.float32)
    out6 = jax.block_until_ready(vdn_net_forward(q6))
    assert out6.shape == (2, 8, 1)
    assert jnp.allclose(out6, jnp.sum(q6, axis=-1, keepdims=True))

    # 7) Default thresholds on a small input -> takes the XLA fast path.
    out7 = jax.block_until_ready(vdn_net_forward(q1))
    assert jnp.allclose(out7, ref1, atol=1e-5, rtol=1e-5)

    print("KERNEL_OK")
</pallas_src>

<mosaic_0001>
module attributes {stable_mosaic.version = 11 : i64} {
  func.func @_vdn_segsum_kernel(%arg0: i32, %arg1: memref<8x4096xf32, #tpu.memory_space<vmem>>, %arg2: memref<4096x128xf32, #tpu.memory_space<vmem>>, %arg3: memref<8x128xf32, #tpu.memory_space<vmem>>) attributes {dimension_semantics = [#tpu.dimension_semantics<parallel>], iteration_bounds = array<i64: 1>, scalar_prefetch = 0 : i64, scratch_operands = 0 : i64, tpu.core_type = #tpu.core_type<tc>, window_params = [{transform_indices = @transform_0, window_bounds = array<i64: 8, 4096>}, {pipeline_mode = #tpu.pipeline_mode<synchronous>, transform_indices = @transform_1, window_bounds = array<i64: 4096, 128>}, {transform_indices = @transform_2, window_bounds = array<i64: 8, 128>}]} {
    %c0 = arith.constant 0 : index
    %c0_0 = arith.constant 0 : index
    %0 = vector.load %arg1[%c0, %c0_0] : memref<8x4096xf32, #tpu.memory_space<vmem>>, vector<8x4096xf32>
    %c0_1 = arith.constant 0 : index
    %c0_2 = arith.constant 0 : index
    %1 = vector.load %arg2[%c0_1, %c0_2] : memref<4096x128xf32, #tpu.memory_space<vmem>>, vector<4096x128xf32>
    %cst = arith.constant dense<0.000000e+00> : vector<8x128xf32>
    %2 = tpu.matmul %0, %1, %cst {dimension_numbers = #tpu.dot_dimension_numbers<[1], [0], [0], [1], [0, 0, 1, 1], [], []>, precision = #tpu.contract_precision<fp32>} : vector<8x4096xf32>, vector<4096x128xf32>, vector<8x128xf32> -> vector<8x128xf32>
    %c0_3 = arith.constant 0 : index
    %c0_4 = arith.constant 0 : index
    %3 = vector.load %arg3[%c0_3, %c0_4] : memref<8x128xf32, #tpu.memory_space<vmem>>, vector<8x128xf32>
    tpu.vector_store %arg3[%c0_3, %c0_4], %2 {strides = array<i32>} : memref<8x128xf32, #tpu.memory_space<vmem>>, vector<8x128xf32>,
    return
  }
  func.func @transform_0(%arg0: i32) -> (i32, i32) {
    %c0_i32 = arith.constant 0 : i32
    %c0_i32_0 = arith.constant 0 : i32
    return %arg0, %c0_i32 : i32, i32
  }
  func.func @transform_1(%arg0: i32) -> (i32, i32) {
    %c0_i32 = arith.constant 0 : i32
    %c0_i32_0 = arith.constant 0 : i32
    %c0_i32_1 = arith.constant 0 : i32
    return %c0_i32, %c0_i32_0 : i32, i32
  }
  func.func @transform_2(%arg0: i32) -> (i32, i32) {
    %c0_i32 = arith.constant 0 : i32
    %c0_i32_0 = arith.constant 0 : i32
    return %arg0, %c0_i32 : i32, i32
  }
}

</mosaic_0001>

<bundles_post_ra>
// kernel: tpu_custom_call.1
= control target key start
LH: loop header
LB: loop body
LE: loop exit
PB: predicated region body
PF: predicated region fallthrough
CT: control target
= control target key end

     0   :  { %7 = vsyncpa [#allocation3], 0  ;;  %s28595_s0 = inlined_call_operand.hbm [shape: f32[8,4096], index: 0, kind: input, shape index: {}]   ;;  %s28596_s1 = inlined_call_operand.hbm [shape: f32[4096,128], index: 1, kind: input, shape index: {}]   ;;  %s28597_s2 = inlined_call_operand.hbm [shape: f32[8,128], index: 2, kind: output, shape index: {}]  }
   0x1   :  { %8 = vsyncpa [#allocation6], 0 }
   0x2   :  { %9 = vsyncpa [#allocation4], 0  ;;  %s20900_s9 = smov [#allocation2]   ;;  %s20901_s11 = smov [#allocation5]  }
   0x3   :  { %s16_s10 = sshll.u32 %s20900_s9, 4  ;;  %s25_s12 = sshll.u32 %s20901_s11, 4  ;;  %s17_s10 = int_to_ptr.vmem [resolvable:$true] %s16_s10  ;;  %s20920_s12 = int_to_ptr.vmem [resolvable:$true] %s25_s12 }
   0x4   :  { %s20828_s15 = scalar_lea.hbm %s28595_s0, 4096 }
   0x5   :  { %p20829_p0 = scmp.ne.s32.totalorder %s28595_s0, %s20828_s15  ;;  %p20832_p1 = scmp.lt.u32.totalorder %s20828_s15, %s28595_s0 }
   0x7   :  { %p20834_p2 = pnand %p20832_p1, %p20829_p0 }
   0x9   :  { %20837 = shalt.err (!%p20834_p2)
}
   0xa   :  { %s20838_s20 = scalar_lea.vmem %s17_s10, 4096  ;;  %p20843_p4 = scmp.lt.s32.totalorder %s17_s10, %s17_s10 }
   0xb   :  { %p20839_p3 = scmp.ne.s32.totalorder %s17_s10, %s20838_s20  ;;  %p20844_p5 = scmp.lt.s32.totalorder %s20838_s20, %s20838_s20 }
   0xd   :  { %p20845_p6 = por %p20844_p5, %p20843_p4 }
   0xf   :  { %p20846_p7 = pnand %p20845_p6, %p20839_p3 }
  0x11   :  { %20849 = shalt.err (!%p20846_p7)
}
  0x12   :  { %19 = dma.hbm_to_vmem [thread:$0]  %s28595_s0, 4096, %s17_s10, [#allocation3]  }
  0x13   :  { %s20850_s25 = scalar_lea.hbm %s28596_s1, 65536 }
  0x14   :  { %p20851_p8 = scmp.ne.s32.totalorder %s28596_s1, %s20850_s25  ;;  %p20854_p9 = scmp.lt.u32.totalorder %s20850_s25, %s28596_s1 }
  0x16   :  { %p20856_p10 = pnand %p20854_p9, %p20851_p8 }
  0x18   :  { %20859 = shalt.err (!%p20856_p10)
}
  0x19   :  { %s20860_s30 = scalar_lea.vmem %s20920_s12, 65536  ;;  %p20865_p12 = scmp.lt.s32.totalorder %s20920_s12, %s20920_s12 }
  0x1a   :  { %p20861_p11 = scmp.ne.s32.totalorder %s20920_s12, %s20860_s30  ;;  %p20866_p13 = scmp.lt.s32.totalorder %s20860_s30, %s20860_s30 }
  0x1c   :  { %p20867_p0 = por %p20866_p13, %p20865_p12 }
  0x1e   :  { %p20868_p1 = pnand %p20867_p0, %p20861_p11 }
  0x20   :  { %20871 = shalt.err (!%p20868_p1)
}
  0x21   :  { %s20902_s0 = smov 128   ;;  %s20903_s3 = smov 8  }
  0x22   :  { %31 = dma.hbm_to_vmem [thread:$0]  %s28596_s1, 65536, %s20920_s12, [#allocation6], %s20902_s0, %s20902_s0, %s20903_s3  }
  0x23   :  { %20894 = dma.done.wait [#allocation3], 4096  }
  0x24   :  { %20895 = vsyncadd [#allocation3], 4294963200 }
  0x25   :  { %20896 = dma.done.wait [#allocation6], 65536  }
  0x26   :  { %20897 = vsyncadd [#allocation6], 4294901760  ;;  %v86_v0 = vld [vmem:[#allocation5 + $0x80] sm:$0xff]  ;;  %v87_v1 = vld [vmem:[#allocation5 + $0x88] sm:$0xff]  ;;  %s20904_s1 = smov [#allocation7]  }
  0x27   :  { %v70_v2 = vld [vmem:[#allocation5] sm:$0xff]  ;;  %v631_v3 = vand.u32 4294901760, %v86_v0  ;;  %v634_v4 = vand.u32 4294901760, %v87_v1  ;;  %v71_v5 = vld [vmem:[#allocation5 + $0x8] sm:$0xff]  ;;  %v88_v7 = vld [vmem:[#allocation5 + $0x90] sm:$0xff]  ;;  %s14381_s6 = sshll.u32 %s20904_s1, 4  ;;  %s14382_s6 = int_to_ptr.vmem [resolvable:$true] %s14381_s6 }
  0x28   :  { %v583_v6 = vand.u32 4294901760, %v70_v2  ;;  %v89_v8 = vld [vmem:[#allocation5 + $0x98] sm:$0xff]  ;;  %v586_v9 = vand.u32 4294901760, %v71_v5  ;;  %v637_v10 = vand.u32 4294901760, %v88_v7  ;;  %v72_v12 = vld [vmem:[#allocation5 + $0x10] sm:$0xff]  ;;  %v90_v18 = vld [vmem:[#allocation5 + $0xa0] sm:$0xff]  ;;  %p20877_p3 = scmp.lt.s32.totalorder %s14382_s6, %s14382_s6 }
  0x29   :  { %v640_v11 = vand.u32 4294901760, %v89_v8  ;;  %v73_v13 = vld [vmem:[#allocation5 + $0x18] sm:$0xff]  ;;  %v20951_v14 = vpack.c.bf16 %v634_v4, %v631_v3  ;;  %v589_v16 = vand.u32 4294901760, %v72_v12  ;;  %v91_v19 = vld [vmem:[#allocation5 + $0xa8] sm:$0xff]  ;;  %v74_v23 = vld [vmem:[#allocation5 + $0x20] sm:$0xff]  ;;  %v643_v29 = vand.u32 4294901760, %v90_v18 }
  0x2a   :  { %v20953_v15 = vsub.f32 %v70_v2, %v583_v6  ;;  %v592_v17 = vand.u32 4294901760, %v73_v13  ;;  %v20955_v20 = vpack.c.bf16 %v586_v9, %v583_v6  ;;  %v20957_v21 = vsub.f32 %v71_v5, %v586_v9  ;;  %v75_v24 = vld [vmem:[#allocation5 + $0x28] sm:$0xff]  ;;  %v92_v37 = vld [vmem:[#allocation5 + $0xb0] sm:$0xff]  ;;  %v93_v42 = vld [vmem:[#allocation5 + $0xb8] sm:$0xff]  ;;  %s20872_s7 = scalar_lea.vmem %s14382_s6, 128 }
  0x2b   :  { %v20959_v22 = vpack.c.bf16 %v640_v11, %v637_v10  ;;  %17752 = vmatprep.subr.bf16.mxu0 %v20951_v14  ;;  %v20962_v25 = vsub.f32 %v88_v7, %v637_v10  ;;  %v20964_v26 = vsub.f32 %v89_v8, %v640_v11  ;;  %v20968_v28 = vsub.f32 %v72_v12, %v589_v16  ;;  %v76_v55 = vld [vmem:[#allocation5 + $0x30] sm:$0xff]  ;;  %v77_v56 = vld [vmem:[#allocation5 + $0x38] sm:$0xff]  ;;  %v94_v5 = vld [vmem:[#allocation5 + $0xc0] sm:$0xff]  ;;  %p20873_p2 = scmp.ne.s32.totalorder %s14382_s6, %s20872_s7  ;;  %p20878_p4 = scmp.lt.s32.totalorder %s20872_s7, %s20872_s7 }
  0x2c   :  { %v20966_v27 = vpack.c.bf16 %v592_v17, %v589_v16  ;;  %17754 = vmatpush3.bf16.msra.mxu0 %v20955_v20  ;;  %v646_v30 = vand.u32 4294901760, %v91_v19  ;;  %v20971_v31 = vsub.f32 %v86_v0, %v631_v3  ;;  %v20973_v32 = vsub.f32 %v87_v1, %v634_v4  ;;  %v95_v6 = vld [vmem:[#allocation5 + $0xc8] sm:$0xff]  ;;  %v78_v11 = vld [vmem:[#allocation5 + $0x40] sm:$0xff] }
  0x2d   :  { %17756 = vmatprep.subr.bf16.mxu0 %v20959_v22  ;;  %v595_v33 = vand.u32 4294901760, %v74_v23  ;;  %v598_v34 = vand.u32 4294901760, %v75_v24  ;;  %v28613_v35 = vand.u32 4294901760, %v20953_v15  ;;  %v28612_v36 = vand.u32 4294901760, %v20957_v21  ;;  %p20879_p5 = por %p20878_p4, %p20877_p3 }
  0x2e   :  { %v20978_v38 = vsub.f32 %v73_v13, %v592_v17  ;;  %v20980_v39 = vpack.c.bf16 %v646_v30, %v643_v29  ;;  %v20982_v40 = vsub.f32 %v90_v18, %v643_v29  ;;  %v28617_v41 = vand.u32 4294901760, %v20971_v31  ;;  %v79_v29 = vld [vmem:[#allocation5 + $0x48] sm:$0xff] }
  0x2f   :  { %v20985_v43 = vsub.f32 %v91_v19, %v646_v30  ;;  %v28615_v44 = vand.u32 4294901760, %v20973_v32  ;;  %v20988_v45 = vpack.c.bf16 %v598_v34, %v595_v33  ;;  %v20990_v46 = vsub.f32 %v74_v23, %v595_v33  ;;  %p20880_p6 = pnand %p20879_p5, %p20873_p2 }
  0x30   :  { %17758 = vmatpush3.bf16.msra.mxu0 %v20966_v27  ;;  %v810_v47 = vsub.f32 %v20971_v31, %v28617_v41  ;;  %v698_v48 = vsub.f32 %v20953_v15, %v28613_v35  ;;  %v705_v49 = vsub.f32 %v20957_v21, %v28612_v36  ;;  %v649_v50 = vand.u32 4294901760, %v92_v37  ;;  %v39_v41 = vld [vmem:[#allocation2 + $0x8] sm:$0xff] }
  0x31   :  { %17760 = vmatprep.subr.bf16.mxu0 %v20980_v39  ;;  %v817_v51 = vsub.f32 %v20973_v32, %v28615_v44  ;;  %v652_v52 = vand.u32 4294901760, %v93_v42  ;;  %v28610_v53 = vand.u32 4294901760, %v20962_v25  ;;  %v28608_v54 = vand.u32 4294901760, %v20964_v26 }
  0x32   :  { %v811_v57 = vand.u32 4294901760, %v810_v47  ;;  %v21008_v58 = vsub.f32 %v75_v24, %v598_v34  ;;  %v699_v59 = vand.u32 4294901760, %v698_v48  ;;  %v706_v60 = vand.u32 4294901760, %v705_v49 }
  0x33   :  { %v818_v61 = vand.u32 4294901760, %v817_v51  ;;  %v21010_v62 = vpack.c.bf16 %v652_v52, %v649_v50  ;;  %v21012_v63 = vsub.f32 %v92_v37, %v649_v50  ;;  %v824_v0 = vsub.f32 %v20962_v25, %v28610_v53 }
  0x34   :  { %17762 = vmatpush3.bf16.msra.mxu0 %v20988_v45  ;;  %v17785_v1 = vpack.c.bf16 %v706_v60, %v699_v59  ;;  %v831_v2 = vsub.f32 %v20964_v26, %v28608_v54  ;;  %v601_v3 = vand.u32 4294901760, %v76_v55  ;;  %v604_v4 = vand.u32 4294901760, %v77_v56  ;;  %v97_v59 = vld [vmem:[#allocation5 + $0xd8] sm:$0xff] }
  0x35   :  { %v17783_v7 = vpack.c.bf16 %v818_v61, %v811_v57  ;;  %17764 = vmatprep.subr.bf16.mxu0 %v21010_v62  ;;  %v825_v8 = vand.u32 4294901760, %v824_v0  ;;  %v28607_v9 = vand.u32 4294901760, %v20968_v28  ;;  %v28605_v10 = vand.u32 4294901760, %v20978_v38  ;;  %v96_v57 = vld [vmem:[#allocation5 + $0xd0] sm:$0xff]  ;;  %v101_v54 = vld [vmem:[#allocation5 + $0xf8] sm:$0xff] }
  0x36   :  { %v21024_v12 = vsub.f32 %v93_v42, %v652_v52  ;;  %v832_v13 = vand.u32 4294901760, %v831_v2  ;;  %v21026_v16 = vpack.c.bf16 %v604_v4, %v601_v3  ;;  %v21028_v17 = vsub.f32 %v76_v55, %v601_v3 }
  0x37   :  { %17784 = vmatprep.subr.bf16.mxu1 %v17783_v7  ;;  %v712_v18 = vsub.f32 %v20968_v28, %v28607_v9  ;;  %v719_v19 = vsub.f32 %v20978_v38, %v28605_v10  ;;  %v655_v23 = vand.u32 4294901760, %v94_v5  ;;  %v658_v24 = vand.u32 4294901760, %v95_v6  ;;  %v100_v9 = vld [vmem:[#allocation5 + $0xf0] sm:$0xff] }
  0x38   :  { %17786 = vmatpush3.bf16.msra.mxu1 %v17785_v1  ;;  %v17787_v30 = vpack.c.bf16 %v832_v13, %v825_v8  ;;  %17766 = vmatpush3.bf16.msra.mxu0 %v21026_v16  ;;  %v28603_v33 = vand.u32 4294901760, %v20982_v40  ;;  %v28602_v34 = vand.u32 4294901760, %v20985_v43  ;;  %v607_v37 = vand.u32 4294901760, %v78_v11  ;;  %v80_v1 = vld [vmem:[#allocation5 + $0x50] sm:$0xff] }
  0x39   :  { %v21039_v42 = vsub.f32 %v77_v56, %v604_v4  ;;  %v713_v47 = vand.u32 4294901760, %v712_v18  ;;  %v720_v48 = vand.u32 4294901760, %v719_v19  ;;  %v21041_v49 = vpack.c.bf16 %v658_v24, %v655_v23  ;;  %v81_v18 = vld [vmem:[#allocation5 + $0x58] sm:$0xff] }
  0x3a   :  { %17788 = vmatprep.subr.bf16.mxu1 %v17787_v30  ;;  %v21043_v50 = vsub.f32 %v94_v5, %v655_v23  ;;  %v838_v51 = vsub.f32 %v20982_v40, %v28603_v33  ;;  %v845_v52 = vsub.f32 %v20985_v43, %v28602_v34  ;;  %v610_v55 = vand.u32 4294901760, %v79_v29 }
  0x3b   :  { %v17789_v56 = vpack.c.bf16 %v720_v48, %v713_v47  ;;  %17768 = vmatprep.subr.bf16.mxu0 %v21041_v49  ;;  %v21052_v60 = vsub.f32 %v95_v6, %v658_v24  ;;  %v28600_v61 = vand.u32 4294901760, %v20990_v46  ;;  %v28598_v0 = vand.u32 4294901760, %v21008_v58 }
  0x3c   :  { %v839_v2 = vand.u32 4294901760, %v838_v51  ;;  %v846_v3 = vand.u32 4294901760, %v845_v52  ;;  %v21056_v4 = vpack.c.bf16 %v610_v55, %v607_v37  ;;  %v21058_v5 = vsub.f32 %v78_v11, %v607_v37 }
  0x3d   :  { %17790 = vmatpush3.bf16.msra.mxu1 %v17789_v56  ;;  %v726_v7 = vsub.f32 %v20990_v46, %v28600_v61  ;;  %v733_v6 = vsub.f32 %v21008_v58, %v28598_v0  ;;  %v661_v8 = vand.u32 4294901760, %v96_v57  ;;  %v664_v13 = vand.u32 4294901760, %v97_v59  ;;  %v99_v0 = vld [vmem:[#allocation5 + $0xe8] sm:$0xff] }
  0x3e   :  { %v17791_v19 = vpack.c.bf16 %v846_v3, %v839_v2  ;;  %17770 = vmatpush3.bf16.msra.mxu0 %v21056_v4  ;;  %v28599_v23 = vand.u32 4294901760, %v21012_v63  ;;  %v28601_v11 = vand.u32 4294901760, %v21024_v12  ;;  %v613_v24 = vand.u32 4294901760, %v80_v1  ;;  %v98_v3 = vld [vmem:[#allocation5 + $0xe0] sm:$0xff] }
  0x3f   :  { %v21069_v30 = vsub.f32 %v79_v29, %v610_v55  ;;  %v727_v37 = vand.u32 4294901760, %v726_v7  ;;  %v734_v47 = vand.u32 4294901760, %v733_v6  ;;  %v21071_v48 = vpack.c.bf16 %v664_v13, %v661_v8  ;;  %v82_v6 = vld [vmem:[#allocation5 + $0x60] sm:$0xff] }
  0x40   :  { %17792 = vmatprep.subr.bf16.mxu1 %v17791_v19  ;;  %v21073_v51 = vsub.f32 %v96_v57, %v661_v8  ;;  %v852_v52 = vsub.f32 %v21012_v63, %v28599_v23  ;;  %v859_v56 = vsub.f32 %v21024_v12, %v28601_v11  ;;  %v616_v2 = vand.u32 4294901760, %v81_v18  ;;  %v83_v11 = vld [vmem:[#allocation5 + $0x68] sm:$0xff] }
  0x41   :  { %v17793_v29 = vpack.c.bf16 %v734_v47, %v727_v37  ;;  %17772 = vmatprep.subr.bf16.mxu0 %v21071_v48  ;;  %v21082_v55 = vsub.f32 %v97_v59, %v664_v13  ;;  %v28604_v7 = vand.u32 4294901760, %v21028_v17  ;;  %v28606_v57 = vand.u32 4294901760, %v21039_v42 }
  0x42   :  { %v853_v8 = vand.u32 4294901760, %v852_v52  ;;  %v860_v19 = vand.u32 4294901760, %v859_v56  ;;  %v21086_v23 = vpack.c.bf16 %v616_v2, %v613_v24  ;;  %v21088_v61 = vsub.f32 %v80_v1, %v613_v24 }
  0x43   :  { %17794 = vmatpush3.bf16.msra.mxu1 %v17793_v29  ;;  %v740_v37 = vsub.f32 %v21028_v17, %v28604_v7  ;;  %v747_v59 = vsub.f32 %v21039_v42, %v28606_v57  ;;  %v667_v13 = vand.u32 4294901760, %v98_v3  ;;  %v670_v47 = vand.u32 4294901760, %v99_v0 }
  0x44   :  { %29400 = vst [vmem:[#allocation11_spill] sm:$0xff] %v21086_v23  ;;  %v17795_v34 = vpack.c.bf16 %v860_v19, %v853_v8  ;;  %17774 = vmatpush3.bf16.msra.mxu0 %v21086_v23  ;;  %v28609_v52 = vand.u32 4294901760, %v21043_v50  ;;  %v28611_v1 = vand.u32 4294901760, %v21052_v60  ;;  %v619_v24 = vand.u32 4294901760, %v82_v6 }
  0x45   :  { %v21099_v56 = vsub.f32 %v81_v18, %v616_v2  ;;  %v741_v29 = vand.u32 4294901760, %v740_v37  ;;  %v748_v33 = vand.u32 4294901760, %v747_v59  ;;  %v21101_v7 = vpack.c.bf16 %v670_v47, %v667_v13  ;;  %v84_v37 = vld [vmem:[#allocation5 + $0x70] sm:$0xff] }
  0x46   :  { %17796 = vmatprep.subr.bf16.mxu1 %v17795_v34  ;;  %v21103_v10 = vsub.f32 %v98_v3, %v667_v13  ;;  %v866_v8 = vsub.f32 %v21043_v50, %v28609_v52  ;;  %v873_v19 = vsub.f32 %v21052_v60, %v28611_v1  ;;  %v622_v57 = vand.u32 4294901760, %v83_v11  ;;  %v85_v1 = vld [vmem:[#allocation5 + $0x78] sm:$0xff] }
  0x47   :  { %29401 = vst [vmem:[#allocation12_spill] sm:$0xff] %v21101_v7  ;;  %v17797_v18 = vpack.c.bf16 %v748_v33, %v741_v29  ;;  %17776 = vmatprep.subr.bf16.mxu0 %v21101_v7  ;;  %v21112_v2 = vsub.f32 %v99_v0, %v670_v47  ;;  %v28614_v34 = vand.u32 4294901760, %v21058_v5  ;;  %v28616_v3 = vand.u32 4294901760, %v21069_v30 }
  0x48   :  { %v867_v59 = vand.u32 4294901760, %v866_v8  ;;  %v874_v13 = vand.u32 4294901760, %v873_v19  ;;  %v21116_v52 = vpack.c.bf16 %v622_v57, %v619_v24  ;;  %v21118_v53 = vsub.f32 %v82_v6, %v619_v24 }
  0x49   :  { %17798 = vmatpush3.bf16.msra.mxu1 %v17797_v18  ;;  %v754_v33 = vsub.f32 %v21058_v5, %v28614_v34  ;;  %v761_v0 = vsub.f32 %v21069_v30, %v28616_v3  ;;  %v673_v47 = vand.u32 4294901760, %v100_v9  ;;  %v676_v29 = vand.u32 4294901760, %v101_v54 }
  0x4a   :  { %29402 = vst [vmem:[#allocation13_spill] sm:$0xff] %v21116_v52  ;;  %v17799_v36 = vpack.c.bf16 %v874_v13, %v867_v59  ;;  %17778 = vmatpush3.bf16.msra.mxu0 %v21116_v52  ;;  %v28620_v8 = vand.u32 4294901760, %v21073_v51  ;;  %v28621_v6 = vand.u32 4294901760, %v21082_v55  ;;  %v625_v24 = vand.u32 4294901760, %v84_v37 }
  0x4b   :  { %v21129_v19 = vsub.f32 %v83_v11, %v622_v57  ;;  %v755_v18 = vand.u32 4294901760, %v754_v33  ;;  %v762_v35 = vand.u32 4294901760, %v761_v0  ;;  %v21131_v34 = vpack.c.bf16 %v676_v29, %v673_v47 }
  0x4c   :  { %17800 = vmatprep.subr.bf16.mxu1 %v17799_v36  ;;  %v21133_v44 = vsub.f32 %v100_v9, %v673_v47  ;;  %v880_v59 = vsub.f32 %v21073_v51, %v28620_v8  ;;  %v887_v13 = vsub.f32 %v21082_v55, %v28621_v6  ;;  %v628_v3 = vand.u32 4294901760, %v85_v1  ;;  %v38_v9 = vld [vmem:[#allocation2] sm:$0xff] }
  0x4d   :  { %29403 = vst [vmem:[#allocation14_spill] sm:$0xff] %v21131_v34  ;;  %v17801_v52 = vpack.c.bf16 %v762_v35, %v755_v18  ;;  %17780 = vmatprep.subr.bf16.mxu0 %v21131_v34  ;;  %v21142_v11 = vsub.f32 %v101_v54, %v676_v29  ;;  %v28622_v57 = vand.u32 4294901760, %v21088_v61  ;;  %v28623_v36 = vand.u32 4294901760, %v21099_v56 }
  0x4e   :  { %v881_v33 = vand.u32 4294901760, %v880_v59  ;;  %v888_v0 = vand.u32 4294901760, %v887_v13  ;;  %v21146_v47 = vpack.c.bf16 %v628_v3, %v625_v24  ;;  %v21148_v8 = vsub.f32 %v84_v37, %v625_v24 }
  0x4f   :  { %17802 = vmatpush3.bf16.msra.mxu1 %v17801_v52  ;;  %v768_v35 = vsub.f32 %v21088_v61, %v28622_v57  ;;  %v775_v54 = vsub.f32 %v21099_v56, %v28623_v36  ;;  %v21156_v29 = vand.u32 4294901760, %v39_v41  ;;  %v28626_v18 = vand.u32 4294901760, %v21103_v10 }
  0x50   :  { %29404 = vst [vmem:[#allocation15_spill] sm:$0xff] %v21146_v47  ;;  %v17803_v6 = vpack.c.bf16 %v888_v0, %v881_v33  ;;  %17782 = vmatpush3.bf16.msra.mxu0 %v21146_v47  ;;  %v28632_v59 = vand.u32 4294901760, %v21112_v2  ;;  %v17815_v52 = vpack.c.bf16 %v20973_v32, %v20971_v31  ;;  %v21163_v37 = vand.u32 4294901760, %v38_v9 }
  0x51   :  { %29405 = vst [vmem:[#allocation16_spill] sm:$0xff] %v21156_v29  ;;  %v769_v24 = vand.u32 4294901760, %v768_v35  ;;  %v776_v13 = vand.u32 4294901760, %v775_v54  ;;  %v21166_v57 = vsub.f32 %v39_v41, %v21156_v29  ;;  %v894_v36 = vsub.f32 %v21103_v10, %v28626_v18  ;;  %919 = vmatprep.mubr.f32.mxu1 %v21156_v29 }
  0x52   :  { %17804 = vmatprep.subr.bf16.mxu1 %v17803_v6  ;;  %v901_v33 = vsub.f32 %v21112_v2, %v28632_v59  ;;  %17816 = vmatprep.subr.bf16.mxu0 %v17815_v52  ;;  %v21176_v0 = vsub.f32 %v38_v9, %v21163_v37  ;;  %v28631_v35 = vand.u32 4294901760, %v21118_v53  ;;  %v28633_v41 = vand.u32 4294901760, %v21129_v19 }
  0x53   :  { %v21180_v54 = vsub.f32 %v85_v1, %v628_v3  ;;  %v17805_v47 = vpack.c.bf16 %v776_v13, %v769_v24  ;;  %v28634_v18 = vand.u32 4294901760, %v21166_v57  ;;  %v895_v34 = vand.u32 4294901760, %v894_v36 }
  0x54   :  { %v902_v29 = vand.u32 4294901760, %v901_v33  ;;  %v686_v6 = vand.u32 4294901760, %v21176_v0  ;;  %v782_v52 = vsub.f32 %v21118_v53, %v28631_v35  ;;  %v789_v9 = vsub.f32 %v21129_v19, %v28633_v41 }
  0x55   :  { %17806 = vmatpush3.bf16.msra.mxu1 %v17805_v47  ;;  %v681_v1 = vsub.f32 %v21166_v57, %v28634_v18  ;;  %v17817_v3 = vpack.c.bf16 %v20957_v21, %v20953_v15  ;;  %v28639_v36 = vand.u32 4294901760, %v21133_v44  ;;  %v28642_v24 = vand.u32 4294901760, %v21142_v11 }
  0x56   :  { %v17807_v13 = vpack.c.bf16 %v902_v29, %v895_v34  ;;  %v687_v33 = vsub.f32 %v21176_v0, %v686_v6  ;;  %v783_v35 = vand.u32 4294901760, %v782_v52  ;;  %v790_v59 = vand.u32 4294901760, %v789_v9 }
  0x57   :  { %v682_v41 = vand.u32 4294901760, %v681_v1  ;;  %v908_v47 = vsub.f32 %v21133_v44, %v28639_v36  ;;  %v915_v18 = vsub.f32 %v21142_v11, %v28642_v24  ;;  %v28641_v7 = vand.u32 4294901760, %v21148_v8 }
  0x58   :  { %17808 = vmatprep.subr.bf16.mxu1 %v17807_v13  ;;  %v688_v23 = vand.u32 4294901760, %v687_v33  ;;  %v17809_v34 = vpack.c.bf16 %v790_v59, %v783_v35  ;;  %v17819_v29 = vpack.c.bf16 %v20964_v26, %v20962_v25  ;;  %v28640_v52 = vand.u32 4294901760, %v21180_v54 }
  0x59   :  { %683 = vmatprep.mubr.f32.mxu0 %v682_v41  ;;  %v909_v9 = vand.u32 4294901760, %v908_v47  ;;  %v916_v1 = vand.u32 4294901760, %v915_v18  ;;  %v796_v36 = vsub.f32 %v21148_v8, %v28641_v7  ;;  %v17821_v33 = vpack.c.bf16 %v20978_v38, %v20968_v28 }
  0x5a   :  { %689 = vmatmul.mubr.f32.vlgmr.msra.gmra.mrb[0].mxu0 %v688_v23  ;;  %17810 = vmatpush3.bf16.msra.mxu1 %v17809_v34  ;;  %v803_v13 = vsub.f32 %v21180_v54, %v28640_v52  ;;  %v17823_v41 = vpack.c.bf16 %v20985_v43, %v20982_v40  ;;  %v17825_v23 = vpack.c.bf16 %v21008_v58, %v20990_v46  ;;  %v29407_v34 = vand.u32 4294901760, %v20973_v32 }
  0x5b   :  { %17818 = vmatpush3.bf16.msra.mxu0 %v17817_v3  ;;  %v17811_v59 = vpack.c.bf16 %v916_v1, %v909_v9  ;;  %v797_v35 = vand.u32 4294901760, %v796_v36  ;;  %1056 = vmatprep.mubr.f32.mxu0 %v21166_v57  ;;  %v17827_v47 = vpack.c.bf16 %v21024_v12, %v21012_v63  ;;  %v29406_v36 = vand.u32 4294901760, %v20971_v31 }
  0x5c   :  { %17820 = vmatprep.subr.bf16.mxu0 %v17819_v29  ;;  %v804_v18 = vand.u32 4294901760, %v803_v13  ;;  %v29408_v1 = vand.u32 4294901760, %v20953_v15  ;;  %v29409_v29 = vand.u32 4294901760, %v20957_v21  ;;  %v29410_v52 = vand.u32 4294901760, %v20962_v25 }
  0x5d   :  { %17812 = vmatprep.subr.bf16.mxu1 %v17811_v59  ;;  %v17879_v9 = vpack.c.bf16 %v29407_v34, %v29406_v36  ;;  %v29411_v59 = vand.u32 4294901760, %v20964_v26  ;;  %v29412_v24 = vand.u32 4294901760, %v20968_v28  ;;  %v29414_v31 = vand.u32 4294901760, %v20982_v40 }
  0x5e   :  { %v17813_v3 = vpack.c.bf16 %v804_v18, %v797_v35  ;;  %v17881_v13 = vpack.c.bf16 %v29409_v29, %v29408_v1  ;;  %v29413_v35 = vand.u32 4294901760, %v20978_v38  ;;  %v29415_v32 = vand.u32 4294901760, %v20985_v43  ;;  %v29429_v29 = vld [vmem:[#allocation16_spill] sm:$0xff] }
  0x5f   :  { %v17883_v7 = vpack.c.bf16 %v29411_v59, %v29410_v52  ;;  %17822 = vmatpush3.bf16.msra.mxu0 %v17821_v33  ;;  %v29416_v15 = vand.u32 4294901760, %v20990_v46  ;;  %v29417_v21 = vand.u32 4294901760, %v21008_v58  ;;  %v29418_v25 = vand.u32 4294901760, %v21012_v63  ;;  %v119_v59 = vld [vmem:[#allocation5 + $0x188] sm:$0xff] }
  0x60   :  { %v17885_v18 = vpack.c.bf16 %v29413_v35, %v29412_v24  ;;  %v17887_v36 = vpack.c.bf16 %v29415_v32, %v29414_v31  ;;  %v29419_v26 = vand.u32 4294901760, %v21024_v12  ;;  %17814 = vmatpush3.bf16.msra.mxu1 %v17813_v3  ;;  %17824 = vmatprep.subr.bf16.mxu0 %v17823_v41  ;;  %v29420_v28 = vand.u32 4294901760, %v21028_v17  ;;  %v102_v35 = vld [vmem:[#allocation5 + $0x100] sm:$0xff]  ;;  %v103_v31 = vld [vmem:[#allocation5 + $0x108] sm:$0xff]  ;;  %v29430_v32 = vld [vmem:[#allocation13_spill] sm:$0xff] }
  0x61   :  { %v21249_v34 = vpack.c.bf16 %v29417_v21, %v29416_v15  ;;  %v29421_v38 = vand.u32 4294901760, %v21039_v42  ;;  %v29422_v43 = vand.u32 4294901760, %v21043_v50  ;;  %v29423_v46 = vand.u32 4294901760, %v21052_v60  ;;  %17848 = vmatprep.subr.bf16.mxu1 %v20951_v14  ;;  %v29431_v15 = vld [vmem:[#allocation14_spill] sm:$0xff] }
  0x62   :  { %v21255_v52 = vpack.c.bf16 %v29419_v26, %v29418_v25  ;;  %v29424_v63 = vand.u32 4294901760, %v21058_v5  ;;  %v29425_v12 = vand.u32 4294901760, %v21069_v30  ;;  %v17829_v33 = vpack.c.bf16 %v21039_v42, %v21028_v17 }
  0x63   :  { %v21261_v40 = vpack.c.bf16 %v29421_v38, %v29420_v28  ;;  %v21267_v58 = vpack.c.bf16 %v29423_v46, %v29422_v43  ;;  %921 = vmatmul.mubr.f32.vlgmr.msra.gmra.mrb[0].mxu1 %v21163_v37  ;;  %17826 = vmatpush3.bf16.msra.mxu0 %v17825_v23  ;;  %v17831_v41 = vpack.c.bf16 %v21052_v60, %v21043_v50  ;;  %v29426_v3 = vand.u32 4294901760, %v21166_v57  ;;  %v29427_v57 = vld [vmem:[#allocation11_spill] sm:$0xff]  ;;  %v29428_v23 = vld [vmem:[#allocation12_spill] sm:$0xff] }
  0x64   :  { %v21273_v24 = vpack.c.bf16 %v29425_v12, %v29424_v63  ;;  %17850 = vmatpush3.bf16.msra.mxu1 %v20955_v20  ;;  %17828 = vmatprep.subr.bf16.mxu0 %v17827_v47  ;;  %v17833_v1 = vpack.c.bf16 %v21069_v30, %v21058_v5  ;;  %v17835_v17 = vpack.c.bf16 %v21082_v55, %v21073_v51  ;;  %v118_v47 = vld [vmem:[#allocation5 + $0x180] sm:$0xff]  ;;  %v1496_v25 = vand.u32 4294901760, %v119_v59  ;;  %v29432_v28 = vld [vmem:[#allocation15_spill] sm:$0xff]  ;;  %v120_v38 = vld [vmem:[#allocation5 + $0x190] sm:$0xff] }
  0x65   :  { %17852 = vmatprep.subr.bf16.mxu1 %v20959_v22  ;;  %1163 = vmatprep.mubr.f32.mxu1 %v29426_v3  ;;  %v17837_v42 = vpack.c.bf16 %v21099_v56, %v21088_v61  ;;  %v17839_v50 = vpack.c.bf16 %v21112_v2, %v21103_v10  ;;  %v17841_v60 = vpack.c.bf16 %v21129_v19, %v21118_v53  ;;  %v1493_v21 = vand.u32 4294901760, %v118_v47  ;;  %v104_v46 = vld [vmem:[#allocation5 + $0x110] sm:$0xff]  ;;  %v105_v63 = vld [vmem:[#allocation5 + $0x118] sm:$0xff] }
  0x66   :  { %v17843_v5 = vpack.c.bf16 %v21142_v11, %v21133_v44  ;;  %v17845_v30 = vpack.c.bf16 %v21180_v54, %v21148_v8  ;;  %v1445_v26 = vand.u32 4294901760, %v102_v35  ;;  %v21317_v12 = vsub.f32 %v119_v59, %v1496_v25 }
  0x67   :  { %17830 = vmatpush3.bf16.msra.mxu0 %v17829_v33  ;;  %v21315_v43 = vsub.f32 %v118_v47, %v1493_v21 }
  0x68   :  { %17854 = vmatpush3.bf16.msra.mxu1 %v20966_v27  ;;  %17832 = vmatprep.subr.bf16.mxu0 %v17831_v41  ;;  %v1499_v41 = vand.u32 4294901760, %v120_v38  ;;  %v28652_v59 = vand.u32 4294901760, %v21317_v12 }
  0x69   :  { %17856 = vmatprep.subr.bf16.mxu1 %v20980_v39 }
  0x6b   :  { %17834 = vmatpush3.bf16.msra.mxu0 %v17833_v1  ;;  %v29435_v1 = vand.u32 4294901760, %v21088_v61 }
  0x6c   :  { %17858 = vmatpush3.bf16.msra.mxu1 %v20988_v45  ;;  %17836 = vmatprep.subr.bf16.mxu0 %v17835_v17  ;;  %v29436_v17 = vand.u32 4294901760, %v21099_v56  ;;  %v29441_v56 = vand.u32 4294901760, %v21133_v44  ;;  %v106_v44 = vld [vmem:[#allocation5 + $0x120] sm:$0xff] }
  0x6d   :  { %17860 = vmatprep.subr.bf16.mxu1 %v21010_v62 }
  0x6f   :  { %17838 = vmatpush3.bf16.msra.mxu0 %v17837_v42  ;;  %v17901_v42 = vpack.c.bf16 %v29436_v17, %v29435_v1  ;;  %v124_v17 = vld [vmem:[#allocation5 + $0x1b0] sm:$0xff] }
  0x70   :  { %17862 = vmatpush3.bf16.msra.mxu1 %v21026_v16  ;;  %17840 = vmatprep.subr.bf16.mxu0 %v17839_v50  ;;  %v122_v50 = vld [vmem:[#allocation5 + $0x1a0] sm:$0xff] }
  0x71   :  { %17864 = vmatprep.subr.bf16.mxu1 %v21041_v49 }
  0x73   :  { %17842 = vmatpush3.bf16.msra.mxu0 %v17841_v60  ;;  %v123_v60 = vld [vmem:[#allocation5 + $0x1a8] sm:$0xff] }
  0x74   :  { %17866 = vmatpush3.bf16.msra.mxu1 %v21056_v4  ;;  %17844 = vmatprep.subr.bf16.mxu0 %v17843_v5 }
  0x75   :  { %17868 = vmatprep.subr.bf16.mxu1 %v21071_v48 }
  0x77   :  { %17846 = vmatpush3.bf16.msra.mxu0 %v17845_v30  ;;  %v29444_v30 = vand.u32 4294901760, %v21180_v54 }
  0x78   :  { %17870 = vmatpush3.bf16.msra.mxu1 %v29427_v57  ;;  %17880 = vmatprep.subr.bf16.mxu0 %v17879_v9  ;;  %v1448_v9 = vand.u32 4294901760, %v103_v31 }
  0x79   :  { %17872 = vmatprep.subr.bf16.mxu1 %v29428_v23 }
  0x7a   :  { %1059 = vmatmul.mubr.f32.vlgmr.msra.gmra.mrb[2].mxu0 %v21176_v0  ;;  %v21321_v33 = vsub.f32 %v103_v31, %v1448_v9  ;;  %v29437_v0 = vand.u32 4294901760, %v21103_v10  ;;  %v29442_v10 = vand.u32 4294901760, %v21142_v11 }
  0x7b   :  { %17882 = vmatpush3.bf16.msra.mxu0 %v17881_v13  ;;  %1333 = vmatprep.mubr.f32.mxu0 %v29429_v29  ;;  %v121_v13 = vld [vmem:[#allocation5 + $0x198] sm:$0xff] }
  0x7c   :  { %17874 = vmatpush3.bf16.msra.mxu1 %v29430_v32  ;;  %17884 = vmatprep.subr.bf16.mxu0 %v17883_v7  ;;  %v21319_v7 = vsub.f32 %v102_v35, %v1445_v26  ;;  %v1502_v3 = vand.u32 4294901760, %v121_v13  ;;  %v21353_v5 = vpack.c.bf16 %v29442_v10, %v29441_v56  ;;  %v107_v35 = vld [vmem:[#allocation5 + $0x128] sm:$0xff]  ;;  %v28643_v31 = vand.u32 4294901760, %v21321_v33 }
  0x7d   :  { %17876 = vmatprep.subr.bf16.mxu1 %v29431_v15 }
  0x7e   :  { %v28649_v11 = vand.u32 4294901760, %v21319_v7  ;;  %v21371_v54 = vpack.c.bf16 %v1502_v3, %v1499_v41 }
  0x7f   :  { %17886 = vmatpush3.bf16.msra.mxu0 %v17885_v18  ;;  %v29433_v18 = vand.u32 4294901760, %v21073_v51  ;;  %v1451_v51 = vand.u32 4294901760, %v104_v46 }
  0x80   :  { %17878 = vmatpush3.bf16.msra.mxu1 %v29432_v28  ;;  %17888 = vmatprep.subr.bf16.mxu0 %v17887_v36  ;;  %v29434_v36 = vand.u32 4294901760, %v21082_v55  ;;  %v1454_v55 = vand.u32 4294901760, %v105_v63  ;;  %29446 = vst [vmem:[#allocation12_spill] sm:$0xff] %v21371_v54 }
  0x81   :  { %17912 = vmatprep.subr.bf16.mxu1 %v20951_v14 }
  0x82   :  { %v17899_v14 = vpack.c.bf16 %v29434_v36, %v29433_v18  ;;  %v1508_v18 = vand.u32 4294901760, %v123_v60  ;;  %v21379_v36 = vpack.c.bf16 %v1454_v55, %v1451_v51 }
  0x83   :  { %1167 = vmatmul.mubr.f32.vlgmr.msra.gmra.mrb[2].mxu1 %v686_v6  ;;  %17890 = vmatpush3.bf16.msra.mxu0 %v21249_v34  ;;  %v29438_v6 = vand.u32 4294901760, %v21112_v2  ;;  %v29443_v2 = vand.u32 4294901760, %v21148_v8  ;;  %v21369_v8 = vpack.c.bf16 %v1448_v9, %v1445_v26  ;;  %v1457_v9 = vand.u32 4294901760, %v106_v44 }
  0x84   :  { %17914 = vmatpush3.bf16.msra.mxu1 %v20955_v20  ;;  %17892 = vmatprep.subr.bf16.mxu0 %v21255_v52  ;;  %v29439_v20 = vand.u32 4294901760, %v21118_v53  ;;  %v29440_v52 = vand.u32 4294901760, %v21129_v19  ;;  %v41_v53 = vld [vmem:[#allocation2 + $0x18] sm:$0xff]  ;;  %v21363_v19 = vpack.c.bf16 %v1496_v25, %v1493_v21  ;;  %v21375_v21 = vsub.f32 %v120_v38, %v1499_v41  ;;  %29447 = vst [vmem:[#allocation16_spill] sm:$0xff] %v21379_v36 }
  0x85   :  { %v21340_v34 = vpack.c.bf16 %v29438_v6, %v29437_v0  ;;  %17916 = vmatprep.subr.bf16.mxu1 %v20959_v22  ;;  %v21359_v47 = vpack.c.bf16 %v29444_v30, %v29443_v2  ;;  %1437 = vmatprep.mubr.f32.mxu1 %v29429_v29  ;;  %v28653_v22 = vand.u32 4294901760, %v21315_v43  ;;  %29445 = vst [vmem:[#allocation11_spill] sm:$0xff] %v21369_v8  ;;  %v1505_v29 = vand.u32 4294901760, %v122_v50 }
  0x86   :  { %v21347_v61 = vpack.c.bf16 %v29440_v52, %v29439_v20  ;;  %v21377_v25 = vsub.f32 %v121_v13, %v1502_v3  ;;  %v21381_v1 = vand.u32 4294901760, %v41_v53  ;;  %v21389_v38 = vsub.f32 %v105_v63, %v1454_v55  ;;  %v108_v52 = vld [vmem:[#allocation5 + $0x130] sm:$0xff] }
  0x87   :  { %17894 = vmatpush3.bf16.msra.mxu0 %v21261_v40  ;;  %v21384_v40 = vsub.f32 %v104_v46, %v1451_v51  ;;  %v1672_v26 = vsub.f32 %v21315_v43, %v28653_v22  ;;  %v1679_v13 = vsub.f32 %v21317_v12, %v28652_v59  ;;  %v1567_v46 = vsub.f32 %v21321_v33, %v28643_v31  ;;  %v126_v31 = vld [vmem:[#allocation5 + $0x1c0] sm:$0xff]  ;;  %v113_v22 = vld [vmem:[#allocation5 + $0x158] sm:$0xff] }
  0x88   :  { %17918 = vmatpush3.bf16.msra.mxu1 %v20966_v27  ;;  %17896 = vmatprep.subr.bf16.mxu0 %v21267_v58  ;;  %29448 = vst [vmem:[#allocation13_spill] sm:$0xff] %v21381_v1  ;;  %v1460_v27 = vand.u32 4294901760, %v107_v35  ;;  %v125_v58 = vld [vmem:[#allocation5 + $0x1b8] sm:$0xff]  ;;  %v21401_v41 = vpack.c.bf16 %v1508_v18, %v1505_v29  ;;  %v21403_v3 = vsub.f32 %v122_v50, %v1505_v29  ;;  %v1511_v6 = vand.u32 4294901760, %v124_v17 }
  0x89   :  { %17920 = vmatprep.subr.bf16.mxu1 %v20980_v39  ;;  %v1560_v39 = vsub.f32 %v21319_v7, %v28649_v11  ;;  %v21405_v63 = vsub.f32 %v123_v60, %v1508_v18  ;;  %v21408_v0 = vsub.f32 %v41_v53, %v21381_v1  ;;  %v1514_v51 = vand.u32 4294901760, %v125_v58 }
  0x8a   :  { %29449 = vst [vmem:[#allocation14_spill] sm:$0xff] %v21401_v41  ;;  %v28647_v55 = vand.u32 4294901760, %v21375_v21  ;;  %v28644_v20 = vand.u32 4294901760, %v21377_v25  ;;  %v1673_v50 = vand.u32 4294901760, %v1672_v26  ;;  %v21414_v56 = vpack.c.bf16 %v1460_v27, %v1457_v9 }
  0x8b   :  { %17898 = vmatpush3.bf16.msra.mxu0 %v21273_v24  ;;  %v109_v24 = vld [vmem:[#allocation5 + $0x138] sm:$0xff]  ;;  %v21416_v60 = vsub.f32 %v106_v44, %v1457_v9  ;;  %v21418_v10 = vsub.f32 %v107_v35, %v1460_v27  ;;  %v1680_v2 = vand.u32 4294901760, %v1679_v13  ;;  %v28646_v30 = vand.u32 4294901760, %v21384_v40  ;;  %v127_v27 = vld [vmem:[#allocation5 + $0x1c8] sm:$0xff] }
  0x8c   :  { %17922 = vmatpush3.bf16.msra.mxu1 %v20988_v45  ;;  %17900 = vmatprep.subr.bf16.mxu0 %v17899_v14  ;;  %29450 = vst [vmem:[#allocation15_spill] sm:$0xff] %v21414_v56  ;;  %v1561_v45 = vand.u32 4294901760, %v1560_v39  ;;  %v1568_v14 = vand.u32 4294901760, %v1567_v46  ;;  %v1463_v53 = vand.u32 4294901760, %v108_v52  ;;  %v1466_v29 = vand.u32 4294901760, %v109_v24 }
  0x8d   :  { %17924 = vmatprep.subr.bf16.mxu1 %v21010_v62  ;;  %v28645_v18 = vand.u32 4294901760, %v21389_v38  ;;  %v28656_v62 = vand.u32 4294901760, %v21408_v0  ;;  %v21425_v44 = vpack.c.bf16 %v1514_v51, %v1511_v6  ;;  %v1686_v35 = vsub.f32 %v21375_v21, %v28647_v55 }
  0x8e   :  { %v21434_v26 = vsub.f32 %v124_v17, %v1511_v6  ;;  %v21436_v9 = vsub.f32 %v125_v58, %v1514_v51  ;;  %v21440_v13 = vpack.c.bf16 %v1680_v2, %v1673_v50  ;;  %v21442_v39 = vpack.c.bf16 %v1568_v14, %v1561_v45 }
  0x8f   :  { %17902 = vmatpush3.bf16.msra.mxu0 %v17901_v42  ;;  %29451 = vst [vmem:[#allocation17_spill] sm:$0xff] %v21425_v44  ;;  %v1693_v42 = vsub.f32 %v21377_v25, %v28644_v20  ;;  %v1574_v46 = vsub.f32 %v21384_v40, %v28646_v30  ;;  %v1517_v20 = vand.u32 4294901760, %v126_v31  ;;  %v1581_v17 = vsub.f32 %v21389_v38, %v28645_v18 }
  0x90   :  { %17926 = vmatpush3.bf16.msra.mxu1 %v21026_v16  ;;  %17904 = vmatprep.subr.bf16.mxu0 %v21340_v34  ;;  %v28648_v16 = vand.u32 4294901760, %v21403_v3  ;;  %v28651_v34 = vand.u32 4294901760, %v21405_v63  ;;  %v28650_v58 = vand.u32 4294901760, %v21416_v60  ;;  %v1543_v6 = vsub.f32 %v21408_v0, %v28656_v62 }
  0x91   :  { %17928 = vmatprep.subr.bf16.mxu1 %v21041_v49  ;;  %v21448_v49 = vpack.c.bf16 %v1466_v29, %v1463_v53  ;;  %v1687_v51 = vand.u32 4294901760, %v1686_v35  ;;  %v1694_v50 = vand.u32 4294901760, %v1693_v42  ;;  %v1520_v2 = vand.u32 4294901760, %v127_v27  ;;  %v111_v42 = vld [vmem:[#allocation5 + $0x148] sm:$0xff] }
  0x92   :  { %v28655_v45 = vand.u32 4294901760, %v21418_v10  ;;  %v21461_v14 = vsub.f32 %v108_v52, %v1463_v53  ;;  %v21463_v18 = vsub.f32 %v109_v24, %v1466_v29  ;;  %v1700_v30 = vsub.f32 %v21403_v3, %v28648_v16  ;;  %v128_v29 = vld [vmem:[#allocation5 + $0x1d0] sm:$0xff]  ;;  %v129_v16 = vld [vmem:[#allocation5 + $0x1d8] sm:$0xff] }
  0x93   :  { %17906 = vmatpush3.bf16.msra.mxu0 %v21347_v61  ;;  %29452 = vst [vmem:[#allocation18_spill] sm:$0xff] %v21448_v49  ;;  %v110_v61 = vld [vmem:[#allocation5 + $0x140] sm:$0xff]  ;;  %v21471_v35 = vsub.f32 %v126_v31, %v1517_v20  ;;  %v28654_v55 = vand.u32 4294901760, %v21434_v26  ;;  %v1582_v52 = vand.u32 4294901760, %v1581_v17  ;;  %v1588_v53 = vsub.f32 %v21416_v60, %v28650_v58 }
  0x94   :  { %17930 = vmatpush3.bf16.msra.mxu1 %v21056_v4  ;;  %17908 = vmatprep.subr.bf16.mxu0 %v21353_v5  ;;  %v1707_v4 = vsub.f32 %v21405_v63, %v28651_v34  ;;  %v1575_v5 = vand.u32 4294901760, %v1574_v46  ;;  %v1469_v24 = vand.u32 4294901760, %v110_v61  ;;  %v1544_v11 = vand.u32 4294901760, %v1543_v6  ;;  %v112_v6 = vld [vmem:[#allocation5 + $0x150] sm:$0xff] }
  0x95   :  { %17932 = vmatprep.subr.bf16.mxu1 %v21071_v48  ;;  %v28657_v48 = vand.u32 4294901760, %v21436_v9  ;;  %v21481_v31 = vpack.c.bf16 %v1694_v50, %v1687_v51  ;;  %v21483_v46 = vpack.c.bf16 %v1520_v2, %v1517_v20  ;;  %v21489_v17 = vsub.f32 %v127_v27, %v1520_v2 }
  0x96   :  { %v1701_v58 = vand.u32 4294901760, %v1700_v30  ;;  %v1708_v34 = vand.u32 4294901760, %v1707_v4  ;;  %v1472_v59 = vand.u32 4294901760, %v111_v42  ;;  %v1526_v51 = vand.u32 4294901760, %v129_v16 }
  0x97   :  { %17910 = vmatpush3.bf16.msra.mxu0 %v21359_v47  ;;  %29453 = vst [vmem:[#allocation19_spill] sm:$0xff] %v21483_v46  ;;  %v1595_v47 = vsub.f32 %v21418_v10, %v28655_v45  ;;  %v1714_v20 = vsub.f32 %v21434_v26, %v28654_v55  ;;  %v1721_v50 = vsub.f32 %v21436_v9, %v28657_v48  ;;  %v1589_v27 = vand.u32 4294901760, %v1588_v53  ;;  %v130_v48 = vld [vmem:[#allocation5 + $0x1e0] sm:$0xff]  ;;  %v131_v53 = vld [vmem:[#allocation5 + $0x1e8] sm:$0xff] }
  0x98   :  { %17934 = vmatpush3.bf16.msra.mxu1 %v29427_v57  ;;  %17944 = vmatprep.subr.bf16.mxu0 %v21363_v19  ;;  %v1523_v57 = vand.u32 4294901760, %v128_v29  ;;  %v21501_v30 = vsub.f32 %v110_v61, %v1469_v24  ;;  %v1475_v55 = vand.u32 4294901760, %v112_v6  ;;  %v1478_v45 = vand.u32 4294901760, %v113_v22 }
  0x99   :  { %17936 = vmatprep.subr.bf16.mxu1 %v29428_v23  ;;  %v21499_v23 = vpack.c.bf16 %v1582_v52, %v1575_v5  ;;  %v1596_v4 = vand.u32 4294901760, %v1595_v47  ;;  %v28662_v62 = vand.u32 4294901760, %v21463_v18  ;;  %v21508_v5 = vpack.c.bf16 %v1708_v34, %v1701_v58 }
  0x9a   :  { %1335 = vmatmul.mubr.f32.vlgmr.msra.gmra.mrb[4].mxu0 %v21163_v37  ;;  %v21510_v61 = vpack.c.bf16 %v1472_v59, %v1469_v24  ;;  %v21512_v52 = vsub.f32 %v111_v42, %v1472_v59  ;;  %v1715_v2 = vand.u32 4294901760, %v1714_v20  ;;  %v1722_v47 = vand.u32 4294901760, %v1721_v50  ;;  %v21545_v50 = vld [vmem:[#allocation5 + $0x168] sm:$0xff] }
  0x9b   :  { %17946 = vmatpush3.bf16.msra.mxu0 %v21369_v8  ;;  %1545 = vmatprep.mubr.f32.mxu0 %v1544_v11  ;;  %v28664_v11 = vand.u32 4294901760, %v21471_v35  ;;  %v21518_v8 = vld [vmem:[#allocation5 + $0x160] sm:$0xff]  ;;  %v21523_v34 = vsub.f32 %v129_v16, %v1526_v51  ;;  %v29457_v59 = vand.u32 4294901760, %v21461_v14  ;;  %v1529_v42 = vand.u32 4294901760, %v130_v48 }
  0x9c   :  { %17938 = vmatpush3.bf16.msra.mxu1 %v29430_v32  ;;  %17948 = vmatprep.subr.bf16.mxu0 %v21371_v54  ;;  %v21515_v32 = vpack.c.bf16 %v1526_v51, %v1523_v57  ;;  %v28663_v54 = vand.u32 4294901760, %v21489_v17  ;;  %v21530_v24 = vpack.c.bf16 %v1596_v4, %v1589_v27  ;;  %v21532_v20 = vpack.c.bf16 %v1478_v45, %v1475_v55 }
  0x9d   :  { %17940 = vmatprep.subr.bf16.mxu1 %v29431_v15  ;;  %v21521_v15 = vsub.f32 %v128_v29, %v1523_v57  ;;  %29456 = vst [vmem:[#allocation22_spill] sm:$0xff] %v21523_v34  ;;  %v1602_v58 = vsub.f32 %v21461_v14, %v29457_v59  ;;  %v1609_v29 = vsub.f32 %v21463_v18, %v28662_v62  ;;  %v1532_v57 = vand.u32 4294901760, %v131_v53 }
  0x9e   :  { %29454 = vst [vmem:[#allocation20_spill] sm:$0xff] %v21515_v32  ;;  %v21538_v16 = vsub.f32 %v112_v6, %v1475_v55  ;;  %v21540_v51 = vsub.f32 %v113_v22, %v1478_v45  ;;  %v28665_v27 = vand.u32 4294901760, %v21518_v8  ;;  %v17987_v4 = vpack.c.bf16 %v1722_v47, %v1715_v2  ;;  %v21555_v22 = vld [vmem:[#allocation5 + $0x1f8] sm:$0xff]  ;;  %v21578_v2 = vld [vmem:[#allocation5 + $0x170] sm:$0xff] }
  0x9f   :  { %17950 = vmatpush3.bf16.msra.mxu0 %v21379_v36  ;;  %29455 = vst [vmem:[#allocation21_spill] sm:$0xff] %v21521_v15  ;;  %v1735_v59 = vsub.f32 %v21489_v17, %v28663_v54  ;;  %v1603_v45 = vand.u32 4294901760, %v1602_v58  ;;  %v21559_v6 = vsub.f32 %v130_v48, %v1529_v42  ;;  %v40_v54 = vld [vmem:[#allocation2 + $0x10] sm:$0xff]  ;;  %v21565_v55 = vpack.c.bf16 %v1532_v57, %v1529_v42  ;;  %v21580_v42 = vld [vmem:[#allocation5 + $0x178] sm:$0xff] }
  0xa0   :  { %17942 = vmatpush3.bf16.msra.mxu1 %v29432_v28  ;;  %17952 = vmatprep.subr.bf16.mxu0 %v21401_v41  ;;  %v1728_v28 = vsub.f32 %v21471_v35, %v28664_v11  ;;  %v1610_v11 = vand.u32 4294901760, %v1609_v29  ;;  %v21567_v62 = vsub.f32 %v131_v53, %v1532_v57  ;;  %v21574_v58 = vsub.f32 %v21518_v8, %v28665_v27 }
  0xa1   :  { %17976 = vmatprep.subr.bf16.mxu1 %v21440_v13  ;;  %v21553_v13 = vld [vmem:[#allocation5 + $0x1f0] sm:$0xff]  ;;  %v1736_v53 = vand.u32 4294901760, %v1735_v59  ;;  %v29458_v29 = vand.u32 4294901760, %v21501_v30  ;;  %v29459_v57 = vand.u32 4294901760, %v21512_v52  ;;  %v21589_v27 = vand.u32 4294901760, %v40_v54 }
  0xa2   :  { %v1729_v48 = vand.u32 4294901760, %v1728_v28  ;;  %v1535_v47 = vand.u32 4294901760, %v21553_v13  ;;  %v29461_v41 = vand.u32 4294901760, %v21523_v34 }
  0xa3   :  { %1439 = vmatmul.mubr.f32.vlgmr.msra.gmra.mrb[4].mxu1 %v21163_v37  ;;  %17954 = vmatpush3.bf16.msra.mxu0 %v21414_v56  ;;  %v1484_v37 = vand.u32 4294901760, %v21545_v50  ;;  %v1623_v28 = vsub.f32 %v21512_v52, %v29459_v57  ;;  %v17989_v57 = vpack.c.bf16 %v1610_v11, %v1603_v45 }
  0xa4   :  { %17978 = vmatpush3.bf16.msra.mxu1 %v21442_v39  ;;  %17956 = vmatprep.subr.bf16.mxu0 %v21425_v44  ;;  %v1538_v39 = vand.u32 4294901760, %v21555_v22  ;;  %v29460_v44 = vand.u32 4294901760, %v21521_v15  ;;  %v1749_v59 = vsub.f32 %v21523_v34, %v29461_v41  ;;  %v21609_v41 = vsub.f32 %v21553_v13, %v1535_v47 }
  0xa5   :  { %17980 = vmatprep.subr.bf16.mxu1 %v21481_v31  ;;  %1781 = vmatprep.mubr.f32.mxu1 %v21381_v1  ;;  %v1616_v31 = vsub.f32 %v21501_v30, %v29458_v29  ;;  %v21603_v36 = vsub.f32 %v21545_v50, %v1484_v37  ;;  %v28686_v29 = vand.u32 4294901760, %v21567_v62  ;;  %v17991_v11 = vpack.c.bf16 %v1736_v53, %v1729_v48 }
  0xa6   :  { %v1742_v56 = vsub.f32 %v21521_v15, %v29460_v44  ;;  %v1490_v44 = vand.u32 4294901760, %v21580_v42  ;;  %v21612_v1 = vsub.f32 %v21555_v22, %v1538_v39  ;;  %v1624_v50 = vand.u32 4294901760, %v1623_v28 }
  0xa7   :  { %17958 = vmatpush3.bf16.msra.mxu0 %v21448_v49  ;;  %v1487_v49 = vand.u32 4294901760, %v21578_v2  ;;  %v1617_v45 = vand.u32 4294901760, %v1616_v31  ;;  %v29462_v13 = vand.u32 4294901760, %v21538_v16  ;;  %v29463_v22 = vand.u32 4294901760, %v21540_v51 }
  0xa8   :  { %17982 = vmatpush3.bf16.msra.mxu1 %v21499_v23  ;;  %17960 = vmatprep.subr.bf16.mxu0 %v21483_v46  ;;  %v21617_v46 = vsub.f32 %v40_v54, %v21589_v27  ;;  %v1743_v34 = vand.u32 4294901760, %v1742_v56  ;;  %v21632_v54 = vsub.f32 %v21580_v42, %v1490_v44  ;;  %v29464_v31 = vand.u32 4294901760, %v21559_v6 }
  0xa9   :  { %17984 = vmatprep.subr.bf16.mxu1 %v21508_v5  ;;  %v1750_v5 = vand.u32 4294901760, %v1749_v59  ;;  %v1630_v15 = vsub.f32 %v21538_v16, %v29462_v13  ;;  %v1637_v23 = vsub.f32 %v21540_v51, %v29463_v22  ;;  %v21629_v48 = vsub.f32 %v21578_v2, %v1487_v49 }
  0xaa   :  { %v1756_v28 = vsub.f32 %v21559_v6, %v29464_v31  ;;  %v1769_v59 = vand.u32 4294901760, %v21609_v41  ;;  %v29465_v42 = vand.u32 4294901760, %v21518_v8  ;;  %v21648_v22 = vpack.c.bf16 %v1538_v39, %v1535_v47 }
  0xab   :  { %17962 = vmatpush3.bf16.msra.mxu0 %v21510_v61  ;;  %v17993_v53 = vpack.c.bf16 %v1624_v50, %v1617_v45  ;;  %v17995_v31 = vpack.c.bf16 %v1750_v5, %v1743_v34  ;;  %v1631_v56 = vand.u32 4294901760, %v1630_v15  ;;  %v29467_v8 = vand.u32 4294901760, %v21603_v36 }
  0xac   :  { %17986 = vmatpush3.bf16.msra.mxu1 %v21530_v24  ;;  %17964 = vmatprep.subr.bf16.mxu0 %v21515_v32  ;;  %v1763_v24 = vsub.f32 %v21567_v62, %v28686_v29  ;;  %v21646_v13 = vpack.c.bf16 %v1484_v37, %v29465_v42  ;;  %v1638_v32 = vand.u32 4294901760, %v1637_v23  ;;  %v29466_v29 = vand.u32 4294901760, %v21574_v58 }
  0xad   :  { %17988 = vmatprep.subr.bf16.mxu1 %v17987_v4  ;;  %v1548_v4 = vand.u32 4294901760, %v21617_v46  ;;  %v1651_v47 = vsub.f32 %v21603_v36, %v29467_v8  ;;  %v28687_v37 = vand.u32 4294901760, %v21629_v48  ;;  %v28688_v39 = vand.u32 4294901760, %v21632_v54 }
  0xae   :  { %v1644_v2 = vsub.f32 %v21574_v58, %v29466_v29  ;;  %v1757_v45 = vand.u32 4294901760, %v1756_v28  ;;  %v1764_v34 = vand.u32 4294901760, %v1763_v24  ;;  %v1770_v15 = vsub.f32 %v21609_v41, %v1769_v59 }
  0xaf   :  { %17966 = vmatpush3.bf16.msra.mxu0 %v21532_v20  ;;  %v1549_v29 = vsub.f32 %v21617_v46, %v1548_v4  ;;  %v21671_v50 = vpack.c.bf16 %v1490_v44, %v1487_v49  ;;  %v17997_v5 = vpack.c.bf16 %v1638_v32, %v1631_v56  ;;  %v1652_v24 = vand.u32 4294901760, %v1651_v47 }
  0xb0   :  { %17990 = vmatpush3.bf16.msra.mxu1 %v17989_v57  ;;  %17968 = vmatprep.subr.bf16.mxu0 %v21565_v55  ;;  %v29468_v57 = vand.u32 4294901760, %v21612_v1  ;;  %v1645_v28 = vand.u32 4294901760, %v1644_v2  ;;  %v1658_v42 = vsub.f32 %v21629_v48, %v28687_v37  ;;  %v1665_v8 = vsub.f32 %v21632_v54, %v28688_v39 }
  0xb1   :  { %17992 = vmatprep.subr.bf16.mxu1 %v17991_v11  ;;  %v18007_v11 = vpack.c.bf16 %v21317_v12, %v21315_v43  ;;  %v17999_v49 = vpack.c.bf16 %v1764_v34, %v1757_v45  ;;  %v1771_v44 = vand.u32 4294901760, %v1770_v15  ;;  %v1550_v56 = vand.u32 4294901760, %v1549_v29  ;;  %v29469_v29 = vld [vmem:[#allocation11_spill] sm:$0xff] }
  0xb2   :  { %v1777_v23 = vsub.f32 %v21612_v1, %v29468_v57  ;;  %v18001_v2 = vpack.c.bf16 %v1652_v24, %v1645_v28  ;;  %v18011_v47 = vpack.c.bf16 %v21377_v25, %v21375_v21  ;;  %v1659_v57 = vand.u32 4294901760, %v1658_v42  ;;  %v29472_v24 = vld [vmem:[#allocation16_spill] sm:$0xff]  ;;  %v29473_v42 = vld [vmem:[#allocation21_spill] sm:$0xff] }
  0xb3   :  { %17970 = vmatpush3.bf16.msra.mxu0 %v21646_v13  ;;  %v1666_v37 = vand.u32 4294901760, %v1665_v8  ;;  %v18015_v34 = vpack.c.bf16 %v21405_v63, %v21403_v3  ;;  %v18017_v15 = vpack.c.bf16 %v21418_v10, %v21416_v60  ;;  %v18025_v28 = vpack.c.bf16 %v21512_v52, %v21501_v30  ;;  %v29474_v8 = vld [vmem:[#allocation22_spill] sm:$0xff] }
  0xb4   :  { %17994 = vmatpush3.bf16.msra.mxu1 %v17993_v53  ;;  %17972 = vmatprep.subr.bf16.mxu0 %v21648_v22  ;;  %v1778_v32 = vand.u32 4294901760, %v1777_v23  ;;  %v18009_v53 = vpack.c.bf16 %v21321_v33, %v21319_v7  ;;  %v18019_v23 = vpack.c.bf16 %v21436_v9, %v21434_v26 }
  0xb5   :  { %17996 = vmatprep.subr.bf16.mxu1 %v17995_v31  ;;  %v18013_v31 = vpack.c.bf16 %v21389_v38, %v21384_v40  ;;  %v18005_v45 = vpack.c.bf16 %v1666_v37, %v1659_v57  ;;  %v18021_v37 = vpack.c.bf16 %v21463_v18, %v21461_v14  ;;  %v18035_v57 = vpack.c.bf16 %v21612_v1, %v21609_v41 }
  0xb6   :  { %v18003_v39 = vpack.c.bf16 %v1778_v32, %v1771_v44  ;;  %v29475_v44 = vld [vmem:[#allocation14_spill] sm:$0xff]  ;;  %v18029_v32 = vpack.c.bf16 %v21540_v51, %v21538_v16 }
  0xb7   :  { %17974 = vmatpush3.bf16.msra.mxu0 %v21671_v50 }
  0xb8   :  { %17998 = vmatpush3.bf16.msra.mxu1 %v17997_v5  ;;  %18008 = vmatprep.subr.bf16.mxu0 %v18007_v11  ;;  %v29470_v5 = vld [vmem:[#allocation12_spill] sm:$0xff]  ;;  %v29471_v11 = vand.u32 4294901760, %v21408_v0 }
  0xb9   :  { %18000 = vmatprep.subr.bf16.mxu1 %v17999_v49  ;;  %v18027_v49 = vpack.c.bf16 %v29474_v8, %v29473_v42 }
  0xba   :  { %1551 = vmatmul.mubr.f32.vlgmr.msra.gmra.mrb[6].mxu0 %v1550_v56  ;;  %v29476_v56 = vld [vmem:[#allocation15_spill] sm:$0xff] }
  0xbb   :  { %18010 = vmatpush3.bf16.msra.mxu0 %v18009_v53  ;;  %1918 = vmatprep.mubr.f32.mxu0 %v21408_v0  ;;  %v18031_v0 = vpack.c.bf16 %v21567_v62, %v21559_v6  ;;  %v29477_v53 = vld [vmem:[#allocation17_spill] sm:$0xff] }
  0xbc   :  { %18002 = vmatpush3.bf16.msra.mxu1 %v18001_v2  ;;  %18012 = vmatprep.subr.bf16.mxu0 %v18011_v47  ;;  %v18033_v2 = vpack.c.bf16 %v21603_v36, %v21574_v58  ;;  %v29478_v47 = vld [vmem:[#allocation18_spill] sm:$0xff] }
  0xbd   :  { %18004 = vmatprep.subr.bf16.mxu1 %v18003_v39  ;;  %v18023_v39 = vpack.c.bf16 %v21489_v17, %v21471_v35 }
  0xbf   :  { %18014 = vmatpush3.bf16.msra.mxu0 %v18013_v31  ;;  %v29479_v31 = vld [vmem:[#allocation19_spill] sm:$0xff] }
  0xc0   :  { %18006 = vmatpush3.bf16.msra.mxu1 %v18005_v45  ;;  %18016 = vmatprep.subr.bf16.mxu0 %v18015_v34  ;;  %v18037_v45 = vpack.c.bf16 %v21632_v54, %v21629_v48  ;;  %v29480_v34 = vand.u32 4294901760, %v21315_v43  ;;  %v150_v43 = vld [vmem:[#allocation5 + $0x280] sm:$0xff] }
  0xc1   :  { %18040 = vmatprep.subr.bf16.mxu1 %v21363_v19 }
  0xc3   :  { %1783 = vmatmul.mubr.f32.vlgmr.msra.gmra.mrb[6].mxu1 %v21589_v27  ;;  %18018 = vmatpush3.bf16.msra.mxu0 %v18017_v15  ;;  %v29481_v15 = vand.u32 4294901760, %v21317_v12  ;;  %v29487_v12 = vand.u32 4294901760, %v21384_v40  ;;  %v29492_v40 = vand.u32 4294901760, %v21416_v60  ;;  %v29496_v60 = vand.u32 4294901760, %v21461_v14 }
  0xc4   :  { %18042 = vmatpush3.bf16.msra.mxu1 %v29469_v29  ;;  %18020 = vmatprep.subr.bf16.mxu0 %v18019_v23  ;;  %v29503_v14 = vand.u32 4294901760, %v29474_v8 }
  0xc5   :  { %18044 = vmatprep.subr.bf16.mxu1 %v29470_v5  ;;  %2025 = vmatprep.mubr.f32.mxu1 %v29471_v11  ;;  %v18071_v23 = vpack.c.bf16 %v29481_v15, %v29480_v34  ;;  %v29484_v11 = vand.u32 4294901760, %v21321_v33  ;;  %v2355_v34 = vand.u32 4294901760, %v150_v43  ;;  %v134_v15 = vld [vmem:[#allocation5 + $0x200] sm:$0xff] }
  0xc7   :  { %18022 = vmatpush3.bf16.msra.mxu0 %v18021_v37  ;;  %v29482_v37 = vld [vmem:[#allocation20_spill] sm:$0xff] }
  0xc8   :  { %18046 = vmatpush3.bf16.msra.mxu1 %v29472_v24  ;;  %18024 = vmatprep.subr.bf16.mxu0 %v18023_v39  ;;  %v29483_v39 = vand.u32 4294901760, %v21319_v7  ;;  %v29488_v7 = vand.u32 4294901760, %v21389_v38  ;;  %v29493_v38 = vand.u32 4294901760, %v21418_v10  ;;  %v29497_v10 = vand.u32 4294901760, %v21463_v18 }
  0xc9   :  { %18048 = vmatprep.subr.bf16.mxu1 %v29475_v44 }
  0xca   :  { %v18077_v33 = vpack.c.bf16 %v29488_v7, %v29487_v12  ;;  %v18085_v7 = vpack.c.bf16 %v29497_v10, %v29496_v60  ;;  %v155_v10 = vld [vmem:[#allocation5 + $0x2a8] sm:$0xff] }
  0xcb   :  { %18026 = vmatpush3.bf16.msra.mxu0 %v18025_v28  ;;  %v18073_v28 = vpack.c.bf16 %v29484_v11, %v29483_v39  ;;  %v18081_v39 = vpack.c.bf16 %v29493_v38, %v29492_v40  ;;  %v137_v40 = vld [vmem:[#allocation5 + $0x218] sm:$0xff]  ;;  %v29501_v38 = vand.u32 4294901760, %v21512_v52  ;;  %v29506_v52 = vand.u32 4294901760, %v21559_v6 }
  0xcc   :  { %18050 = vmatpush3.bf16.msra.mxu1 %v29476_v56  ;;  %18028 = vmatprep.subr.bf16.mxu0 %v18027_v49  ;;  %v29485_v49 = vand.u32 4294901760, %v21375_v21  ;;  %v29490_v21 = vand.u32 4294901760, %v21403_v3  ;;  %v29494_v3 = vand.u32 4294901760, %v21434_v26  ;;  %v136_v26 = vld [vmem:[#allocation5 + $0x210] sm:$0xff]  ;;  %v29508_v6 = vand.u32 4294901760, %v21574_v58 }
  0xcd   :  { %18052 = vmatprep.subr.bf16.mxu1 %v29477_v53  ;;  %v29512_v58 = vand.u32 4294901760, %v21632_v54 }
  0xcf   :  { %18030 = vmatpush3.bf16.msra.mxu0 %v18029_v32  ;;  %v29486_v32 = vand.u32 4294901760, %v21377_v25  ;;  %v29491_v25 = vand.u32 4294901760, %v21405_v63  ;;  %v29495_v63 = vand.u32 4294901760, %v21436_v9  ;;  %v29500_v9 = vand.u32 4294901760, %v21501_v30 }
  0xd0   :  { %18054 = vmatpush3.bf16.msra.mxu1 %v29478_v47  ;;  %18032 = vmatprep.subr.bf16.mxu0 %v18031_v0  ;;  %v29505_v30 = vand.u32 4294901760, %v21540_v51  ;;  %v43_v51 = vld [vmem:[#allocation2 + $0x28] sm:$0xff] }
  0xd1   :  { %18056 = vmatprep.subr.bf16.mxu1 %v29479_v31  ;;  %v18075_v0 = vpack.c.bf16 %v29486_v32, %v29485_v49  ;;  %v153_v49 = vld [vmem:[#allocation5 + $0x298] sm:$0xff]  ;;  %v18083_v32 = vpack.c.bf16 %v29495_v63, %v29494_v3  ;;  %v18089_v3 = vpack.c.bf16 %v29501_v38, %v29500_v9 }
  0xd2   :  { %v2364_v60 = vand.u32 4294901760, %v153_v49 }
  0xd3   :  { %18034 = vmatpush3.bf16.msra.mxu0 %v18033_v2  ;;  %v29489_v2 = vld [vmem:[#allocation13_spill] sm:$0xff] }
  0xd4   :  { %18058 = vmatpush3.bf16.msra.mxu1 %v21510_v61  ;;  %18036 = vmatprep.subr.bf16.mxu0 %v18035_v57  ;;  %v18079_v57 = vpack.c.bf16 %v29491_v25, %v29490_v21  ;;  %v29499_v21 = vand.u32 4294901760, %v21489_v17  ;;  %v29504_v17 = vand.u32 4294901760, %v21538_v16  ;;  %v2313_v16 = vand.u32 4294901760, %v136_v26 }
  0xd5   :  { %18060 = vmatprep.subr.bf16.mxu1 %v29482_v37  ;;  %v21826_v38 = vsub.f32 %v153_v49, %v2364_v60  ;;  %v157_v49 = vld [vmem:[#allocation5 + $0x2b8] sm:$0xff] }
  0xd7   :  { %18038 = vmatpush3.bf16.msra.mxu0 %v18037_v45  ;;  %v151_v45 = vld [vmem:[#allocation5 + $0x288] sm:$0xff] }
  0xd8   :  { %18062 = vmatpush3.bf16.msra.mxu1 %v21532_v20  ;;  %18072 = vmatprep.subr.bf16.mxu0 %v18071_v23  ;;  %v135_v23 = vld [vmem:[#allocation5 + $0x208] sm:$0xff]  ;;  %v2358_v11 = vand.u32 4294901760, %v151_v45 }
  0xd9   :  { %18064 = vmatprep.subr.bf16.mxu1 %v21565_v55  ;;  %v2310_v12 = vand.u32 4294901760, %v135_v23 }
  0xda   :  { %1921 = vmatmul.mubr.f32.vlgmr.msra.gmra.mrb[8].mxu0 %v21617_v46 }
  0xdb   :  { %18074 = vmatpush3.bf16.msra.mxu0 %v18073_v28  ;;  %2195 = vmatprep.mubr.f32.mxu0 %v29489_v2  ;;  %v152_v28 = vld [vmem:[#allocation5 + $0x290] sm:$0xff] }
  0xdc   :  { %18066 = vmatpush3.bf16.msra.mxu1 %v21646_v13  ;;  %18076 = vmatprep.subr.bf16.mxu0 %v18075_v0  ;;  %v2307_v0 = vand.u32 4294901760, %v134_v15  ;;  %v2361_v63 = vand.u32 4294901760, %v152_v28 }
  0xdd   :  { %18068 = vmatprep.subr.bf16.mxu1 %v21648_v22 }
  0xde   :  { %v21799_v46 = vsub.f32 %v134_v15, %v2307_v0 }
  0xdf   :  { %18078 = vmatpush3.bf16.msra.mxu0 %v18077_v33  ;;  %v29498_v33 = vand.u32 4294901760, %v21471_v35  ;;  %v154_v35 = vld [vmem:[#allocation5 + $0x2a0] sm:$0xff] }
  0xe0   :  { %18070 = vmatpush3.bf16.msra.mxu1 %v21671_v50  ;;  %18080 = vmatprep.subr.bf16.mxu0 %v18079_v57  ;;  %v21772_v57 = vsub.f32 %v150_v43, %v2355_v34  ;;  %v21788_v43 = vpack.c.bf16 %v29505_v30, %v29504_v17  ;;  %v28689_v17 = vand.u32 4294901760, %v21826_v38 }
  0xe1   :  { %18104 = vmatprep.subr.bf16.mxu1 %v21363_v19  ;;  %v18087_v25 = vpack.c.bf16 %v29499_v21, %v29498_v33  ;;  %v29502_v19 = vand.u32 4294901760, %v29473_v42  ;;  %v29507_v42 = vand.u32 4294901760, %v21567_v62  ;;  %v21796_v33 = vsub.f32 %v151_v45, %v2358_v11 }
  0xe2   :  { %v29509_v62 = vand.u32 4294901760, %v21603_v36  ;;  %v2367_v45 = vand.u32 4294901760, %v154_v35  ;;  %v28699_v15 = vand.u32 4294901760, %v21772_v57  ;;  %v21824_v36 = vsub.f32 %v152_v28, %v2361_v63 }
  0xe3   :  { %v18091_v18 = vpack.c.bf16 %v29503_v14, %v29502_v19  ;;  %2029 = vmatmul.mubr.f32.vlgmr.msra.gmra.mrb[8].mxu1 %v1548_v4  ;;  %18082 = vmatpush3.bf16.msra.mxu0 %v18081_v39  ;;  %v21794_v8 = vpack.c.bf16 %v29507_v42, %v29506_v52  ;;  %v21801_v4 = vsub.f32 %v135_v23, %v2310_v12  ;;  %v2316_v39 = vand.u32 4294901760, %v137_v40 }
  0xe4   :  { %18106 = vmatpush3.bf16.msra.mxu1 %v29469_v29  ;;  %18084 = vmatprep.subr.bf16.mxu0 %v18083_v32  ;;  %v21808_v21 = vpack.c.bf16 %v29509_v62, %v29508_v6  ;;  %v2370_v29 = vand.u32 4294901760, %v155_v10  ;;  %v29510_v23 = vand.u32 4294901760, %v21612_v1  ;;  %v21830_v19 = vpack.c.bf16 %v2310_v12, %v2307_v0  ;;  %v138_v1 = vld [vmem:[#allocation5 + $0x220] sm:$0xff] }
  0xe5   :  { %18108 = vmatprep.subr.bf16.mxu1 %v29470_v5  ;;  %2299 = vmatprep.mubr.f32.mxu1 %v29489_v2  ;;  %v29511_v5 = vand.u32 4294901760, %v21629_v48  ;;  %v21828_v2 = vpack.c.bf16 %v2358_v11, %v2355_v34  ;;  %v28697_v41 = vand.u32 4294901760, %v21796_v33  ;;  %v21833_v14 = vand.u32 4294901760, %v43_v51  ;;  %v156_v11 = vld [vmem:[#allocation5 + $0x2b0] sm:$0xff] }
  0xe6   :  { %v21816_v32 = vpack.c.bf16 %v29510_v23, %v1769_v59  ;;  %29513 = vst [vmem:[#allocation11_spill] sm:$0xff] %v21830_v19  ;;  %v139_v59 = vld [vmem:[#allocation5 + $0x228] sm:$0xff]  ;;  %v21836_v48 = vpack.c.bf16 %v2364_v60, %v2361_v63  ;;  %v21838_v54 = vpack.c.bf16 %v2316_v39, %v2313_v16  ;;  %v28694_v28 = vand.u32 4294901760, %v21799_v46 }
  0xe7   :  { %v21822_v9 = vpack.c.bf16 %v29512_v58, %v29511_v5  ;;  %18086 = vmatpush3.bf16.msra.mxu0 %v18085_v7  ;;  %29514 = vst [vmem:[#allocation12_spill] sm:$0xff] %v21833_v14  ;;  %v28693_v34 = vand.u32 4294901760, %v21801_v4  ;;  %v21843_v0 = vsub.f32 %v136_v26, %v2313_v16  ;;  %v21845_v12 = vsub.f32 %v137_v40, %v2316_v39 }
  0xe8   :  { %18110 = vmatpush3.bf16.msra.mxu1 %v29472_v24  ;;  %18088 = vmatprep.subr.bf16.mxu0 %v18087_v25  ;;  %29515 = vst [vmem:[#allocation16_spill] sm:$0xff] %v21836_v48  ;;  %29516 = vst [vmem:[#allocation21_spill] sm:$0xff] %v21838_v54  ;;  %v21847_v7 = vpack.c.bf16 %v2370_v29, %v2367_v45  ;;  %v2534_v24 = vsub.f32 %v21772_v57, %v28699_v15  ;;  %v2319_v25 = vand.u32 4294901760, %v138_v1 }
  0xe9   :  { %18112 = vmatprep.subr.bf16.mxu1 %v29475_v44  ;;  %v2322_v63 = vand.u32 4294901760, %v139_v59  ;;  %v28690_v60 = vand.u32 4294901760, %v21824_v36  ;;  %v2541_v44 = vsub.f32 %v21796_v33, %v28697_v41  ;;  %v2373_v26 = vand.u32 4294901760, %v156_v11 }
  0xea   :  { %29517 = vst [vmem:[#allocation22_spill] sm:$0xff] %v21847_v7  ;;  %v2376_v40 = vand.u32 4294901760, %v157_v49  ;;  %v21858_v30 = vsub.f32 %v43_v51, %v21833_v14  ;;  %v21861_v52 = vsub.f32 %v154_v35, %v2367_v45  ;;  %v2422_v42 = vsub.f32 %v21799_v46, %v28694_v28  ;;  %v140_v51 = vld [vmem:[#allocation5 + $0x230] sm:$0xff]  ;;  %v143_v28 = vld [vmem:[#allocation5 + $0x248] sm:$0xff] }
  0xeb   :  { %18090 = vmatpush3.bf16.msra.mxu0 %v18089_v3  ;;  %v2429_v3 = vsub.f32 %v21801_v4, %v28693_v34  ;;  %v21870_v16 = vsub.f32 %v155_v10, %v2370_v29  ;;  %v2535_v39 = vand.u32 4294901760, %v2534_v24  ;;  %v28692_v6 = vand.u32 4294901760, %v21843_v0  ;;  %v141_v10 = vld [vmem:[#allocation5 + $0x238] sm:$0xff] }
  0xec   :  { %18114 = vmatpush3.bf16.msra.mxu1 %v29476_v56  ;;  %18092 = vmatprep.subr.bf16.mxu0 %v18091_v18  ;;  %v28691_v56 = vand.u32 4294901760, %v21845_v12  ;;  %v21874_v18 = vpack.c.bf16 %v2322_v63, %v2319_v25  ;;  %v21876_v35 = vsub.f32 %v138_v1, %v2319_v25  ;;  %v2548_v62 = vsub.f32 %v21824_v36, %v28690_v60  ;;  %v159_v60 = vld [vmem:[#allocation5 + $0x2c8] sm:$0xff] }
  0xed   :  { %18116 = vmatprep.subr.bf16.mxu1 %v29477_v53  ;;  %v2555_v53 = vsub.f32 %v21826_v38, %v28689_v17  ;;  %v2542_v45 = vand.u32 4294901760, %v2541_v44  ;;  %v21885_v29 = vsub.f32 %v139_v59, %v2322_v63  ;;  %v21887_v23 = vpack.c.bf16 %v2376_v40, %v2373_v26  ;;  %v158_v17 = vld [vmem:[#allocation5 + $0x2c0] sm:$0xff] }
  0xee   :  { %29518 = vst [vmem:[#allocation14_spill] sm:$0xff] %v21874_v18  ;;  %v28700_v5 = vand.u32 4294901760, %v21858_v30  ;;  %v2423_v58 = vand.u32 4294901760, %v2422_v42  ;;  %v2430_v1 = vand.u32 4294901760, %v2429_v3  ;;  %v21892_v24 = vsub.f32 %v156_v11, %v2373_v26  ;;  %v142_v42 = vld [vmem:[#allocation5 + $0x240] sm:$0xff] }
  0xef   :  { %18094 = vmatpush3.bf16.msra.mxu0 %v21788_v43  ;;  %29519 = vst [vmem:[#allocation15_spill] sm:$0xff] %v21887_v23  ;;  %v2325_v25 = vand.u32 4294901760, %v140_v51  ;;  %v21895_v43 = vsub.f32 %v157_v49, %v2376_v40  ;;  %v2328_v59 = vand.u32 4294901760, %v141_v10  ;;  %v2436_v63 = vsub.f32 %v21843_v0, %v28692_v6 }
  0xf0   :  { %18118 = vmatpush3.bf16.msra.mxu1 %v29478_v47  ;;  %18096 = vmatprep.subr.bf16.mxu0 %v21794_v8  ;;  %v2443_v47 = vsub.f32 %v21845_v12, %v28691_v56  ;;  %v2549_v8 = vand.u32 4294901760, %v2548_v62  ;;  %v2556_v44 = vand.u32 4294901760, %v2555_v53  ;;  %v28696_v11 = vand.u32 4294901760, %v21861_v52 }
  0xf1   :  { %18120 = vmatprep.subr.bf16.mxu1 %v29479_v31  ;;  %v28695_v26 = vand.u32 4294901760, %v21870_v16  ;;  %v21906_v31 = vpack.c.bf16 %v2542_v45, %v2535_v39  ;;  %v2379_v49 = vand.u32 4294901760, %v158_v17  ;;  %v2382_v40 = vand.u32 4294901760, %v159_v60 }
  0xf2   :  { %v2405_v3 = vsub.f32 %v21858_v30, %v28700_v5  ;;  %v21913_v62 = vpack.c.bf16 %v2430_v1, %v2423_v58  ;;  %v21915_v53 = vsub.f32 %v140_v51, %v2325_v25  ;;  %v28698_v56 = vand.u32 4294901760, %v21876_v35  ;;  %v161_v1 = vld [vmem:[#allocation5 + $0x2d8] sm:$0xff] }
  0xf3   :  { %18098 = vmatpush3.bf16.msra.mxu0 %v21808_v21  ;;  %v28701_v21 = vand.u32 4294901760, %v21885_v29  ;;  %v21920_v39 = vpack.c.bf16 %v2328_v59, %v2325_v25  ;;  %v21922_v45 = vsub.f32 %v141_v10, %v2328_v59  ;;  %v2437_v6 = vand.u32 4294901760, %v2436_v63  ;;  %v160_v10 = vld [vmem:[#allocation5 + $0x2d0] sm:$0xff]  ;;  %v145_v5 = vld [vmem:[#allocation5 + $0x258] sm:$0xff] }
  0xf4   :  { %18122 = vmatpush3.bf16.msra.mxu1 %v21510_v61  ;;  %18100 = vmatprep.subr.bf16.mxu0 %v21816_v32  ;;  %v2444_v34 = vand.u32 4294901760, %v2443_v47  ;;  %v21924_v61 = vpack.c.bf16 %v2556_v44, %v2549_v8  ;;  %v2562_v32 = vsub.f32 %v21861_v52, %v28696_v11  ;;  %v2569_v51 = vsub.f32 %v21870_v16, %v28695_v26 }
  0xf5   :  { %18124 = vmatprep.subr.bf16.mxu1 %v29482_v37  ;;  %29520 = vst [vmem:[#allocation17_spill] sm:$0xff] %v21920_v39  ;;  %v2331_v58 = vand.u32 4294901760, %v142_v42  ;;  %v21933_v37 = vpack.c.bf16 %v2382_v40, %v2379_v49  ;;  %v28703_v25 = vand.u32 4294901760, %v21892_v24  ;;  %v28702_v59 = vand.u32 4294901760, %v21895_v43 }
  0xf6   :  { %v2406_v63 = vand.u32 4294901760, %v2405_v3  ;;  %v21939_v47 = vsub.f32 %v158_v17, %v2379_v49  ;;  %v2334_v8 = vand.u32 4294901760, %v143_v28  ;;  %v2457_v44 = vsub.f32 %v21885_v29, %v28701_v21 }
  0xf7   :  { %18102 = vmatpush3.bf16.msra.mxu0 %v21822_v9  ;;  %29521 = vst [vmem:[#allocation18_spill] sm:$0xff] %v21933_v37  ;;  %v2450_v9 = vsub.f32 %v21876_v35, %v28698_v56  ;;  %v21948_v26 = vpack.c.bf16 %v2444_v34, %v2437_v6  ;;  %v21950_v3 = vsub.f32 %v159_v60, %v2382_v40  ;;  %v28706_v11 = vand.u32 4294901760, %v21915_v53 }
  0xf8   :  { %18126 = vmatpush3.bf16.msra.mxu1 %v21532_v20  ;;  %18136 = vmatprep.subr.bf16.mxu0 %v21828_v2  ;;  %v144_v20 = vld [vmem:[#allocation5 + $0x250] sm:$0xff]  ;;  %v28709_v17 = vand.u32 4294901760, %v21922_v45  ;;  %v2563_v49 = vand.u32 4294901760, %v2562_v32  ;;  %v2570_v41 = vand.u32 4294901760, %v2569_v51  ;;  %v2385_v56 = vand.u32 4294901760, %v160_v10 }
  0xf9   :  { %18128 = vmatprep.subr.bf16.mxu1 %v21565_v55  ;;  %v2388_v15 = vand.u32 4294901760, %v161_v1  ;;  %v21956_v21 = vsub.f32 %v142_v42, %v2331_v58  ;;  %v2576_v55 = vsub.f32 %v21892_v24, %v28703_v25  ;;  %v2583_v34 = vsub.f32 %v21895_v43, %v28702_v59  ;;  %v162_v59 = vld [vmem:[#allocation5 + $0x2e0] sm:$0xff] }
  0xfa   :  { %2197 = vmatmul.mubr.f32.vlgmr.msra.gmra.mrb[10].mxu0 %v21589_v27  ;;  %v21966_v60 = vpack.c.bf16 %v2334_v8, %v2331_v58  ;;  %v2451_v6 = vand.u32 4294901760, %v2450_v9  ;;  %v2458_v40 = vand.u32 4294901760, %v2457_v44  ;;  %v2337_v32 = vand.u32 4294901760, %v144_v20  ;;  %v21994_v25 = vld [vmem:[#allocation5 + $0x260] sm:$0xff] }
  0xfb   :  { %18138 = vmatpush3.bf16.msra.mxu0 %v21830_v19  ;;  %2407 = vmatprep.mubr.f32.mxu0 %v2406_v63  ;;  %v2340_v42 = vand.u32 4294901760, %v145_v5  ;;  %v2464_v51 = vsub.f32 %v21915_v53, %v28706_v11  ;;  %v2471_v63 = vsub.f32 %v21922_v45, %v28709_v17  ;;  %v21976_v58 = vpack.c.bf16 %v2570_v41, %v2563_v49 }
  0xfc   :  { %18130 = vmatpush3.bf16.msra.mxu1 %v21646_v13  ;;  %18140 = vmatprep.subr.bf16.mxu0 %v21836_v48  ;;  %v163_v13 = vld [vmem:[#allocation5 + $0x2e8] sm:$0xff]  ;;  %v21978_v9 = vsub.f32 %v143_v28, %v2334_v8  ;;  %v21980_v44 = vpack.c.bf16 %v2388_v15, %v2385_v56  ;;  %v21984_v48 = vsub.f32 %v160_v10, %v2385_v56  ;;  %v2577_v19 = vand.u32 4294901760, %v2576_v55 }
  0xfd   :  { %18132 = vmatprep.subr.bf16.mxu1 %v21648_v22  ;;  %v28710_v22 = vand.u32 4294901760, %v21950_v3  ;;  %v21986_v11 = vsub.f32 %v161_v1, %v2388_v15  ;;  %v2584_v17 = vand.u32 4294901760, %v2583_v34  ;;  %v21990_v41 = vpack.c.bf16 %v2458_v40, %v2451_v6  ;;  %v22002_v55 = vld [vmem:[#allocation5 + $0x268] sm:$0xff]  ;;  %v22011_v40 = vld [vmem:[#allocation5 + $0x2f0] sm:$0xff] }
  0xfe   :  { %29522 = vst [vmem:[#allocation19_spill] sm:$0xff] %v21984_v48  ;;  %v21992_v28 = vsub.f32 %v144_v20, %v2337_v32  ;;  %v2391_v8 = vand.u32 4294901760, %v162_v59  ;;  %v2394_v49 = vand.u32 4294901760, %v163_v13  ;;  %v21997_v56 = vpack.c.bf16 %v2340_v42, %v2337_v32  ;;  %v22013_v32 = vld [vmem:[#allocation5 + $0x2f8] sm:$0xff] }
  0xff   :  { %18142 = vmatpush3.bf16.msra.mxu0 %v21838_v54  ;;  %29523 = vst [vmem:[#allocation20_spill] sm:$0xff] %v21986_v11  ;;  %v2465_v15 = vand.u32 4294901760, %v2464_v51  ;;  %v2472_v10 = vand.u32 4294901760, %v2471_v63  ;;  %v29524_v1 = vand.u32 4294901760, %v21939_v47  ;;  %v22004_v34 = vsub.f32 %v145_v5, %v2340_v42 }
 0x100   :  { %18134 = vmatpush3.bf16.msra.mxu1 %v21671_v50  ;;  %18144 = vmatprep.subr.bf16.mxu0 %v21847_v7  ;;  %v2597_v20 = vsub.f32 %v21950_v3, %v28710_v22  ;;  %v18179_v51 = vpack.c.bf16 %v2584_v17, %v2577_v19  ;;  %v2343_v5 = vand.u32 4294901760, %v21994_v25  ;;  %v22022_v22 = vpack.c.bf16 %v2394_v49, %v2391_v8 }
 0x101   :  { %18168 = vmatprep.subr.bf16.mxu1 %v21906_v31  ;;  %v2590_v50 = vsub.f32 %v21939_v47, %v29524_v1  ;;  %v42_v1 = vld [vmem:[#allocation2 + $0x20] sm:$0xff]  ;;  %v22024_v31 = vsub.f32 %v162_v59, %v2391_v8  ;;  %v22026_v6 = vsub.f32 %v163_v13, %v2394_v49  ;;  %v18181_v19 = vpack.c.bf16 %v2472_v10, %v2465_v15 }
 0x102   :  { %v2397_v42 = vand.u32 4294901760, %v22011_v40  ;;  %v2400_v63 = vand.u32 4294901760, %v22013_v32  ;;  %v2598_v59 = vand.u32 4294901760, %v2597_v20  ;;  %v29525_v13 = vand.u32 4294901760, %v21956_v21 }
 0x103   :  { %2301 = vmatmul.mubr.f32.vlgmr.msra.gmra.mrb[10].mxu1 %v21589_v27  ;;  %18146 = vmatpush3.bf16.msra.mxu0 %v21874_v18  ;;  %v2346_v27 = vand.u32 4294901760, %v22002_v55  ;;  %v2591_v17 = vand.u32 4294901760, %v2590_v50  ;;  %v22032_v18 = vld [vmem:[#allocation5 + $0x270] sm:$0xff]  ;;  %v29526_v49 = vand.u32 4294901760, %v21978_v9  ;;  %v22043_v15 = vand.u32 4294901760, %v42_v1 }
 0x104   :  { %18170 = vmatpush3.bf16.msra.mxu1 %v21913_v62  ;;  %18148 = vmatprep.subr.bf16.mxu0 %v21887_v23  ;;  %v22034_v62 = vld [vmem:[#allocation5 + $0x278] sm:$0xff]  ;;  %v2478_v8 = vsub.f32 %v21956_v21, %v29525_v13  ;;  %v29527_v10 = vand.u32 4294901760, %v21984_v48  ;;  %v29528_v23 = vand.u32 4294901760, %v21986_v11  ;;  %v22069_v13 = vsub.f32 %v22013_v32, %v2400_v63 }
 0x105   :  { %18172 = vmatprep.subr.bf16.mxu1 %v21924_v61  ;;  %2643 = vmatprep.mubr.f32.mxu1 %v21833_v14  ;;  %v2485_v61 = vsub.f32 %v21978_v9, %v29526_v49  ;;  %v22057_v49 = vsub.f32 %v21994_v25, %v2343_v5  ;;  %v2352_v7 = vand.u32 4294901760, %v22034_v62  ;;  %v28729_v25 = vand.u32 4294901760, %v22026_v6 }
 0x106   :  { %v2604_v50 = vsub.f32 %v21984_v48, %v29527_v10  ;;  %v2611_v20 = vsub.f32 %v21986_v11, %v29528_v23  ;;  %v2349_v10 = vand.u32 4294901760, %v22032_v18  ;;  %v22066_v23 = vsub.f32 %v22011_v40, %v2397_v42 }
 0x107   :  { %18150 = vmatpush3.bf16.msra.mxu0 %v21920_v39  ;;  %v22060_v39 = vsub.f32 %v22002_v55, %v2346_v27  ;;  %v18183_v14 = vpack.c.bf16 %v2598_v59, %v2591_v17  ;;  %v2486_v55 = vand.u32 4294901760, %v2485_v61  ;;  %v22074_v11 = vsub.f32 %v42_v1, %v22043_v15 }
 0x108   :  { %18174 = vmatpush3.bf16.msra.mxu1 %v21948_v26  ;;  %18152 = vmatprep.subr.bf16.mxu0 %v21933_v37  ;;  %v2479_v37 = vand.u32 4294901760, %v2478_v8  ;;  %v2605_v48 = vand.u32 4294901760, %v2604_v50  ;;  %v29529_v40 = vand.u32 4294901760, %v21992_v28  ;;  %v29530_v32 = vand.u32 4294901760, %v22004_v34 }
 0x109   :  { %18176 = vmatprep.subr.bf16.mxu1 %v21976_v58  ;;  %v2612_v58 = vand.u32 4294901760, %v2611_v20  ;;  %v22086_v17 = vsub.f32 %v22032_v18, %v2349_v10  ;;  %v22089_v1 = vsub.f32 %v22034_v62, %v2352_v7  ;;  %v29531_v61 = vand.u32 4294901760, %v22024_v31 }
 0x10a   :  { %v2492_v54 = vsub.f32 %v21992_v28, %v29529_v40  ;;  %v2499_v26 = vsub.f32 %v22004_v34, %v29530_v32  ;;  %v28731_v18 = vand.u32 4294901760, %v22069_v13  ;;  %v22101_v40 = vpack.c.bf16 %v2346_v27, %v2343_v5 }
 0x10b   :  { %18154 = vmatpush3.bf16.msra.mxu0 %v21966_v60  ;;  %v2618_v50 = vsub.f32 %v22024_v31, %v29531_v61  ;;  %v22103_v62 = vpack.c.bf16 %v2400_v63, %v2397_v42  ;;  %v28733_v32 = vand.u32 4294901760, %v22074_v11  ;;  %v18187_v8 = vpack.c.bf16 %v2612_v58, %v2605_v48 }
 0x10c   :  { %18178 = vmatpush3.bf16.msra.mxu1 %v21990_v41  ;;  %18156 = vmatprep.subr.bf16.mxu0 %v21980_v44  ;;  %v2625_v41 = vsub.f32 %v22026_v6, %v28729_v25  ;;  %v2493_v59 = vand.u32 4294901760, %v2492_v54  ;;  %v2500_v61 = vand.u32 4294901760, %v2499_v26  ;;  %v29532_v25 = vand.u32 4294901760, %v22057_v49 }
 0x10d   :  { %18180 = vmatprep.subr.bf16.mxu1 %v18179_v51  ;;  %v18185_v51 = vpack.c.bf16 %v2486_v55, %v2479_v37  ;;  %v29533_v5 = vand.u32 4294901760, %v22060_v39  ;;  %v28730_v63 = vand.u32 4294901760, %v22086_v17  ;;  %v28732_v27 = vand.u32 4294901760, %v22089_v1 }
 0x10e   :  { %v2506_v20 = vsub.f32 %v22057_v49, %v29532_v25  ;;  %v2619_v37 = vand.u32 4294901760, %v2618_v50  ;;  %v2626_v48 = vand.u32 4294901760, %v2625_v41  ;;  %v29534_v54 = vand.u32 4294901760, %v22066_v23 }
 0x10f   :  { %18158 = vmatpush3.bf16.msra.mxu0 %v21997_v56  ;;  %v2513_v42 = vsub.f32 %v22060_v39, %v29533_v5  ;;  %v2639_v26 = vsub.f32 %v22069_v13, %v28731_v18  ;;  %v2411_v25 = vsub.f32 %v22074_v11, %v28733_v32  ;;  %v22126_v55 = vpack.c.bf16 %v2352_v7, %v2349_v10  ;;  %v22201_v32 = vld [vmem:[#allocation5 + $0x300] sm:$0xff] }
 0x110   :  { %18182 = vmatpush3.bf16.msra.mxu1 %v18181_v19  ;;  %18160 = vmatprep.subr.bf16.mxu0 %v22022_v22  ;;  %v2632_v19 = vsub.f32 %v22066_v23, %v29534_v54  ;;  %v18189_v58 = vpack.c.bf16 %v2500_v61, %v2493_v59  ;;  %v2507_v50 = vand.u32 4294901760, %v2506_v20  ;;  %v2520_v5 = vsub.f32 %v22086_v17, %v28730_v63 }
 0x111   :  { %18184 = vmatprep.subr.bf16.mxu1 %v18183_v14  ;;  %v18199_v14 = vpack.c.bf16 %v21796_v33, %v21772_v57  ;;  %v2514_v41 = vand.u32 4294901760, %v2513_v42  ;;  %v2527_v54 = vsub.f32 %v22089_v1, %v28732_v27  ;;  %v18191_v7 = vpack.c.bf16 %v2626_v48, %v2619_v37 }
 0x112   :  { %v2633_v10 = vand.u32 4294901760, %v2632_v19  ;;  %v2640_v59 = vand.u32 4294901760, %v2639_v26  ;;  %v2412_v61 = vand.u32 4294901760, %v2411_v25  ;;  %v18203_v42 = vpack.c.bf16 %v21826_v38, %v21824_v36  ;;  %v29536_v25 = vld [vmem:[#allocation16_spill] sm:$0xff] }
 0x113   :  { %18162 = vmatpush3.bf16.msra.mxu0 %v22101_v40  ;;  %v18193_v20 = vpack.c.bf16 %v2514_v41, %v2507_v50  ;;  %v2521_v63 = vand.u32 4294901760, %v2520_v5  ;;  %v2528_v18 = vand.u32 4294901760, %v2527_v54  ;;  %v18207_v48 = vpack.c.bf16 %v21870_v16, %v21861_v52  ;;  %v29538_v50 = vld [vmem:[#allocation21_spill] sm:$0xff]  ;;  %v29539_v41 = vld [vmem:[#allocation19_spill] sm:$0xff]  ;;  %v29540_v5 = vld [vmem:[#allocation20_spill] sm:$0xff] }
 0x114   :  { %18186 = vmatpush3.bf16.msra.mxu1 %v18185_v51  ;;  %18164 = vmatprep.subr.bf16.mxu0 %v22103_v62  ;;  %v18201_v51 = vpack.c.bf16 %v21801_v4, %v21799_v46  ;;  %v18195_v27 = vpack.c.bf16 %v2640_v59, %v2633_v10  ;;  %v18209_v19 = vpack.c.bf16 %v21885_v29, %v21876_v35  ;;  %v29542_v59 = vld [vmem:[#allocation14_spill] sm:$0xff] }
 0x115   :  { %18188 = vmatprep.subr.bf16.mxu1 %v18187_v8  ;;  %v18205_v8 = vpack.c.bf16 %v21845_v12, %v21843_v0  ;;  %v18197_v37 = vpack.c.bf16 %v2528_v18, %v2521_v63  ;;  %v18211_v26 = vpack.c.bf16 %v21895_v43, %v21892_v24  ;;  %v18213_v18 = vpack.c.bf16 %v21922_v45, %v21915_v53  ;;  %v29535_v63 = vld [vmem:[#allocation11_spill] sm:$0xff] }
 0x116   :  { %v18219_v54 = vpack.c.bf16 %v29540_v5, %v29539_v41  ;;  %v18221_v10 = vpack.c.bf16 %v22004_v34, %v21992_v28 }
 0x117   :  { %18166 = vmatpush3.bf16.msra.mxu0 %v22126_v55 }
 0x118   :  { %18190 = vmatpush3.bf16.msra.mxu1 %v18189_v58  ;;  %18200 = vmatprep.subr.bf16.mxu0 %v18199_v14  ;;  %v29537_v58 = vand.u32 4294901760, %v21858_v30  ;;  %v18217_v14 = vpack.c.bf16 %v21978_v9, %v21956_v21 }
 0x119   :  { %18192 = vmatprep.subr.bf16.mxu1 %v18191_v7  ;;  %v29541_v7 = vld [vmem:[#allocation22_spill] sm:$0xff] }
 0x11a   :  { %2413 = vmatmul.mubr.f32.vlgmr.msra.gmra.mrb[12].mxu0 %v2412_v61  ;;  %v29543_v61 = vld [vmem:[#allocation15_spill] sm:$0xff] }
 0x11b   :  { %18202 = vmatpush3.bf16.msra.mxu0 %v18201_v51  ;;  %2780 = vmatprep.mubr.f32.mxu0 %v21858_v30  ;;  %v18223_v30 = vpack.c.bf16 %v22026_v6, %v22024_v31 }
 0x11c   :  { %18194 = vmatpush3.bf16.msra.mxu1 %v18193_v20  ;;  %18204 = vmatprep.subr.bf16.mxu0 %v18203_v42  ;;  %v18225_v42 = vpack.c.bf16 %v22060_v39, %v22057_v49 }
 0x11d   :  { %18196 = vmatprep.subr.bf16.mxu1 %v18195_v27  ;;  %v18215_v27 = vpack.c.bf16 %v21950_v3, %v21939_v47 }
 0x11f   :  { %18206 = vmatpush3.bf16.msra.mxu0 %v18205_v8 }
 0x120   :  { %18198 = vmatpush3.bf16.msra.mxu1 %v18197_v37  ;;  %18208 = vmatprep.subr.bf16.mxu0 %v18207_v48  ;;  %v29544_v37 = vld [vmem:[#allocation17_spill] sm:$0xff]  ;;  %v18227_v48 = vpack.c.bf16 %v22069_v13, %v22066_v23 }
 0x121   :  { %18232 = vmatprep.subr.bf16.mxu1 %v21828_v2 }
 0x123   :  { %2645 = vmatmul.mubr.f32.vlgmr.msra.gmra.mrb[12].mxu1 %v22043_v15  ;;  %18210 = vmatpush3.bf16.msra.mxu0 %v18209_v19  ;;  %v29545_v19 = vld [vmem:[#allocation18_spill] sm:$0xff] }
 0x124   :  { %18234 = vmatpush3.bf16.msra.mxu1 %v29535_v63  ;;  %18212 = vmatprep.subr.bf16.mxu0 %v18211_v26  ;;  %v18229_v26 = vpack.c.bf16 %v22089_v1, %v22086_v17 }
 0x125   :  { %18236 = vmatprep.subr.bf16.mxu1 %v29536_v25  ;;  %2887 = vmatprep.mubr.f32.mxu1 %v29537_v58 }
 0x127   :  { %18214 = vmatpush3.bf16.msra.mxu0 %v18213_v18  ;;  %v29546_v18 = vand.u32 4294901760, %v21772_v57  ;;  %v29550_v57 = vand.u32 4294901760, %v21824_v36  ;;  %v29552_v36 = vand.u32 4294901760, %v21843_v0 }
 0x128   :  { %18238 = vmatpush3.bf16.msra.mxu1 %v29538_v50  ;;  %18216 = vmatprep.subr.bf16.mxu0 %v18215_v27  ;;  %v29547_v27 = vand.u32 4294901760, %v21796_v33  ;;  %v29551_v33 = vand.u32 4294901760, %v21826_v38  ;;  %v29553_v38 = vand.u32 4294901760, %v21845_v12 }
 0x129   :  { %18240 = vmatprep.subr.bf16.mxu1 %v29541_v7 }
 0x12a   :  { %v18263_v58 = vpack.c.bf16 %v29547_v27, %v29546_v18  ;;  %v18267_v18 = vpack.c.bf16 %v29551_v33, %v29550_v57  ;;  %v29558_v57 = vand.u32 4294901760, %v21885_v29 }
 0x12b   :  { %18218 = vmatpush3.bf16.msra.mxu0 %v18217_v14  ;;  %v22187_v14 = vld [vmem:[#allocation5 + $0x380] sm:$0xff] }
 0x12c   :  { %18242 = vmatpush3.bf16.msra.mxu1 %v29542_v59  ;;  %18220 = vmatprep.subr.bf16.mxu0 %v18219_v54  ;;  %v28737_v27 = vand.u32 4294901760, %v22187_v14 }
 0x12d   :  { %18244 = vmatprep.subr.bf16.mxu1 %v29543_v61  ;;  %v14423_v51 = vpop.f32.mrb[0].mxu0 }
 0x12e   :  { %v14424_v20 = vpop.f32.mrb[1].mxu0 }
 0x12f   :  { %18222 = vmatpush3.bf16.msra.mxu0 %v18221_v10  ;;  %v14425_v8 = vadd.f32 %v14424_v20, %v14423_v51  ;;  %v22189_v10 = vld [vmem:[#allocation5 + $0x388] sm:$0xff]  ;;  %v29548_v51 = vand.u32 4294901760, %v21799_v46  ;;  %v29549_v20 = vand.u32 4294901760, %v21801_v4 }
 0x130   :  { %18246 = vmatpush3.bf16.msra.mxu1 %v29544_v37  ;;  %18224 = vmatprep.subr.bf16.mxu0 %v18223_v30  ;;  %v28736_v46 = vand.u32 4294901760, %v22189_v10 }
 0x131   :  { %18248 = vmatprep.subr.bf16.mxu1 %v29545_v19 }
 0x132   :  { %v22231_v12 = vsub.f32 %v22189_v10, %v28736_v46 }
 0x133   :  { %18226 = vmatpush3.bf16.msra.mxu0 %v18225_v42  ;;  %v18265_v42 = vpack.c.bf16 %v29549_v20, %v29548_v51  ;;  %v29555_v51 = vand.u32 4294901760, %v21861_v52  ;;  %v22235_v52 = vld [vmem:[#allocation5 + $0x398] sm:$0xff] }
 0x134   :  { %18250 = vmatpush3.bf16.msra.mxu1 %v21966_v60  ;;  %18228 = vmatprep.subr.bf16.mxu0 %v18227_v48 }
 0x135   :  { %18252 = vmatprep.subr.bf16.mxu1 %v21980_v44 }
 0x136   :  { %v14458_v54 = vpop.f32.mrb[0].mxu1 }
 0x137   :  { %v14459_v30 = vpop.f32.mrb[1].mxu1  ;;  %18230 = vmatpush3.bf16.msra.mxu0 %v18229_v26  ;;  %v22205_v26 = vld [vmem:[#allocation5 + $0x308] sm:$0xff] }
 0x138   :  { %v14460_v48 = vadd.f32 %v14459_v30, %v14458_v54  ;;  %18254 = vmatpush3.bf16.msra.mxu1 %v21997_v56  ;;  %18264 = vmatprep.subr.bf16.mxu0 %v18263_v58  ;;  %v18269_v58 = vpack.c.bf16 %v29553_v38, %v29552_v36  ;;  %v29554_v54 = vld [vmem:[#allocation12_spill] sm:$0xff]  ;;  %v28735_v30 = vand.u32 4294901760, %v22201_v32  ;;  %v28734_v0 = vand.u32 4294901760, %v22205_v26 }
 0x139   :  { %18256 = vmatprep.subr.bf16.mxu1 %v22022_v22  ;;  %v168_v36 = vld [vmem:[#allocation5 + $0x310] sm:$0xff]  ;;  %v29559_v38 = vand.u32 4294901760, %v21892_v24  ;;  %v29561_v24 = vand.u32 4294901760, %v21915_v53  ;;  %v29568_v53 = vand.u32 4294901760, %v29539_v41  ;;  %v187_v41 = vld [vmem:[#allocation5 + $0x3a8] sm:$0xff] }
 0x13a   :  { %v22207_v4 = vadd.f32 %v14460_v48, %v14425_v8  ;;  %2783 = vmatmul.mubr.f32.vlgmr.msra.gmra.mrb[14].mxu0 %v22074_v11  ;;  %v29556_v8 = vand.u32 4294901760, %v21870_v16  ;;  %v22233_v48 = vld [vmem:[#allocation5 + $0x390] sm:$0xff]  ;;  %v29557_v16 = vand.u32 4294901760, %v21876_v35  ;;  %v22254_v35 = vsub.f32 %v22205_v26, %v28734_v0 }
 0x13b   :  { %18266 = vmatpush3.bf16.msra.mxu0 %v18265_v42  ;;  %3057 = vmatprep.mubr.f32.mxu0 %v29554_v54  ;;  %v22224_v42 = vsub.f32 %v22187_v14, %v28737_v27  ;;  %v3223_v29 = vand.u32 4294901760, %v22233_v48  ;;  %v29564_v0 = vand.u32 4294901760, %v21950_v3  ;;  %v3175_v46 = vand.u32 4294901760, %v168_v36 }
 0x13c   :  { %18258 = vmatpush3.bf16.msra.mxu1 %v22101_v40  ;;  %18268 = vmatprep.subr.bf16.mxu0 %v18267_v18  ;;  %v18271_v20 = vpack.c.bf16 %v29556_v8, %v29555_v51  ;;  %v18273_v33 = vpack.c.bf16 %v29558_v57, %v29557_v16  ;;  %v22244_v18 = vsub.f32 %v22201_v32, %v28735_v30  ;;  %v29560_v51 = vand.u32 4294901760, %v21895_v43  ;;  %v169_v57 = vld [vmem:[#allocation5 + $0x318] sm:$0xff] }
 0x13d   :  { %18260 = vmatprep.subr.bf16.mxu1 %v22103_v62  ;;  %v3226_v16 = vand.u32 4294901760, %v22235_v52  ;;  %v29562_v43 = vand.u32 4294901760, %v21922_v45  ;;  %v29565_v27 = vand.u32 4294901760, %v22074_v11  ;;  %v29569_v45 = vand.u32 4294901760, %v29540_v5 }
 0x13e   :  { %v18275_v8 = vpack.c.bf16 %v29560_v51, %v29559_v38  ;;  %v29563_v51 = vand.u32 4294901760, %v21939_v47  ;;  %v29570_v47 = vand.u32 4294901760, %v21992_v28  ;;  %v29571_v3 = vand.u32 4294901760, %v22004_v34  ;;  %v45_v34 = vld [vmem:[#allocation2 + $0x38] sm:$0xff] }
 0x13f   :  { %18270 = vmatpush3.bf16.msra.mxu0 %v18269_v58  ;;  %v18277_v38 = vpack.c.bf16 %v29562_v43, %v29561_v24  ;;  %v29567_v58 = vand.u32 4294901760, %v21978_v9  ;;  %v18283_v24 = vpack.c.bf16 %v29569_v45, %v29568_v53  ;;  %v28747_v11 = vand.u32 4294901760, %v22244_v18 }
 0x140   :  { %18262 = vmatpush3.bf16.msra.mxu1 %v22126_v55  ;;  %18272 = vmatprep.subr.bf16.mxu0 %v18271_v20  ;;  %v18279_v30 = vpack.c.bf16 %v29564_v0, %v29563_v51  ;;  %v22283_v0 = vpack.c.bf16 %v29571_v3, %v29570_v47  ;;  %v3178_v9 = vand.u32 4294901760, %v169_v57  ;;  %v29572_v5 = vand.u32 4294901760, %v22224_v42 }
 0x141   :  { %18296 = vmatprep.subr.bf16.mxu1 %v21828_v2  ;;  %v29566_v2 = vand.u32 4294901760, %v21956_v21  ;;  %v22288_v21 = vsub.f32 %v22233_v48, %v3223_v29  ;;  %v28738_v28 = vand.u32 4294901760, %v22254_v35  ;;  %v22302_v48 = vsub.f32 %v22235_v52, %v3226_v16 }
 0x142   :  { %v29575_v43 = vand.u32 4294901760, %v22231_v12  ;;  %v29577_v53 = vand.u32 4294901760, %v22060_v39  ;;  %v29580_v52 = vand.u32 4294901760, %v22086_v17  ;;  %v22326_v3 = vsub.f32 %v168_v36, %v3175_v46 }
 0x143   :  { %2891 = vmatmul.mubr.f32.vlgmr.msra.gmra.mrb[14].mxu1 %v29565_v27  ;;  %18274 = vmatpush3.bf16.msra.mxu0 %v18273_v33  ;;  %v18281_v20 = vpack.c.bf16 %v29567_v58, %v29566_v2  ;;  %v186_v27 = vld [vmem:[#allocation5 + $0x3a0] sm:$0xff]  ;;  %v3396_v33 = vsub.f32 %v22224_v42, %v29572_v5  ;;  %v29573_v58 = vand.u32 4294901760, %v22024_v31  ;;  %v29576_v2 = vand.u32 4294901760, %v22057_v49  ;;  %v171_v49 = vld [vmem:[#allocation5 + $0x328] sm:$0xff] }
 0x144   :  { %18298 = vmatpush3.bf16.msra.mxu1 %v29535_v63  ;;  %18276 = vmatprep.subr.bf16.mxu0 %v18275_v8  ;;  %v29574_v63 = vand.u32 4294901760, %v22026_v6  ;;  %v3403_v51 = vsub.f32 %v22231_v12, %v29575_v43  ;;  %v29578_v31 = vand.u32 4294901760, %v22066_v23  ;;  %v29579_v6 = vand.u32 4294901760, %v22069_v13  ;;  %v170_v5 = vld [vmem:[#allocation5 + $0x320] sm:$0xff] }
 0x145   :  { %18300 = vmatprep.subr.bf16.mxu1 %v29536_v25  ;;  %3161 = vmatprep.mubr.f32.mxu1 %v29554_v54  ;;  %v22312_v25 = vpack.c.bf16 %v29577_v53, %v29576_v2  ;;  %v29581_v54 = vand.u32 4294901760, %v22089_v1  ;;  %v3229_v39 = vand.u32 4294901760, %v186_v27  ;;  %v3284_v23 = vsub.f32 %v22244_v18, %v28747_v11 }
 0x146   :  { %v22299_v8 = vpack.c.bf16 %v29574_v63, %v29573_v58  ;;  %v22318_v45 = vpack.c.bf16 %v29579_v6, %v29578_v31  ;;  %v3232_v58 = vand.u32 4294901760, %v187_v41  ;;  %v22331_v13 = vand.u32 4294901760, %v45_v34 }
 0x147   :  { %v22324_v47 = vpack.c.bf16 %v29581_v54, %v29580_v52  ;;  %18278 = vmatpush3.bf16.msra.mxu0 %v18277_v38  ;;  %v22334_v17 = vsub.f32 %v169_v57, %v3178_v9  ;;  %v3397_v1 = vand.u32 4294901760, %v3396_v33  ;;  %v3291_v36 = vsub.f32 %v22254_v35, %v28738_v28  ;;  %v188_v28 = vld [vmem:[#allocation5 + $0x3b0] sm:$0xff] }
 0x148   :  { %29582 = vst [vmem:[#allocation13_spill] sm:$0xff] %v22331_v13  ;;  %18302 = vmatpush3.bf16.msra.mxu1 %v29538_v50  ;;  %18280 = vmatprep.subr.bf16.mxu0 %v18279_v30  ;;  %v28742_v38 = vand.u32 4294901760, %v22288_v21  ;;  %v3404_v63 = vand.u32 4294901760, %v3403_v51  ;;  %v3181_v43 = vand.u32 4294901760, %v170_v5  ;;  %v3184_v2 = vand.u32 4294901760, %v171_v49 }
 0x149   :  { %18304 = vmatprep.subr.bf16.mxu1 %v29541_v7  ;;  %v28739_v53 = vand.u32 4294901760, %v22302_v48  ;;  %v29583_v31 = vand.u32 4294901760, %v22187_v14  ;;  %v29584_v50 = vand.u32 4294901760, %v22189_v10  ;;  %v29586_v57 = vand.u32 4294901760, %v22201_v32  ;;  %v189_v10 = vld [vmem:[#allocation5 + $0x3b8] sm:$0xff] }
 0x14a   :  { %v29587_v33 = vand.u32 4294901760, %v22205_v26  ;;  %v22354_v52 = vpack.c.bf16 %v3226_v16, %v3223_v29  ;;  %v22356_v7 = vpack.c.bf16 %v3178_v9, %v3175_v46  ;;  %v22358_v51 = vpack.c.bf16 %v3232_v58, %v3229_v39  ;;  %v172_v26 = vld [vmem:[#allocation5 + $0x330] sm:$0xff]  ;;  %v173_v29 = vld [vmem:[#allocation5 + $0x338] sm:$0xff] }
 0x14b   :  { %v22346_v30 = vpack.c.bf16 %v29584_v50, %v29583_v31  ;;  %18282 = vmatpush3.bf16.msra.mxu0 %v18281_v20  ;;  %v22360_v54 = vsub.f32 %v186_v27, %v3229_v39  ;;  %v3285_v14 = vand.u32 4294901760, %v3284_v23  ;;  %v22363_v31 = vsub.f32 %v45_v34, %v22331_v13 }
 0x14c   :  { %v22352_v6 = vpack.c.bf16 %v29587_v33, %v29586_v57  ;;  %29589 = vst [vmem:[#allocation21_spill] sm:$0xff] %v22354_v52  ;;  %29590 = vst [vmem:[#allocation19_spill] sm:$0xff] %v22358_v51  ;;  %18306 = vmatpush3.bf16.msra.mxu1 %v29542_v59  ;;  %18284 = vmatprep.subr.bf16.mxu0 %v18283_v24  ;;  %v3292_v32 = vand.u32 4294901760, %v3291_v36  ;;  %v3410_v46 = vsub.f32 %v22288_v21, %v28742_v38 }
 0x14d   :  { %29585 = vst [vmem:[#allocation11_spill] sm:$0xff] %v22346_v30  ;;  %v28741_v16 = vand.u32 4294901760, %v22326_v3  ;;  %v28740_v20 = vand.u32 4294901760, %v22334_v17  ;;  %v14493_v9 = vpop.f32.mrb[2].mxu0  ;;  %18308 = vmatprep.subr.bf16.mxu1 %v29543_v61  ;;  %v22372_v27 = vsub.f32 %v187_v41, %v3232_v58  ;;  %v22374_v34 = vpack.c.bf16 %v3404_v63, %v3397_v1  ;;  %v190_v58 = vld [vmem:[#allocation5 + $0x3c0] sm:$0xff]  ;;  %v191_v1 = vld [vmem:[#allocation5 + $0x3c8] sm:$0xff] }
 0x14e   :  { %29588 = vst [vmem:[#allocation16_spill] sm:$0xff] %v22352_v6  ;;  %v22376_v59 = vpack.c.bf16 %v3184_v2, %v3181_v43  ;;  %v3417_v24 = vsub.f32 %v22302_v48, %v28739_v53  ;;  %v14494_v39 = vpop.f32.mrb[3].mxu0  ;;  %v22381_v23 = vsub.f32 %v170_v5, %v3181_v43  ;;  %v22383_v36 = vsub.f32 %v171_v49, %v3184_v2 }
 0x14f   :  { %v3235_v50 = vand.u32 4294901760, %v188_v28  ;;  %v3238_v57 = vand.u32 4294901760, %v189_v10  ;;  %v14495_v33 = vadd.f32 %v14494_v39, %v14493_v9  ;;  %18286 = vmatpush3.bf16.msra.mxu0 %v22283_v0  ;;  %v3187_v61 = vand.u32 4294901760, %v172_v26 }
 0x150   :  { %29591 = vst [vmem:[#allocation20_spill] sm:$0xff] %v22376_v59  ;;  %v3190_v41 = vand.u32 4294901760, %v173_v29  ;;  %v28748_v63 = vand.u32 4294901760, %v22363_v31  ;;  %18310 = vmatpush3.bf16.msra.mxu1 %v29544_v37  ;;  %18288 = vmatprep.subr.bf16.mxu0 %v22299_v8  ;;  %v22389_v53 = vpack.c.bf16 %v3292_v32, %v3285_v14  ;;  %v3411_v5 = vand.u32 4294901760, %v3410_v46 }
 0x151   :  { %v3298_v49 = vsub.f32 %v22326_v3, %v28741_v16  ;;  %v3305_v0 = vsub.f32 %v22334_v17, %v28740_v20  ;;  %v1061_v43 = vadd.f32 %v14495_v33, %v22207_v4  ;;  %18312 = vmatprep.subr.bf16.mxu1 %v29545_v19  ;;  %v3418_v2 = vand.u32 4294901760, %v3417_v24  ;;  %v22409_v4 = vld [vmem:[#allocation5 + $0x340] sm:$0xff] }
 0x152   :  { %v28745_v37 = vand.u32 4294901760, %v22360_v54  ;;  %v28743_v8 = vand.u32 4294901760, %v22372_v27  ;;  %v22401_v14 = vpack.c.bf16 %v3238_v57, %v3235_v50  ;;  %v3241_v32 = vand.u32 4294901760, %v190_v58 }
 0x153   :  { %v3244_v46 = vand.u32 4294901760, %v191_v1  ;;  %v28744_v9 = vand.u32 4294901760, %v22381_v23  ;;  %18290 = vmatpush3.bf16.msra.mxu0 %v22312_v25  ;;  %v22405_v39 = vsub.f32 %v188_v28, %v3235_v50  ;;  %v22407_v20 = vsub.f32 %v189_v10, %v3238_v57 }
 0x154   :  { %29592 = vst [vmem:[#allocation22_spill] sm:$0xff] %v22401_v14  ;;  %v28746_v19 = vand.u32 4294901760, %v22383_v36  ;;  %v3267_v24 = vsub.f32 %v22363_v31, %v28748_v63  ;;  %18314 = vmatpush3.bf16.msra.mxu1 %v21966_v60  ;;  %18292 = vmatprep.subr.bf16.mxu0 %v22318_v45  ;;  %v22417_v33 = vpack.c.bf16 %v3190_v41, %v3187_v61  ;;  %v3299_v25 = vand.u32 4294901760, %v3298_v49  ;;  %v192_v49 = vld [vmem:[#allocation5 + $0x3d0] sm:$0xff] }
 0x155   :  { %v22419_v16 = vsub.f32 %v172_v26, %v3187_v61  ;;  %v22421_v28 = vsub.f32 %v173_v29, %v3190_v41  ;;  %18316 = vmatprep.subr.bf16.mxu1 %v21980_v44  ;;  %v22424_v10 = vpack.c.bf16 %v3418_v2, %v3411_v5  ;;  %v3306_v50 = vand.u32 4294901760, %v3305_v0  ;;  %v175_v29 = vld [vmem:[#allocation5 + $0x348] sm:$0xff]  ;;  %v193_v0 = vld [vmem:[#allocation5 + $0x3d8] sm:$0xff] }
 0x156   :  { %29593 = vst [vmem:[#allocation14_spill] sm:$0xff] %v22417_v33  ;;  %v3424_v57 = vsub.f32 %v22360_v54, %v28745_v37  ;;  %v3431_v60 = vsub.f32 %v22372_v27, %v28743_v8  ;;  %v14528_v45 = vpop.f32.mrb[2].mxu1  ;;  %v22432_v38 = vpack.c.bf16 %v3244_v46, %v3241_v32  ;;  %v22434_v26 = vsub.f32 %v190_v58, %v3241_v32  ;;  %v176_v58 = vld [vmem:[#allocation5 + $0x350] sm:$0xff] }
 0x157   :  { %29594 = vst [vmem:[#allocation15_spill] sm:$0xff] %v22419_v16  ;;  %29595 = vst [vmem:[#allocation17_spill] sm:$0xff] %v22421_v28  ;;  %v3193_v61 = vand.u32 4294901760, %v22409_v4  ;;  %v3312_v44 = vsub.f32 %v22381_v23, %v28744_v9  ;;  %v14529_v41 = vpop.f32.mrb[3].mxu1  ;;  %18294 = vmatpush3.bf16.msra.mxu0 %v22324_v47  ;;  %v3319_v5 = vsub.f32 %v22383_v36, %v28746_v19  ;;  %v3268_v32 = vand.u32 4294901760, %v3267_v24  ;;  %v177_v24 = vld [vmem:[#allocation5 + $0x358] sm:$0xff] }
 0x158   :  { %29596 = vst [vmem:[#allocation18_spill] sm:$0xff] %v22432_v38  ;;  %v14530_v8 = vadd.f32 %v14529_v41, %v14528_v45  ;;  %18318 = vmatpush3.bf16.msra.mxu1 %v21997_v56  ;;  %18328 = vmatprep.subr.bf16.mxu0 %v22346_v30  ;;  %v22448_v9 = vsub.f32 %v191_v1, %v3244_v46  ;;  %v28755_v47 = vand.u32 4294901760, %v22419_v16  ;;  %v28758_v37 = vand.u32 4294901760, %v22421_v28 }
 0x159   :  { %18320 = vmatprep.subr.bf16.mxu1 %v22022_v22  ;;  %v22453_v19 = vpack.c.bf16 %v3306_v50, %v3299_v25  ;;  %v3425_v11 = vand.u32 4294901760, %v3424_v57  ;;  %v3432_v63 = vand.u32 4294901760, %v3431_v60  ;;  %v3196_v2 = vand.u32 4294901760, %v175_v29 }
 0x15a   :  { %v22455_v45 = vadd.f32 %v14530_v8, %v1061_v43  ;;  %3059 = vmatmul.mubr.f32.vlgmr.msra.gmra.mrb[16].mxu0 %v22043_v15  ;;  %v22459_v56 = vsub.f32 %v22409_v4, %v3193_v61  ;;  %v3247_v1 = vand.u32 4294901760, %v192_v49  ;;  %v3250_v46 = vand.u32 4294901760, %v193_v0  ;;  %v194_v8 = vld [vmem:[#allocation5 + $0x3e0] sm:$0xff] }
 0x15b   :  { %18330 = vmatpush3.bf16.msra.mxu0 %v22352_v6  ;;  %v3313_v41 = vand.u32 4294901760, %v3312_v44  ;;  %v3320_v22 = vand.u32 4294901760, %v3319_v5  ;;  %v29597_v25 = vand.u32 4294901760, %v22405_v39  ;;  %v29598_v57 = vand.u32 4294901760, %v22407_v20  ;;  %3269 = vmatprep.mubr.f32.mxu0 %v3268_v32 }
 0x15c   :  { %18322 = vmatpush3.bf16.msra.mxu1 %v22101_v40  ;;  %18332 = vmatprep.subr.bf16.mxu0 %v22354_v52  ;;  %v3199_v4 = vand.u32 4294901760, %v176_v58  ;;  %v3202_v60 = vand.u32 4294901760, %v177_v24  ;;  %v3326_v44 = vsub.f32 %v22419_v16, %v28755_v47  ;;  %v3333_v5 = vsub.f32 %v22421_v28, %v28758_v37 }
 0x15d   :  { %v3438_v50 = vsub.f32 %v22405_v39, %v29597_v25  ;;  %v3445_v43 = vsub.f32 %v22407_v20, %v29598_v57  ;;  %v195_v25 = vld [vmem:[#allocation5 + $0x3e8] sm:$0xff]  ;;  %18324 = vmatprep.subr.bf16.mxu1 %v22103_v62  ;;  %v22477_v57 = vpack.c.bf16 %v3432_v63, %v3425_v11  ;;  %v22479_v32 = vpack.c.bf16 %v3196_v2, %v3193_v61 }
 0x15e   :  { %v22481_v40 = vsub.f32 %v175_v29, %v3196_v2  ;;  %v28761_v52 = vand.u32 4294901760, %v22434_v26  ;;  %v22484_v6 = vpack.c.bf16 %v3250_v46, %v3247_v1  ;;  %v22486_v30 = vsub.f32 %v192_v49, %v3247_v1 }
 0x15f   :  { %29599 = vst [vmem:[#allocation12_spill] sm:$0xff] %v22479_v32  ;;  %v22488_v47 = vsub.f32 %v193_v0, %v3250_v46  ;;  %v3253_v16 = vand.u32 4294901760, %v194_v8  ;;  %18334 = vmatpush3.bf16.msra.mxu0 %v22356_v7  ;;  %v3439_v37 = vand.u32 4294901760, %v3438_v50  ;;  %v3446_v28 = vand.u32 4294901760, %v3445_v43  ;;  %v179_v46 = vld [vmem:[#allocation5 + $0x368] sm:$0xff]  ;;  %v22512_v43 = vld [vmem:[#allocation5 + $0x3f0] sm:$0xff] }
 0x160   :  { %29600 = vst [vmem:[#allocation23_spill] sm:$0xff] %v22484_v6  ;;  %v3256_v62 = vand.u32 4294901760, %v195_v25  ;;  %v28762_v11 = vand.u32 4294901760, %v22448_v9  ;;  %18326 = vmatpush3.bf16.msra.mxu1 %v22126_v55  ;;  %18336 = vmatprep.subr.bf16.mxu0 %v22358_v51  ;;  %v22494_v63 = vpack.c.bf16 %v3320_v22, %v3313_v41  ;;  %v22496_v29 = vpack.c.bf16 %v3202_v60, %v3199_v4  ;;  %v178_v55 = vld [vmem:[#allocation5 + $0x360] sm:$0xff] }
 0x161   :  { %v3327_v61 = vand.u32 4294901760, %v3326_v44  ;;  %v3334_v49 = vand.u32 4294901760, %v3333_v5  ;;  %18360 = vmatprep.subr.bf16.mxu1 %v22374_v34  ;;  %v22499_v0 = vsub.f32 %v176_v58, %v3199_v4  ;;  %v22501_v2 = vsub.f32 %v177_v24, %v3202_v60  ;;  %v22514_v34 = vld [vmem:[#allocation5 + $0x3f8] sm:$0xff]  ;;  %v44_v44 = vld [vmem:[#allocation2 + $0x30] sm:$0xff] }
 0x162   :  { %v22506_v1 = vsub.f32 %v22434_v26, %v28761_v52  ;;  %v28763_v41 = vand.u32 4294901760, %v22459_v56  ;;  %v22509_v22 = vsub.f32 %v194_v8, %v3253_v16  ;;  %v28770_v50 = vand.u32 4294901760, %v22481_v40 }
 0x163   :  { %29601 = vst [vmem:[#allocation24_spill] sm:$0xff] %v22501_v2  ;;  %3163 = vmatmul.mubr.f32.vlgmr.msra.gmra.mrb[16].mxu1 %v22043_v15  ;;  %18338 = vmatpush3.bf16.msra.mxu0 %v22376_v59  ;;  %v18371_v4 = vpack.c.bf16 %v3446_v28, %v3439_v37  ;;  %v22520_v60 = vpack.c.bf16 %v3256_v62, %v3253_v16  ;;  %v3205_v24 = vand.u32 4294901760, %v178_v55  ;;  %v3208_v58 = vand.u32 4294901760, %v179_v46 }
 0x164   :  { %29602 = vst [vmem:[#allocation25_spill] sm:$0xff] %v22509_v22  ;;  %v3459_v8 = vsub.f32 %v22448_v9, %v28762_v11  ;;  %18362 = vmatpush3.bf16.msra.mxu1 %v22389_v53  ;;  %18340 = vmatprep.subr.bf16.mxu0 %v22401_v14  ;;  %v18373_v5 = vpack.c.bf16 %v3334_v49, %v3327_v61  ;;  %v3453_v15 = vand.u32 4294901760, %v22506_v1  ;;  %v3259_v37 = vand.u32 4294901760, %v22512_v43  ;;  %v22536_v53 = vld [vmem:[#allocation5 + $0x370] sm:$0xff]  ;;  %v22538_v11 = vld [vmem:[#allocation5 + $0x378] sm:$0xff] }
 0x165   :  { %v22527_v52 = vsub.f32 %v195_v25, %v3256_v62  ;;  %18364 = vmatprep.subr.bf16.mxu1 %v22424_v10  ;;  %v3340_v16 = vsub.f32 %v22459_v56, %v28763_v41  ;;  %v3262_v28 = vand.u32 4294901760, %v22514_v34  ;;  %3505 = vmatprep.mubr.f32.mxu1 %v22331_v13  ;;  %v3347_v10 = vsub.f32 %v22481_v40, %v28770_v50 }
 0x166   :  { %v29603_v25 = vand.u32 4294901760, %v22486_v30  ;;  %v29604_v61 = vand.u32 4294901760, %v22488_v47  ;;  %v22550_v1 = vand.u32 4294901760, %v44_v44  ;;  %v3460_v41 = vand.u32 4294901760, %v3459_v8 }
 0x167   :  { %18342 = vmatpush3.bf16.msra.mxu0 %v22417_v33  ;;  %v22560_v50 = vsub.f32 %v179_v46, %v3208_v58  ;;  %v3214_v51 = vand.u32 4294901760, %v22538_v11  ;;  %v3341_v8 = vand.u32 4294901760, %v3340_v16  ;;  %v22566_v14 = vsub.f32 %v22512_v43, %v3259_v37 }
 0x168   :  { %v3466_v62 = vsub.f32 %v22486_v30, %v29603_v25  ;;  %v3473_v49 = vsub.f32 %v22488_v47, %v29604_v61  ;;  %18366 = vmatpush3.bf16.msra.mxu1 %v22453_v19  ;;  %18344 = vmatprep.subr.bf16.mxu0 %v22432_v38  ;;  %v22558_v25 = vsub.f32 %v178_v55, %v3205_v24  ;;  %v3211_v61 = vand.u32 4294901760, %v22536_v53 }
 0x169   :  { %18368 = vmatprep.subr.bf16.mxu1 %v22477_v57  ;;  %v22569_v59 = vsub.f32 %v22514_v34, %v3262_v28  ;;  %v3348_v13 = vand.u32 4294901760, %v3347_v10  ;;  %v22573_v46 = vsub.f32 %v44_v44, %v22550_v1  ;;  %v22576_v33 = vpack.c.bf16 %v3208_v58, %v3205_v24 }
 0x16a   :  { %v3467_v55 = vand.u32 4294901760, %v3466_v62  ;;  %v3474_v38 = vand.u32 4294901760, %v3473_v49  ;;  %v29605_v57 = vand.u32 4294901760, %v22499_v0  ;;  %v29606_v16 = vand.u32 4294901760, %v22501_v2 }
 0x16b   :  { %18346 = vmatpush3.bf16.msra.mxu0 %v22479_v32  ;;  %v29607_v19 = vand.u32 4294901760, %v22509_v22  ;;  %v22590_v44 = vsub.f32 %v22536_v53, %v3211_v61  ;;  %v22593_v58 = vsub.f32 %v22538_v11, %v3214_v51  ;;  %v28788_v62 = vand.u32 4294901760, %v22560_v50 }
 0x16c   :  { %v3354_v43 = vsub.f32 %v22499_v0, %v29605_v57  ;;  %v3361_v34 = vsub.f32 %v22501_v2, %v29606_v16  ;;  %18370 = vmatpush3.bf16.msra.mxu1 %v22494_v63  ;;  %18348 = vmatprep.subr.bf16.mxu0 %v22484_v6  ;;  %v18375_v57 = vpack.c.bf16 %v3460_v41, %v3453_v15  ;;  %v29608_v16 = vand.u32 4294901760, %v22527_v52 }
 0x16d   :  { %v3480_v10 = vsub.f32 %v22509_v22, %v29607_v19  ;;  %v14563_v49 = vpop.f32.mrb[4].mxu0  ;;  %18372 = vmatprep.subr.bf16.mxu1 %v18371_v4  ;;  %v28787_v63 = vand.u32 4294901760, %v22566_v14  ;;  %v18377_v32 = vpack.c.bf16 %v3348_v13, %v3341_v8  ;;  %v22602_v22 = vpack.c.bf16 %v3262_v28, %v3259_v37 }
 0x16e   :  { %v3487_v19 = vsub.f32 %v22527_v52, %v29608_v16  ;;  %v14564_v53 = vpop.f32.mrb[5].mxu0  ;;  %v18379_v11 = vpack.c.bf16 %v3474_v38, %v3467_v55  ;;  %v28789_v24 = vand.u32 4294901760, %v22573_v46  ;;  %v3355_v4 = vand.u32 4294901760, %v3354_v43 }
 0x16f   :  { %v14565_v2 = vadd.f32 %v14564_v53, %v14563_v49  ;;  %18350 = vmatpush3.bf16.msra.mxu0 %v22496_v29  ;;  %v3362_v41 = vand.u32 4294901760, %v3361_v34  ;;  %v3481_v15 = vand.u32 4294901760, %v3480_v10  ;;  %v29609_v16 = vand.u32 4294901760, %v22558_v25 }
 0x170   :  { %18374 = vmatpush3.bf16.msra.mxu1 %v18373_v5  ;;  %18352 = vmatprep.subr.bf16.mxu0 %v22520_v60  ;;  %v3375_v13 = vsub.f32 %v22560_v50, %v28788_v62  ;;  %v28785_v38 = vand.u32 4294901760, %v22590_v44  ;;  %v28786_v37 = vand.u32 4294901760, %v22593_v58  ;;  %v3488_v8 = vand.u32 4294901760, %v3487_v19 }
 0x171   :  { %v3368_v6 = vsub.f32 %v22558_v25, %v29609_v16  ;;  %v1337_v28 = vadd.f32 %v14565_v2, %v22455_v45  ;;  %18376 = vmatprep.subr.bf16.mxu1 %v18375_v57  ;;  %v3494_v5 = vsub.f32 %v22566_v14, %v28787_v63  ;;  %v29610_v55 = vand.u32 4294901760, %v22569_v59 }
 0x172   :  { %v3273_v34 = vsub.f32 %v22573_v46, %v28789_v24  ;;  %v22626_v10 = vpack.c.bf16 %v3214_v51, %v3211_v61  ;;  %v18381_v49 = vpack.c.bf16 %v3362_v41, %v3355_v4  ;;  %v18391_v45 = vpack.c.bf16 %v22231_v12, %v22224_v42 }
 0x173   :  { %v3501_v43 = vsub.f32 %v22569_v59, %v29610_v55  ;;  %18354 = vmatpush3.bf16.msra.mxu0 %v22576_v33  ;;  %v3369_v2 = vand.u32 4294901760, %v3368_v6  ;;  %v3376_v57 = vand.u32 4294901760, %v3375_v13  ;;  %v3382_v19 = vsub.f32 %v22590_v44, %v28785_v38 }
 0x174   :  { %18378 = vmatpush3.bf16.msra.mxu1 %v18377_v32  ;;  %18356 = vmatprep.subr.bf16.mxu0 %v22602_v22  ;;  %v3389_v53 = vsub.f32 %v22593_v58, %v28786_v37  ;;  %v18383_v51 = vpack.c.bf16 %v3488_v8, %v3481_v15  ;;  %v3495_v61 = vand.u32 4294901760, %v3494_v5  ;;  %v3274_v16 = vand.u32 4294901760, %v3273_v34 }
 0x175   :  { %18380 = vmatprep.subr.bf16.mxu1 %v18379_v11  ;;  %v3502_v4 = vand.u32 4294901760, %v3501_v43  ;;  %v18393_v6 = vpack.c.bf16 %v22254_v35, %v22244_v18  ;;  %v18395_v32 = vpack.c.bf16 %v22302_v48, %v22288_v21  ;;  %v18385_v38 = vpack.c.bf16 %v3376_v57, %v3369_v2  ;;  %v29614_v57 = vld [vmem:[#allocation16_spill] sm:$0xff] }
 0x176   :  { %v14598_v41 = vpop.f32.mrb[4].mxu1  ;;  %v3383_v37 = vand.u32 4294901760, %v3382_v19  ;;  %v3390_v11 = vand.u32 4294901760, %v3389_v53  ;;  %v18397_v5 = vpack.c.bf16 %v22334_v17, %v22326_v3  ;;  %v18399_v34 = vpack.c.bf16 %v22372_v27, %v22360_v54  ;;  %v29615_v53 = vld [vmem:[#allocation21_spill] sm:$0xff] }
 0x177   :  { %v14599_v55 = vpop.f32.mrb[5].mxu1  ;;  %18358 = vmatpush3.bf16.msra.mxu0 %v22626_v10  ;;  %v18387_v15 = vpack.c.bf16 %v3502_v4, %v3495_v61  ;;  %v18407_v19 = vpack.c.bf16 %v22448_v9, %v22434_v26  ;;  %v18409_v61 = vpack.c.bf16 %v22481_v40, %v22459_v56  ;;  %v18411_v4 = vpack.c.bf16 %v22488_v47, %v22486_v30 }
 0x178   :  { %v14600_v13 = vadd.f32 %v14599_v55, %v14598_v41  ;;  %18382 = vmatpush3.bf16.msra.mxu1 %v18381_v49  ;;  %18392 = vmatprep.subr.bf16.mxu0 %v18391_v45  ;;  %v18389_v43 = vpack.c.bf16 %v3390_v11, %v3383_v37  ;;  %v18401_v49 = vpack.c.bf16 %v22383_v36, %v22381_v23  ;;  %v29611_v45 = vld [vmem:[#allocation11_spill] sm:$0xff]  ;;  %v29613_v37 = vld [vmem:[#allocation17_spill] sm:$0xff]  ;;  %v29621_v11 = vld [vmem:[#allocation22_spill] sm:$0xff]  ;;  %v29629_v63 = vand.u32 4294901760, %v22254_v35 }
 0x179   :  { %18384 = vmatprep.subr.bf16.mxu1 %v18383_v51  ;;  %v29616_v51 = vand.u32 4294901760, %v22363_v31  ;;  %v29617_v41 = vld [vmem:[#allocation19_spill] sm:$0xff]  ;;  %v29632_v35 = vand.u32 4294901760, %v22326_v3 }
 0x17a   :  { %v1441_v8 = vadd.f32 %v14600_v13, %v1337_v28  ;;  %3275 = vmatmul.mubr.f32.vlgmr.msra.gmra.mrb[18].mxu0 %v3274_v16  ;;  %v18403_v28 = vpack.c.bf16 %v22407_v20, %v22405_v39  ;;  %v29618_v16 = vld [vmem:[#allocation24_spill] sm:$0xff] }
 0x17b   :  { %18394 = vmatpush3.bf16.msra.mxu0 %v18393_v6  ;;  %3642 = vmatprep.mubr.f32.mxu0 %v22363_v31  ;;  %v18413_v55 = vpack.c.bf16 %v29618_v16, %v22499_v0  ;;  %v29619_v6 = vld [vmem:[#allocation20_spill] sm:$0xff]  ;;  %v29620_v31 = vld [vmem:[#allocation25_spill] sm:$0xff] }
 0x17c   :  { %18386 = vmatpush3.bf16.msra.mxu1 %v18385_v38  ;;  %18396 = vmatprep.subr.bf16.mxu0 %v18395_v32  ;;  %v29612_v38 = vld [vmem:[#allocation15_spill] sm:$0xff]  ;;  %v18415_v32 = vpack.c.bf16 %v22527_v52, %v29620_v31 }
 0x17d   :  { %18388 = vmatprep.subr.bf16.mxu1 %v18387_v15  ;;  %v18405_v2 = vpack.c.bf16 %v29613_v37, %v29612_v38 }
 0x17f   :  { %18398 = vmatpush3.bf16.msra.mxu0 %v18397_v5 }
 0x180   :  { %18390 = vmatpush3.bf16.msra.mxu1 %v18389_v43  ;;  %18400 = vmatprep.subr.bf16.mxu0 %v18399_v34  ;;  %v18417_v43 = vpack.c.bf16 %v22560_v50, %v22558_v25  ;;  %v29622_v34 = vld [vmem:[#allocation14_spill] sm:$0xff] }
 0x181   :  { %18424 = vmatprep.subr.bf16.mxu1 %v29611_v45 }
 0x183   :  { %3507 = vmatmul.mubr.f32.vlgmr.msra.gmra.mrb[18].mxu1 %v22550_v1  ;;  %18402 = vmatpush3.bf16.msra.mxu0 %v18401_v49  ;;  %v18419_v49 = vpack.c.bf16 %v22569_v59, %v22566_v14 }
 0x184   :  { %18426 = vmatpush3.bf16.msra.mxu1 %v29614_v57  ;;  %18404 = vmatprep.subr.bf16.mxu0 %v18403_v28 }
 0x185   :  { %18428 = vmatprep.subr.bf16.mxu1 %v29615_v53  ;;  %3749 = vmatprep.mubr.f32.mxu1 %v29616_v51  ;;  %v29624_v51 = vld [vmem:[#allocation12_spill] sm:$0xff] }
 0x187   :  { %18406 = vmatpush3.bf16.msra.mxu0 %v18405_v2  ;;  %v29623_v2 = vld [vmem:[#allocation18_spill] sm:$0xff] }
 0x188   :  { %18430 = vmatpush3.bf16.msra.mxu1 %v22356_v7  ;;  %18408 = vmatprep.subr.bf16.mxu0 %v18407_v19  ;;  %v18421_v19 = vpack.c.bf16 %v22593_v58, %v22590_v44 }
 0x189   :  { %18432 = vmatprep.subr.bf16.mxu1 %v29617_v41 }
 0x18b   :  { %18410 = vmatpush3.bf16.msra.mxu0 %v18409_v61  ;;  %v29625_v61 = vand.u32 4294901760, %v22224_v42  ;;  %v29630_v42 = vand.u32 4294901760, %v22288_v21  ;;  %v29633_v21 = vand.u32 4294901760, %v22334_v17 }
 0x18c   :  { %18434 = vmatpush3.bf16.msra.mxu1 %v29619_v6  ;;  %18412 = vmatprep.subr.bf16.mxu0 %v18411_v4  ;;  %v29626_v4 = vand.u32 4294901760, %v22231_v12  ;;  %v29631_v12 = vand.u32 4294901760, %v22302_v48  ;;  %v29634_v48 = vld [vmem:[#allocation13_spill] sm:$0xff] }
 0x18d   :  { %v14633_v13 = vpop.f32.mrb[6].mxu0  ;;  %18436 = vmatprep.subr.bf16.mxu1 %v29621_v11 }
 0x18e   :  { %v14634_v15 = vpop.f32.mrb[7].mxu0 }
 0x18f   :  { %v14635_v5 = vadd.f32 %v14634_v15, %v14633_v13  ;;  %18414 = vmatpush3.bf16.msra.mxu0 %v18413_v55  ;;  %v18455_v55 = vpack.c.bf16 %v29626_v4, %v29625_v61  ;;  %v29627_v13 = vld [vmem:[#allocation23_spill] sm:$0xff]  ;;  %v18459_v61 = vpack.c.bf16 %v29631_v12, %v29630_v42  ;;  %v29640_v12 = vand.u32 4294901760, %v22407_v20 }
 0x190   :  { %18438 = vmatpush3.bf16.msra.mxu1 %v29622_v34  ;;  %18416 = vmatprep.subr.bf16.mxu0 %v18415_v32  ;;  %v22687_v32 = vld [vmem:[#allocation5 + $0x480] sm:$0xff]  ;;  %v29641_v20 = vand.u32 4294901760, %v29612_v38 }
 0x191   :  { %v1553_v28 = vadd.f32 %v14635_v5, %v1441_v8  ;;  %18440 = vmatprep.subr.bf16.mxu1 %v29623_v2  ;;  %v22689_v8 = vld [vmem:[#allocation5 + $0x488] sm:$0xff]  ;;  %v4079_v4 = vand.u32 4294901760, %v22687_v32 }
 0x193   :  { %18418 = vmatpush3.bf16.msra.mxu0 %v18417_v43  ;;  %v29628_v43 = vand.u32 4294901760, %v22244_v18  ;;  %v22706_v18 = vld [vmem:[#allocation5 + $0x400] sm:$0xff] }
 0x194   :  { %18442 = vmatpush3.bf16.msra.mxu1 %v29624_v51  ;;  %18420 = vmatprep.subr.bf16.mxu0 %v18419_v49  ;;  %v28790_v17 = vand.u32 4294901760, %v22706_v18 }
 0x195   :  { %18444 = vmatprep.subr.bf16.mxu1 %v29627_v13  ;;  %v18457_v62 = vpack.c.bf16 %v29629_v63, %v29628_v43  ;;  %v18461_v63 = vpack.c.bf16 %v29633_v21, %v29632_v35  ;;  %v22721_v43 = vsub.f32 %v22687_v32, %v4079_v4 }
 0x196   :  { %v14668_v15 = vpop.f32.mrb[6].mxu1 }
 0x197   :  { %v14669_v5 = vpop.f32.mrb[7].mxu1  ;;  %18422 = vmatpush3.bf16.msra.mxu0 %v18421_v19  ;;  %v4082_v19 = vand.u32 4294901760, %v22689_v8 }
 0x198   :  { %v14670_v49 = vadd.f32 %v14669_v5, %v14668_v15  ;;  %18446 = vmatpush3.bf16.msra.mxu1 %v22496_v29  ;;  %18456 = vmatprep.subr.bf16.mxu0 %v18455_v55  ;;  %v22713_v55 = vld [vmem:[#allocation5 + $0x408] sm:$0xff]  ;;  %v29636_v15 = vand.u32 4294901760, %v22372_v27  ;;  %v29638_v27 = vand.u32 4294901760, %v22383_v36  ;;  %v201_v36 = vld [vmem:[#allocation5 + $0x418] sm:$0xff] }
 0x199   :  { %18448 = vmatprep.subr.bf16.mxu1 %v22520_v60  ;;  %v22725_v3 = vsub.f32 %v22689_v8, %v4082_v19  ;;  %v4034_v42 = vand.u32 4294901760, %v22713_v55  ;;  %v29639_v8 = vand.u32 4294901760, %v22405_v39  ;;  %v29647_v39 = vand.u32 4294901760, %v22481_v40 }
 0x19a   :  { %v22703_v24 = vadd.f32 %v14670_v49, %v1553_v28  ;;  %3645 = vmatmul.mubr.f32.vlgmr.msra.gmra.mrb[20].mxu0 %v22573_v46  ;;  %v29635_v28 = vand.u32 4294901760, %v22360_v54  ;;  %v22730_v49 = vld [vmem:[#allocation5 + $0x498] sm:$0xff]  ;;  %v29637_v54 = vand.u32 4294901760, %v22381_v23  ;;  %v22749_v23 = vsub.f32 %v22706_v18, %v28790_v17 }
 0x19b   :  { %18458 = vmatpush3.bf16.msra.mxu0 %v18457_v62  ;;  %3919 = vmatprep.mubr.f32.mxu0 %v29634_v48  ;;  %v22728_v62 = vld [vmem:[#allocation5 + $0x490] sm:$0xff]  ;;  %v4088_v21 = vand.u32 4294901760, %v22730_v49  ;;  %v29646_v17 = vand.u32 4294901760, %v22459_v56 }
 0x19c   :  { %18450 = vmatpush3.bf16.msra.mxu1 %v22576_v33  ;;  %18460 = vmatprep.subr.bf16.mxu0 %v18459_v61  ;;  %v18463_v5 = vpack.c.bf16 %v29636_v15, %v29635_v28  ;;  %v18465_v32 = vpack.c.bf16 %v29638_v27, %v29637_v54  ;;  %v18467_v61 = vpack.c.bf16 %v29640_v12, %v29639_v8  ;;  %v4085_v35 = vand.u32 4294901760, %v22728_v62  ;;  %v200_v28 = vld [vmem:[#allocation5 + $0x410] sm:$0xff] }
 0x19d   :  { %18452 = vmatprep.subr.bf16.mxu1 %v22602_v22  ;;  %v29642_v15 = vand.u32 4294901760, %v29613_v37  ;;  %v29643_v54 = vand.u32 4294901760, %v22434_v26  ;;  %v29644_v27 = vand.u32 4294901760, %v22448_v9  ;;  %v29645_v12 = vand.u32 4294901760, %v22573_v46  ;;  %v218_v46 = vld [vmem:[#allocation5 + $0x4a0] sm:$0xff] }
 0x19e   :  { %v18473_v38 = vpack.c.bf16 %v29647_v39, %v29646_v17  ;;  %v29648_v37 = vand.u32 4294901760, %v22486_v30  ;;  %v29650_v9 = vand.u32 4294901760, %v22499_v0  ;;  %v22781_v56 = vsub.f32 %v22728_v62, %v4085_v35 }
 0x19f   :  { %18462 = vmatpush3.bf16.msra.mxu0 %v18461_v63  ;;  %v28795_v63 = vand.u32 4294901760, %v22721_v43  ;;  %v18471_v8 = vpack.c.bf16 %v29644_v27, %v29643_v54  ;;  %v4037_v54 = vand.u32 4294901760, %v200_v28  ;;  %v22784_v40 = vsub.f32 %v22730_v49, %v4088_v21 }
 0x1a0   :  { %18454 = vmatpush3.bf16.msra.mxu1 %v22626_v10  ;;  %18464 = vmatprep.subr.bf16.mxu0 %v18463_v5  ;;  %v18469_v5 = vpack.c.bf16 %v29642_v15, %v29641_v20  ;;  %v29649_v20 = vand.u32 4294901760, %v22488_v47  ;;  %v29651_v15 = vand.u32 4294901760, %v29618_v16  ;;  %v4040_v30 = vand.u32 4294901760, %v201_v36  ;;  %v219_v47 = vld [vmem:[#allocation5 + $0x4a8] sm:$0xff] }
 0x1a1   :  { %18488 = vmatprep.subr.bf16.mxu1 %v29611_v45  ;;  %v22761_v45 = vsub.f32 %v22713_v55, %v4034_v42  ;;  %v4258_v0 = vsub.f32 %v22721_v43, %v28795_v63  ;;  %v47_v16 = vld [vmem:[#allocation2 + $0x48] sm:$0xff]  ;;  %v29652_v17 = vand.u32 4294901760, %v29620_v31  ;;  %v29654_v62 = vand.u32 4294901760, %v22558_v25 }
 0x1a2   :  { %v18475_v26 = vpack.c.bf16 %v29649_v20, %v29648_v37  ;;  %v22777_v55 = vpack.c.bf16 %v29651_v15, %v29650_v9  ;;  %v29655_v49 = vand.u32 4294901760, %v22560_v50  ;;  %v29656_v39 = vand.u32 4294901760, %v22725_v3  ;;  %v203_v9 = vld [vmem:[#allocation5 + $0x428] sm:$0xff] }
 0x1a3   :  { %3753 = vmatmul.mubr.f32.vlgmr.msra.gmra.mrb[20].mxu1 %v29645_v12  ;;  %18466 = vmatpush3.bf16.msra.mxu0 %v18465_v32  ;;  %v29657_v31 = vand.u32 4294901760, %v22566_v14  ;;  %v29659_v25 = vand.u32 4294901760, %v22590_v44  ;;  %v29660_v50 = vand.u32 4294901760, %v22593_v58  ;;  %v22819_v20 = vpack.c.bf16 %v4082_v19, %v4079_v4 }
 0x1a4   :  { %18490 = vmatpush3.bf16.msra.mxu1 %v29614_v57  ;;  %18468 = vmatprep.subr.bf16.mxu0 %v18467_v61  ;;  %v29653_v57 = vand.u32 4294901760, %v22527_v52  ;;  %v22800_v61 = vpack.c.bf16 %v29655_v49, %v29654_v62  ;;  %v4265_v27 = vsub.f32 %v22725_v3, %v29656_v39  ;;  %v29658_v52 = vand.u32 4294901760, %v22569_v59 }
 0x1a5   :  { %18492 = vmatprep.subr.bf16.mxu1 %v29615_v53  ;;  %4023 = vmatprep.mubr.f32.mxu1 %v29634_v48  ;;  %v28794_v53 = vand.u32 4294901760, %v22749_v23  ;;  %v22817_v37 = vpack.c.bf16 %v29660_v50, %v29659_v25  ;;  %v202_v48 = vld [vmem:[#allocation5 + $0x420] sm:$0xff]  ;;  %v28793_v15 = vand.u32 4294901760, %v22761_v45  ;;  %v4091_v14 = vand.u32 4294901760, %v218_v46  ;;  %v221_v25 = vld [vmem:[#allocation5 + $0x4b8] sm:$0xff] }
 0x1a6   :  { %v22794_v32 = vpack.c.bf16 %v29653_v57, %v29652_v17  ;;  %v22811_v12 = vpack.c.bf16 %v29658_v52, %v29657_v31  ;;  %v22822_v17 = vsub.f32 %v200_v28, %v4037_v54  ;;  %v4094_v57 = vand.u32 4294901760, %v219_v47  ;;  %v220_v52 = vld [vmem:[#allocation5 + $0x4b0] sm:$0xff] }
 0x1a7   :  { %18470 = vmatpush3.bf16.msra.mxu0 %v18469_v5  ;;  %v22824_v59 = vand.u32 4294901760, %v47_v16  ;;  %v22827_v44 = vsub.f32 %v201_v36, %v4040_v30  ;;  %v4259_v58 = vand.u32 4294901760, %v4258_v0  ;;  %v28792_v4 = vand.u32 4294901760, %v22781_v56 }
 0x1a8   :  { %18494 = vmatpush3.bf16.msra.mxu1 %v22356_v7  ;;  %18472 = vmatprep.subr.bf16.mxu0 %v18471_v8  ;;  %v28791_v19 = vand.u32 4294901760, %v22784_v40  ;;  %v4266_v62 = vand.u32 4294901760, %v4265_v27  ;;  %v4043_v5 = vand.u32 4294901760, %v202_v48  ;;  %v4046_v28 = vand.u32 4294901760, %v203_v9 }
 0x1a9   :  { %29661 = vst [vmem:[#allocation11_spill] sm:$0xff] %v22824_v59  ;;  %18496 = vmatprep.subr.bf16.mxu1 %v29617_v41  ;;  %v4146_v49 = vsub.f32 %v22749_v23, %v28794_v53  ;;  %v29662_v39 = vand.u32 4294901760, %v22706_v18  ;;  %v22839_v36 = vpack.c.bf16 %v4088_v21, %v4085_v35  ;;  %v22841_v8 = vpack.c.bf16 %v4040_v30, %v4037_v54  ;;  %v204_v21 = vld [vmem:[#allocation5 + $0x430] sm:$0xff] }
 0x1aa   :  { %v4153_v0 = vsub.f32 %v22761_v45, %v28793_v15  ;;  %v22846_v41 = vpack.c.bf16 %v4094_v57, %v4091_v14  ;;  %v22848_v27 = vsub.f32 %v218_v46, %v4091_v14  ;;  %v22850_v31 = vsub.f32 %v219_v47, %v4094_v57  ;;  %v223_v15 = vld [vmem:[#allocation5 + $0x4c8] sm:$0xff] }
 0x1ab   :  { %v22837_v7 = vpack.c.bf16 %v4034_v42, %v29662_v39  ;;  %29664 = vst [vmem:[#allocation17_spill] sm:$0xff] %v22839_v36  ;;  %18474 = vmatpush3.bf16.msra.mxu0 %v18473_v38  ;;  %v22853_v18 = vsub.f32 %v47_v16, %v22824_v59  ;;  %v4272_v42 = vsub.f32 %v22781_v56, %v28792_v4  ;;  %v205_v38 = vld [vmem:[#allocation5 + $0x438] sm:$0xff]  ;;  %v28797_v54 = vand.u32 4294901760, %v22822_v17  ;;  %v222_v4 = vld [vmem:[#allocation5 + $0x4c0] sm:$0xff] }
 0x1ac   :  { %29665 = vst [vmem:[#allocation16_spill] sm:$0xff] %v22846_v41  ;;  %18498 = vmatpush3.bf16.msra.mxu1 %v29619_v6  ;;  %18476 = vmatprep.subr.bf16.mxu0 %v18475_v26  ;;  %v4279_v35 = vsub.f32 %v22784_v40, %v28791_v19  ;;  %v28796_v30 = vand.u32 4294901760, %v22827_v44  ;;  %v22865_v47 = vpack.c.bf16 %v4266_v62, %v4259_v58  ;;  %v4147_v16 = vand.u32 4294901760, %v4146_v49 }
 0x1ad   :  { %29663 = vst [vmem:[#allocation15_spill] sm:$0xff] %v22837_v7  ;;  %v14703_v46 = vpop.f32.mrb[8].mxu0  ;;  %18500 = vmatprep.subr.bf16.mxu1 %v29621_v11  ;;  %v22867_v6 = vpack.c.bf16 %v4046_v28, %v4043_v5  ;;  %v22869_v26 = vsub.f32 %v202_v48, %v4043_v5  ;;  %v22871_v14 = vsub.f32 %v203_v9, %v4046_v28  ;;  %v4154_v57 = vand.u32 4294901760, %v4153_v0 }
 0x1ae   :  { %v14704_v50 = vpop.f32.mrb[9].mxu0  ;;  %v4097_v39 = vand.u32 4294901760, %v220_v52  ;;  %v4100_v19 = vand.u32 4294901760, %v221_v25  ;;  %v4049_v63 = vand.u32 4294901760, %v204_v21  ;;  %v4052_v11 = vand.u32 4294901760, %v205_v38 }
 0x1af   :  { %29666 = vst [vmem:[#allocation21_spill] sm:$0xff] %v22867_v6  ;;  %v14705_v53 = vadd.f32 %v14704_v50, %v14703_v46  ;;  %18478 = vmatpush3.bf16.msra.mxu0 %v22777_v55  ;;  %v28801_v58 = vand.u32 4294901760, %v22853_v18  ;;  %v4273_v48 = vand.u32 4294901760, %v4272_v42  ;;  %v4280_v62 = vand.u32 4294901760, %v4279_v35 }
 0x1b0   :  { %18502 = vmatpush3.bf16.msra.mxu1 %v29622_v34  ;;  %18480 = vmatprep.subr.bf16.mxu0 %v22794_v32  ;;  %v4160_v9 = vsub.f32 %v22822_v17, %v28797_v54  ;;  %v4167_v5 = vsub.f32 %v22827_v44, %v28796_v30  ;;  %v4103_v28 = vand.u32 4294901760, %v222_v4  ;;  %v4106_v49 = vand.u32 4294901760, %v223_v15 }
 0x1b1   :  { %v1923_v55 = vadd.f32 %v14705_v53, %v22703_v24  ;;  %18504 = vmatprep.subr.bf16.mxu1 %v29623_v2  ;;  %v28799_v34 = vand.u32 4294901760, %v22848_v27  ;;  %v22886_v0 = vpack.c.bf16 %v4154_v57, %v4147_v16  ;;  %v22888_v32 = vpack.c.bf16 %v4100_v19, %v4097_v39  ;;  %v206_v24 = vld [vmem:[#allocation5 + $0x440] sm:$0xff]  ;;  %v207_v2 = vld [vmem:[#allocation5 + $0x448] sm:$0xff] }
 0x1b2   :  { %v22890_v42 = vsub.f32 %v220_v52, %v4097_v39  ;;  %v28798_v35 = vand.u32 4294901760, %v22850_v31  ;;  %v22894_v46 = vsub.f32 %v221_v25, %v4100_v19  ;;  %v22896_v50 = vpack.c.bf16 %v4052_v11, %v4049_v63 }
 0x1b3   :  { %29667 = vst [vmem:[#allocation19_spill] sm:$0xff] %v22888_v32  ;;  %18482 = vmatpush3.bf16.msra.mxu0 %v22800_v61  ;;  %v28800_v53 = vand.u32 4294901760, %v22869_v26  ;;  %v4129_v16 = vsub.f32 %v22853_v18, %v28801_v58  ;;  %v22904_v52 = vsub.f32 %v204_v21, %v4049_v63  ;;  %v22906_v57 = vsub.f32 %v205_v38, %v4052_v11  ;;  %v224_v11 = vld [vmem:[#allocation5 + $0x4d0] sm:$0xff] }
 0x1b4   :  { %29668 = vst [vmem:[#allocation24_spill] sm:$0xff] %v22896_v50  ;;  %18506 = vmatpush3.bf16.msra.mxu1 %v29624_v51  ;;  %18484 = vmatprep.subr.bf16.mxu0 %v22811_v12  ;;  %v4161_v61 = vand.u32 4294901760, %v4160_v9  ;;  %v28802_v19 = vand.u32 4294901760, %v22871_v14  ;;  %v22910_v25 = vpack.c.bf16 %v4280_v62, %v4273_v48  ;;  %v4168_v39 = vand.u32 4294901760, %v4167_v5  ;;  %v225_v62 = vld [vmem:[#allocation5 + $0x4d8] sm:$0xff]  ;;  %v208_v9 = vld [vmem:[#allocation5 + $0x450] sm:$0xff] }
 0x1b5   :  { %29669 = vst [vmem:[#allocation20_spill] sm:$0xff] %v22904_v52  ;;  %29670 = vst [vmem:[#allocation25_spill] sm:$0xff] %v22906_v57  ;;  %18508 = vmatprep.subr.bf16.mxu1 %v29627_v13  ;;  %v22912_v30 = vpack.c.bf16 %v4106_v49, %v4103_v28  ;;  %v4286_v51 = vsub.f32 %v22848_v27, %v28799_v34  ;;  %v22917_v12 = vsub.f32 %v222_v4, %v4103_v28 }
 0x1b6   :  { %v14738_v54 = vpop.f32.mrb[8].mxu1  ;;  %v4293_v63 = vsub.f32 %v22850_v31, %v28798_v35  ;;  %v4055_v21 = vand.u32 4294901760, %v206_v24  ;;  %v4058_v38 = vand.u32 4294901760, %v207_v2  ;;  %v4174_v48 = vsub.f32 %v22869_v26, %v28800_v53 }
 0x1b7   :  { %29671 = vst [vmem:[#allocation22_spill] sm:$0xff] %v22912_v30  ;;  %v14739_v13 = vpop.f32.mrb[9].mxu1  ;;  %18486 = vmatpush3.bf16.msra.mxu0 %v22817_v37  ;;  %v4130_v5 = vand.u32 4294901760, %v4129_v16  ;;  %v4181_v35 = vsub.f32 %v22871_v14, %v28802_v19  ;;  %v22936_v53 = vpack.c.bf16 %v4168_v39, %v4161_v61  ;;  %v22938_v58 = vsub.f32 %v223_v15, %v4106_v49  ;;  %v209_v37 = vld [vmem:[#allocation5 + $0x458] sm:$0xff] }
 0x1b8   :  { %v14740_v28 = vadd.f32 %v14739_v13, %v14738_v54  ;;  %18510 = vmatpush3.bf16.msra.mxu1 %v22496_v29  ;;  %18520 = vmatprep.subr.bf16.mxu0 %v22819_v20  ;;  %v4287_v16 = vand.u32 4294901760, %v4286_v51  ;;  %v4109_v54 = vand.u32 4294901760, %v224_v11  ;;  %v4294_v29 = vand.u32 4294901760, %v4293_v63 }
 0x1b9   :  { %18512 = vmatprep.subr.bf16.mxu1 %v22520_v60  ;;  %v22943_v4 = vsub.f32 %v206_v24, %v4055_v21  ;;  %v4112_v19 = vand.u32 4294901760, %v225_v62  ;;  %v22946_v34 = vpack.c.bf16 %v4058_v38, %v4055_v21  ;;  %v29673_v60 = vand.u32 4294901760, %v22890_v42 }
 0x1ba   :  { %v22940_v13 = vadd.f32 %v14740_v28, %v1923_v55  ;;  %3921 = vmatmul.mubr.f32.vlgmr.msra.gmra.mrb[22].mxu0 %v22550_v1  ;;  %v29674_v49 = vand.u32 4294901760, %v22894_v46  ;;  %v4175_v24 = vand.u32 4294901760, %v4174_v48  ;;  %v4182_v61 = vand.u32 4294901760, %v4181_v35  ;;  %v226_v28 = vld [vmem:[#allocation5 + $0x4e0] sm:$0xff] }
 0x1bb   :  { %18522 = vmatpush3.bf16.msra.mxu0 %v22837_v7  ;;  %29672 = vst [vmem:[#allocation14_spill] sm:$0xff] %v22946_v34  ;;  %v4300_v15 = vsub.f32 %v22890_v42, %v29673_v60  ;;  %4131 = vmatprep.mubr.f32.mxu0 %v4130_v5  ;;  %v29675_v39 = vand.u32 4294901760, %v22904_v52  ;;  %v29676_v63 = vand.u32 4294901760, %v22906_v57  ;;  %v227_v60 = vld [vmem:[#allocation5 + $0x4e8] sm:$0xff]  ;;  %v4061_v5 = vand.u32 4294901760, %v208_v9 }
 0x1bc   :  { %v4307_v55 = vsub.f32 %v22894_v46, %v29674_v49  ;;  %18514 = vmatpush3.bf16.msra.mxu1 %v22576_v33  ;;  %18524 = vmatprep.subr.bf16.mxu0 %v22839_v36  ;;  %v22963_v49 = vsub.f32 %v207_v2, %v4058_v38  ;;  %v4064_v33 = vand.u32 4294901760, %v209_v37  ;;  %v28811_v36 = vand.u32 4294901760, %v22917_v12 }
 0x1bd   :  { %v4188_v51 = vsub.f32 %v22904_v52, %v29675_v39  ;;  %v4195_v21 = vsub.f32 %v22906_v57, %v29676_v63  ;;  %18516 = vmatprep.subr.bf16.mxu1 %v22602_v22  ;;  %v22966_v48 = vpack.c.bf16 %v4294_v29, %v4287_v16  ;;  %v22968_v35 = vpack.c.bf16 %v4112_v19, %v4109_v54 }
 0x1be   :  { %v22970_v7 = vsub.f32 %v224_v11, %v4109_v54  ;;  %v22972_v39 = vsub.f32 %v225_v62, %v4112_v19  ;;  %v4301_v63 = vand.u32 4294901760, %v4300_v15  ;;  %v4308_v57 = vand.u32 4294901760, %v4307_v55  ;;  %v210_v11 = vld [vmem:[#allocation5 + $0x460] sm:$0xff] }
 0x1bf   :  { %29677 = vst [vmem:[#allocation18_spill] sm:$0xff] %v22968_v35  ;;  %18526 = vmatpush3.bf16.msra.mxu0 %v22841_v8  ;;  %v4115_v52 = vand.u32 4294901760, %v226_v28  ;;  %v4118_v22 = vand.u32 4294901760, %v227_v60  ;;  %v22977_v2 = vpack.c.bf16 %v4182_v61, %v4175_v24  ;;  %v4189_v38 = vand.u32 4294901760, %v4188_v51  ;;  %v22994_v61 = vld [vmem:[#allocation5 + $0x4f0] sm:$0xff]  ;;  %v22996_v51 = vld [vmem:[#allocation5 + $0x4f8] sm:$0xff] }
 0x1c0   :  { %29678 = vst [vmem:[#allocation12_spill] sm:$0xff] %v22972_v39  ;;  %18518 = vmatpush3.bf16.msra.mxu1 %v22626_v10  ;;  %18528 = vmatprep.subr.bf16.mxu0 %v22846_v41  ;;  %v4196_v16 = vand.u32 4294901760, %v4195_v21  ;;  %v28812_v29 = vand.u32 4294901760, %v22938_v58  ;;  %v22981_v19 = vpack.c.bf16 %v4064_v33, %v4061_v5  ;;  %v22983_v62 = vsub.f32 %v208_v9, %v4061_v5  ;;  %v211_v10 = vld [vmem:[#allocation5 + $0x468] sm:$0xff] }
 0x1c1   :  { %18552 = vmatprep.subr.bf16.mxu1 %v22865_v47  ;;  %v22988_v54 = vsub.f32 %v22917_v12, %v28811_v36  ;;  %v22991_v55 = vsub.f32 %v209_v37, %v4064_v33  ;;  %v28819_v47 = vand.u32 4294901760, %v22970_v7  ;;  %v18563_v21 = vpack.c.bf16 %v4308_v57, %v4301_v63  ;;  %v46_v33 = vld [vmem:[#allocation2 + $0x40] sm:$0xff] }
 0x1c2   :  { %v23002_v5 = vpack.c.bf16 %v4118_v22, %v4115_v52  ;;  %v23004_v36 = vsub.f32 %v226_v28, %v4115_v52  ;;  %v4067_v37 = vand.u32 4294901760, %v210_v11  ;;  %v18565_v24 = vpack.c.bf16 %v4196_v16, %v4189_v38  ;;  %v23020_v38 = vld [vmem:[#allocation5 + $0x470] sm:$0xff] }
 0x1c3   :  { %29679 = vst [vmem:[#allocation23_spill] sm:$0xff] %v22991_v55  ;;  %4025 = vmatmul.mubr.f32.vlgmr.msra.gmra.mrb[22].mxu1 %v22550_v1  ;;  %18530 = vmatpush3.bf16.msra.mxu0 %v22867_v6  ;;  %v23008_v15 = vsub.f32 %v227_v60, %v4118_v22  ;;  %v4321_v1 = vsub.f32 %v22938_v58, %v28812_v29  ;;  %v4070_v9 = vand.u32 4294901760, %v211_v10  ;;  %v4315_v57 = vand.u32 4294901760, %v22988_v54  ;;  %v23022_v60 = vld [vmem:[#allocation5 + $0x478] sm:$0xff] }
 0x1c4   :  { %29680 = vst [vmem:[#allocation13_spill] sm:$0xff] %v23004_v36  ;;  %18554 = vmatpush3.bf16.msra.mxu1 %v22886_v0  ;;  %18532 = vmatprep.subr.bf16.mxu0 %v22888_v32  ;;  %v29681_v52 = vand.u32 4294901760, %v22943_v4  ;;  %v4121_v0 = vand.u32 4294901760, %v22994_v61  ;;  %v4124_v63 = vand.u32 4294901760, %v22996_v51  ;;  %v29682_v22 = vand.u32 4294901760, %v22963_v49 }
 0x1c5   :  { %18556 = vmatprep.subr.bf16.mxu1 %v22910_v25  ;;  %4367 = vmatprep.mubr.f32.mxu1 %v22824_v59  ;;  %v4328_v16 = vsub.f32 %v22970_v7, %v28819_v47  ;;  %v29683_v54 = vand.u32 4294901760, %v22972_v39  ;;  %v23034_v29 = vand.u32 4294901760, %v46_v33  ;;  %v23037_v32 = vsub.f32 %v210_v11, %v4067_v37 }
 0x1c6   :  { %v4202_v28 = vsub.f32 %v22943_v4, %v29681_v52  ;;  %v4209_v25 = vsub.f32 %v22963_v49, %v29682_v22  ;;  %v4322_v47 = vand.u32 4294901760, %v4321_v1  ;;  %v23044_v41 = vsub.f32 %v211_v10, %v4070_v9 }
 0x1c7   :  { %v4335_v52 = vsub.f32 %v22972_v39, %v29683_v54  ;;  %18534 = vmatpush3.bf16.msra.mxu0 %v22896_v50  ;;  %v4073_v54 = vand.u32 4294901760, %v23020_v38  ;;  %v4076_v39 = vand.u32 4294901760, %v23022_v60  ;;  %v23050_v59 = vsub.f32 %v22994_v61, %v4121_v0 }
 0x1c8   :  { %18558 = vmatpush3.bf16.msra.mxu1 %v22936_v53  ;;  %18536 = vmatprep.subr.bf16.mxu0 %v22912_v30  ;;  %v4203_v11 = vand.u32 4294901760, %v4202_v28  ;;  %v23053_v6 = vsub.f32 %v22996_v51, %v4124_v63  ;;  %v4210_v22 = vand.u32 4294901760, %v4209_v25  ;;  %v4329_v30 = vand.u32 4294901760, %v4328_v16 }
 0x1c9   :  { %18560 = vmatprep.subr.bf16.mxu1 %v22966_v48  ;;  %v4336_v1 = vand.u32 4294901760, %v4335_v52  ;;  %v23057_v10 = vsub.f32 %v46_v33, %v23034_v29  ;;  %v23060_v50 = vpack.c.bf16 %v4070_v9, %v4067_v37  ;;  %v29684_v48 = vand.u32 4294901760, %v22983_v62 }
 0x1ca   :  { %v29685_v28 = vand.u32 4294901760, %v22991_v55  ;;  %v29686_v53 = vand.u32 4294901760, %v23004_v36  ;;  %v23074_v33 = vsub.f32 %v23020_v38, %v4073_v54  ;;  %v23077_v9 = vsub.f32 %v23022_v60, %v4076_v39 }
 0x1cb   :  { %18538 = vmatpush3.bf16.msra.mxu0 %v22946_v34  ;;  %v4216_v61 = vsub.f32 %v22983_v62, %v29684_v48  ;;  %v28839_v16 = vand.u32 4294901760, %v23044_v41  ;;  %v18567_v48 = vpack.c.bf16 %v4322_v47, %v4315_v57  ;;  %v18569_v34 = vpack.c.bf16 %v4210_v22, %v4203_v11 }
 0x1cc   :  { %v4223_v51 = vsub.f32 %v22991_v55, %v29685_v28  ;;  %v4342_v25 = vsub.f32 %v23004_v36, %v29686_v53  ;;  %18562 = vmatpush3.bf16.msra.mxu1 %v22977_v2  ;;  %18540 = vmatprep.subr.bf16.mxu0 %v22968_v35  ;;  %v29687_v28 = vand.u32 4294901760, %v23008_v15  ;;  %v28838_v2 = vand.u32 4294901760, %v23050_v59 }
 0x1cd   :  { %v14773_v52 = vpop.f32.mrb[10].mxu0  ;;  %18564 = vmatprep.subr.bf16.mxu1 %v18563_v21  ;;  %v23086_v36 = vpack.c.bf16 %v4124_v63, %v4121_v0  ;;  %v18571_v60 = vpack.c.bf16 %v4336_v1, %v4329_v30  ;;  %v28840_v37 = vand.u32 4294901760, %v23057_v10  ;;  %v4217_v21 = vand.u32 4294901760, %v4216_v61 }
 0x1ce   :  { %v4349_v53 = vsub.f32 %v23008_v15, %v29687_v28  ;;  %v14774_v38 = vpop.f32.mrb[11].mxu0  ;;  %v4224_v47 = vand.u32 4294901760, %v4223_v51  ;;  %v4343_v57 = vand.u32 4294901760, %v4342_v25  ;;  %v29688_v28 = vand.u32 4294901760, %v23037_v32 }
 0x1cf   :  { %v14775_v55 = vadd.f32 %v14774_v38, %v14773_v52  ;;  %18542 = vmatpush3.bf16.msra.mxu0 %v22981_v19  ;;  %v4237_v0 = vsub.f32 %v23044_v41, %v28839_v16  ;;  %v28836_v30 = vand.u32 4294901760, %v23074_v33  ;;  %v28837_v63 = vand.u32 4294901760, %v23077_v9 }
 0x1d0   :  { %18566 = vmatpush3.bf16.msra.mxu1 %v18565_v24  ;;  %18544 = vmatprep.subr.bf16.mxu0 %v23002_v5  ;;  %v4230_v35 = vsub.f32 %v23037_v32, %v29688_v28  ;;  %v4350_v11 = vand.u32 4294901760, %v4349_v53  ;;  %v4356_v24 = vsub.f32 %v23050_v59, %v28838_v2  ;;  %v29689_v1 = vand.u32 4294901760, %v23053_v6 }
 0x1d1   :  { %v2199_v22 = vadd.f32 %v14775_v55, %v22940_v13  ;;  %18568 = vmatprep.subr.bf16.mxu1 %v18567_v48  ;;  %v4135_v51 = vsub.f32 %v23057_v10, %v28840_v37  ;;  %v23110_v25 = vpack.c.bf16 %v4076_v39, %v4073_v54  ;;  %v18573_v52 = vpack.c.bf16 %v4224_v47, %v4217_v21 }
 0x1d2   :  { %v4363_v61 = vsub.f32 %v23053_v6, %v29689_v1  ;;  %v18583_v13 = vpack.c.bf16 %v22725_v3, %v22721_v43  ;;  %v4231_v55 = vand.u32 4294901760, %v4230_v35  ;;  %v4238_v48 = vand.u32 4294901760, %v4237_v0 }
 0x1d3   :  { %18546 = vmatpush3.bf16.msra.mxu0 %v23060_v50  ;;  %v4244_v53 = vsub.f32 %v23074_v33, %v28836_v30  ;;  %v4251_v38 = vsub.f32 %v23077_v9, %v28837_v63  ;;  %v18575_v39 = vpack.c.bf16 %v4350_v11, %v4343_v57  ;;  %v4357_v54 = vand.u32 4294901760, %v4356_v24 }
 0x1d4   :  { %18570 = vmatpush3.bf16.msra.mxu1 %v18569_v34  ;;  %18548 = vmatprep.subr.bf16.mxu0 %v23086_v36  ;;  %v4364_v21 = vand.u32 4294901760, %v4363_v61  ;;  %v4136_v28 = vand.u32 4294901760, %v4135_v51  ;;  %v18585_v34 = vpack.c.bf16 %v22761_v45, %v22749_v23  ;;  %v18587_v35 = vpack.c.bf16 %v22784_v40, %v22781_v56 }
 0x1d5   :  { %18572 = vmatprep.subr.bf16.mxu1 %v18571_v60  ;;  %v18577_v30 = vpack.c.bf16 %v4238_v48, %v4231_v55  ;;  %v4245_v63 = vand.u32 4294901760, %v4244_v53  ;;  %v4252_v60 = vand.u32 4294901760, %v4251_v38  ;;  %v18589_v24 = vpack.c.bf16 %v22827_v44, %v22822_v17  ;;  %v29692_v55 = vld [vmem:[#allocation15_spill] sm:$0xff]  ;;  %v29693_v53 = vld [vmem:[#allocation17_spill] sm:$0xff] }
 0x1d6   :  { %v14808_v47 = vpop.f32.mrb[10].mxu1  ;;  %v18579_v57 = vpack.c.bf16 %v4364_v21, %v4357_v54  ;;  %v18591_v51 = vpack.c.bf16 %v22850_v31, %v22848_v27  ;;  %v18599_v48 = vpack.c.bf16 %v22938_v58, %v22917_v12  ;;  %v29694_v38 = vand.u32 4294901760, %v22853_v18  ;;  %v29695_v54 = vld [vmem:[#allocation12_spill] sm:$0xff] }
 0x1d7   :  { %v14809_v1 = vpop.f32.mrb[11].mxu1  ;;  %18550 = vmatpush3.bf16.msra.mxu0 %v23110_v25  ;;  %v18581_v61 = vpack.c.bf16 %v4252_v60, %v4245_v63  ;;  %v29691_v63 = vld [vmem:[#allocation25_spill] sm:$0xff]  ;;  %v18603_v21 = vpack.c.bf16 %v29695_v54, %v22970_v7  ;;  %v29700_v60 = vld [vmem:[#allocation19_spill] sm:$0xff]  ;;  %v29708_v2 = vand.u32 4294901760, %v22761_v45  ;;  %v29711_v45 = vand.u32 4294901760, %v22822_v17 }
 0x1d8   :  { %v14810_v0 = vadd.f32 %v14809_v1, %v14808_v47  ;;  %18574 = vmatpush3.bf16.msra.mxu1 %v18573_v52  ;;  %18584 = vmatprep.subr.bf16.mxu0 %v18583_v13  ;;  %v18593_v52 = vpack.c.bf16 %v22871_v14, %v22869_v26  ;;  %v29696_v47 = vld [vmem:[#allocation16_spill] sm:$0xff] }
 0x1d9   :  { %18576 = vmatprep.subr.bf16.mxu1 %v18575_v39  ;;  %v18601_v39 = vpack.c.bf16 %v22963_v49, %v22943_v4 }
 0x1da   :  { %v2303_v11 = vadd.f32 %v14810_v0, %v2199_v22  ;;  %4137 = vmatmul.mubr.f32.vlgmr.msra.gmra.mrb[24].mxu0 %v4136_v28  ;;  %v18595_v22 = vpack.c.bf16 %v22894_v46, %v22890_v42  ;;  %v29697_v28 = vld [vmem:[#allocation23_spill] sm:$0xff] }
 0x1db   :  { %18586 = vmatpush3.bf16.msra.mxu0 %v18585_v34  ;;  %4504 = vmatprep.mubr.f32.mxu0 %v22853_v18  ;;  %v18605_v1 = vpack.c.bf16 %v29697_v28, %v22983_v62  ;;  %v29698_v34 = vld [vmem:[#allocation21_spill] sm:$0xff] }
 0x1dc   :  { %18578 = vmatpush3.bf16.msra.mxu1 %v18577_v30  ;;  %18588 = vmatprep.subr.bf16.mxu0 %v18587_v35  ;;  %v29690_v30 = vld [vmem:[#allocation20_spill] sm:$0xff]  ;;  %v29699_v18 = vld [vmem:[#allocation13_spill] sm:$0xff] }
 0x1dd   :  { %18580 = vmatprep.subr.bf16.mxu1 %v18579_v57  ;;  %v18597_v13 = vpack.c.bf16 %v29691_v63, %v29690_v30  ;;  %v18607_v35 = vpack.c.bf16 %v23008_v15, %v29699_v18 }
 0x1df   :  { %18590 = vmatpush3.bf16.msra.mxu0 %v18589_v24 }
 0x1e0   :  { %18582 = vmatpush3.bf16.msra.mxu1 %v18581_v61  ;;  %18592 = vmatprep.subr.bf16.mxu0 %v18591_v51  ;;  %v18609_v61 = vpack.c.bf16 %v23044_v41, %v23037_v32  ;;  %v29701_v51 = vld [vmem:[#allocation24_spill] sm:$0xff] }
 0x1e1   :  { %18616 = vmatprep.subr.bf16.mxu1 %v22819_v20 }
 0x1e3   :  { %4369 = vmatmul.mubr.f32.vlgmr.msra.gmra.mrb[24].mxu1 %v23034_v29  ;;  %18594 = vmatpush3.bf16.msra.mxu0 %v18593_v52  ;;  %v18611_v52 = vpack.c.bf16 %v23053_v6, %v23050_v59 }
 0x1e4   :  { %18618 = vmatpush3.bf16.msra.mxu1 %v29692_v55  ;;  %18596 = vmatprep.subr.bf16.mxu0 %v18595_v22 }
 0x1e5   :  { %18620 = vmatprep.subr.bf16.mxu1 %v29693_v53  ;;  %4611 = vmatprep.mubr.f32.mxu1 %v29694_v38  ;;  %v29703_v38 = vld [vmem:[#allocation14_spill] sm:$0xff] }
 0x1e7   :  { %18598 = vmatpush3.bf16.msra.mxu0 %v18597_v13  ;;  %v29702_v13 = vld [vmem:[#allocation22_spill] sm:$0xff] }
 0x1e8   :  { %18622 = vmatpush3.bf16.msra.mxu1 %v22841_v8  ;;  %18600 = vmatprep.subr.bf16.mxu0 %v18599_v48  ;;  %v18613_v48 = vpack.c.bf16 %v23077_v9, %v23074_v33 }
 0x1e9   :  { %18624 = vmatprep.subr.bf16.mxu1 %v29696_v47 }
 0x1eb   :  { %18602 = vmatpush3.bf16.msra.mxu0 %v18601_v39  ;;  %v29704_v39 = vand.u32 4294901760, %v22721_v43  ;;  %v29709_v43 = vand.u32 4294901760, %v22781_v56  ;;  %v29712_v56 = vand.u32 4294901760, %v22827_v44 }
 0x1ec   :  { %18626 = vmatpush3.bf16.msra.mxu1 %v29698_v34  ;;  %18604 = vmatprep.subr.bf16.mxu0 %v18603_v21  ;;  %v29705_v21 = vand.u32 4294901760, %v22725_v3  ;;  %v29710_v3 = vand.u32 4294901760, %v22784_v40  ;;  %v29713_v40 = vld [vmem:[#allocation11_spill] sm:$0xff] }
 0x1ed   :  { %v14843_v0 = vpop.f32.mrb[12].mxu0  ;;  %18628 = vmatprep.subr.bf16.mxu1 %v29700_v60 }
 0x1ee   :  { %v14844_v57 = vpop.f32.mrb[13].mxu0 }
 0x1ef   :  { %v14845_v24 = vadd.f32 %v14844_v57, %v14843_v0  ;;  %18606 = vmatpush3.bf16.msra.mxu0 %v18605_v1  ;;  %v18647_v1 = vpack.c.bf16 %v29705_v21, %v29704_v39  ;;  %v29706_v0 = vld [vmem:[#allocation18_spill] sm:$0xff]  ;;  %v18651_v39 = vpack.c.bf16 %v29710_v3, %v29709_v43  ;;  %v29719_v3 = vand.u32 4294901760, %v22894_v46 }
 0x1f0   :  { %18630 = vmatpush3.bf16.msra.mxu1 %v29701_v51  ;;  %18608 = vmatprep.subr.bf16.mxu0 %v18607_v35  ;;  %v23171_v35 = vld [vmem:[#allocation5 + $0x580] sm:$0xff]  ;;  %v29720_v46 = vand.u32 4294901760, %v29690_v30 }
 0x1f1   :  { %v2415_v22 = vadd.f32 %v14845_v24, %v2303_v11  ;;  %18632 = vmatprep.subr.bf16.mxu1 %v29702_v13  ;;  %v23173_v11 = vld [vmem:[#allocation5 + $0x588] sm:$0xff]  ;;  %v4941_v21 = vand.u32 4294901760, %v23171_v35 }
 0x1f3   :  { %18610 = vmatpush3.bf16.msra.mxu0 %v18609_v61  ;;  %v29707_v61 = vand.u32 4294901760, %v22749_v23  ;;  %v23190_v23 = vld [vmem:[#allocation5 + $0x500] sm:$0xff] }
 0x1f4   :  { %18634 = vmatpush3.bf16.msra.mxu1 %v29703_v38  ;;  %18612 = vmatprep.subr.bf16.mxu0 %v18611_v52  ;;  %v28841_v44 = vand.u32 4294901760, %v23190_v23 }
 0x1f5   :  { %18636 = vmatprep.subr.bf16.mxu1 %v29706_v0  ;;  %v18649_v16 = vpack.c.bf16 %v29708_v2, %v29707_v61  ;;  %v18653_v2 = vpack.c.bf16 %v29712_v56, %v29711_v45  ;;  %v23205_v61 = vsub.f32 %v23171_v35, %v4941_v21 }
 0x1f6   :  { %v14878_v57 = vpop.f32.mrb[12].mxu1 }
 0x1f7   :  { %v14879_v24 = vpop.f32.mrb[13].mxu1  ;;  %18614 = vmatpush3.bf16.msra.mxu0 %v18613_v48  ;;  %v4944_v48 = vand.u32 4294901760, %v23173_v11 }
 0x1f8   :  { %v14880_v52 = vadd.f32 %v14879_v24, %v14878_v57  ;;  %18638 = vmatpush3.bf16.msra.mxu1 %v22981_v19  ;;  %18648 = vmatprep.subr.bf16.mxu0 %v18647_v1  ;;  %v23197_v1 = vld [vmem:[#allocation5 + $0x508] sm:$0xff]  ;;  %v29715_v57 = vand.u32 4294901760, %v22850_v31  ;;  %v29717_v31 = vand.u32 4294901760, %v22871_v14  ;;  %v233_v14 = vld [vmem:[#allocation5 + $0x518] sm:$0xff] }
 0x1f9   :  { %18640 = vmatprep.subr.bf16.mxu1 %v23002_v5  ;;  %v23209_v17 = vsub.f32 %v23173_v11, %v4944_v48  ;;  %v4896_v43 = vand.u32 4294901760, %v23197_v1  ;;  %v29718_v11 = vand.u32 4294901760, %v22890_v42  ;;  %v29726_v42 = vand.u32 4294901760, %v22963_v49 }
 0x1fa   :  { %v23187_v37 = vadd.f32 %v14880_v52, %v2415_v22  ;;  %4507 = vmatmul.mubr.f32.vlgmr.msra.gmra.mrb[26].mxu0 %v23057_v10  ;;  %v29714_v22 = vand.u32 4294901760, %v22848_v27  ;;  %v23214_v52 = vld [vmem:[#allocation5 + $0x598] sm:$0xff]  ;;  %v29716_v27 = vand.u32 4294901760, %v22869_v26  ;;  %v23233_v26 = vsub.f32 %v23190_v23, %v28841_v44 }
 0x1fb   :  { %18650 = vmatpush3.bf16.msra.mxu0 %v18649_v16  ;;  %4781 = vmatprep.mubr.f32.mxu0 %v29713_v40  ;;  %v23212_v16 = vld [vmem:[#allocation5 + $0x590] sm:$0xff]  ;;  %v4950_v56 = vand.u32 4294901760, %v23214_v52  ;;  %v29725_v44 = vand.u32 4294901760, %v22943_v4 }
 0x1fc   :  { %18642 = vmatpush3.bf16.msra.mxu1 %v23060_v50  ;;  %18652 = vmatprep.subr.bf16.mxu0 %v18651_v39  ;;  %v18655_v24 = vpack.c.bf16 %v29715_v57, %v29714_v22  ;;  %v18657_v35 = vpack.c.bf16 %v29717_v31, %v29716_v27  ;;  %v18659_v39 = vpack.c.bf16 %v29719_v3, %v29718_v11  ;;  %v4947_v45 = vand.u32 4294901760, %v23212_v16  ;;  %v232_v22 = vld [vmem:[#allocation5 + $0x510] sm:$0xff] }
 0x1fd   :  { %18644 = vmatprep.subr.bf16.mxu1 %v23086_v36  ;;  %v29721_v57 = vand.u32 4294901760, %v29691_v63  ;;  %v29722_v27 = vand.u32 4294901760, %v22917_v12  ;;  %v29723_v31 = vand.u32 4294901760, %v22938_v58  ;;  %v29724_v3 = vand.u32 4294901760, %v23057_v10  ;;  %v250_v10 = vld [vmem:[#allocation5 + $0x5a0] sm:$0xff] }
 0x1fe   :  { %v18665_v30 = vpack.c.bf16 %v29726_v42, %v29725_v44  ;;  %v29727_v63 = vand.u32 4294901760, %v22970_v7  ;;  %v29729_v58 = vand.u32 4294901760, %v22983_v62  ;;  %v23265_v4 = vsub.f32 %v23212_v16, %v4947_v45 }
 0x1ff   :  { %18654 = vmatpush3.bf16.msra.mxu0 %v18653_v2  ;;  %v28846_v2 = vand.u32 4294901760, %v23205_v61  ;;  %v18663_v11 = vpack.c.bf16 %v29723_v31, %v29722_v27  ;;  %v4899_v27 = vand.u32 4294901760, %v232_v22  ;;  %v23268_v49 = vsub.f32 %v23214_v52, %v4950_v56 }
 0x200   :  { %18646 = vmatpush3.bf16.msra.mxu1 %v23110_v25  ;;  %18656 = vmatprep.subr.bf16.mxu0 %v18655_v24  ;;  %v18661_v24 = vpack.c.bf16 %v29721_v57, %v29720_v46  ;;  %v29728_v46 = vand.u32 4294901760, %v29695_v54  ;;  %v29730_v57 = vand.u32 4294901760, %v29697_v28  ;;  %v4902_v7 = vand.u32 4294901760, %v233_v14  ;;  %v251_v54 = vld [vmem:[#allocation5 + $0x5a8] sm:$0xff]  ;;  %v49_v28 = vld [vmem:[#allocation2 + $0x58] sm:$0xff] }
 0x201   :  { %18680 = vmatprep.subr.bf16.mxu1 %v22819_v20  ;;  %v23245_v20 = vsub.f32 %v23197_v1, %v4896_v43  ;;  %v5120_v62 = vsub.f32 %v23205_v61, %v28846_v2  ;;  %v29731_v44 = vand.u32 4294901760, %v29699_v18  ;;  %v29733_v16 = vand.u32 4294901760, %v23037_v32 }
 0x202   :  { %v18667_v12 = vpack.c.bf16 %v29728_v46, %v29727_v63  ;;  %v23261_v1 = vpack.c.bf16 %v29730_v57, %v29729_v58  ;;  %v29734_v52 = vand.u32 4294901760, %v23044_v41  ;;  %v29735_v42 = vand.u32 4294901760, %v23209_v17  ;;  %v235_v58 = vld [vmem:[#allocation5 + $0x528] sm:$0xff] }
 0x203   :  { %4615 = vmatmul.mubr.f32.vlgmr.msra.gmra.mrb[26].mxu1 %v29724_v3  ;;  %18658 = vmatpush3.bf16.msra.mxu0 %v18657_v35  ;;  %v29736_v18 = vand.u32 4294901760, %v23050_v59  ;;  %v29738_v32 = vand.u32 4294901760, %v23074_v33  ;;  %v29739_v41 = vand.u32 4294901760, %v23077_v9  ;;  %v23303_v46 = vpack.c.bf16 %v4944_v48, %v4941_v21 }
 0x204   :  { %18682 = vmatpush3.bf16.msra.mxu1 %v29692_v55  ;;  %18660 = vmatprep.subr.bf16.mxu0 %v18659_v39  ;;  %v29732_v55 = vand.u32 4294901760, %v23008_v15  ;;  %v23284_v39 = vpack.c.bf16 %v29734_v52, %v29733_v16  ;;  %v5127_v31 = vsub.f32 %v23209_v17, %v29735_v42  ;;  %v29737_v15 = vand.u32 4294901760, %v23053_v6 }
 0x205   :  { %18684 = vmatprep.subr.bf16.mxu1 %v29693_v53  ;;  %4885 = vmatprep.mubr.f32.mxu1 %v29713_v40  ;;  %v28845_v53 = vand.u32 4294901760, %v23233_v26  ;;  %v23301_v63 = vpack.c.bf16 %v29739_v41, %v29738_v32  ;;  %v234_v40 = vld [vmem:[#allocation5 + $0x520] sm:$0xff]  ;;  %v28844_v57 = vand.u32 4294901760, %v23245_v20  ;;  %v4953_v59 = vand.u32 4294901760, %v250_v10  ;;  %v253_v32 = vld [vmem:[#allocation5 + $0x5b8] sm:$0xff] }
 0x206   :  { %v23278_v35 = vpack.c.bf16 %v29732_v55, %v29731_v44  ;;  %v23295_v3 = vpack.c.bf16 %v29737_v15, %v29736_v18  ;;  %v23306_v44 = vsub.f32 %v232_v22, %v4899_v27  ;;  %v4956_v55 = vand.u32 4294901760, %v251_v54  ;;  %v252_v15 = vld [vmem:[#allocation5 + $0x5b0] sm:$0xff] }
 0x207   :  { %18662 = vmatpush3.bf16.msra.mxu0 %v18661_v24  ;;  %v23308_v6 = vand.u32 4294901760, %v49_v28  ;;  %v23311_v33 = vsub.f32 %v233_v14, %v4902_v7  ;;  %v5121_v9 = vand.u32 4294901760, %v5120_v62  ;;  %v28843_v21 = vand.u32 4294901760, %v23265_v4 }
 0x208   :  { %18686 = vmatpush3.bf16.msra.mxu1 %v22841_v8  ;;  %18664 = vmatprep.subr.bf16.mxu0 %v18663_v11  ;;  %v28842_v48 = vand.u32 4294901760, %v23268_v49  ;;  %v5128_v16 = vand.u32 4294901760, %v5127_v31  ;;  %v4905_v24 = vand.u32 4294901760, %v234_v40  ;;  %v4908_v22 = vand.u32 4294901760, %v235_v58 }
 0x209   :  { %29740 = vst [vmem:[#allocation20_spill] sm:$0xff] %v23308_v6  ;;  %18688 = vmatprep.subr.bf16.mxu1 %v29696_v47  ;;  %v5008_v52 = vsub.f32 %v23233_v26, %v28845_v53  ;;  %v29741_v42 = vand.u32 4294901760, %v23190_v23  ;;  %v23323_v14 = vpack.c.bf16 %v4950_v56, %v4947_v45  ;;  %v23325_v11 = vpack.c.bf16 %v4902_v7, %v4899_v27  ;;  %v236_v56 = vld [vmem:[#allocation5 + $0x530] sm:$0xff] }
 0x20a   :  { %v5015_v62 = vsub.f32 %v23245_v20, %v28844_v57  ;;  %v23330_v47 = vpack.c.bf16 %v4956_v55, %v4953_v59  ;;  %v23332_v31 = vsub.f32 %v250_v10, %v4953_v59  ;;  %v23334_v18 = vsub.f32 %v251_v54, %v4956_v55  ;;  %v255_v57 = vld [vmem:[#allocation5 + $0x5c8] sm:$0xff] }
 0x20b   :  { %v23321_v8 = vpack.c.bf16 %v4896_v43, %v29741_v42  ;;  %29743 = vst [vmem:[#allocation15_spill] sm:$0xff] %v23323_v14  ;;  %18666 = vmatpush3.bf16.msra.mxu0 %v18665_v30  ;;  %v23337_v23 = vsub.f32 %v49_v28, %v23308_v6  ;;  %v5134_v43 = vsub.f32 %v23265_v4, %v28843_v21  ;;  %v237_v30 = vld [vmem:[#allocation5 + $0x538] sm:$0xff]  ;;  %v28848_v27 = vand.u32 4294901760, %v23306_v44  ;;  %v254_v21 = vld [vmem:[#allocation5 + $0x5c0] sm:$0xff] }
 0x20c   :  { %29744 = vst [vmem:[#allocation17_spill] sm:$0xff] %v23330_v47  ;;  %18690 = vmatpush3.bf16.msra.mxu1 %v29698_v34  ;;  %18668 = vmatprep.subr.bf16.mxu0 %v18667_v12  ;;  %v5141_v45 = vsub.f32 %v23268_v49, %v28842_v48  ;;  %v28847_v7 = vand.u32 4294901760, %v23311_v33  ;;  %v23349_v54 = vpack.c.bf16 %v5128_v16, %v5121_v9  ;;  %v5009_v28 = vand.u32 4294901760, %v5008_v52 }
 0x20d   :  { %29742 = vst [vmem:[#allocation25_spill] sm:$0xff] %v23321_v8  ;;  %v14913_v10 = vpop.f32.mrb[14].mxu0  ;;  %18692 = vmatprep.subr.bf16.mxu1 %v29700_v60  ;;  %v23351_v34 = vpack.c.bf16 %v4908_v22, %v4905_v24  ;;  %v23353_v12 = vsub.f32 %v234_v40, %v4905_v24  ;;  %v23355_v59 = vsub.f32 %v235_v58, %v4908_v22  ;;  %v5016_v55 = vand.u32 4294901760, %v5015_v62 }
 0x20e   :  { %v14914_v41 = vpop.f32.mrb[15].mxu0  ;;  %v4959_v42 = vand.u32 4294901760, %v252_v15  ;;  %v4962_v48 = vand.u32 4294901760, %v253_v32  ;;  %v4911_v2 = vand.u32 4294901760, %v236_v56  ;;  %v4914_v60 = vand.u32 4294901760, %v237_v30 }
 0x20f   :  { %29745 = vst [vmem:[#allocation12_spill] sm:$0xff] %v23351_v34  ;;  %v14915_v53 = vadd.f32 %v14914_v41, %v14913_v10  ;;  %18670 = vmatpush3.bf16.msra.mxu0 %v23261_v1  ;;  %v28852_v9 = vand.u32 4294901760, %v23337_v23  ;;  %v5135_v40 = vand.u32 4294901760, %v5134_v43  ;;  %v5142_v16 = vand.u32 4294901760, %v5141_v45 }
 0x210   :  { %18694 = vmatpush3.bf16.msra.mxu1 %v29701_v51  ;;  %18672 = vmatprep.subr.bf16.mxu0 %v23278_v35  ;;  %v5022_v58 = vsub.f32 %v23306_v44, %v28848_v27  ;;  %v5029_v24 = vsub.f32 %v23311_v33, %v28847_v7  ;;  %v4965_v22 = vand.u32 4294901760, %v254_v21  ;;  %v4968_v52 = vand.u32 4294901760, %v255_v57 }
 0x211   :  { %v2785_v1 = vadd.f32 %v14915_v53, %v23187_v37  ;;  %18696 = vmatprep.subr.bf16.mxu1 %v29702_v13  ;;  %v28850_v51 = vand.u32 4294901760, %v23332_v31  ;;  %v23370_v62 = vpack.c.bf16 %v5016_v55, %v5009_v28  ;;  %v23372_v35 = vpack.c.bf16 %v4962_v48, %v4959_v42  ;;  %v238_v37 = vld [vmem:[#allocation5 + $0x540] sm:$0xff]  ;;  %v239_v13 = vld [vmem:[#allocation5 + $0x548] sm:$0xff] }
 0x212   :  { %v23374_v43 = vsub.f32 %v252_v15, %v4959_v42  ;;  %v28849_v45 = vand.u32 4294901760, %v23334_v18  ;;  %v23378_v10 = vsub.f32 %v253_v32, %v4962_v48  ;;  %v23380_v41 = vpack.c.bf16 %v4914_v60, %v4911_v2 }
 0x213   :  { %29746 = vst [vmem:[#allocation16_spill] sm:$0xff] %v23372_v35  ;;  %18674 = vmatpush3.bf16.msra.mxu0 %v23284_v39  ;;  %v28851_v53 = vand.u32 4294901760, %v23353_v12  ;;  %v4991_v28 = vsub.f32 %v23337_v23, %v28852_v9  ;;  %v23388_v15 = vsub.f32 %v236_v56, %v4911_v2  ;;  %v23390_v55 = vsub.f32 %v237_v30, %v4914_v60  ;;  %v256_v60 = vld [vmem:[#allocation5 + $0x5d0] sm:$0xff] }
 0x214   :  { %29747 = vst [vmem:[#allocation23_spill] sm:$0xff] %v23380_v41  ;;  %18698 = vmatpush3.bf16.msra.mxu1 %v29703_v38  ;;  %18676 = vmatprep.subr.bf16.mxu0 %v23295_v3  ;;  %v5023_v39 = vand.u32 4294901760, %v5022_v58  ;;  %v28853_v48 = vand.u32 4294901760, %v23355_v59  ;;  %v23394_v32 = vpack.c.bf16 %v5142_v16, %v5135_v40  ;;  %v5030_v42 = vand.u32 4294901760, %v5029_v24  ;;  %v257_v16 = vld [vmem:[#allocation5 + $0x5d8] sm:$0xff]  ;;  %v240_v58 = vld [vmem:[#allocation5 + $0x550] sm:$0xff] }
 0x215   :  { %29748 = vst [vmem:[#allocation21_spill] sm:$0xff] %v23388_v15  ;;  %29749 = vst [vmem:[#allocation13_spill] sm:$0xff] %v23390_v55  ;;  %18700 = vmatprep.subr.bf16.mxu1 %v29706_v0  ;;  %v23396_v7 = vpack.c.bf16 %v4968_v52, %v4965_v22  ;;  %v5148_v38 = vsub.f32 %v23332_v31, %v28850_v51  ;;  %v23401_v3 = vsub.f32 %v254_v21, %v4965_v22 }
 0x216   :  { %v14948_v27 = vpop.f32.mrb[14].mxu1  ;;  %v5155_v2 = vsub.f32 %v23334_v18, %v28849_v45  ;;  %v4917_v56 = vand.u32 4294901760, %v238_v37  ;;  %v4920_v30 = vand.u32 4294901760, %v239_v13  ;;  %v5036_v40 = vsub.f32 %v23353_v12, %v28851_v53 }
 0x217   :  { %29750 = vst [vmem:[#allocation19_spill] sm:$0xff] %v23396_v7  ;;  %v14949_v0 = vpop.f32.mrb[15].mxu1  ;;  %18678 = vmatpush3.bf16.msra.mxu0 %v23301_v63  ;;  %v4992_v24 = vand.u32 4294901760, %v4991_v28  ;;  %v5043_v45 = vsub.f32 %v23355_v59, %v28853_v48  ;;  %v23420_v53 = vpack.c.bf16 %v5030_v42, %v5023_v39  ;;  %v23422_v9 = vsub.f32 %v255_v57, %v4968_v52  ;;  %v241_v63 = vld [vmem:[#allocation5 + $0x558] sm:$0xff] }
 0x218   :  { %v14950_v22 = vadd.f32 %v14949_v0, %v14948_v27  ;;  %18702 = vmatpush3.bf16.msra.mxu1 %v22981_v19  ;;  %18712 = vmatprep.subr.bf16.mxu0 %v23303_v46  ;;  %v5149_v28 = vand.u32 4294901760, %v5148_v38  ;;  %v4971_v27 = vand.u32 4294901760, %v256_v60  ;;  %v5156_v19 = vand.u32 4294901760, %v5155_v2 }
 0x219   :  { %18704 = vmatprep.subr.bf16.mxu1 %v23002_v5  ;;  %v23427_v21 = vsub.f32 %v238_v37, %v4917_v56  ;;  %v4974_v48 = vand.u32 4294901760, %v257_v16  ;;  %v23430_v51 = vpack.c.bf16 %v4920_v30, %v4917_v56  ;;  %v29752_v5 = vand.u32 4294901760, %v23374_v43 }
 0x21a   :  { %v23424_v0 = vadd.f32 %v14950_v22, %v2785_v1  ;;  %4783 = vmatmul.mubr.f32.vlgmr.msra.gmra.mrb[28].mxu0 %v23034_v29  ;;  %v29753_v52 = vand.u32 4294901760, %v23378_v10  ;;  %v5037_v37 = vand.u32 4294901760, %v5036_v40  ;;  %v5044_v39 = vand.u32 4294901760, %v5043_v45  ;;  %v258_v22 = vld [vmem:[#allocation5 + $0x5e0] sm:$0xff] }
 0x21b   :  { %18714 = vmatpush3.bf16.msra.mxu0 %v23321_v8  ;;  %29751 = vst [vmem:[#allocation24_spill] sm:$0xff] %v23430_v51  ;;  %v5162_v57 = vsub.f32 %v23374_v43, %v29752_v5  ;;  %4993 = vmatprep.mubr.f32.mxu0 %v4992_v24  ;;  %v29754_v42 = vand.u32 4294901760, %v23388_v15  ;;  %v29755_v2 = vand.u32 4294901760, %v23390_v55  ;;  %v259_v5 = vld [vmem:[#allocation5 + $0x5e8] sm:$0xff]  ;;  %v4923_v24 = vand.u32 4294901760, %v240_v58 }
 0x21c   :  { %v5169_v1 = vsub.f32 %v23378_v10, %v29753_v52  ;;  %18706 = vmatpush3.bf16.msra.mxu1 %v23060_v50  ;;  %18716 = vmatprep.subr.bf16.mxu0 %v23323_v14  ;;  %v23447_v52 = vsub.f32 %v239_v13, %v4920_v30  ;;  %v4926_v50 = vand.u32 4294901760, %v241_v63  ;;  %v28862_v14 = vand.u32 4294901760, %v23401_v3 }
 0x21d   :  { %v5050_v38 = vsub.f32 %v23388_v15, %v29754_v42  ;;  %v5057_v56 = vsub.f32 %v23390_v55, %v29755_v2  ;;  %18708 = vmatprep.subr.bf16.mxu1 %v23086_v36  ;;  %v23450_v40 = vpack.c.bf16 %v5156_v19, %v5149_v28  ;;  %v23452_v45 = vpack.c.bf16 %v4974_v48, %v4971_v27 }
 0x21e   :  { %v23454_v8 = vsub.f32 %v256_v60, %v4971_v27  ;;  %v23456_v42 = vsub.f32 %v257_v16, %v4974_v48  ;;  %v5163_v2 = vand.u32 4294901760, %v5162_v57  ;;  %v5170_v55 = vand.u32 4294901760, %v5169_v1  ;;  %v242_v60 = vld [vmem:[#allocation5 + $0x560] sm:$0xff] }
 0x21f   :  { %29756 = vst [vmem:[#allocation22_spill] sm:$0xff] %v23452_v45  ;;  %18718 = vmatpush3.bf16.msra.mxu0 %v23325_v11  ;;  %v4977_v15 = vand.u32 4294901760, %v258_v22  ;;  %v4980_v36 = vand.u32 4294901760, %v259_v5  ;;  %v23461_v13 = vpack.c.bf16 %v5044_v39, %v5037_v37  ;;  %v5051_v30 = vand.u32 4294901760, %v5050_v38  ;;  %v23478_v39 = vld [vmem:[#allocation5 + $0x5f0] sm:$0xff]  ;;  %v23480_v38 = vld [vmem:[#allocation5 + $0x5f8] sm:$0xff] }
 0x220   :  { %29757 = vst [vmem:[#allocation14_spill] sm:$0xff] %v23456_v42  ;;  %18710 = vmatpush3.bf16.msra.mxu1 %v23110_v25  ;;  %18720 = vmatprep.subr.bf16.mxu0 %v23330_v47  ;;  %v5058_v28 = vand.u32 4294901760, %v5057_v56  ;;  %v28863_v19 = vand.u32 4294901760, %v23422_v9  ;;  %v23465_v48 = vpack.c.bf16 %v4926_v50, %v4923_v24  ;;  %v23467_v16 = vsub.f32 %v240_v58, %v4923_v24  ;;  %v243_v25 = vld [vmem:[#allocation5 + $0x568] sm:$0xff] }
 0x221   :  { %18744 = vmatprep.subr.bf16.mxu1 %v23349_v54  ;;  %v23472_v27 = vsub.f32 %v23401_v3, %v28862_v14  ;;  %v23475_v1 = vsub.f32 %v241_v63, %v4926_v50  ;;  %v28870_v54 = vand.u32 4294901760, %v23454_v8  ;;  %v18755_v56 = vpack.c.bf16 %v5170_v55, %v5163_v2  ;;  %v48_v50 = vld [vmem:[#allocation2 + $0x50] sm:$0xff] }
 0x222   :  { %v23486_v24 = vpack.c.bf16 %v4980_v36, %v4977_v15  ;;  %v23488_v14 = vsub.f32 %v258_v22, %v4977_v15  ;;  %v4929_v63 = vand.u32 4294901760, %v242_v60  ;;  %v18757_v37 = vpack.c.bf16 %v5058_v28, %v5051_v30  ;;  %v23504_v30 = vld [vmem:[#allocation5 + $0x570] sm:$0xff] }
 0x223   :  { %29758 = vst [vmem:[#allocation18_spill] sm:$0xff] %v23475_v1  ;;  %4887 = vmatmul.mubr.f32.vlgmr.msra.gmra.mrb[28].mxu1 %v23034_v29  ;;  %18722 = vmatpush3.bf16.msra.mxu0 %v23351_v34  ;;  %v23492_v57 = vsub.f32 %v259_v5, %v4980_v36  ;;  %v5183_v29 = vsub.f32 %v23422_v9, %v28863_v19  ;;  %v4932_v58 = vand.u32 4294901760, %v243_v25  ;;  %v5177_v55 = vand.u32 4294901760, %v23472_v27  ;;  %v23506_v5 = vld [vmem:[#allocation5 + $0x578] sm:$0xff] }
 0x224   :  { %29759 = vst [vmem:[#allocation11_spill] sm:$0xff] %v23488_v14  ;;  %18746 = vmatpush3.bf16.msra.mxu1 %v23370_v62  ;;  %18724 = vmatprep.subr.bf16.mxu0 %v23372_v35  ;;  %v29760_v15 = vand.u32 4294901760, %v23427_v21  ;;  %v4983_v62 = vand.u32 4294901760, %v23478_v39  ;;  %v4986_v2 = vand.u32 4294901760, %v23480_v38  ;;  %v29761_v36 = vand.u32 4294901760, %v23447_v52 }
 0x225   :  { %18748 = vmatprep.subr.bf16.mxu1 %v23394_v32  ;;  %5229 = vmatprep.mubr.f32.mxu1 %v23308_v6  ;;  %v5190_v28 = vsub.f32 %v23454_v8, %v28870_v54  ;;  %v29762_v27 = vand.u32 4294901760, %v23456_v42  ;;  %v23518_v19 = vand.u32 4294901760, %v48_v50  ;;  %v23521_v35 = vsub.f32 %v242_v60, %v4929_v63 }
 0x226   :  { %v5064_v22 = vsub.f32 %v23427_v21, %v29760_v15  ;;  %v5071_v32 = vsub.f32 %v23447_v52, %v29761_v36  ;;  %v5184_v54 = vand.u32 4294901760, %v5183_v29  ;;  %v23528_v47 = vsub.f32 %v243_v25, %v4932_v58 }
 0x227   :  { %v5197_v15 = vsub.f32 %v23456_v42, %v29762_v27  ;;  %18726 = vmatpush3.bf16.msra.mxu0 %v23380_v41  ;;  %v4935_v27 = vand.u32 4294901760, %v23504_v30  ;;  %v4938_v42 = vand.u32 4294901760, %v23506_v5  ;;  %v23534_v6 = vsub.f32 %v23478_v39, %v4983_v62 }
 0x228   :  { %18750 = vmatpush3.bf16.msra.mxu1 %v23420_v53  ;;  %18728 = vmatprep.subr.bf16.mxu0 %v23396_v7  ;;  %v5065_v60 = vand.u32 4294901760, %v5064_v22  ;;  %v23537_v34 = vsub.f32 %v23480_v38, %v4986_v2  ;;  %v5072_v36 = vand.u32 4294901760, %v5071_v32  ;;  %v5191_v7 = vand.u32 4294901760, %v5190_v28 }
 0x229   :  { %18752 = vmatprep.subr.bf16.mxu1 %v23450_v40  ;;  %v5198_v29 = vand.u32 4294901760, %v5197_v15  ;;  %v23541_v25 = vsub.f32 %v48_v50, %v23518_v19  ;;  %v23544_v41 = vpack.c.bf16 %v4932_v58, %v4929_v63  ;;  %v29763_v40 = vand.u32 4294901760, %v23467_v16 }
 0x22a   :  { %v29764_v22 = vand.u32 4294901760, %v23475_v1  ;;  %v29765_v53 = vand.u32 4294901760, %v23488_v14  ;;  %v23558_v50 = vsub.f32 %v23504_v30, %v4935_v27  ;;  %v23561_v58 = vsub.f32 %v23506_v5, %v4938_v42 }
 0x22b   :  { %18730 = vmatpush3.bf16.msra.mxu0 %v23430_v51  ;;  %v5078_v39 = vsub.f32 %v23467_v16, %v29763_v40  ;;  %v28890_v28 = vand.u32 4294901760, %v23528_v47  ;;  %v18759_v40 = vpack.c.bf16 %v5184_v54, %v5177_v55  ;;  %v18761_v51 = vpack.c.bf16 %v5072_v36, %v5065_v60 }
 0x22c   :  { %v5085_v38 = vsub.f32 %v23475_v1, %v29764_v22  ;;  %v5204_v32 = vsub.f32 %v23488_v14, %v29765_v53  ;;  %18754 = vmatpush3.bf16.msra.mxu1 %v23461_v13  ;;  %18732 = vmatprep.subr.bf16.mxu0 %v23452_v45  ;;  %v29766_v22 = vand.u32 4294901760, %v23492_v57  ;;  %v28889_v13 = vand.u32 4294901760, %v23534_v6 }
 0x22d   :  { %v14983_v15 = vpop.f32.mrb[16].mxu0  ;;  %18756 = vmatprep.subr.bf16.mxu1 %v18755_v56  ;;  %v23570_v14 = vpack.c.bf16 %v4986_v2, %v4983_v62  ;;  %v18763_v5 = vpack.c.bf16 %v5198_v29, %v5191_v7  ;;  %v28891_v63 = vand.u32 4294901760, %v23541_v25  ;;  %v5079_v56 = vand.u32 4294901760, %v5078_v39 }
 0x22e   :  { %v5211_v53 = vsub.f32 %v23492_v57, %v29766_v22  ;;  %v14984_v30 = vpop.f32.mrb[17].mxu0  ;;  %v5086_v54 = vand.u32 4294901760, %v5085_v38  ;;  %v5205_v55 = vand.u32 4294901760, %v5204_v32  ;;  %v29767_v22 = vand.u32 4294901760, %v23521_v35 }
 0x22f   :  { %v14985_v1 = vadd.f32 %v14984_v30, %v14983_v15  ;;  %18734 = vmatpush3.bf16.msra.mxu0 %v23465_v48  ;;  %v5099_v62 = vsub.f32 %v23528_v47, %v28890_v28  ;;  %v28887_v7 = vand.u32 4294901760, %v23558_v50  ;;  %v28888_v2 = vand.u32 4294901760, %v23561_v58 }
 0x230   :  { %18758 = vmatpush3.bf16.msra.mxu1 %v18757_v37  ;;  %18736 = vmatprep.subr.bf16.mxu0 %v23486_v24  ;;  %v5092_v45 = vsub.f32 %v23521_v35, %v29767_v22  ;;  %v5212_v60 = vand.u32 4294901760, %v5211_v53  ;;  %v5218_v37 = vsub.f32 %v23534_v6, %v28889_v13  ;;  %v29768_v29 = vand.u32 4294901760, %v23537_v34 }
 0x231   :  { %v3061_v36 = vadd.f32 %v14985_v1, %v23424_v0  ;;  %18760 = vmatprep.subr.bf16.mxu1 %v18759_v40  ;;  %v4997_v38 = vsub.f32 %v23541_v25, %v28891_v63  ;;  %v23594_v32 = vpack.c.bf16 %v4938_v42, %v4935_v27  ;;  %v18765_v15 = vpack.c.bf16 %v5086_v54, %v5079_v56 }
 0x232   :  { %v5225_v39 = vsub.f32 %v23537_v34, %v29768_v29  ;;  %v18775_v0 = vpack.c.bf16 %v23209_v17, %v23205_v61  ;;  %v5093_v1 = vand.u32 4294901760, %v5092_v45  ;;  %v5100_v40 = vand.u32 4294901760, %v5099_v62 }
 0x233   :  { %18738 = vmatpush3.bf16.msra.mxu0 %v23544_v41  ;;  %v5106_v53 = vsub.f32 %v23558_v50, %v28887_v7  ;;  %v5113_v30 = vsub.f32 %v23561_v58, %v28888_v2  ;;  %v18767_v42 = vpack.c.bf16 %v5212_v60, %v5205_v55  ;;  %v5219_v27 = vand.u32 4294901760, %v5218_v37 }
 0x234   :  { %18762 = vmatpush3.bf16.msra.mxu1 %v18761_v51  ;;  %18740 = vmatprep.subr.bf16.mxu0 %v23570_v14  ;;  %v5226_v56 = vand.u32 4294901760, %v5225_v39  ;;  %v4998_v22 = vand.u32 4294901760, %v4997_v38  ;;  %v18777_v51 = vpack.c.bf16 %v23245_v20, %v23233_v26  ;;  %v18779_v45 = vpack.c.bf16 %v23268_v49, %v23265_v4 }
 0x235   :  { %18764 = vmatprep.subr.bf16.mxu1 %v18763_v5  ;;  %v18769_v7 = vpack.c.bf16 %v5100_v40, %v5093_v1  ;;  %v5107_v2 = vand.u32 4294901760, %v5106_v53  ;;  %v5114_v5 = vand.u32 4294901760, %v5113_v30  ;;  %v18781_v37 = vpack.c.bf16 %v23311_v33, %v23306_v44  ;;  %v29771_v1 = vld [vmem:[#allocation25_spill] sm:$0xff]  ;;  %v29772_v53 = vld [vmem:[#allocation15_spill] sm:$0xff] }
 0x236   :  { %v15018_v54 = vpop.f32.mrb[16].mxu1  ;;  %v18771_v55 = vpack.c.bf16 %v5226_v56, %v5219_v27  ;;  %v18783_v38 = vpack.c.bf16 %v23334_v18, %v23332_v31  ;;  %v18791_v40 = vpack.c.bf16 %v23422_v9, %v23401_v3  ;;  %v29773_v30 = vand.u32 4294901760, %v23337_v23  ;;  %v29774_v27 = vld [vmem:[#allocation14_spill] sm:$0xff] }
 0x237   :  { %v15019_v29 = vpop.f32.mrb[17].mxu1  ;;  %18742 = vmatpush3.bf16.msra.mxu0 %v23594_v32  ;;  %v18773_v39 = vpack.c.bf16 %v5114_v5, %v5107_v2  ;;  %v29770_v2 = vld [vmem:[#allocation13_spill] sm:$0xff]  ;;  %v18795_v56 = vpack.c.bf16 %v29774_v27, %v23454_v8  ;;  %v29779_v5 = vld [vmem:[#allocation16_spill] sm:$0xff]  ;;  %v29787_v13 = vand.u32 4294901760, %v23245_v20  ;;  %v29790_v20 = vand.u32 4294901760, %v23306_v44 }
 0x238   :  { %v15020_v62 = vadd.f32 %v15019_v29, %v15018_v54  ;;  %18766 = vmatpush3.bf16.msra.mxu1 %v18765_v15  ;;  %18776 = vmatprep.subr.bf16.mxu0 %v18775_v0  ;;  %v18785_v15 = vpack.c.bf16 %v23355_v59, %v23353_v12  ;;  %v29775_v54 = vld [vmem:[#allocation17_spill] sm:$0xff] }
 0x239   :  { %18768 = vmatprep.subr.bf16.mxu1 %v18767_v42  ;;  %v18793_v42 = vpack.c.bf16 %v23447_v52, %v23427_v21 }
 0x23a   :  { %v3165_v60 = vadd.f32 %v15020_v62, %v3061_v36  ;;  %4999 = vmatmul.mubr.f32.vlgmr.msra.gmra.mrb[30].mxu0 %v4998_v22  ;;  %v18787_v36 = vpack.c.bf16 %v23378_v10, %v23374_v43  ;;  %v29776_v22 = vld [vmem:[#allocation18_spill] sm:$0xff] }
 0x23b   :  { %18778 = vmatpush3.bf16.msra.mxu0 %v18777_v51  ;;  %5366 = vmatprep.mubr.f32.mxu0 %v23337_v23  ;;  %v18797_v29 = vpack.c.bf16 %v29776_v22, %v23467_v16  ;;  %v29777_v51 = vld [vmem:[#allocation12_spill] sm:$0xff]  ;;  %v29778_v23 = vld [vmem:[#allocation11_spill] sm:$0xff] }
 0x23c   :  { %18770 = vmatpush3.bf16.msra.mxu1 %v18769_v7  ;;  %18780 = vmatprep.subr.bf16.mxu0 %v18779_v45  ;;  %v29769_v7 = vld [vmem:[#allocation21_spill] sm:$0xff]  ;;  %v18799_v45 = vpack.c.bf16 %v23492_v57, %v29778_v23 }
 0x23d   :  { %18772 = vmatprep.subr.bf16.mxu1 %v18771_v55  ;;  %v18789_v0 = vpack.c.bf16 %v29770_v2, %v29769_v7 }
 0x23f   :  { %18782 = vmatpush3.bf16.msra.mxu0 %v18781_v37 }
 0x240   :  { %18774 = vmatpush3.bf16.msra.mxu1 %v18773_v39  ;;  %18784 = vmatprep.subr.bf16.mxu0 %v18783_v38  ;;  %v18801_v39 = vpack.c.bf16 %v23528_v47, %v23521_v35  ;;  %v29780_v38 = vld [vmem:[#allocation23_spill] sm:$0xff] }
 0x241   :  { %18808 = vmatprep.subr.bf16.mxu1 %v23303_v46 }
 0x243   :  { %5231 = vmatmul.mubr.f32.vlgmr.msra.gmra.mrb[30].mxu1 %v23518_v19  ;;  %18786 = vmatpush3.bf16.msra.mxu0 %v18785_v15  ;;  %v18803_v15 = vpack.c.bf16 %v23537_v34, %v23534_v6 }
 0x244   :  { %18810 = vmatpush3.bf16.msra.mxu1 %v29771_v1  ;;  %18788 = vmatprep.subr.bf16.mxu0 %v18787_v36 }
 0x245   :  { %18812 = vmatprep.subr.bf16.mxu1 %v29772_v53  ;;  %5473 = vmatprep.mubr.f32.mxu1 %v29773_v30  ;;  %v29782_v30 = vld [vmem:[#allocation24_spill] sm:$0xff] }
 0x247   :  { %18790 = vmatpush3.bf16.msra.mxu0 %v18789_v0  ;;  %v29781_v0 = vld [vmem:[#allocation19_spill] sm:$0xff] }
 0x248   :  { %18814 = vmatpush3.bf16.msra.mxu1 %v23325_v11  ;;  %18792 = vmatprep.subr.bf16.mxu0 %v18791_v40  ;;  %v18805_v40 = vpack.c.bf16 %v23561_v58, %v23558_v50 }
 0x249   :  { %18816 = vmatprep.subr.bf16.mxu1 %v29775_v54 }
 0x24b   :  { %18794 = vmatpush3.bf16.msra.mxu0 %v18793_v42  ;;  %v29783_v42 = vand.u32 4294901760, %v23205_v61  ;;  %v29788_v61 = vand.u32 4294901760, %v23265_v4  ;;  %v29791_v4 = vand.u32 4294901760, %v23311_v33 }
 0x24c   :  { %18818 = vmatpush3.bf16.msra.mxu1 %v29777_v51  ;;  %18796 = vmatprep.subr.bf16.mxu0 %v18795_v56  ;;  %v29784_v56 = vand.u32 4294901760, %v23209_v17  ;;  %v29789_v17 = vand.u32 4294901760, %v23268_v49  ;;  %v29792_v49 = vld [vmem:[#allocation20_spill] sm:$0xff] }
 0x24d   :  { %v15053_v62 = vpop.f32.mrb[18].mxu0  ;;  %18820 = vmatprep.subr.bf16.mxu1 %v29779_v5 }
 0x24e   :  { %v15054_v55 = vpop.f32.mrb[19].mxu0 }
 0x24f   :  { %v15055_v37 = vadd.f32 %v15054_v55, %v15053_v62  ;;  %18798 = vmatpush3.bf16.msra.mxu0 %v18797_v29  ;;  %v18839_v29 = vpack.c.bf16 %v29784_v56, %v29783_v42  ;;  %v29785_v62 = vld [vmem:[#allocation22_spill] sm:$0xff]  ;;  %v18843_v42 = vpack.c.bf16 %v29789_v17, %v29788_v61  ;;  %v29798_v17 = vand.u32 4294901760, %v23378_v10 }
 0x250   :  { %18822 = vmatpush3.bf16.msra.mxu1 %v29780_v38  ;;  %18800 = vmatprep.subr.bf16.mxu0 %v18799_v45  ;;  %v23655_v45 = vld [vmem:[#allocation5 + $0x680] sm:$0xff]  ;;  %v29799_v10 = vand.u32 4294901760, %v29769_v7 }
 0x251   :  { %v3277_v36 = vadd.f32 %v15055_v37, %v3165_v60  ;;  %18824 = vmatprep.subr.bf16.mxu1 %v29781_v0  ;;  %v23657_v60 = vld [vmem:[#allocation5 + $0x688] sm:$0xff]  ;;  %v5803_v56 = vand.u32 4294901760, %v23655_v45 }
 0x253   :  { %18802 = vmatpush3.bf16.msra.mxu0 %v18801_v39  ;;  %v29786_v39 = vand.u32 4294901760, %v23233_v26  ;;  %v23674_v26 = vld [vmem:[#allocation5 + $0x600] sm:$0xff] }
 0x254   :  { %18826 = vmatpush3.bf16.msra.mxu1 %v29782_v30  ;;  %18804 = vmatprep.subr.bf16.mxu0 %v18803_v15  ;;  %v28892_v33 = vand.u32 4294901760, %v23674_v26 }
 0x255   :  { %18828 = vmatprep.subr.bf16.mxu1 %v29785_v62  ;;  %v18841_v28 = vpack.c.bf16 %v29787_v13, %v29786_v39  ;;  %v18845_v13 = vpack.c.bf16 %v29791_v4, %v29790_v20  ;;  %v23689_v39 = vsub.f32 %v23655_v45, %v5803_v56 }
 0x256   :  { %v15088_v55 = vpop.f32.mrb[18].mxu1 }
 0x257   :  { %v15089_v37 = vpop.f32.mrb[19].mxu1  ;;  %18806 = vmatpush3.bf16.msra.mxu0 %v18805_v40  ;;  %v5806_v40 = vand.u32 4294901760, %v23657_v60 }
 0x258   :  { %v15090_v15 = vadd.f32 %v15089_v37, %v15088_v55  ;;  %18830 = vmatpush3.bf16.msra.mxu1 %v23465_v48  ;;  %18840 = vmatprep.subr.bf16.mxu0 %v18839_v29  ;;  %v23681_v29 = vld [vmem:[#allocation5 + $0x608] sm:$0xff]  ;;  %v29794_v55 = vand.u32 4294901760, %v23334_v18  ;;  %v29796_v18 = vand.u32 4294901760, %v23355_v59  ;;  %v265_v59 = vld [vmem:[#allocation5 + $0x618] sm:$0xff] }
 0x259   :  { %18832 = vmatprep.subr.bf16.mxu1 %v23486_v24  ;;  %v23693_v44 = vsub.f32 %v23657_v60, %v5806_v40  ;;  %v5758_v61 = vand.u32 4294901760, %v23681_v29  ;;  %v29797_v60 = vand.u32 4294901760, %v23374_v43  ;;  %v29805_v43 = vand.u32 4294901760, %v23447_v52 }
 0x25a   :  { %v23671_v63 = vadd.f32 %v15090_v15, %v3277_v36  ;;  %5369 = vmatmul.mubr.f32.vlgmr.msra.gmra.mrb[32].mxu0 %v23541_v25  ;;  %v29793_v36 = vand.u32 4294901760, %v23332_v31  ;;  %v23698_v15 = vld [vmem:[#allocation5 + $0x698] sm:$0xff]  ;;  %v29795_v31 = vand.u32 4294901760, %v23353_v12  ;;  %v23717_v12 = vsub.f32 %v23674_v26, %v28892_v33 }
 0x25b   :  { %18842 = vmatpush3.bf16.msra.mxu0 %v18841_v28  ;;  %5643 = vmatprep.mubr.f32.mxu0 %v29792_v49  ;;  %v23696_v28 = vld [vmem:[#allocation5 + $0x690] sm:$0xff]  ;;  %v5812_v4 = vand.u32 4294901760, %v23698_v15  ;;  %v29804_v33 = vand.u32 4294901760, %v23427_v21 }
 0x25c   :  { %18834 = vmatpush3.bf16.msra.mxu1 %v23544_v41  ;;  %18844 = vmatprep.subr.bf16.mxu0 %v18843_v42  ;;  %v18847_v37 = vpack.c.bf16 %v29794_v55, %v29793_v36  ;;  %v18849_v45 = vpack.c.bf16 %v29796_v18, %v29795_v31  ;;  %v18851_v42 = vpack.c.bf16 %v29798_v17, %v29797_v60  ;;  %v5809_v20 = vand.u32 4294901760, %v23696_v28  ;;  %v264_v36 = vld [vmem:[#allocation5 + $0x610] sm:$0xff] }
 0x25d   :  { %18836 = vmatprep.subr.bf16.mxu1 %v23570_v14  ;;  %v29800_v55 = vand.u32 4294901760, %v29770_v2  ;;  %v29801_v31 = vand.u32 4294901760, %v23401_v3  ;;  %v29802_v18 = vand.u32 4294901760, %v23422_v9  ;;  %v29803_v17 = vand.u32 4294901760, %v23541_v25  ;;  %v282_v25 = vld [vmem:[#allocation5 + $0x6a0] sm:$0xff] }
 0x25e   :  { %v18857_v7 = vpack.c.bf16 %v29805_v43, %v29804_v33  ;;  %v29806_v2 = vand.u32 4294901760, %v23454_v8  ;;  %v29808_v9 = vand.u32 4294901760, %v23467_v16  ;;  %v23749_v21 = vsub.f32 %v23696_v28, %v5809_v20 }
 0x25f   :  { %18846 = vmatpush3.bf16.msra.mxu0 %v18845_v13  ;;  %v28897_v13 = vand.u32 4294901760, %v23689_v39  ;;  %v18855_v60 = vpack.c.bf16 %v29802_v18, %v29801_v31  ;;  %v5761_v31 = vand.u32 4294901760, %v264_v36  ;;  %v23752_v52 = vsub.f32 %v23698_v15, %v5812_v4 }
 0x260   :  { %18838 = vmatpush3.bf16.msra.mxu1 %v23594_v32  ;;  %18848 = vmatprep.subr.bf16.mxu0 %v18847_v37  ;;  %v18853_v37 = vpack.c.bf16 %v29800_v55, %v29799_v10  ;;  %v29807_v10 = vand.u32 4294901760, %v29774_v27  ;;  %v29809_v55 = vand.u32 4294901760, %v29776_v22  ;;  %v5764_v8 = vand.u32 4294901760, %v265_v59  ;;  %v283_v27 = vld [vmem:[#allocation5 + $0x6a8] sm:$0xff] }
 0x261   :  { %18872 = vmatprep.subr.bf16.mxu1 %v23303_v46  ;;  %v23729_v46 = vsub.f32 %v23681_v29, %v5758_v61  ;;  %v5982_v16 = vsub.f32 %v23689_v39, %v28897_v13  ;;  %v51_v22 = vld [vmem:[#allocation2 + $0x68] sm:$0xff]  ;;  %v29810_v33 = vand.u32 4294901760, %v29778_v23  ;;  %v29812_v28 = vand.u32 4294901760, %v23521_v35 }
 0x262   :  { %v18859_v3 = vpack.c.bf16 %v29807_v10, %v29806_v2  ;;  %v23745_v29 = vpack.c.bf16 %v29809_v55, %v29808_v9  ;;  %v29813_v15 = vand.u32 4294901760, %v23528_v47  ;;  %v29814_v43 = vand.u32 4294901760, %v23693_v44  ;;  %v267_v9 = vld [vmem:[#allocation5 + $0x628] sm:$0xff] }
 0x263   :  { %5477 = vmatmul.mubr.f32.vlgmr.msra.gmra.mrb[32].mxu1 %v29803_v17  ;;  %18850 = vmatpush3.bf16.msra.mxu0 %v18849_v45  ;;  %v29815_v23 = vand.u32 4294901760, %v23534_v6  ;;  %v29817_v35 = vand.u32 4294901760, %v23558_v50  ;;  %v29818_v47 = vand.u32 4294901760, %v23561_v58  ;;  %v23787_v10 = vpack.c.bf16 %v5806_v40, %v5803_v56 }
 0x264   :  { %18874 = vmatpush3.bf16.msra.mxu1 %v29771_v1  ;;  %18852 = vmatprep.subr.bf16.mxu0 %v18851_v42  ;;  %v29811_v1 = vand.u32 4294901760, %v23492_v57  ;;  %v23768_v42 = vpack.c.bf16 %v29813_v15, %v29812_v28  ;;  %v5989_v18 = vsub.f32 %v23693_v44, %v29814_v43  ;;  %v29816_v57 = vand.u32 4294901760, %v23537_v34 }
 0x265   :  { %18876 = vmatprep.subr.bf16.mxu1 %v29772_v53  ;;  %5747 = vmatprep.mubr.f32.mxu1 %v29792_v49  ;;  %v28896_v53 = vand.u32 4294901760, %v23717_v12  ;;  %v23785_v2 = vpack.c.bf16 %v29818_v47, %v29817_v35  ;;  %v266_v49 = vld [vmem:[#allocation5 + $0x620] sm:$0xff]  ;;  %v28895_v55 = vand.u32 4294901760, %v23729_v46  ;;  %v5815_v6 = vand.u32 4294901760, %v282_v25  ;;  %v285_v35 = vld [vmem:[#allocation5 + $0x6b8] sm:$0xff] }
 0x266   :  { %v23762_v45 = vpack.c.bf16 %v29811_v1, %v29810_v33  ;;  %v23779_v17 = vpack.c.bf16 %v29816_v57, %v29815_v23  ;;  %v23790_v33 = vsub.f32 %v264_v36, %v5761_v31  ;;  %v5818_v1 = vand.u32 4294901760, %v283_v27  ;;  %v284_v57 = vld [vmem:[#allocation5 + $0x6b0] sm:$0xff] }
 0x267   :  { %18854 = vmatpush3.bf16.msra.mxu0 %v18853_v37  ;;  %v23792_v34 = vand.u32 4294901760, %v51_v22  ;;  %v23795_v50 = vsub.f32 %v265_v59, %v5764_v8  ;;  %v5983_v58 = vand.u32 4294901760, %v5982_v16  ;;  %v28894_v56 = vand.u32 4294901760, %v23749_v21 }
 0x268   :  { %18878 = vmatpush3.bf16.msra.mxu1 %v23325_v11  ;;  %18856 = vmatprep.subr.bf16.mxu0 %v18855_v60  ;;  %v28893_v40 = vand.u32 4294901760, %v23752_v52  ;;  %v5990_v28 = vand.u32 4294901760, %v5989_v18  ;;  %v5767_v37 = vand.u32 4294901760, %v266_v49  ;;  %v5770_v36 = vand.u32 4294901760, %v267_v9 }
 0x269   :  { %29819 = vst [vmem:[#allocation21_spill] sm:$0xff] %v23792_v34  ;;  %18880 = vmatprep.subr.bf16.mxu1 %v29775_v54  ;;  %v5870_v15 = vsub.f32 %v23717_v12, %v28896_v53  ;;  %v29820_v43 = vand.u32 4294901760, %v23674_v26  ;;  %v23807_v59 = vpack.c.bf16 %v5812_v4, %v5809_v20  ;;  %v23809_v60 = vpack.c.bf16 %v5764_v8, %v5761_v31  ;;  %v268_v4 = vld [vmem:[#allocation5 + $0x630] sm:$0xff] }
 0x26a   :  { %v5877_v16 = vsub.f32 %v23729_v46, %v28895_v55  ;;  %v23814_v54 = vpack.c.bf16 %v5818_v1, %v5815_v6  ;;  %v23816_v18 = vsub.f32 %v282_v25, %v5815_v6  ;;  %v23818_v23 = vsub.f32 %v283_v27, %v5818_v1  ;;  %v287_v55 = vld [vmem:[#allocation5 + $0x6c8] sm:$0xff] }
 0x26b   :  { %v23805_v11 = vpack.c.bf16 %v5758_v61, %v29820_v43  ;;  %29822 = vst [vmem:[#allocation25_spill] sm:$0xff] %v23807_v59  ;;  %18858 = vmatpush3.bf16.msra.mxu0 %v18857_v7  ;;  %v23821_v26 = vsub.f32 %v51_v22, %v23792_v34  ;;  %v5996_v61 = vsub.f32 %v23749_v21, %v28894_v56  ;;  %v269_v7 = vld [vmem:[#allocation5 + $0x638] sm:$0xff]  ;;  %v28899_v31 = vand.u32 4294901760, %v23790_v33  ;;  %v286_v56 = vld [vmem:[#allocation5 + $0x6c0] sm:$0xff] }
 0x26c   :  { %29823 = vst [vmem:[#allocation15_spill] sm:$0xff] %v23814_v54  ;;  %18882 = vmatpush3.bf16.msra.mxu1 %v29777_v51  ;;  %18860 = vmatprep.subr.bf16.mxu0 %v18859_v3  ;;  %v6003_v20 = vsub.f32 %v23752_v52, %v28893_v40  ;;  %v28898_v8 = vand.u32 4294901760, %v23795_v50  ;;  %v23833_v27 = vpack.c.bf16 %v5990_v28, %v5983_v58  ;;  %v5871_v22 = vand.u32 4294901760, %v5870_v15 }
 0x26d   :  { %29821 = vst [vmem:[#allocation13_spill] sm:$0xff] %v23805_v11  ;;  %v15123_v25 = vpop.f32.mrb[20].mxu0  ;;  %18884 = vmatprep.subr.bf16.mxu1 %v29779_v5  ;;  %v23835_v51 = vpack.c.bf16 %v5770_v36, %v5767_v37  ;;  %v23837_v3 = vsub.f32 %v266_v49, %v5767_v37  ;;  %v23839_v6 = vsub.f32 %v267_v9, %v5770_v36  ;;  %v5878_v1 = vand.u32 4294901760, %v5877_v16 }
 0x26e   :  { %v15124_v47 = vpop.f32.mrb[21].mxu0  ;;  %v5821_v43 = vand.u32 4294901760, %v284_v57  ;;  %v5824_v40 = vand.u32 4294901760, %v285_v35  ;;  %v5773_v13 = vand.u32 4294901760, %v268_v4  ;;  %v5776_v5 = vand.u32 4294901760, %v269_v7 }
 0x26f   :  { %29824 = vst [vmem:[#allocation14_spill] sm:$0xff] %v23835_v51  ;;  %v15125_v53 = vadd.f32 %v15124_v47, %v15123_v25  ;;  %18862 = vmatpush3.bf16.msra.mxu0 %v23745_v29  ;;  %v28903_v58 = vand.u32 4294901760, %v23821_v26  ;;  %v5997_v49 = vand.u32 4294901760, %v5996_v61  ;;  %v6004_v28 = vand.u32 4294901760, %v6003_v20 }
 0x270   :  { %18886 = vmatpush3.bf16.msra.mxu1 %v29780_v38  ;;  %18864 = vmatprep.subr.bf16.mxu0 %v23762_v45  ;;  %v5884_v9 = vsub.f32 %v23790_v33, %v28899_v31  ;;  %v5891_v37 = vsub.f32 %v23795_v50, %v28898_v8  ;;  %v5827_v36 = vand.u32 4294901760, %v286_v56  ;;  %v5830_v15 = vand.u32 4294901760, %v287_v55 }
 0x271   :  { %v3647_v29 = vadd.f32 %v15125_v53, %v23671_v63  ;;  %18888 = vmatprep.subr.bf16.mxu1 %v29781_v0  ;;  %v28901_v38 = vand.u32 4294901760, %v23816_v18  ;;  %v23854_v16 = vpack.c.bf16 %v5878_v1, %v5871_v22  ;;  %v23856_v45 = vpack.c.bf16 %v5824_v40, %v5821_v43  ;;  %v270_v63 = vld [vmem:[#allocation5 + $0x640] sm:$0xff]  ;;  %v271_v0 = vld [vmem:[#allocation5 + $0x648] sm:$0xff] }
 0x272   :  { %v23858_v61 = vsub.f32 %v284_v57, %v5821_v43  ;;  %v28900_v20 = vand.u32 4294901760, %v23818_v23  ;;  %v23862_v25 = vsub.f32 %v285_v35, %v5824_v40  ;;  %v23864_v47 = vpack.c.bf16 %v5776_v5, %v5773_v13 }
 0x273   :  { %29825 = vst [vmem:[#allocation17_spill] sm:$0xff] %v23856_v45  ;;  %18866 = vmatpush3.bf16.msra.mxu0 %v23768_v42  ;;  %v28902_v53 = vand.u32 4294901760, %v23837_v3  ;;  %v5853_v22 = vsub.f32 %v23821_v26, %v28903_v58  ;;  %v23872_v57 = vsub.f32 %v268_v4, %v5773_v13  ;;  %v23874_v1 = vsub.f32 %v269_v7, %v5776_v5  ;;  %v288_v5 = vld [vmem:[#allocation5 + $0x6d0] sm:$0xff] }
 0x274   :  { %29826 = vst [vmem:[#allocation18_spill] sm:$0xff] %v23864_v47  ;;  %18890 = vmatpush3.bf16.msra.mxu1 %v29782_v30  ;;  %18868 = vmatprep.subr.bf16.mxu0 %v23779_v17  ;;  %v5885_v42 = vand.u32 4294901760, %v5884_v9  ;;  %v28904_v40 = vand.u32 4294901760, %v23839_v6  ;;  %v23878_v35 = vpack.c.bf16 %v6004_v28, %v5997_v49  ;;  %v5892_v43 = vand.u32 4294901760, %v5891_v37  ;;  %v289_v28 = vld [vmem:[#allocation5 + $0x6d8] sm:$0xff]  ;;  %v272_v9 = vld [vmem:[#allocation5 + $0x650] sm:$0xff] }
 0x275   :  { %29827 = vst [vmem:[#allocation12_spill] sm:$0xff] %v23872_v57  ;;  %29828 = vst [vmem:[#allocation11_spill] sm:$0xff] %v23874_v1  ;;  %18892 = vmatprep.subr.bf16.mxu1 %v29785_v62  ;;  %v23880_v8 = vpack.c.bf16 %v5830_v15, %v5827_v36  ;;  %v6010_v30 = vsub.f32 %v23816_v18, %v28901_v38  ;;  %v23885_v17 = vsub.f32 %v286_v56, %v5827_v36 }
 0x276   :  { %v15158_v31 = vpop.f32.mrb[20].mxu1  ;;  %v6017_v13 = vsub.f32 %v23818_v23, %v28900_v20  ;;  %v5779_v4 = vand.u32 4294901760, %v270_v63  ;;  %v5782_v7 = vand.u32 4294901760, %v271_v0  ;;  %v5898_v49 = vsub.f32 %v23837_v3, %v28902_v53 }
 0x277   :  { %29829 = vst [vmem:[#allocation16_spill] sm:$0xff] %v23880_v8  ;;  %v15159_v62 = vpop.f32.mrb[21].mxu1  ;;  %18870 = vmatpush3.bf16.msra.mxu0 %v23785_v2  ;;  %v5854_v37 = vand.u32 4294901760, %v5853_v22  ;;  %v5905_v20 = vsub.f32 %v23839_v6, %v28904_v40  ;;  %v23904_v53 = vpack.c.bf16 %v5892_v43, %v5885_v42  ;;  %v23906_v58 = vsub.f32 %v287_v55, %v5830_v15  ;;  %v273_v2 = vld [vmem:[#allocation5 + $0x658] sm:$0xff] }
 0x278   :  { %v15160_v36 = vadd.f32 %v15159_v62, %v15158_v31  ;;  %18894 = vmatpush3.bf16.msra.mxu1 %v23465_v48  ;;  %18904 = vmatprep.subr.bf16.mxu0 %v23787_v10  ;;  %v6011_v22 = vand.u32 4294901760, %v6010_v30  ;;  %v5833_v31 = vand.u32 4294901760, %v288_v5  ;;  %v6018_v48 = vand.u32 4294901760, %v6017_v13 }
 0x279   :  { %18896 = vmatprep.subr.bf16.mxu1 %v23486_v24  ;;  %v23911_v56 = vsub.f32 %v270_v63, %v5779_v4  ;;  %v5836_v40 = vand.u32 4294901760, %v289_v28  ;;  %v23914_v38 = vpack.c.bf16 %v5782_v7, %v5779_v4  ;;  %v29831_v24 = vand.u32 4294901760, %v23858_v61 }
 0x27a   :  { %v23908_v62 = vadd.f32 %v15160_v36, %v3647_v29  ;;  %5645 = vmatmul.mubr.f32.vlgmr.msra.gmra.mrb[34].mxu0 %v23518_v19  ;;  %v29832_v15 = vand.u32 4294901760, %v23862_v25  ;;  %v5899_v63 = vand.u32 4294901760, %v5898_v49  ;;  %v5906_v42 = vand.u32 4294901760, %v5905_v20  ;;  %v290_v36 = vld [vmem:[#allocation5 + $0x6e0] sm:$0xff] }
 0x27b   :  { %18906 = vmatpush3.bf16.msra.mxu0 %v23805_v11  ;;  %29830 = vst [vmem:[#allocation23_spill] sm:$0xff] %v23914_v38  ;;  %v6024_v55 = vsub.f32 %v23858_v61, %v29831_v24  ;;  %5855 = vmatprep.mubr.f32.mxu0 %v5854_v37  ;;  %v29833_v43 = vand.u32 4294901760, %v23872_v57  ;;  %v29834_v13 = vand.u32 4294901760, %v23874_v1  ;;  %v291_v24 = vld [vmem:[#allocation5 + $0x6e8] sm:$0xff]  ;;  %v5785_v37 = vand.u32 4294901760, %v272_v9 }
 0x27c   :  { %v6031_v29 = vsub.f32 %v23862_v25, %v29832_v15  ;;  %18898 = vmatpush3.bf16.msra.mxu1 %v23544_v41  ;;  %18908 = vmatprep.subr.bf16.mxu0 %v23807_v59  ;;  %v23931_v15 = vsub.f32 %v271_v0, %v5782_v7  ;;  %v5788_v41 = vand.u32 4294901760, %v273_v2  ;;  %v28913_v59 = vand.u32 4294901760, %v23885_v17 }
 0x27d   :  { %v5912_v30 = vsub.f32 %v23872_v57, %v29833_v43  ;;  %v5919_v4 = vsub.f32 %v23874_v1, %v29834_v13  ;;  %18900 = vmatprep.subr.bf16.mxu1 %v23570_v14  ;;  %v23934_v49 = vpack.c.bf16 %v6018_v48, %v6011_v22  ;;  %v23936_v20 = vpack.c.bf16 %v5836_v40, %v5833_v31 }
 0x27e   :  { %v23938_v11 = vsub.f32 %v288_v5, %v5833_v31  ;;  %v23940_v43 = vsub.f32 %v289_v28, %v5836_v40  ;;  %v6025_v13 = vand.u32 4294901760, %v6024_v55  ;;  %v6032_v1 = vand.u32 4294901760, %v6031_v29  ;;  %v274_v5 = vld [vmem:[#allocation5 + $0x660] sm:$0xff] }
 0x27f   :  { %29835 = vst [vmem:[#allocation19_spill] sm:$0xff] %v23936_v20  ;;  %18910 = vmatpush3.bf16.msra.mxu0 %v23809_v60  ;;  %v5839_v57 = vand.u32 4294901760, %v290_v36  ;;  %v5842_v14 = vand.u32 4294901760, %v291_v24  ;;  %v23945_v0 = vpack.c.bf16 %v5906_v42, %v5899_v63  ;;  %v5913_v7 = vand.u32 4294901760, %v5912_v30  ;;  %v23962_v42 = vld [vmem:[#allocation5 + $0x6f0] sm:$0xff]  ;;  %v23964_v30 = vld [vmem:[#allocation5 + $0x6f8] sm:$0xff] }
 0x280   :  { %29836 = vst [vmem:[#allocation24_spill] sm:$0xff] %v23940_v43  ;;  %18902 = vmatpush3.bf16.msra.mxu1 %v23594_v32  ;;  %18912 = vmatprep.subr.bf16.mxu0 %v23814_v54  ;;  %v5920_v22 = vand.u32 4294901760, %v5919_v4  ;;  %v28914_v48 = vand.u32 4294901760, %v23906_v58  ;;  %v23949_v40 = vpack.c.bf16 %v5788_v41, %v5785_v37  ;;  %v23951_v28 = vsub.f32 %v272_v9, %v5785_v37  ;;  %v275_v32 = vld [vmem:[#allocation5 + $0x668] sm:$0xff] }
 0x281   :  { %18936 = vmatprep.subr.bf16.mxu1 %v23833_v27  ;;  %v23956_v31 = vsub.f32 %v23885_v17, %v28913_v59  ;;  %v23959_v29 = vsub.f32 %v273_v2, %v5788_v41  ;;  %v28921_v27 = vand.u32 4294901760, %v23938_v11  ;;  %v18947_v4 = vpack.c.bf16 %v6032_v1, %v6025_v13  ;;  %v50_v41 = vld [vmem:[#allocation2 + $0x60] sm:$0xff] }
 0x282   :  { %v23970_v37 = vpack.c.bf16 %v5842_v14, %v5839_v57  ;;  %v23972_v59 = vsub.f32 %v290_v36, %v5839_v57  ;;  %v5791_v2 = vand.u32 4294901760, %v274_v5  ;;  %v18949_v63 = vpack.c.bf16 %v5920_v22, %v5913_v7  ;;  %v23988_v7 = vld [vmem:[#allocation5 + $0x670] sm:$0xff] }
 0x283   :  { %29837 = vst [vmem:[#allocation22_spill] sm:$0xff] %v23959_v29  ;;  %5749 = vmatmul.mubr.f32.vlgmr.msra.gmra.mrb[34].mxu1 %v23518_v19  ;;  %18914 = vmatpush3.bf16.msra.mxu0 %v23835_v51  ;;  %v23976_v55 = vsub.f32 %v291_v24, %v5842_v14  ;;  %v6045_v19 = vsub.f32 %v23906_v58, %v28914_v48  ;;  %v5794_v9 = vand.u32 4294901760, %v275_v32  ;;  %v6039_v1 = vand.u32 4294901760, %v23956_v31  ;;  %v23990_v24 = vld [vmem:[#allocation5 + $0x678] sm:$0xff] }
 0x284   :  { %29838 = vst [vmem:[#allocation20_spill] sm:$0xff] %v23972_v59  ;;  %18938 = vmatpush3.bf16.msra.mxu1 %v23854_v16  ;;  %18916 = vmatprep.subr.bf16.mxu0 %v23856_v45  ;;  %v29839_v57 = vand.u32 4294901760, %v23911_v56  ;;  %v5845_v16 = vand.u32 4294901760, %v23962_v42  ;;  %v5848_v13 = vand.u32 4294901760, %v23964_v30  ;;  %v29840_v14 = vand.u32 4294901760, %v23931_v15 }
 0x285   :  { %18940 = vmatprep.subr.bf16.mxu1 %v23878_v35  ;;  %6091 = vmatprep.mubr.f32.mxu1 %v23792_v34  ;;  %v6052_v22 = vsub.f32 %v23938_v11, %v28921_v27  ;;  %v29841_v31 = vand.u32 4294901760, %v23940_v43  ;;  %v24002_v48 = vand.u32 4294901760, %v50_v41  ;;  %v24005_v45 = vsub.f32 %v274_v5, %v5791_v2 }
 0x286   :  { %v5926_v36 = vsub.f32 %v23911_v56, %v29839_v57  ;;  %v5933_v35 = vsub.f32 %v23931_v15, %v29840_v14  ;;  %v6046_v27 = vand.u32 4294901760, %v6045_v19  ;;  %v24012_v54 = vsub.f32 %v275_v32, %v5794_v9 }
 0x287   :  { %v6059_v57 = vsub.f32 %v23940_v43, %v29841_v31  ;;  %18918 = vmatpush3.bf16.msra.mxu0 %v23864_v47  ;;  %v5797_v31 = vand.u32 4294901760, %v23988_v7  ;;  %v5800_v43 = vand.u32 4294901760, %v23990_v24  ;;  %v24018_v34 = vsub.f32 %v23962_v42, %v5845_v16 }
 0x288   :  { %18942 = vmatpush3.bf16.msra.mxu1 %v23904_v53  ;;  %18920 = vmatprep.subr.bf16.mxu0 %v23880_v8  ;;  %v5927_v5 = vand.u32 4294901760, %v5926_v36  ;;  %v24021_v51 = vsub.f32 %v23964_v30, %v5848_v13  ;;  %v5934_v14 = vand.u32 4294901760, %v5933_v35  ;;  %v6053_v8 = vand.u32 4294901760, %v6052_v22 }
 0x289   :  { %18944 = vmatprep.subr.bf16.mxu1 %v23934_v49  ;;  %v6060_v19 = vand.u32 4294901760, %v6059_v57  ;;  %v24025_v32 = vsub.f32 %v50_v41, %v24002_v48  ;;  %v24028_v47 = vpack.c.bf16 %v5794_v9, %v5791_v2  ;;  %v29842_v49 = vand.u32 4294901760, %v23951_v28 }
 0x28a   :  { %v29843_v36 = vand.u32 4294901760, %v23959_v29  ;;  %v29844_v53 = vand.u32 4294901760, %v23972_v59  ;;  %v24042_v41 = vsub.f32 %v23988_v7, %v5797_v31  ;;  %v24045_v9 = vsub.f32 %v23990_v24, %v5800_v43 }
 0x28b   :  { %18922 = vmatpush3.bf16.msra.mxu0 %v23914_v38  ;;  %v5940_v42 = vsub.f32 %v23951_v28, %v29842_v49  ;;  %v28941_v22 = vand.u32 4294901760, %v24012_v54  ;;  %v18951_v49 = vpack.c.bf16 %v6046_v27, %v6039_v1  ;;  %v18953_v38 = vpack.c.bf16 %v5934_v14, %v5927_v5 }
 0x28c   :  { %v5947_v30 = vsub.f32 %v23959_v29, %v29843_v36  ;;  %v6066_v35 = vsub.f32 %v23972_v59, %v29844_v53  ;;  %18946 = vmatpush3.bf16.msra.mxu1 %v23945_v0  ;;  %18924 = vmatprep.subr.bf16.mxu0 %v23936_v20  ;;  %v29845_v36 = vand.u32 4294901760, %v23976_v55  ;;  %v28940_v0 = vand.u32 4294901760, %v24018_v34 }
 0x28d   :  { %v15193_v57 = vpop.f32.mrb[22].mxu0  ;;  %18948 = vmatprep.subr.bf16.mxu1 %v18947_v4  ;;  %v24054_v59 = vpack.c.bf16 %v5848_v13, %v5845_v16  ;;  %v18955_v24 = vpack.c.bf16 %v6060_v19, %v6053_v8  ;;  %v28942_v2 = vand.u32 4294901760, %v24025_v32  ;;  %v5941_v4 = vand.u32 4294901760, %v5940_v42 }
 0x28e   :  { %v6073_v53 = vsub.f32 %v23976_v55, %v29845_v36  ;;  %v15194_v7 = vpop.f32.mrb[23].mxu0  ;;  %v5948_v27 = vand.u32 4294901760, %v5947_v30  ;;  %v6067_v1 = vand.u32 4294901760, %v6066_v35  ;;  %v29846_v36 = vand.u32 4294901760, %v24005_v45 }
 0x28f   :  { %v15195_v29 = vadd.f32 %v15194_v7, %v15193_v57  ;;  %18926 = vmatpush3.bf16.msra.mxu0 %v23949_v40  ;;  %v5961_v16 = vsub.f32 %v24012_v54, %v28941_v22  ;;  %v28938_v8 = vand.u32 4294901760, %v24042_v41  ;;  %v28939_v13 = vand.u32 4294901760, %v24045_v9 }
 0x290   :  { %18950 = vmatpush3.bf16.msra.mxu1 %v18949_v63  ;;  %18928 = vmatprep.subr.bf16.mxu0 %v23970_v37  ;;  %v5954_v20 = vsub.f32 %v24005_v45, %v29846_v36  ;;  %v6074_v5 = vand.u32 4294901760, %v6073_v53  ;;  %v6080_v63 = vsub.f32 %v24018_v34, %v28940_v0  ;;  %v29847_v19 = vand.u32 4294901760, %v24021_v51 }
 0x291   :  { %v3923_v14 = vadd.f32 %v15195_v29, %v23908_v62  ;;  %18952 = vmatprep.subr.bf16.mxu1 %v18951_v49  ;;  %v5859_v30 = vsub.f32 %v24025_v32, %v28942_v2  ;;  %v24078_v35 = vpack.c.bf16 %v5800_v43, %v5797_v31  ;;  %v18957_v57 = vpack.c.bf16 %v5948_v27, %v5941_v4 }
 0x292   :  { %v6087_v42 = vsub.f32 %v24021_v51, %v29847_v19  ;;  %v18967_v62 = vpack.c.bf16 %v23693_v44, %v23689_v39  ;;  %v5955_v29 = vand.u32 4294901760, %v5954_v20  ;;  %v5962_v49 = vand.u32 4294901760, %v5961_v16 }
 0x293   :  { %18930 = vmatpush3.bf16.msra.mxu0 %v24028_v47  ;;  %v5968_v53 = vsub.f32 %v24042_v41, %v28938_v8  ;;  %v5975_v7 = vsub.f32 %v24045_v9, %v28939_v13  ;;  %v18959_v43 = vpack.c.bf16 %v6074_v5, %v6067_v1  ;;  %v6081_v31 = vand.u32 4294901760, %v6080_v63 }
 0x294   :  { %18954 = vmatpush3.bf16.msra.mxu1 %v18953_v38  ;;  %18932 = vmatprep.subr.bf16.mxu0 %v24054_v59  ;;  %v6088_v4 = vand.u32 4294901760, %v6087_v42  ;;  %v5860_v36 = vand.u32 4294901760, %v5859_v30  ;;  %v18969_v38 = vpack.c.bf16 %v23729_v46, %v23717_v12  ;;  %v18971_v20 = vpack.c.bf16 %v23752_v52, %v23749_v21 }
 0x295   :  { %18956 = vmatprep.subr.bf16.mxu1 %v18955_v24  ;;  %v18961_v8 = vpack.c.bf16 %v5962_v49, %v5955_v29  ;;  %v5969_v13 = vand.u32 4294901760, %v5968_v53  ;;  %v5976_v24 = vand.u32 4294901760, %v5975_v7  ;;  %v18973_v63 = vpack.c.bf16 %v23795_v50, %v23790_v33  ;;  %v29850_v29 = vld [vmem:[#allocation13_spill] sm:$0xff] }
 0x296   :  { %v15228_v27 = vpop.f32.mrb[22].mxu1  ;;  %v18963_v1 = vpack.c.bf16 %v6088_v4, %v6081_v31  ;;  %v18975_v30 = vpack.c.bf16 %v23818_v23, %v23816_v18  ;;  %v18983_v49 = vpack.c.bf16 %v23906_v58, %v23885_v17  ;;  %v29851_v53 = vld [vmem:[#allocation25_spill] sm:$0xff]  ;;  %v29852_v7 = vand.u32 4294901760, %v23821_v26  ;;  %v29853_v31 = vld [vmem:[#allocation24_spill] sm:$0xff] }
 0x297   :  { %v15229_v19 = vpop.f32.mrb[23].mxu1  ;;  %18934 = vmatpush3.bf16.msra.mxu0 %v24078_v35  ;;  %v18965_v42 = vpack.c.bf16 %v5976_v24, %v5969_v13  ;;  %v29849_v13 = vld [vmem:[#allocation11_spill] sm:$0xff]  ;;  %v18987_v4 = vpack.c.bf16 %v29853_v31, %v23938_v11  ;;  %v29858_v24 = vld [vmem:[#allocation17_spill] sm:$0xff]  ;;  %v29866_v0 = vand.u32 4294901760, %v23729_v46  ;;  %v29869_v46 = vand.u32 4294901760, %v23790_v33 }
 0x298   :  { %v15230_v16 = vadd.f32 %v15229_v19, %v15228_v27  ;;  %18958 = vmatpush3.bf16.msra.mxu1 %v18957_v57  ;;  %18968 = vmatprep.subr.bf16.mxu0 %v18967_v62  ;;  %v18977_v57 = vpack.c.bf16 %v23839_v6, %v23837_v3  ;;  %v29854_v27 = vld [vmem:[#allocation15_spill] sm:$0xff] }
 0x299   :  { %18960 = vmatprep.subr.bf16.mxu1 %v18959_v43  ;;  %v18985_v43 = vpack.c.bf16 %v23931_v15, %v23911_v56 }
 0x29a   :  { %v4027_v5 = vadd.f32 %v15230_v16, %v3923_v14  ;;  %5861 = vmatmul.mubr.f32.vlgmr.msra.gmra.mrb[36].mxu0 %v5860_v36  ;;  %v18979_v14 = vpack.c.bf16 %v23862_v25, %v23858_v61  ;;  %v29855_v36 = vld [vmem:[#allocation22_spill] sm:$0xff] }
 0x29b   :  { %18970 = vmatpush3.bf16.msra.mxu0 %v18969_v38  ;;  %6228 = vmatprep.mubr.f32.mxu0 %v23821_v26  ;;  %v18989_v19 = vpack.c.bf16 %v29855_v36, %v23951_v28  ;;  %v29856_v38 = vld [vmem:[#allocation14_spill] sm:$0xff]  ;;  %v29857_v26 = vld [vmem:[#allocation20_spill] sm:$0xff] }
 0x29c   :  { %18962 = vmatpush3.bf16.msra.mxu1 %v18961_v8  ;;  %18972 = vmatprep.subr.bf16.mxu0 %v18971_v20  ;;  %v29848_v8 = vld [vmem:[#allocation12_spill] sm:$0xff]  ;;  %v18991_v20 = vpack.c.bf16 %v23976_v55, %v29857_v26 }
 0x29d   :  { %18964 = vmatprep.subr.bf16.mxu1 %v18963_v1  ;;  %v18981_v62 = vpack.c.bf16 %v29849_v13, %v29848_v8 }
 0x29f   :  { %18974 = vmatpush3.bf16.msra.mxu0 %v18973_v63 }
 0x2a0   :  { %18966 = vmatpush3.bf16.msra.mxu1 %v18965_v42  ;;  %18976 = vmatprep.subr.bf16.mxu0 %v18975_v30  ;;  %v18993_v42 = vpack.c.bf16 %v24012_v54, %v24005_v45  ;;  %v29859_v30 = vld [vmem:[#allocation18_spill] sm:$0xff] }
 0x2a1   :  { %19000 = vmatprep.subr.bf16.mxu1 %v23787_v10 }
 0x2a3   :  { %6093 = vmatmul.mubr.f32.vlgmr.msra.gmra.mrb[36].mxu1 %v24002_v48  ;;  %18978 = vmatpush3.bf16.msra.mxu0 %v18977_v57  ;;  %v18995_v57 = vpack.c.bf16 %v24021_v51, %v24018_v34 }
 0x2a4   :  { %19002 = vmatpush3.bf16.msra.mxu1 %v29850_v29  ;;  %18980 = vmatprep.subr.bf16.mxu0 %v18979_v14 }
 0x2a5   :  { %19004 = vmatprep.subr.bf16.mxu1 %v29851_v53  ;;  %6335 = vmatprep.mubr.f32.mxu1 %v29852_v7  ;;  %v29861_v7 = vld [vmem:[#allocation23_spill] sm:$0xff] }
 0x2a7   :  { %18982 = vmatpush3.bf16.msra.mxu0 %v18981_v62  ;;  %v29860_v62 = vld [vmem:[#allocation16_spill] sm:$0xff] }
 0x2a8   :  { %19006 = vmatpush3.bf16.msra.mxu1 %v23809_v60  ;;  %18984 = vmatprep.subr.bf16.mxu0 %v18983_v49  ;;  %v18997_v49 = vpack.c.bf16 %v24045_v9, %v24042_v41 }
 0x2a9   :  { %19008 = vmatprep.subr.bf16.mxu1 %v29854_v27 }
 0x2ab   :  { %18986 = vmatpush3.bf16.msra.mxu0 %v18985_v43  ;;  %v29862_v43 = vand.u32 4294901760, %v23689_v39  ;;  %v29867_v39 = vand.u32 4294901760, %v23749_v21  ;;  %v29870_v21 = vand.u32 4294901760, %v23795_v50 }
 0x2ac   :  { %19010 = vmatpush3.bf16.msra.mxu1 %v29856_v38  ;;  %18988 = vmatprep.subr.bf16.mxu0 %v18987_v4  ;;  %v29863_v4 = vand.u32 4294901760, %v23693_v44  ;;  %v29868_v44 = vand.u32 4294901760, %v23752_v52  ;;  %v29871_v52 = vld [vmem:[#allocation21_spill] sm:$0xff] }
 0x2ad   :  { %v15263_v16 = vpop.f32.mrb[24].mxu0  ;;  %19012 = vmatprep.subr.bf16.mxu1 %v29858_v24 }
 0x2ae   :  { %v15264_v1 = vpop.f32.mrb[25].mxu0 }
 0x2af   :  { %v15265_v63 = vadd.f32 %v15264_v1, %v15263_v16  ;;  %18990 = vmatpush3.bf16.msra.mxu0 %v18989_v19  ;;  %v19031_v19 = vpack.c.bf16 %v29863_v4, %v29862_v43  ;;  %v29864_v16 = vld [vmem:[#allocation19_spill] sm:$0xff]  ;;  %v19035_v43 = vpack.c.bf16 %v29868_v44, %v29867_v39  ;;  %v29877_v44 = vand.u32 4294901760, %v23862_v25 }
 0x2b0   :  { %19014 = vmatpush3.bf16.msra.mxu1 %v29859_v30  ;;  %18992 = vmatprep.subr.bf16.mxu0 %v18991_v20  ;;  %v24139_v20 = vld [vmem:[#allocation5 + $0x780] sm:$0xff]  ;;  %v29878_v25 = vand.u32 4294901760, %v29848_v8 }
 0x2b1   :  { %v4139_v14 = vadd.f32 %v15265_v63, %v4027_v5  ;;  %19016 = vmatprep.subr.bf16.mxu1 %v29860_v62  ;;  %v24141_v5 = vld [vmem:[#allocation5 + $0x788] sm:$0xff]  ;;  %v6665_v4 = vand.u32 4294901760, %v24139_v20 }
 0x2b3   :  { %18994 = vmatpush3.bf16.msra.mxu0 %v18993_v42  ;;  %v29865_v42 = vand.u32 4294901760, %v23717_v12  ;;  %v24158_v12 = vld [vmem:[#allocation5 + $0x700] sm:$0xff] }
 0x2b4   :  { %19018 = vmatpush3.bf16.msra.mxu1 %v29861_v7  ;;  %18996 = vmatprep.subr.bf16.mxu0 %v18995_v57  ;;  %v28943_v50 = vand.u32 4294901760, %v24158_v12 }
 0x2b5   :  { %19020 = vmatprep.subr.bf16.mxu1 %v29864_v16  ;;  %v19033_v22 = vpack.c.bf16 %v29866_v0, %v29865_v42  ;;  %v19037_v0 = vpack.c.bf16 %v29870_v21, %v29869_v46  ;;  %v24173_v42 = vsub.f32 %v24139_v20, %v6665_v4 }
 0x2b6   :  { %v15298_v1 = vpop.f32.mrb[24].mxu1 }
 0x2b7   :  { %v15299_v63 = vpop.f32.mrb[25].mxu1  ;;  %18998 = vmatpush3.bf16.msra.mxu0 %v18997_v49  ;;  %v6668_v49 = vand.u32 4294901760, %v24141_v5 }
 0x2b8   :  { %v15300_v57 = vadd.f32 %v15299_v63, %v15298_v1  ;;  %19022 = vmatpush3.bf16.msra.mxu1 %v23949_v40  ;;  %19032 = vmatprep.subr.bf16.mxu0 %v19031_v19  ;;  %v24165_v19 = vld [vmem:[#allocation5 + $0x708] sm:$0xff]  ;;  %v29873_v1 = vand.u32 4294901760, %v23818_v23  ;;  %v29875_v23 = vand.u32 4294901760, %v23839_v6  ;;  %v297_v6 = vld [vmem:[#allocation5 + $0x718] sm:$0xff] }
 0x2b9   :  { %19024 = vmatprep.subr.bf16.mxu1 %v23970_v37  ;;  %v24177_v33 = vsub.f32 %v24141_v5, %v6668_v49  ;;  %v6620_v39 = vand.u32 4294901760, %v24165_v19  ;;  %v29876_v5 = vand.u32 4294901760, %v23858_v61  ;;  %v29884_v61 = vand.u32 4294901760, %v23931_v15 }
 0x2ba   :  { %v24155_v2 = vadd.f32 %v15300_v57, %v4139_v14  ;;  %6231 = vmatmul.mubr.f32.vlgmr.msra.gmra.mrb[38].mxu0 %v24025_v32  ;;  %v29872_v14 = vand.u32 4294901760, %v23816_v18  ;;  %v24182_v57 = vld [vmem:[#allocation5 + $0x798] sm:$0xff]  ;;  %v29874_v18 = vand.u32 4294901760, %v23837_v3  ;;  %v24201_v3 = vsub.f32 %v24158_v12, %v28943_v50 }
 0x2bb   :  { %19034 = vmatpush3.bf16.msra.mxu0 %v19033_v22  ;;  %6505 = vmatprep.mubr.f32.mxu0 %v29871_v52  ;;  %v24180_v22 = vld [vmem:[#allocation5 + $0x790] sm:$0xff]  ;;  %v6674_v21 = vand.u32 4294901760, %v24182_v57  ;;  %v29883_v50 = vand.u32 4294901760, %v23911_v56 }
 0x2bc   :  { %19026 = vmatpush3.bf16.msra.mxu1 %v24028_v47  ;;  %19036 = vmatprep.subr.bf16.mxu0 %v19035_v43  ;;  %v19039_v63 = vpack.c.bf16 %v29873_v1, %v29872_v14  ;;  %v19041_v20 = vpack.c.bf16 %v29875_v23, %v29874_v18  ;;  %v19043_v43 = vpack.c.bf16 %v29877_v44, %v29876_v5  ;;  %v6671_v46 = vand.u32 4294901760, %v24180_v22  ;;  %v296_v14 = vld [vmem:[#allocation5 + $0x710] sm:$0xff] }
 0x2bd   :  { %19028 = vmatprep.subr.bf16.mxu1 %v24054_v59  ;;  %v29879_v1 = vand.u32 4294901760, %v29849_v13  ;;  %v29880_v18 = vand.u32 4294901760, %v23885_v17  ;;  %v29881_v23 = vand.u32 4294901760, %v23906_v58  ;;  %v29882_v44 = vand.u32 4294901760, %v24025_v32  ;;  %v314_v32 = vld [vmem:[#allocation5 + $0x7a0] sm:$0xff] }
 0x2be   :  { %v19049_v8 = vpack.c.bf16 %v29884_v61, %v29883_v50  ;;  %v29885_v13 = vand.u32 4294901760, %v23938_v11  ;;  %v29887_v58 = vand.u32 4294901760, %v23951_v28  ;;  %v24233_v56 = vsub.f32 %v24180_v22, %v6671_v46 }
 0x2bf   :  { %19038 = vmatpush3.bf16.msra.mxu0 %v19037_v0  ;;  %v28948_v0 = vand.u32 4294901760, %v24173_v42  ;;  %v19047_v5 = vpack.c.bf16 %v29881_v23, %v29880_v18  ;;  %v6623_v18 = vand.u32 4294901760, %v296_v14  ;;  %v24236_v15 = vsub.f32 %v24182_v57, %v6674_v21 }
 0x2c0   :  { %19030 = vmatpush3.bf16.msra.mxu1 %v24078_v35  ;;  %19040 = vmatprep.subr.bf16.mxu0 %v19039_v63  ;;  %v19045_v63 = vpack.c.bf16 %v29879_v1, %v29878_v25  ;;  %v29886_v25 = vand.u32 4294901760, %v29853_v31  ;;  %v29888_v1 = vand.u32 4294901760, %v29855_v36  ;;  %v6626_v11 = vand.u32 4294901760, %v297_v6  ;;  %v315_v31 = vld [vmem:[#allocation5 + $0x7a8] sm:$0xff]  ;;  %v53_v36 = vld [vmem:[#allocation2 + $0x78] sm:$0xff] }
 0x2c1   :  { %19064 = vmatprep.subr.bf16.mxu1 %v23787_v10  ;;  %v24213_v10 = vsub.f32 %v24165_v19, %v6620_v39  ;;  %v6844_v28 = vsub.f32 %v24173_v42, %v28948_v0  ;;  %v29889_v50 = vand.u32 4294901760, %v29857_v26  ;;  %v29891_v22 = vand.u32 4294901760, %v24005_v45 }
 0x2c2   :  { %v19051_v17 = vpack.c.bf16 %v29886_v25, %v29885_v13  ;;  %v24229_v19 = vpack.c.bf16 %v29888_v1, %v29887_v58  ;;  %v29892_v57 = vand.u32 4294901760, %v24012_v54  ;;  %v29893_v61 = vand.u32 4294901760, %v24177_v33  ;;  %v299_v58 = vld [vmem:[#allocation5 + $0x728] sm:$0xff] }
 0x2c3   :  { %6339 = vmatmul.mubr.f32.vlgmr.msra.gmra.mrb[38].mxu1 %v29882_v44  ;;  %19042 = vmatpush3.bf16.msra.mxu0 %v19041_v20  ;;  %v29894_v26 = vand.u32 4294901760, %v24018_v34  ;;  %v29896_v45 = vand.u32 4294901760, %v24042_v41  ;;  %v29897_v54 = vand.u32 4294901760, %v24045_v9  ;;  %v24271_v25 = vpack.c.bf16 %v6668_v49, %v6665_v4 }
 0x2c4   :  { %19066 = vmatpush3.bf16.msra.mxu1 %v29850_v29  ;;  %19044 = vmatprep.subr.bf16.mxu0 %v19043_v43  ;;  %v29890_v29 = vand.u32 4294901760, %v23976_v55  ;;  %v24252_v43 = vpack.c.bf16 %v29892_v57, %v29891_v22  ;;  %v6851_v23 = vsub.f32 %v24177_v33, %v29893_v61  ;;  %v29895_v55 = vand.u32 4294901760, %v24021_v51 }
 0x2c5   :  { %19068 = vmatprep.subr.bf16.mxu1 %v29851_v53  ;;  %6609 = vmatprep.mubr.f32.mxu1 %v29871_v52  ;;  %v28947_v53 = vand.u32 4294901760, %v24201_v3  ;;  %v24269_v13 = vpack.c.bf16 %v29897_v54, %v29896_v45  ;;  %v298_v52 = vld [vmem:[#allocation5 + $0x720] sm:$0xff]  ;;  %v28946_v1 = vand.u32 4294901760, %v24213_v10  ;;  %v6677_v34 = vand.u32 4294901760, %v314_v32  ;;  %v317_v45 = vld [vmem:[#allocation5 + $0x7b8] sm:$0xff] }
 0x2c6   :  { %v24246_v20 = vpack.c.bf16 %v29890_v29, %v29889_v50  ;;  %v24263_v44 = vpack.c.bf16 %v29895_v55, %v29894_v26  ;;  %v24274_v50 = vsub.f32 %v296_v14, %v6623_v18  ;;  %v6680_v29 = vand.u32 4294901760, %v315_v31  ;;  %v316_v55 = vld [vmem:[#allocation5 + $0x7b0] sm:$0xff] }
 0x2c7   :  { %19046 = vmatpush3.bf16.msra.mxu0 %v19045_v63  ;;  %v24276_v51 = vand.u32 4294901760, %v53_v36  ;;  %v24279_v41 = vsub.f32 %v297_v6, %v6626_v11  ;;  %v6845_v9 = vand.u32 4294901760, %v6844_v28  ;;  %v28945_v4 = vand.u32 4294901760, %v24233_v56 }
 0x2c8   :  { %19070 = vmatpush3.bf16.msra.mxu1 %v23809_v60  ;;  %19048 = vmatprep.subr.bf16.mxu0 %v19047_v5  ;;  %v28944_v49 = vand.u32 4294901760, %v24236_v15  ;;  %v6852_v22 = vand.u32 4294901760, %v6851_v23  ;;  %v6629_v63 = vand.u32 4294901760, %v298_v52  ;;  %v6632_v14 = vand.u32 4294901760, %v299_v58 }
 0x2c9   :  { %29898 = vst [vmem:[#allocation12_spill] sm:$0xff] %v24276_v51  ;;  %19072 = vmatprep.subr.bf16.mxu1 %v29854_v27  ;;  %v6732_v57 = vsub.f32 %v24201_v3, %v28947_v53  ;;  %v29899_v61 = vand.u32 4294901760, %v24158_v12  ;;  %v24291_v6 = vpack.c.bf16 %v6674_v21, %v6671_v46  ;;  %v24293_v5 = vpack.c.bf16 %v6626_v11, %v6623_v18  ;;  %v300_v21 = vld [vmem:[#allocation5 + $0x730] sm:$0xff] }
 0x2ca   :  { %v6739_v28 = vsub.f32 %v24213_v10, %v28946_v1  ;;  %v24298_v27 = vpack.c.bf16 %v6680_v29, %v6677_v34  ;;  %v24300_v23 = vsub.f32 %v314_v32, %v6677_v34  ;;  %v24302_v26 = vsub.f32 %v315_v31, %v6680_v29  ;;  %v319_v1 = vld [vmem:[#allocation5 + $0x7c8] sm:$0xff] }
 0x2cb   :  { %v24289_v60 = vpack.c.bf16 %v6620_v39, %v29899_v61  ;;  %29901 = vst [vmem:[#allocation13_spill] sm:$0xff] %v24291_v6  ;;  %19050 = vmatpush3.bf16.msra.mxu0 %v19049_v8  ;;  %v24305_v12 = vsub.f32 %v53_v36, %v24276_v51  ;;  %v6858_v39 = vsub.f32 %v24233_v56, %v28945_v4  ;;  %v301_v8 = vld [vmem:[#allocation5 + $0x738] sm:$0xff]  ;;  %v28950_v18 = vand.u32 4294901760, %v24274_v50  ;;  %v318_v4 = vld [vmem:[#allocation5 + $0x7c0] sm:$0xff] }
 0x2cc   :  { %29902 = vst [vmem:[#allocation25_spill] sm:$0xff] %v24298_v27  ;;  %19074 = vmatpush3.bf16.msra.mxu1 %v29856_v38  ;;  %19052 = vmatprep.subr.bf16.mxu0 %v19051_v17  ;;  %v6865_v46 = vsub.f32 %v24236_v15, %v28944_v49  ;;  %v28949_v11 = vand.u32 4294901760, %v24279_v41  ;;  %v24317_v31 = vpack.c.bf16 %v6852_v22, %v6845_v9  ;;  %v6733_v36 = vand.u32 4294901760, %v6732_v57 }
 0x2cd   :  { %29900 = vst [vmem:[#allocation11_spill] sm:$0xff] %v24289_v60  ;;  %v15333_v32 = vpop.f32.mrb[26].mxu0  ;;  %19076 = vmatprep.subr.bf16.mxu1 %v29858_v24  ;;  %v24319_v38 = vpack.c.bf16 %v6632_v14, %v6629_v63  ;;  %v24321_v17 = vsub.f32 %v298_v52, %v6629_v63  ;;  %v24323_v34 = vsub.f32 %v299_v58, %v6632_v14  ;;  %v6740_v29 = vand.u32 4294901760, %v6739_v28 }
 0x2ce   :  { %v15334_v54 = vpop.f32.mrb[27].mxu0  ;;  %v6683_v61 = vand.u32 4294901760, %v316_v55  ;;  %v6686_v49 = vand.u32 4294901760, %v317_v45  ;;  %v6635_v0 = vand.u32 4294901760, %v300_v21  ;;  %v6638_v24 = vand.u32 4294901760, %v301_v8 }
 0x2cf   :  { %29903 = vst [vmem:[#allocation24_spill] sm:$0xff] %v24319_v38  ;;  %v15335_v53 = vadd.f32 %v15334_v54, %v15333_v32  ;;  %19054 = vmatpush3.bf16.msra.mxu0 %v24229_v19  ;;  %v28954_v9 = vand.u32 4294901760, %v24305_v12  ;;  %v6859_v52 = vand.u32 4294901760, %v6858_v39  ;;  %v6866_v22 = vand.u32 4294901760, %v6865_v46 }
 0x2d0   :  { %19078 = vmatpush3.bf16.msra.mxu1 %v29859_v30  ;;  %19056 = vmatprep.subr.bf16.mxu0 %v24246_v20  ;;  %v6746_v58 = vsub.f32 %v24274_v50, %v28950_v18  ;;  %v6753_v63 = vsub.f32 %v24279_v41, %v28949_v11  ;;  %v6689_v14 = vand.u32 4294901760, %v318_v4  ;;  %v6692_v57 = vand.u32 4294901760, %v319_v1 }
 0x2d1   :  { %v4509_v19 = vadd.f32 %v15335_v53, %v24155_v2  ;;  %19080 = vmatprep.subr.bf16.mxu1 %v29860_v62  ;;  %v28952_v30 = vand.u32 4294901760, %v24300_v23  ;;  %v24338_v28 = vpack.c.bf16 %v6740_v29, %v6733_v36  ;;  %v24340_v20 = vpack.c.bf16 %v6686_v49, %v6683_v61  ;;  %v302_v2 = vld [vmem:[#allocation5 + $0x740] sm:$0xff]  ;;  %v303_v62 = vld [vmem:[#allocation5 + $0x748] sm:$0xff] }
 0x2d2   :  { %v24342_v39 = vsub.f32 %v316_v55, %v6683_v61  ;;  %v28951_v46 = vand.u32 4294901760, %v24302_v26  ;;  %v24346_v32 = vsub.f32 %v317_v45, %v6686_v49  ;;  %v24348_v54 = vpack.c.bf16 %v6638_v24, %v6635_v0 }
 0x2d3   :  { %29904 = vst [vmem:[#allocation15_spill] sm:$0xff] %v24340_v20  ;;  %19058 = vmatpush3.bf16.msra.mxu0 %v24252_v43  ;;  %v28953_v53 = vand.u32 4294901760, %v24321_v17  ;;  %v6715_v36 = vsub.f32 %v24305_v12, %v28954_v9  ;;  %v24356_v55 = vsub.f32 %v300_v21, %v6635_v0  ;;  %v24358_v29 = vsub.f32 %v301_v8, %v6638_v24  ;;  %v320_v24 = vld [vmem:[#allocation5 + $0x7d0] sm:$0xff] }
 0x2d4   :  { %29905 = vst [vmem:[#allocation22_spill] sm:$0xff] %v24348_v54  ;;  %19082 = vmatpush3.bf16.msra.mxu1 %v29861_v7  ;;  %19060 = vmatprep.subr.bf16.mxu0 %v24263_v44  ;;  %v6747_v43 = vand.u32 4294901760, %v6746_v58  ;;  %v28955_v49 = vand.u32 4294901760, %v24323_v34  ;;  %v24362_v45 = vpack.c.bf16 %v6866_v22, %v6859_v52  ;;  %v6754_v61 = vand.u32 4294901760, %v6753_v63  ;;  %v321_v22 = vld [vmem:[#allocation5 + $0x7d8] sm:$0xff]  ;;  %v304_v58 = vld [vmem:[#allocation5 + $0x750] sm:$0xff] }
 0x2d5   :  { %29906 = vst [vmem:[#allocation14_spill] sm:$0xff] %v24356_v55  ;;  %29907 = vst [vmem:[#allocation20_spill] sm:$0xff] %v24358_v29  ;;  %19084 = vmatprep.subr.bf16.mxu1 %v29864_v16  ;;  %v24364_v11 = vpack.c.bf16 %v6692_v57, %v6689_v14  ;;  %v6872_v7 = vsub.f32 %v24300_v23, %v28952_v30  ;;  %v24369_v44 = vsub.f32 %v318_v4, %v6689_v14 }
 0x2d6   :  { %v15368_v18 = vpop.f32.mrb[26].mxu1  ;;  %v6879_v0 = vsub.f32 %v24302_v26, %v28951_v46  ;;  %v6641_v21 = vand.u32 4294901760, %v302_v2  ;;  %v6644_v8 = vand.u32 4294901760, %v303_v62  ;;  %v6760_v52 = vsub.f32 %v24321_v17, %v28953_v53 }
 0x2d7   :  { %29908 = vst [vmem:[#allocation17_spill] sm:$0xff] %v24364_v11  ;;  %v15369_v16 = vpop.f32.mrb[27].mxu1  ;;  %19062 = vmatpush3.bf16.msra.mxu0 %v24269_v13  ;;  %v6716_v63 = vand.u32 4294901760, %v6715_v36  ;;  %v6767_v46 = vsub.f32 %v24323_v34, %v28955_v49  ;;  %v24388_v53 = vpack.c.bf16 %v6754_v61, %v6747_v43  ;;  %v24390_v9 = vsub.f32 %v319_v1, %v6692_v57  ;;  %v305_v13 = vld [vmem:[#allocation5 + $0x758] sm:$0xff] }
 0x2d8   :  { %v15370_v14 = vadd.f32 %v15369_v16, %v15368_v18  ;;  %19086 = vmatpush3.bf16.msra.mxu1 %v23949_v40  ;;  %19096 = vmatprep.subr.bf16.mxu0 %v24271_v25  ;;  %v6873_v36 = vand.u32 4294901760, %v6872_v7  ;;  %v6695_v18 = vand.u32 4294901760, %v320_v24  ;;  %v6880_v40 = vand.u32 4294901760, %v6879_v0 }
 0x2d9   :  { %19088 = vmatprep.subr.bf16.mxu1 %v23970_v37  ;;  %v24395_v4 = vsub.f32 %v302_v2, %v6641_v21  ;;  %v6698_v49 = vand.u32 4294901760, %v321_v22  ;;  %v24398_v30 = vpack.c.bf16 %v6644_v8, %v6641_v21  ;;  %v29910_v37 = vand.u32 4294901760, %v24342_v39 }
 0x2da   :  { %v24392_v16 = vadd.f32 %v15370_v14, %v4509_v19  ;;  %6507 = vmatmul.mubr.f32.vlgmr.msra.gmra.mrb[40].mxu0 %v24002_v48  ;;  %v29911_v57 = vand.u32 4294901760, %v24346_v32  ;;  %v6761_v2 = vand.u32 4294901760, %v6760_v52  ;;  %v6768_v43 = vand.u32 4294901760, %v6767_v46  ;;  %v322_v14 = vld [vmem:[#allocation5 + $0x7e0] sm:$0xff] }
 0x2db   :  { %19098 = vmatpush3.bf16.msra.mxu0 %v24289_v60  ;;  %29909 = vst [vmem:[#allocation18_spill] sm:$0xff] %v24398_v30  ;;  %v6886_v1 = vsub.f32 %v24342_v39, %v29910_v37  ;;  %6717 = vmatprep.mubr.f32.mxu0 %v6716_v63  ;;  %v29912_v61 = vand.u32 4294901760, %v24356_v55  ;;  %v29913_v0 = vand.u32 4294901760, %v24358_v29  ;;  %v323_v37 = vld [vmem:[#allocation5 + $0x7e8] sm:$0xff]  ;;  %v6647_v63 = vand.u32 4294901760, %v304_v58 }
 0x2dc   :  { %v6893_v19 = vsub.f32 %v24346_v32, %v29911_v57  ;;  %19090 = vmatpush3.bf16.msra.mxu1 %v24028_v47  ;;  %19100 = vmatprep.subr.bf16.mxu0 %v24291_v6  ;;  %v24415_v57 = vsub.f32 %v303_v62, %v6644_v8  ;;  %v6650_v47 = vand.u32 4294901760, %v305_v13  ;;  %v28964_v6 = vand.u32 4294901760, %v24369_v44 }
 0x2dd   :  { %v6774_v7 = vsub.f32 %v24356_v55, %v29912_v61  ;;  %v6781_v21 = vsub.f32 %v24358_v29, %v29913_v0  ;;  %19092 = vmatprep.subr.bf16.mxu1 %v24054_v59  ;;  %v24418_v52 = vpack.c.bf16 %v6880_v40, %v6873_v36  ;;  %v24420_v46 = vpack.c.bf16 %v6698_v49, %v6695_v18 }
 0x2de   :  { %v24422_v60 = vsub.f32 %v320_v24, %v6695_v18  ;;  %v24424_v61 = vsub.f32 %v321_v22, %v6698_v49  ;;  %v6887_v0 = vand.u32 4294901760, %v6886_v1  ;;  %v6894_v29 = vand.u32 4294901760, %v6893_v19  ;;  %v306_v24 = vld [vmem:[#allocation5 + $0x760] sm:$0xff] }
 0x2df   :  { %29914 = vst [vmem:[#allocation16_spill] sm:$0xff] %v24420_v46  ;;  %19102 = vmatpush3.bf16.msra.mxu0 %v24293_v5  ;;  %v6701_v55 = vand.u32 4294901760, %v322_v14  ;;  %v6704_v59 = vand.u32 4294901760, %v323_v37  ;;  %v24429_v62 = vpack.c.bf16 %v6768_v43, %v6761_v2  ;;  %v6775_v8 = vand.u32 4294901760, %v6774_v7  ;;  %v24446_v43 = vld [vmem:[#allocation5 + $0x7f0] sm:$0xff]  ;;  %v24448_v7 = vld [vmem:[#allocation5 + $0x7f8] sm:$0xff] }
 0x2e0   :  { %29915 = vst [vmem:[#allocation23_spill] sm:$0xff] %v24424_v61  ;;  %19094 = vmatpush3.bf16.msra.mxu1 %v24078_v35  ;;  %19104 = vmatprep.subr.bf16.mxu0 %v24298_v27  ;;  %v6782_v36 = vand.u32 4294901760, %v6781_v21  ;;  %v28965_v40 = vand.u32 4294901760, %v24390_v9  ;;  %v24433_v49 = vpack.c.bf16 %v6650_v47, %v6647_v63  ;;  %v24435_v22 = vsub.f32 %v304_v58, %v6647_v63  ;;  %v307_v35 = vld [vmem:[#allocation5 + $0x768] sm:$0xff] }
 0x2e1   :  { %19128 = vmatprep.subr.bf16.mxu1 %v24317_v31  ;;  %v24440_v18 = vsub.f32 %v24369_v44, %v28964_v6  ;;  %v24443_v19 = vsub.f32 %v305_v13, %v6650_v47  ;;  %v28972_v31 = vand.u32 4294901760, %v24422_v60  ;;  %v19139_v21 = vpack.c.bf16 %v6894_v29, %v6887_v0  ;;  %v52_v47 = vld [vmem:[#allocation2 + $0x70] sm:$0xff] }
 0x2e2   :  { %v24454_v63 = vpack.c.bf16 %v6704_v59, %v6701_v55  ;;  %v24456_v6 = vsub.f32 %v322_v14, %v6701_v55  ;;  %v6653_v13 = vand.u32 4294901760, %v306_v24  ;;  %v19141_v2 = vpack.c.bf16 %v6782_v36, %v6775_v8  ;;  %v24472_v8 = vld [vmem:[#allocation5 + $0x770] sm:$0xff] }
 0x2e3   :  { %29916 = vst [vmem:[#allocation19_spill] sm:$0xff] %v24443_v19  ;;  %6611 = vmatmul.mubr.f32.vlgmr.msra.gmra.mrb[40].mxu1 %v24002_v48  ;;  %19106 = vmatpush3.bf16.msra.mxu0 %v24319_v38  ;;  %v24460_v1 = vsub.f32 %v323_v37, %v6704_v59  ;;  %v6907_v48 = vsub.f32 %v24390_v9, %v28965_v40  ;;  %v6656_v58 = vand.u32 4294901760, %v307_v35  ;;  %v6901_v29 = vand.u32 4294901760, %v24440_v18  ;;  %v24474_v37 = vld [vmem:[#allocation5 + $0x778] sm:$0xff] }
 0x2e4   :  { %29917 = vst [vmem:[#allocation21_spill] sm:$0xff] %v24456_v6  ;;  %19130 = vmatpush3.bf16.msra.mxu1 %v24338_v28  ;;  %19108 = vmatprep.subr.bf16.mxu0 %v24340_v20  ;;  %v29918_v55 = vand.u32 4294901760, %v24395_v4  ;;  %v6707_v28 = vand.u32 4294901760, %v24446_v43  ;;  %v6710_v0 = vand.u32 4294901760, %v24448_v7  ;;  %v29919_v59 = vand.u32 4294901760, %v24415_v57 }
 0x2e5   :  { %19132 = vmatprep.subr.bf16.mxu1 %v24362_v45  ;;  %6953 = vmatprep.mubr.f32.mxu1 %v24276_v51  ;;  %v6914_v36 = vsub.f32 %v24422_v60, %v28972_v31  ;;  %v29920_v18 = vand.u32 4294901760, %v24424_v61  ;;  %v24486_v40 = vand.u32 4294901760, %v52_v47  ;;  %v24489_v20 = vsub.f32 %v306_v24, %v6653_v13 }
 0x2e6   :  { %v6788_v14 = vsub.f32 %v24395_v4, %v29918_v55  ;;  %v6795_v45 = vsub.f32 %v24415_v57, %v29919_v59  ;;  %v6908_v31 = vand.u32 4294901760, %v6907_v48  ;;  %v24496_v27 = vsub.f32 %v307_v35, %v6656_v58 }
 0x2e7   :  { %v6921_v55 = vsub.f32 %v24424_v61, %v29920_v18  ;;  %19110 = vmatpush3.bf16.msra.mxu0 %v24348_v54  ;;  %v6659_v18 = vand.u32 4294901760, %v24472_v8  ;;  %v6662_v61 = vand.u32 4294901760, %v24474_v37  ;;  %v24502_v51 = vsub.f32 %v24446_v43, %v6707_v28 }
 0x2e8   :  { %19134 = vmatpush3.bf16.msra.mxu1 %v24388_v53  ;;  %19112 = vmatprep.subr.bf16.mxu0 %v24364_v11  ;;  %v6789_v24 = vand.u32 4294901760, %v6788_v14  ;;  %v24505_v38 = vsub.f32 %v24448_v7, %v6710_v0  ;;  %v6796_v59 = vand.u32 4294901760, %v6795_v45  ;;  %v6915_v11 = vand.u32 4294901760, %v6914_v36 }
 0x2e9   :  { %19136 = vmatprep.subr.bf16.mxu1 %v24418_v52  ;;  %v6922_v48 = vand.u32 4294901760, %v6921_v55  ;;  %v24509_v35 = vsub.f32 %v52_v47, %v24486_v40  ;;  %v24512_v54 = vpack.c.bf16 %v6656_v58, %v6653_v13  ;;  %v29921_v52 = vand.u32 4294901760, %v24435_v22 }
 0x2ea   :  { %v29922_v14 = vand.u32 4294901760, %v24443_v19  ;;  %v29923_v53 = vand.u32 4294901760, %v24456_v6  ;;  %v24526_v47 = vsub.f32 %v24472_v8, %v6659_v18  ;;  %v24529_v58 = vsub.f32 %v24474_v37, %v6662_v61 }
 0x2eb   :  { %19114 = vmatpush3.bf16.msra.mxu0 %v24398_v30  ;;  %v6802_v43 = vsub.f32 %v24435_v22, %v29921_v52  ;;  %v28992_v36 = vand.u32 4294901760, %v24496_v27  ;;  %v19143_v52 = vpack.c.bf16 %v6908_v31, %v6901_v29  ;;  %v19145_v30 = vpack.c.bf16 %v6796_v59, %v6789_v24 }
 0x2ec   :  { %v6809_v7 = vsub.f32 %v24443_v19, %v29922_v14  ;;  %v6928_v45 = vsub.f32 %v24456_v6, %v29923_v53  ;;  %19138 = vmatpush3.bf16.msra.mxu1 %v24429_v62  ;;  %19116 = vmatprep.subr.bf16.mxu0 %v24420_v46  ;;  %v29924_v14 = vand.u32 4294901760, %v24460_v1  ;;  %v28991_v62 = vand.u32 4294901760, %v24502_v51 }
 0x2ed   :  { %v15403_v55 = vpop.f32.mrb[28].mxu0  ;;  %19140 = vmatprep.subr.bf16.mxu1 %v19139_v21  ;;  %v24538_v6 = vpack.c.bf16 %v6710_v0, %v6707_v28  ;;  %v19147_v37 = vpack.c.bf16 %v6922_v48, %v6915_v11  ;;  %v28993_v13 = vand.u32 4294901760, %v24509_v35  ;;  %v6803_v21 = vand.u32 4294901760, %v6802_v43 }
 0x2ee   :  { %v6935_v53 = vsub.f32 %v24460_v1, %v29924_v14  ;;  %v15404_v8 = vpop.f32.mrb[29].mxu0  ;;  %v6810_v31 = vand.u32 4294901760, %v6809_v7  ;;  %v6929_v29 = vand.u32 4294901760, %v6928_v45  ;;  %v29925_v14 = vand.u32 4294901760, %v24489_v20 }
 0x2ef   :  { %v15405_v19 = vadd.f32 %v15404_v8, %v15403_v55  ;;  %19118 = vmatpush3.bf16.msra.mxu0 %v24433_v49  ;;  %v6823_v28 = vsub.f32 %v24496_v27, %v28992_v36  ;;  %v28989_v11 = vand.u32 4294901760, %v24526_v47  ;;  %v28990_v0 = vand.u32 4294901760, %v24529_v58 }
 0x2f0   :  { %19142 = vmatpush3.bf16.msra.mxu1 %v19141_v2  ;;  %19120 = vmatprep.subr.bf16.mxu0 %v24454_v63  ;;  %v6816_v46 = vsub.f32 %v24489_v20, %v29925_v14  ;;  %v6936_v24 = vand.u32 4294901760, %v6935_v53  ;;  %v6942_v2 = vsub.f32 %v24502_v51, %v28991_v62  ;;  %v29926_v48 = vand.u32 4294901760, %v24505_v38 }
 0x2f1   :  { %v4785_v59 = vadd.f32 %v15405_v19, %v24392_v16  ;;  %19144 = vmatprep.subr.bf16.mxu1 %v19143_v52  ;;  %v6721_v7 = vsub.f32 %v24509_v35, %v28993_v13  ;;  %v24562_v45 = vpack.c.bf16 %v6662_v61, %v6659_v18  ;;  %v19149_v55 = vpack.c.bf16 %v6810_v31, %v6803_v21 }
 0x2f2   :  { %v6949_v43 = vsub.f32 %v24505_v38, %v29926_v48  ;;  %v19159_v16 = vpack.c.bf16 %v24177_v33, %v24173_v42  ;;  %v6817_v19 = vand.u32 4294901760, %v6816_v46  ;;  %v6824_v52 = vand.u32 4294901760, %v6823_v28 }
 0x2f3   :  { %19122 = vmatpush3.bf16.msra.mxu0 %v24512_v54  ;;  %v6830_v53 = vsub.f32 %v24526_v47, %v28989_v11  ;;  %v6837_v8 = vsub.f32 %v24529_v58, %v28990_v0  ;;  %v19151_v61 = vpack.c.bf16 %v6936_v24, %v6929_v29  ;;  %v6943_v18 = vand.u32 4294901760, %v6942_v2 }
 0x2f4   :  { %19146 = vmatpush3.bf16.msra.mxu1 %v19145_v30  ;;  %19124 = vmatprep.subr.bf16.mxu0 %v24538_v6  ;;  %v6950_v21 = vand.u32 4294901760, %v6949_v43  ;;  %v6722_v14 = vand.u32 4294901760, %v6721_v7  ;;  %v19161_v30 = vpack.c.bf16 %v24213_v10, %v24201_v3  ;;  %v19163_v46 = vpack.c.bf16 %v24236_v15, %v24233_v56 }
 0x2f5   :  { %19148 = vmatprep.subr.bf16.mxu1 %v19147_v37  ;;  %v19153_v11 = vpack.c.bf16 %v6824_v52, %v6817_v19  ;;  %v6831_v0 = vand.u32 4294901760, %v6830_v53  ;;  %v6838_v37 = vand.u32 4294901760, %v6837_v8  ;;  %v19165_v2 = vpack.c.bf16 %v24279_v41, %v24274_v50  ;;  %v29929_v19 = vld [vmem:[#allocation11_spill] sm:$0xff]  ;;  %v29930_v53 = vld [vmem:[#allocation13_spill] sm:$0xff] }
 0x2f6   :  { %v15438_v31 = vpop.f32.mrb[28].mxu1  ;;  %v19155_v29 = vpack.c.bf16 %v6950_v21, %v6943_v18  ;;  %v19167_v7 = vpack.c.bf16 %v24302_v26, %v24300_v23  ;;  %v19175_v52 = vpack.c.bf16 %v24390_v9, %v24369_v44  ;;  %v29931_v8 = vand.u32 4294901760, %v24305_v12  ;;  %v29932_v18 = vld [vmem:[#allocation23_spill] sm:$0xff] }
 0x2f7   :  { %v15439_v48 = vpop.f32.mrb[29].mxu1  ;;  %19126 = vmatpush3.bf16.msra.mxu0 %v24562_v45  ;;  %v19157_v43 = vpack.c.bf16 %v6838_v37, %v6831_v0  ;;  %v29928_v0 = vld [vmem:[#allocation20_spill] sm:$0xff]  ;;  %v19179_v21 = vpack.c.bf16 %v29932_v18, %v24422_v60  ;;  %v29937_v37 = vld [vmem:[#allocation15_spill] sm:$0xff]  ;;  %v29945_v62 = vand.u32 4294901760, %v24213_v10  ;;  %v29948_v10 = vand.u32 4294901760, %v24274_v50 }
 0x2f8   :  { %v15440_v28 = vadd.f32 %v15439_v48, %v15438_v31  ;;  %19150 = vmatpush3.bf16.msra.mxu1 %v19149_v55  ;;  %19160 = vmatprep.subr.bf16.mxu0 %v19159_v16  ;;  %v19169_v55 = vpack.c.bf16 %v24323_v34, %v24321_v17  ;;  %v29933_v31 = vld [vmem:[#allocation25_spill] sm:$0xff] }
 0x2f9   :  { %19152 = vmatprep.subr.bf16.mxu1 %v19151_v61  ;;  %v19177_v61 = vpack.c.bf16 %v24415_v57, %v24395_v4 }
 0x2fa   :  { %v4889_v24 = vadd.f32 %v15440_v28, %v4785_v59  ;;  %6723 = vmatmul.mubr.f32.vlgmr.msra.gmra.mrb[42].mxu0 %v6722_v14  ;;  %v19171_v59 = vpack.c.bf16 %v24346_v32, %v24342_v39  ;;  %v29934_v14 = vld [vmem:[#allocation19_spill] sm:$0xff] }
 0x2fb   :  { %19162 = vmatpush3.bf16.msra.mxu0 %v19161_v30  ;;  %7090 = vmatprep.mubr.f32.mxu0 %v24305_v12  ;;  %v19181_v48 = vpack.c.bf16 %v29934_v14, %v24435_v22  ;;  %v29935_v30 = vld [vmem:[#allocation24_spill] sm:$0xff]  ;;  %v29936_v12 = vld [vmem:[#allocation21_spill] sm:$0xff] }
 0x2fc   :  { %19154 = vmatpush3.bf16.msra.mxu1 %v19153_v11  ;;  %19164 = vmatprep.subr.bf16.mxu0 %v19163_v46  ;;  %v29927_v11 = vld [vmem:[#allocation14_spill] sm:$0xff]  ;;  %v19183_v46 = vpack.c.bf16 %v24460_v1, %v29936_v12 }
 0x2fd   :  { %19156 = vmatprep.subr.bf16.mxu1 %v19155_v29  ;;  %v19173_v16 = vpack.c.bf16 %v29928_v0, %v29927_v11 }
 0x2ff   :  { %19166 = vmatpush3.bf16.msra.mxu0 %v19165_v2 }
 0x300   :  { %19158 = vmatpush3.bf16.msra.mxu1 %v19157_v43  ;;  %19168 = vmatprep.subr.bf16.mxu0 %v19167_v7  ;;  %v19185_v43 = vpack.c.bf16 %v24496_v27, %v24489_v20  ;;  %v29938_v7 = vld [vmem:[#allocation22_spill] sm:$0xff] }
 0x301   :  { %19192 = vmatprep.subr.bf16.mxu1 %v24271_v25 }
 0x303   :  { %6955 = vmatmul.mubr.f32.vlgmr.msra.gmra.mrb[42].mxu1 %v24486_v40  ;;  %19170 = vmatpush3.bf16.msra.mxu0 %v19169_v55  ;;  %v19187_v55 = vpack.c.bf16 %v24505_v38, %v24502_v51 }
 0x304   :  { %19194 = vmatpush3.bf16.msra.mxu1 %v29929_v19  ;;  %19172 = vmatprep.subr.bf16.mxu0 %v19171_v59 }
 0x305   :  { %19196 = vmatprep.subr.bf16.mxu1 %v29930_v53  ;;  %7197 = vmatprep.mubr.f32.mxu1 %v29931_v8  ;;  %v29940_v8 = vld [vmem:[#allocation18_spill] sm:$0xff] }
 0x307   :  { %19174 = vmatpush3.bf16.msra.mxu0 %v19173_v16  ;;  %v29939_v16 = vld [vmem:[#allocation17_spill] sm:$0xff] }
 0x308   :  { %19198 = vmatpush3.bf16.msra.mxu1 %v24293_v5  ;;  %19176 = vmatprep.subr.bf16.mxu0 %v19175_v52  ;;  %v19189_v52 = vpack.c.bf16 %v24529_v58, %v24526_v47 }
 0x309   :  { %19200 = vmatprep.subr.bf16.mxu1 %v29933_v31 }
 0x30b   :  { %19178 = vmatpush3.bf16.msra.mxu0 %v19177_v61  ;;  %v29941_v61 = vand.u32 4294901760, %v24173_v42  ;;  %v29946_v42 = vand.u32 4294901760, %v24233_v56  ;;  %v29949_v56 = vand.u32 4294901760, %v24279_v41 }
 0x30c   :  { %19202 = vmatpush3.bf16.msra.mxu1 %v29935_v30  ;;  %19180 = vmatprep.subr.bf16.mxu0 %v19179_v21  ;;  %v29942_v21 = vand.u32 4294901760, %v24177_v33  ;;  %v29947_v33 = vand.u32 4294901760, %v24236_v15  ;;  %v29950_v15 = vld [vmem:[#allocation12_spill] sm:$0xff] }
 0x30d   :  { %v15473_v28 = vpop.f32.mrb[30].mxu0  ;;  %19204 = vmatprep.subr.bf16.mxu1 %v29937_v37 }
 0x30e   :  { %v15474_v29 = vpop.f32.mrb[31].mxu0 }
 0x30f   :  { %v15475_v2 = vadd.f32 %v15474_v29, %v15473_v28  ;;  %19182 = vmatpush3.bf16.msra.mxu0 %v19181_v48  ;;  %v19223_v48 = vpack.c.bf16 %v29942_v21, %v29941_v61  ;;  %v29943_v28 = vld [vmem:[#allocation16_spill] sm:$0xff]  ;;  %v19227_v61 = vpack.c.bf16 %v29947_v33, %v29946_v42  ;;  %v29956_v33 = vand.u32 4294901760, %v24346_v32 }
 0x310   :  { %19206 = vmatpush3.bf16.msra.mxu1 %v29938_v7  ;;  %19184 = vmatprep.subr.bf16.mxu0 %v19183_v46  ;;  %v24623_v46 = vld [vmem:[#allocation5 + $0x880] sm:$0xff]  ;;  %v29957_v32 = vand.u32 4294901760, %v29927_v11 }
 0x311   :  { %v5001_v59 = vadd.f32 %v15475_v2, %v4889_v24  ;;  %19208 = vmatprep.subr.bf16.mxu1 %v29939_v16  ;;  %v24625_v24 = vld [vmem:[#allocation5 + $0x888] sm:$0xff]  ;;  %v7527_v21 = vand.u32 4294901760, %v24623_v46 }
 0x313   :  { %19186 = vmatpush3.bf16.msra.mxu0 %v19185_v43  ;;  %v29944_v43 = vand.u32 4294901760, %v24201_v3  ;;  %v24642_v3 = vld [vmem:[#allocation5 + $0x800] sm:$0xff] }
 0x314   :  { %19210 = vmatpush3.bf16.msra.mxu1 %v29940_v8  ;;  %19188 = vmatprep.subr.bf16.mxu0 %v19187_v55  ;;  %v28994_v41 = vand.u32 4294901760, %v24642_v3 }
 0x315   :  { %19212 = vmatprep.subr.bf16.mxu1 %v29943_v28  ;;  %v19225_v36 = vpack.c.bf16 %v29945_v62, %v29944_v43  ;;  %v19229_v62 = vpack.c.bf16 %v29949_v56, %v29948_v10  ;;  %v24657_v43 = vsub.f32 %v24623_v46, %v7527_v21 }
 0x316   :  { %v15508_v29 = vpop.f32.mrb[30].mxu1 }
 0x317   :  { %v15509_v2 = vpop.f32.mrb[31].mxu1  ;;  %19190 = vmatpush3.bf16.msra.mxu0 %v19189_v52  ;;  %v7530_v52 = vand.u32 4294901760, %v24625_v24 }
 0x318   :  { %v15510_v55 = vadd.f32 %v15509_v2, %v15508_v29  ;;  %19214 = vmatpush3.bf16.msra.mxu1 %v24433_v49  ;;  %19224 = vmatprep.subr.bf16.mxu0 %v19223_v48  ;;  %v24649_v48 = vld [vmem:[#allocation5 + $0x808] sm:$0xff]  ;;  %v29952_v29 = vand.u32 4294901760, %v24302_v26  ;;  %v29954_v26 = vand.u32 4294901760, %v24323_v34  ;;  %v329_v34 = vld [vmem:[#allocation5 + $0x818] sm:$0xff] }
 0x319   :  { %19216 = vmatprep.subr.bf16.mxu1 %v24454_v63  ;;  %v24661_v50 = vsub.f32 %v24625_v24, %v7530_v52  ;;  %v7482_v42 = vand.u32 4294901760, %v24649_v48  ;;  %v29955_v24 = vand.u32 4294901760, %v24342_v39  ;;  %v29963_v39 = vand.u32 4294901760, %v24415_v57 }
 0x31a   :  { %v24639_v13 = vadd.f32 %v15510_v55, %v5001_v59  ;;  %7093 = vmatmul.mubr.f32.vlgmr.msra.gmra.mrb[44].mxu0 %v24509_v35  ;;  %v29951_v59 = vand.u32 4294901760, %v24300_v23  ;;  %v24666_v55 = vld [vmem:[#allocation5 + $0x898] sm:$0xff]  ;;  %v29953_v23 = vand.u32 4294901760, %v24321_v17  ;;  %v24685_v17 = vsub.f32 %v24642_v3, %v28994_v41 }
 0x31b   :  { %19226 = vmatpush3.bf16.msra.mxu0 %v19225_v36  ;;  %7367 = vmatprep.mubr.f32.mxu0 %v29950_v15  ;;  %v24664_v36 = vld [vmem:[#allocation5 + $0x890] sm:$0xff]  ;;  %v7536_v56 = vand.u32 4294901760, %v24666_v55  ;;  %v29962_v41 = vand.u32 4294901760, %v24395_v4 }
 0x31c   :  { %19218 = vmatpush3.bf16.msra.mxu1 %v24512_v54  ;;  %19228 = vmatprep.subr.bf16.mxu0 %v19227_v61  ;;  %v19231_v2 = vpack.c.bf16 %v29952_v29, %v29951_v59  ;;  %v19233_v46 = vpack.c.bf16 %v29954_v26, %v29953_v23  ;;  %v19235_v61 = vpack.c.bf16 %v29956_v33, %v29955_v24  ;;  %v7533_v10 = vand.u32 4294901760, %v24664_v36  ;;  %v328_v59 = vld [vmem:[#allocation5 + $0x810] sm:$0xff] }
 0x31d   :  { %19220 = vmatprep.subr.bf16.mxu1 %v24538_v6  ;;  %v29958_v29 = vand.u32 4294901760, %v29928_v0  ;;  %v29959_v23 = vand.u32 4294901760, %v24369_v44  ;;  %v29960_v26 = vand.u32 4294901760, %v24390_v9  ;;  %v29961_v33 = vand.u32 4294901760, %v24509_v35  ;;  %v346_v35 = vld [vmem:[#allocation5 + $0x8a0] sm:$0xff] }
 0x31e   :  { %v19241_v11 = vpack.c.bf16 %v29963_v39, %v29962_v41  ;;  %v29964_v0 = vand.u32 4294901760, %v24422_v60  ;;  %v29966_v9 = vand.u32 4294901760, %v24435_v22  ;;  %v24717_v4 = vsub.f32 %v24664_v36, %v7533_v10 }
 0x31f   :  { %19230 = vmatpush3.bf16.msra.mxu0 %v19229_v62  ;;  %v28999_v62 = vand.u32 4294901760, %v24657_v43  ;;  %v19239_v24 = vpack.c.bf16 %v29960_v26, %v29959_v23  ;;  %v7485_v23 = vand.u32 4294901760, %v328_v59  ;;  %v24720_v57 = vsub.f32 %v24666_v55, %v7536_v56 }
 0x320   :  { %19222 = vmatpush3.bf16.msra.mxu1 %v24562_v45  ;;  %19232 = vmatprep.subr.bf16.mxu0 %v19231_v2  ;;  %v19237_v2 = vpack.c.bf16 %v29958_v29, %v29957_v32  ;;  %v29965_v32 = vand.u32 4294901760, %v29932_v18  ;;  %v29967_v29 = vand.u32 4294901760, %v29934_v14  ;;  %v7488_v60 = vand.u32 4294901760, %v329_v34  ;;  %v347_v18 = vld [vmem:[#allocation5 + $0x8a8] sm:$0xff] }
 0x321   :  { %19256 = vmatprep.subr.bf16.mxu1 %v24271_v25  ;;  %v24697_v25 = vsub.f32 %v24649_v48, %v7482_v42  ;;  %v7706_v22 = vsub.f32 %v24657_v43, %v28999_v62  ;;  %v55_v14 = vld [vmem:[#allocation2 + $0x88] sm:$0xff]  ;;  %v29968_v41 = vand.u32 4294901760, %v29936_v12  ;;  %v29970_v36 = vand.u32 4294901760, %v24489_v20 }
 0x322   :  { %v19243_v44 = vpack.c.bf16 %v29965_v32, %v29964_v0  ;;  %v24713_v48 = vpack.c.bf16 %v29967_v29, %v29966_v9  ;;  %v29971_v55 = vand.u32 4294901760, %v24496_v27  ;;  %v29972_v39 = vand.u32 4294901760, %v24661_v50  ;;  %v331_v9 = vld [vmem:[#allocation5 + $0x828] sm:$0xff] }
 0x323   :  { %7201 = vmatmul.mubr.f32.vlgmr.msra.gmra.mrb[44].mxu1 %v29961_v33  ;;  %19234 = vmatpush3.bf16.msra.mxu0 %v19233_v46  ;;  %v29973_v12 = vand.u32 4294901760, %v24502_v51  ;;  %v29975_v20 = vand.u32 4294901760, %v24526_v47  ;;  %v29976_v27 = vand.u32 4294901760, %v24529_v58  ;;  %v24755_v32 = vpack.c.bf16 %v7530_v52, %v7527_v21 }
 0x324   :  { %19258 = vmatpush3.bf16.msra.mxu1 %v29929_v19  ;;  %19236 = vmatprep.subr.bf16.mxu0 %v19235_v61  ;;  %v29969_v19 = vand.u32 4294901760, %v24460_v1  ;;  %v24736_v61 = vpack.c.bf16 %v29971_v55, %v29970_v36  ;;  %v7713_v26 = vsub.f32 %v24661_v50, %v29972_v39  ;;  %v29974_v1 = vand.u32 4294901760, %v24505_v38 }
 0x325   :  { %19260 = vmatprep.subr.bf16.mxu1 %v29930_v53  ;;  %7471 = vmatprep.mubr.f32.mxu1 %v29950_v15  ;;  %v28998_v53 = vand.u32 4294901760, %v24685_v17  ;;  %v24753_v0 = vpack.c.bf16 %v29976_v27, %v29975_v20  ;;  %v330_v15 = vld [vmem:[#allocation5 + $0x820] sm:$0xff]  ;;  %v28997_v29 = vand.u32 4294901760, %v24697_v25  ;;  %v7539_v51 = vand.u32 4294901760, %v346_v35  ;;  %v349_v20 = vld [vmem:[#allocation5 + $0x8b8] sm:$0xff] }
 0x326   :  { %v24730_v46 = vpack.c.bf16 %v29969_v19, %v29968_v41  ;;  %v24747_v33 = vpack.c.bf16 %v29974_v1, %v29973_v12  ;;  %v24758_v41 = vsub.f32 %v328_v59, %v7485_v23  ;;  %v7542_v19 = vand.u32 4294901760, %v347_v18  ;;  %v348_v1 = vld [vmem:[#allocation5 + $0x8b0] sm:$0xff] }
 0x327   :  { %19238 = vmatpush3.bf16.msra.mxu0 %v19237_v2  ;;  %v24760_v38 = vand.u32 4294901760, %v55_v14  ;;  %v24763_v47 = vsub.f32 %v329_v34, %v7488_v60  ;;  %v7707_v58 = vand.u32 4294901760, %v7706_v22  ;;  %v28996_v21 = vand.u32 4294901760, %v24717_v4 }
 0x328   :  { %19262 = vmatpush3.bf16.msra.mxu1 %v24293_v5  ;;  %19240 = vmatprep.subr.bf16.mxu0 %v19239_v24  ;;  %v28995_v52 = vand.u32 4294901760, %v24720_v57  ;;  %v7714_v36 = vand.u32 4294901760, %v7713_v26  ;;  %v7491_v2 = vand.u32 4294901760, %v330_v15  ;;  %v7494_v59 = vand.u32 4294901760, %v331_v9 }
 0x329   :  { %29977 = vst [vmem:[#allocation14_spill] sm:$0xff] %v24760_v38  ;;  %19264 = vmatprep.subr.bf16.mxu1 %v29933_v31  ;;  %v7594_v55 = vsub.f32 %v24685_v17, %v28998_v53  ;;  %v29978_v39 = vand.u32 4294901760, %v24642_v3  ;;  %v24775_v34 = vpack.c.bf16 %v7536_v56, %v7533_v10  ;;  %v24777_v24 = vpack.c.bf16 %v7488_v60, %v7485_v23  ;;  %v332_v56 = vld [vmem:[#allocation5 + $0x830] sm:$0xff] }
 0x32a   :  { %v7601_v22 = vsub.f32 %v24697_v25, %v28997_v29  ;;  %v24782_v31 = vpack.c.bf16 %v7542_v19, %v7539_v51  ;;  %v24784_v26 = vsub.f32 %v346_v35, %v7539_v51  ;;  %v24786_v12 = vsub.f32 %v347_v18, %v7542_v19  ;;  %v351_v29 = vld [vmem:[#allocation5 + $0x8c8] sm:$0xff] }
 0x32b   :  { %v24773_v5 = vpack.c.bf16 %v7482_v42, %v29978_v39  ;;  %29980 = vst [vmem:[#allocation11_spill] sm:$0xff] %v24775_v34  ;;  %19242 = vmatpush3.bf16.msra.mxu0 %v19241_v11  ;;  %v24789_v3 = vsub.f32 %v55_v14, %v24760_v38  ;;  %v7720_v42 = vsub.f32 %v24717_v4, %v28996_v21  ;;  %v333_v11 = vld [vmem:[#allocation5 + $0x838] sm:$0xff]  ;;  %v29001_v23 = vand.u32 4294901760, %v24758_v41  ;;  %v350_v21 = vld [vmem:[#allocation5 + $0x8c0] sm:$0xff] }
 0x32c   :  { %29981 = vst [vmem:[#allocation13_spill] sm:$0xff] %v24782_v31  ;;  %19266 = vmatpush3.bf16.msra.mxu1 %v29935_v30  ;;  %19244 = vmatprep.subr.bf16.mxu0 %v19243_v44  ;;  %v7727_v10 = vsub.f32 %v24720_v57, %v28995_v52  ;;  %v29000_v60 = vand.u32 4294901760, %v24763_v47  ;;  %v24801_v18 = vpack.c.bf16 %v7714_v36, %v7707_v58  ;;  %v7595_v14 = vand.u32 4294901760, %v7594_v55 }
 0x32d   :  { %29979 = vst [vmem:[#allocation20_spill] sm:$0xff] %v24773_v5  ;;  %v15543_v35 = vpop.f32.mrb[32].mxu0  ;;  %19268 = vmatprep.subr.bf16.mxu1 %v29937_v37  ;;  %v24803_v30 = vpack.c.bf16 %v7494_v59, %v7491_v2  ;;  %v24805_v44 = vsub.f32 %v330_v15, %v7491_v2  ;;  %v24807_v51 = vsub.f32 %v331_v9, %v7494_v59  ;;  %v7602_v19 = vand.u32 4294901760, %v7601_v22 }
 0x32e   :  { %v15544_v27 = vpop.f32.mrb[33].mxu0  ;;  %v7545_v39 = vand.u32 4294901760, %v348_v1  ;;  %v7548_v52 = vand.u32 4294901760, %v349_v20  ;;  %v7497_v62 = vand.u32 4294901760, %v332_v56  ;;  %v7500_v37 = vand.u32 4294901760, %v333_v11 }
 0x32f   :  { %29982 = vst [vmem:[#allocation23_spill] sm:$0xff] %v24803_v30  ;;  %v15545_v53 = vadd.f32 %v15544_v27, %v15543_v35  ;;  %19246 = vmatpush3.bf16.msra.mxu0 %v24713_v48  ;;  %v29005_v58 = vand.u32 4294901760, %v24789_v3  ;;  %v7721_v15 = vand.u32 4294901760, %v7720_v42  ;;  %v7728_v36 = vand.u32 4294901760, %v7727_v10 }
 0x330   :  { %19270 = vmatpush3.bf16.msra.mxu1 %v29938_v7  ;;  %19248 = vmatprep.subr.bf16.mxu0 %v24730_v46  ;;  %v7608_v9 = vsub.f32 %v24758_v41, %v29001_v23  ;;  %v7615_v2 = vsub.f32 %v24763_v47, %v29000_v60  ;;  %v7551_v59 = vand.u32 4294901760, %v350_v21  ;;  %v7554_v55 = vand.u32 4294901760, %v351_v29 }
 0x331   :  { %v5371_v48 = vadd.f32 %v15545_v53, %v24639_v13  ;;  %19272 = vmatprep.subr.bf16.mxu1 %v29939_v16  ;;  %v29003_v7 = vand.u32 4294901760, %v24784_v26  ;;  %v24822_v22 = vpack.c.bf16 %v7602_v19, %v7595_v14  ;;  %v24824_v46 = vpack.c.bf16 %v7548_v52, %v7545_v39  ;;  %v334_v13 = vld [vmem:[#allocation5 + $0x840] sm:$0xff]  ;;  %v335_v16 = vld [vmem:[#allocation5 + $0x848] sm:$0xff] }
 0x332   :  { %v24826_v42 = vsub.f32 %v348_v1, %v7545_v39  ;;  %v29002_v10 = vand.u32 4294901760, %v24786_v12  ;;  %v24830_v35 = vsub.f32 %v349_v20, %v7548_v52  ;;  %v24832_v27 = vpack.c.bf16 %v7500_v37, %v7497_v62 }
 0x333   :  { %29983 = vst [vmem:[#allocation25_spill] sm:$0xff] %v24824_v46  ;;  %19250 = vmatpush3.bf16.msra.mxu0 %v24736_v61  ;;  %v29004_v53 = vand.u32 4294901760, %v24805_v44  ;;  %v7577_v14 = vsub.f32 %v24789_v3, %v29005_v58  ;;  %v24840_v1 = vsub.f32 %v332_v56, %v7497_v62  ;;  %v24842_v19 = vsub.f32 %v333_v11, %v7500_v37  ;;  %v352_v37 = vld [vmem:[#allocation5 + $0x8d0] sm:$0xff] }
 0x334   :  { %29984 = vst [vmem:[#allocation19_spill] sm:$0xff] %v24832_v27  ;;  %19274 = vmatpush3.bf16.msra.mxu1 %v29940_v8  ;;  %19252 = vmatprep.subr.bf16.mxu0 %v24747_v33  ;;  %v7609_v61 = vand.u32 4294901760, %v7608_v9  ;;  %v29006_v52 = vand.u32 4294901760, %v24807_v51  ;;  %v24846_v20 = vpack.c.bf16 %v7728_v36, %v7721_v15  ;;  %v7616_v39 = vand.u32 4294901760, %v7615_v2  ;;  %v353_v36 = vld [vmem:[#allocation5 + $0x8d8] sm:$0xff]  ;;  %v336_v9 = vld [vmem:[#allocation5 + $0x850] sm:$0xff] }
 0x335   :  { %29985 = vst [vmem:[#allocation24_spill] sm:$0xff] %v24840_v1  ;;  %29986 = vst [vmem:[#allocation21_spill] sm:$0xff] %v24842_v19  ;;  %19276 = vmatprep.subr.bf16.mxu1 %v29943_v28  ;;  %v24848_v60 = vpack.c.bf16 %v7554_v55, %v7551_v59  ;;  %v7734_v8 = vsub.f32 %v24784_v26, %v29003_v7  ;;  %v24853_v33 = vsub.f32 %v350_v21, %v7551_v59 }
 0x336   :  { %v15578_v23 = vpop.f32.mrb[32].mxu1  ;;  %v7741_v62 = vsub.f32 %v24786_v12, %v29002_v10  ;;  %v7503_v56 = vand.u32 4294901760, %v334_v13  ;;  %v7506_v11 = vand.u32 4294901760, %v335_v16  ;;  %v7622_v15 = vsub.f32 %v24805_v44, %v29004_v53 }
 0x337   :  { %29987 = vst [vmem:[#allocation15_spill] sm:$0xff] %v24848_v60  ;;  %v15579_v28 = vpop.f32.mrb[33].mxu1  ;;  %19254 = vmatpush3.bf16.msra.mxu0 %v24753_v0  ;;  %v7578_v2 = vand.u32 4294901760, %v7577_v14  ;;  %v7629_v10 = vsub.f32 %v24807_v51, %v29006_v52  ;;  %v24872_v53 = vpack.c.bf16 %v7616_v39, %v7609_v61  ;;  %v24874_v58 = vsub.f32 %v351_v29, %v7554_v55  ;;  %v337_v0 = vld [vmem:[#allocation5 + $0x858] sm:$0xff] }
 0x338   :  { %v15580_v59 = vadd.f32 %v15579_v28, %v15578_v23  ;;  %19278 = vmatpush3.bf16.msra.mxu1 %v24433_v49  ;;  %19288 = vmatprep.subr.bf16.mxu0 %v24755_v32  ;;  %v7735_v14 = vand.u32 4294901760, %v7734_v8  ;;  %v7557_v23 = vand.u32 4294901760, %v352_v37  ;;  %v7742_v49 = vand.u32 4294901760, %v7741_v62 }
 0x339   :  { %19280 = vmatprep.subr.bf16.mxu1 %v24454_v63  ;;  %v24879_v21 = vsub.f32 %v334_v13, %v7503_v56  ;;  %v7560_v52 = vand.u32 4294901760, %v353_v36  ;;  %v24882_v7 = vpack.c.bf16 %v7506_v11, %v7503_v56  ;;  %v29989_v63 = vand.u32 4294901760, %v24826_v42 }
 0x33a   :  { %v24876_v28 = vadd.f32 %v15580_v59, %v5371_v48  ;;  %7369 = vmatmul.mubr.f32.vlgmr.msra.gmra.mrb[46].mxu0 %v24486_v40  ;;  %v29990_v55 = vand.u32 4294901760, %v24830_v35  ;;  %v7623_v13 = vand.u32 4294901760, %v7622_v15  ;;  %v7630_v61 = vand.u32 4294901760, %v7629_v10  ;;  %v354_v59 = vld [vmem:[#allocation5 + $0x8e0] sm:$0xff] }
 0x33b   :  { %19290 = vmatpush3.bf16.msra.mxu0 %v24773_v5  ;;  %29988 = vst [vmem:[#allocation22_spill] sm:$0xff] %v24882_v7  ;;  %v7748_v29 = vsub.f32 %v24826_v42, %v29989_v63  ;;  %7579 = vmatprep.mubr.f32.mxu0 %v7578_v2  ;;  %v29991_v39 = vand.u32 4294901760, %v24840_v1  ;;  %v29992_v62 = vand.u32 4294901760, %v24842_v19  ;;  %v355_v63 = vld [vmem:[#allocation5 + $0x8e8] sm:$0xff]  ;;  %v7509_v2 = vand.u32 4294901760, %v336_v9 }
 0x33c   :  { %v7755_v48 = vsub.f32 %v24830_v35, %v29990_v55  ;;  %19282 = vmatpush3.bf16.msra.mxu1 %v24512_v54  ;;  %19292 = vmatprep.subr.bf16.mxu0 %v24775_v34  ;;  %v24899_v55 = vsub.f32 %v335_v16, %v7506_v11  ;;  %v7512_v54 = vand.u32 4294901760, %v337_v0  ;;  %v29015_v34 = vand.u32 4294901760, %v24853_v33 }
 0x33d   :  { %v7636_v8 = vsub.f32 %v24840_v1, %v29991_v39  ;;  %v7643_v56 = vsub.f32 %v24842_v19, %v29992_v62  ;;  %19284 = vmatprep.subr.bf16.mxu1 %v24538_v6  ;;  %v24902_v15 = vpack.c.bf16 %v7742_v49, %v7735_v14  ;;  %v24904_v10 = vpack.c.bf16 %v7560_v52, %v7557_v23 }
 0x33e   :  { %v24906_v5 = vsub.f32 %v352_v37, %v7557_v23  ;;  %v24908_v39 = vsub.f32 %v353_v36, %v7560_v52  ;;  %v7749_v62 = vand.u32 4294901760, %v7748_v29  ;;  %v7756_v19 = vand.u32 4294901760, %v7755_v48  ;;  %v338_v37 = vld [vmem:[#allocation5 + $0x860] sm:$0xff] }
 0x33f   :  { %29993 = vst [vmem:[#allocation17_spill] sm:$0xff] %v24904_v10  ;;  %19294 = vmatpush3.bf16.msra.mxu0 %v24777_v24  ;;  %v7563_v1 = vand.u32 4294901760, %v354_v59  ;;  %v7566_v6 = vand.u32 4294901760, %v355_v63  ;;  %v24913_v16 = vpack.c.bf16 %v7630_v61, %v7623_v13  ;;  %v7637_v11 = vand.u32 4294901760, %v7636_v8  ;;  %v24930_v61 = vld [vmem:[#allocation5 + $0x8f0] sm:$0xff]  ;;  %v24932_v8 = vld [vmem:[#allocation5 + $0x8f8] sm:$0xff] }
 0x340   :  { %29994 = vst [vmem:[#allocation18_spill] sm:$0xff] %v24908_v39  ;;  %19286 = vmatpush3.bf16.msra.mxu1 %v24562_v45  ;;  %19296 = vmatprep.subr.bf16.mxu0 %v24782_v31  ;;  %v7644_v14 = vand.u32 4294901760, %v7643_v56  ;;  %v29016_v49 = vand.u32 4294901760, %v24874_v58  ;;  %v24917_v52 = vpack.c.bf16 %v7512_v54, %v7509_v2  ;;  %v24919_v36 = vsub.f32 %v336_v9, %v7509_v2  ;;  %v339_v45 = vld [vmem:[#allocation5 + $0x868] sm:$0xff] }
 0x341   :  { %19320 = vmatprep.subr.bf16.mxu1 %v24801_v18  ;;  %v24924_v23 = vsub.f32 %v24853_v33, %v29015_v34  ;;  %v24927_v48 = vsub.f32 %v337_v0, %v7512_v54  ;;  %v29023_v18 = vand.u32 4294901760, %v24906_v5  ;;  %v19331_v56 = vpack.c.bf16 %v7756_v19, %v7749_v62  ;;  %v54_v54 = vld [vmem:[#allocation2 + $0x80] sm:$0xff] }
 0x342   :  { %v24938_v2 = vpack.c.bf16 %v7566_v6, %v7563_v1  ;;  %v24940_v34 = vsub.f32 %v354_v59, %v7563_v1  ;;  %v7515_v0 = vand.u32 4294901760, %v338_v37  ;;  %v19333_v13 = vpack.c.bf16 %v7644_v14, %v7637_v11  ;;  %v24956_v11 = vld [vmem:[#allocation5 + $0x870] sm:$0xff] }
 0x343   :  { %29995 = vst [vmem:[#allocation16_spill] sm:$0xff] %v24927_v48  ;;  %7473 = vmatmul.mubr.f32.vlgmr.msra.gmra.mrb[46].mxu1 %v24486_v40  ;;  %19298 = vmatpush3.bf16.msra.mxu0 %v24803_v30  ;;  %v24944_v29 = vsub.f32 %v355_v63, %v7566_v6  ;;  %v7769_v40 = vsub.f32 %v24874_v58, %v29016_v49  ;;  %v7518_v9 = vand.u32 4294901760, %v339_v45  ;;  %v7763_v19 = vand.u32 4294901760, %v24924_v23  ;;  %v24958_v63 = vld [vmem:[#allocation5 + $0x878] sm:$0xff] }
 0x344   :  { %29996 = vst [vmem:[#allocation12_spill] sm:$0xff] %v24940_v34  ;;  %19322 = vmatpush3.bf16.msra.mxu1 %v24822_v22  ;;  %19300 = vmatprep.subr.bf16.mxu0 %v24824_v46  ;;  %v29997_v1 = vand.u32 4294901760, %v24879_v21  ;;  %v7569_v22 = vand.u32 4294901760, %v24930_v61  ;;  %v7572_v62 = vand.u32 4294901760, %v24932_v8  ;;  %v29998_v6 = vand.u32 4294901760, %v24899_v55 }
 0x345   :  { %19324 = vmatprep.subr.bf16.mxu1 %v24846_v20  ;;  %7815 = vmatprep.mubr.f32.mxu1 %v24760_v38  ;;  %v7776_v14 = vsub.f32 %v24906_v5, %v29023_v18  ;;  %v29999_v23 = vand.u32 4294901760, %v24908_v39  ;;  %v24970_v49 = vand.u32 4294901760, %v54_v54  ;;  %v24973_v46 = vsub.f32 %v338_v37, %v7515_v0 }
 0x346   :  { %v7650_v59 = vsub.f32 %v24879_v21, %v29997_v1  ;;  %v7657_v20 = vsub.f32 %v24899_v55, %v29998_v6  ;;  %v7770_v18 = vand.u32 4294901760, %v7769_v40  ;;  %v24980_v31 = vsub.f32 %v339_v45, %v7518_v9 }
 0x347   :  { %v7783_v1 = vsub.f32 %v24908_v39, %v29999_v23  ;;  %19302 = vmatpush3.bf16.msra.mxu0 %v24832_v27  ;;  %v7521_v23 = vand.u32 4294901760, %v24956_v11  ;;  %v7524_v39 = vand.u32 4294901760, %v24958_v63  ;;  %v24986_v38 = vsub.f32 %v24930_v61, %v7569_v22 }
 0x348   :  { %19326 = vmatpush3.bf16.msra.mxu1 %v24872_v53  ;;  %19304 = vmatprep.subr.bf16.mxu0 %v24848_v60  ;;  %v7651_v37 = vand.u32 4294901760, %v7650_v59  ;;  %v24989_v30 = vsub.f32 %v24932_v8, %v7572_v62  ;;  %v7658_v6 = vand.u32 4294901760, %v7657_v20  ;;  %v7777_v60 = vand.u32 4294901760, %v7776_v14 }
 0x349   :  { %19328 = vmatprep.subr.bf16.mxu1 %v24902_v15  ;;  %v7784_v40 = vand.u32 4294901760, %v7783_v1  ;;  %v24993_v45 = vsub.f32 %v54_v54, %v24970_v49  ;;  %v24996_v27 = vpack.c.bf16 %v7518_v9, %v7515_v0  ;;  %v30000_v15 = vand.u32 4294901760, %v24919_v36 }
 0x34a   :  { %v30001_v59 = vand.u32 4294901760, %v24927_v48  ;;  %v30002_v53 = vand.u32 4294901760, %v24940_v34  ;;  %v25010_v54 = vsub.f32 %v24956_v11, %v7521_v23  ;;  %v25013_v9 = vsub.f32 %v24958_v63, %v7524_v39 }
 0x34b   :  { %19306 = vmatpush3.bf16.msra.mxu0 %v24882_v7  ;;  %v7664_v61 = vsub.f32 %v24919_v36, %v30000_v15  ;;  %v29043_v14 = vand.u32 4294901760, %v24980_v31  ;;  %v19335_v15 = vpack.c.bf16 %v7770_v18, %v7763_v19  ;;  %v19337_v7 = vpack.c.bf16 %v7658_v6, %v7651_v37 }
 0x34c   :  { %v7671_v8 = vsub.f32 %v24927_v48, %v30001_v59  ;;  %v7790_v20 = vsub.f32 %v24940_v34, %v30002_v53  ;;  %19330 = vmatpush3.bf16.msra.mxu1 %v24913_v16  ;;  %19308 = vmatprep.subr.bf16.mxu0 %v24904_v10  ;;  %v30003_v59 = vand.u32 4294901760, %v24944_v29  ;;  %v29042_v16 = vand.u32 4294901760, %v24986_v38 }
 0x34d   :  { %v15613_v1 = vpop.f32.mrb[34].mxu0  ;;  %19332 = vmatprep.subr.bf16.mxu1 %v19331_v56  ;;  %v25022_v34 = vpack.c.bf16 %v7572_v62, %v7569_v22  ;;  %v19339_v63 = vpack.c.bf16 %v7784_v40, %v7777_v60  ;;  %v29044_v0 = vand.u32 4294901760, %v24993_v45  ;;  %v7665_v56 = vand.u32 4294901760, %v7664_v61 }
 0x34e   :  { %v7797_v53 = vsub.f32 %v24944_v29, %v30003_v59  ;;  %v15614_v11 = vpop.f32.mrb[35].mxu0  ;;  %v7672_v18 = vand.u32 4294901760, %v7671_v8  ;;  %v7791_v19 = vand.u32 4294901760, %v7790_v20  ;;  %v30004_v59 = vand.u32 4294901760, %v24973_v46 }
 0x34f   :  { %v15615_v48 = vadd.f32 %v15614_v11, %v15613_v1  ;;  %19310 = vmatpush3.bf16.msra.mxu0 %v24917_v52  ;;  %v7685_v22 = vsub.f32 %v24980_v31, %v29043_v14  ;;  %v29040_v60 = vand.u32 4294901760, %v25010_v54  ;;  %v29041_v62 = vand.u32 4294901760, %v25013_v9 }
 0x350   :  { %19334 = vmatpush3.bf16.msra.mxu1 %v19333_v13  ;;  %19312 = vmatprep.subr.bf16.mxu0 %v24938_v2  ;;  %v7678_v10 = vsub.f32 %v24973_v46, %v30004_v59  ;;  %v7798_v37 = vand.u32 4294901760, %v7797_v53  ;;  %v7804_v13 = vsub.f32 %v24986_v38, %v29042_v16  ;;  %v30005_v40 = vand.u32 4294901760, %v24989_v30 }
 0x351   :  { %v5647_v6 = vadd.f32 %v15615_v48, %v24876_v28  ;;  %19336 = vmatprep.subr.bf16.mxu1 %v19335_v15  ;;  %v7583_v8 = vsub.f32 %v24993_v45, %v29044_v0  ;;  %v25046_v20 = vpack.c.bf16 %v7524_v39, %v7521_v23  ;;  %v19341_v1 = vpack.c.bf16 %v7672_v18, %v7665_v56 }
 0x352   :  { %v7811_v61 = vsub.f32 %v24989_v30, %v30005_v40  ;;  %v19351_v28 = vpack.c.bf16 %v24661_v50, %v24657_v43  ;;  %v7679_v48 = vand.u32 4294901760, %v7678_v10  ;;  %v7686_v15 = vand.u32 4294901760, %v7685_v22 }
 0x353   :  { %19314 = vmatpush3.bf16.msra.mxu0 %v24996_v27  ;;  %v7692_v53 = vsub.f32 %v25010_v54, %v29040_v60  ;;  %v7699_v11 = vsub.f32 %v25013_v9, %v29041_v62  ;;  %v19343_v39 = vpack.c.bf16 %v7798_v37, %v7791_v19  ;;  %v7805_v23 = vand.u32 4294901760, %v7804_v13 }
 0x354   :  { %19338 = vmatpush3.bf16.msra.mxu1 %v19337_v7  ;;  %19316 = vmatprep.subr.bf16.mxu0 %v25022_v34  ;;  %v7812_v56 = vand.u32 4294901760, %v7811_v61  ;;  %v7584_v59 = vand.u32 4294901760, %v7583_v8  ;;  %v19353_v7 = vpack.c.bf16 %v24697_v25, %v24685_v17  ;;  %v19355_v10 = vpack.c.bf16 %v24720_v57, %v24717_v4 }
 0x355   :  { %19340 = vmatprep.subr.bf16.mxu1 %v19339_v63  ;;  %v19345_v60 = vpack.c.bf16 %v7686_v15, %v7679_v48  ;;  %v7693_v62 = vand.u32 4294901760, %v7692_v53  ;;  %v7700_v63 = vand.u32 4294901760, %v7699_v11  ;;  %v19357_v13 = vpack.c.bf16 %v24763_v47, %v24758_v41  ;;  %v30008_v48 = vld [vmem:[#allocation20_spill] sm:$0xff]  ;;  %v30009_v53 = vld [vmem:[#allocation11_spill] sm:$0xff] }
 0x356   :  { %v15648_v18 = vpop.f32.mrb[34].mxu1  ;;  %v19347_v19 = vpack.c.bf16 %v7812_v56, %v7805_v23  ;;  %v19359_v8 = vpack.c.bf16 %v24786_v12, %v24784_v26  ;;  %v19367_v15 = vpack.c.bf16 %v24874_v58, %v24853_v33  ;;  %v30010_v11 = vand.u32 4294901760, %v24789_v3  ;;  %v30011_v23 = vld [vmem:[#allocation18_spill] sm:$0xff] }
 0x357   :  { %v15649_v40 = vpop.f32.mrb[35].mxu1  ;;  %19318 = vmatpush3.bf16.msra.mxu0 %v25046_v20  ;;  %v19349_v61 = vpack.c.bf16 %v7700_v63, %v7693_v62  ;;  %v30007_v62 = vld [vmem:[#allocation21_spill] sm:$0xff]  ;;  %v19371_v56 = vpack.c.bf16 %v30011_v23, %v24906_v5  ;;  %v30024_v16 = vand.u32 4294901760, %v24697_v25  ;;  %v30027_v25 = vand.u32 4294901760, %v24758_v41 }
 0x358   :  { %v15650_v22 = vadd.f32 %v15649_v40, %v15648_v18  ;;  %19342 = vmatpush3.bf16.msra.mxu1 %v19341_v1  ;;  %19352 = vmatprep.subr.bf16.mxu0 %v19351_v28  ;;  %v19361_v1 = vpack.c.bf16 %v24807_v51, %v24805_v44  ;;  %v30012_v18 = vld [vmem:[#allocation13_spill] sm:$0xff] }
 0x359   :  { %19344 = vmatprep.subr.bf16.mxu1 %v19343_v39  ;;  %v19369_v39 = vpack.c.bf16 %v24899_v55, %v24879_v21  ;;  %v30016_v63 = vld [vmem:[#allocation25_spill] sm:$0xff] }
 0x35a   :  { %v5751_v37 = vadd.f32 %v15650_v22, %v5647_v6  ;;  %7585 = vmatmul.mubr.f32.vlgmr.msra.gmra.mrb[48].mxu0 %v7584_v59  ;;  %v19363_v6 = vpack.c.bf16 %v24830_v35, %v24826_v42  ;;  %v30013_v59 = vld [vmem:[#allocation16_spill] sm:$0xff] }
 0x35b   :  { %19354 = vmatpush3.bf16.msra.mxu0 %v19353_v7  ;;  %7952 = vmatprep.mubr.f32.mxu0 %v24789_v3  ;;  %v19373_v40 = vpack.c.bf16 %v30013_v59, %v24919_v36  ;;  %v30014_v7 = vld [vmem:[#allocation23_spill] sm:$0xff]  ;;  %v30015_v3 = vld [vmem:[#allocation12_spill] sm:$0xff] }
 0x35c   :  { %19346 = vmatpush3.bf16.msra.mxu1 %v19345_v60  ;;  %19356 = vmatprep.subr.bf16.mxu0 %v19355_v10  ;;  %v30006_v60 = vld [vmem:[#allocation24_spill] sm:$0xff]  ;;  %v19375_v10 = vpack.c.bf16 %v24944_v29, %v30015_v3 }
 0x35d   :  { %19348 = vmatprep.subr.bf16.mxu1 %v19347_v19  ;;  %v19365_v28 = vpack.c.bf16 %v30007_v62, %v30006_v60 }
 0x35f   :  { %19358 = vmatpush3.bf16.msra.mxu0 %v19357_v13 }
 0x360   :  { %19350 = vmatpush3.bf16.msra.mxu1 %v19349_v61  ;;  %19360 = vmatprep.subr.bf16.mxu0 %v19359_v8  ;;  %v19377_v61 = vpack.c.bf16 %v24980_v31, %v24973_v46  ;;  %v30017_v8 = vld [vmem:[#allocation19_spill] sm:$0xff] }
 0x361   :  { %19384 = vmatprep.subr.bf16.mxu1 %v24755_v32 }
 0x363   :  { %7817 = vmatmul.mubr.f32.vlgmr.msra.gmra.mrb[48].mxu1 %v24970_v49  ;;  %19362 = vmatpush3.bf16.msra.mxu0 %v19361_v1  ;;  %v19379_v1 = vpack.c.bf16 %v24989_v30, %v24986_v38 }
 0x364   :  { %19386 = vmatpush3.bf16.msra.mxu1 %v30008_v48  ;;  %19364 = vmatprep.subr.bf16.mxu0 %v19363_v6 }
 0x365   :  { %19388 = vmatprep.subr.bf16.mxu1 %v30009_v53  ;;  %8059 = vmatprep.mubr.f32.mxu1 %v30010_v11  ;;  %v30019_v11 = vld [vmem:[#allocation22_spill] sm:$0xff] }
 0x367   :  { %19366 = vmatpush3.bf16.msra.mxu0 %v19365_v28  ;;  %v30018_v28 = vld [vmem:[#allocation15_spill] sm:$0xff] }
 0x368   :  { %19390 = vmatpush3.bf16.msra.mxu1 %v24777_v24  ;;  %19368 = vmatprep.subr.bf16.mxu0 %v19367_v15  ;;  %v19381_v15 = vpack.c.bf16 %v25013_v9, %v25010_v54 }
 0x369   :  { %19392 = vmatprep.subr.bf16.mxu1 %v30012_v18 }
 0x36b   :  { %19370 = vmatpush3.bf16.msra.mxu0 %v19369_v39  ;;  %v30020_v39 = vand.u32 4294901760, %v24657_v43  ;;  %v30025_v43 = vand.u32 4294901760, %v24717_v4  ;;  %v30028_v4 = vand.u32 4294901760, %v24763_v47 }
 0x36c   :  { %19394 = vmatpush3.bf16.msra.mxu1 %v30014_v7  ;;  %19372 = vmatprep.subr.bf16.mxu0 %v19371_v56  ;;  %v30021_v56 = vand.u32 4294901760, %v24661_v50  ;;  %v30026_v50 = vand.u32 4294901760, %v24720_v57  ;;  %v30029_v57 = vld [vmem:[#allocation14_spill] sm:$0xff] }
 0x36d   :  { %v15683_v22 = vpop.f32.mrb[36].mxu0  ;;  %19396 = vmatprep.subr.bf16.mxu1 %v30016_v63 }
 0x36e   :  { %v15684_v19 = vpop.f32.mrb[37].mxu0 }
 0x36f   :  { %v15685_v13 = vadd.f32 %v15684_v19, %v15683_v22  ;;  %19374 = vmatpush3.bf16.msra.mxu0 %v19373_v40  ;;  %v19415_v40 = vpack.c.bf16 %v30021_v56, %v30020_v39  ;;  %v30022_v22 = vld [vmem:[#allocation17_spill] sm:$0xff]  ;;  %v19419_v39 = vpack.c.bf16 %v30026_v50, %v30025_v43  ;;  %v30035_v50 = vand.u32 4294901760, %v24830_v35 }
 0x370   :  { %19398 = vmatpush3.bf16.msra.mxu1 %v30017_v8  ;;  %19376 = vmatprep.subr.bf16.mxu0 %v19375_v10  ;;  %v25107_v10 = vld [vmem:[#allocation5 + $0x980] sm:$0xff]  ;;  %v30036_v35 = vand.u32 4294901760, %v30006_v60 }
 0x371   :  { %v5863_v6 = vadd.f32 %v15685_v13, %v5751_v37  ;;  %19400 = vmatprep.subr.bf16.mxu1 %v30018_v28  ;;  %v25109_v37 = vld [vmem:[#allocation5 + $0x988] sm:$0xff]  ;;  %v8389_v56 = vand.u32 4294901760, %v25107_v10 }
 0x373   :  { %19378 = vmatpush3.bf16.msra.mxu0 %v19377_v61  ;;  %v30023_v61 = vand.u32 4294901760, %v24685_v17  ;;  %v25126_v17 = vld [vmem:[#allocation5 + $0x900] sm:$0xff] }
 0x374   :  { %19402 = vmatpush3.bf16.msra.mxu1 %v30019_v11  ;;  %19380 = vmatprep.subr.bf16.mxu0 %v19379_v1  ;;  %v29045_v47 = vand.u32 4294901760, %v25126_v17 }
 0x375   :  { %19404 = vmatprep.subr.bf16.mxu1 %v30022_v22  ;;  %v19417_v14 = vpack.c.bf16 %v30024_v16, %v30023_v61  ;;  %v19421_v16 = vpack.c.bf16 %v30028_v4, %v30027_v25  ;;  %v25141_v61 = vsub.f32 %v25107_v10, %v8389_v56 }
 0x376   :  { %v15718_v19 = vpop.f32.mrb[36].mxu1 }
 0x377   :  { %v15719_v13 = vpop.f32.mrb[37].mxu1  ;;  %19382 = vmatpush3.bf16.msra.mxu0 %v19381_v15  ;;  %v8392_v15 = vand.u32 4294901760, %v25109_v37 }
 0x378   :  { %v15720_v1 = vadd.f32 %v15719_v13, %v15718_v19  ;;  %19406 = vmatpush3.bf16.msra.mxu1 %v24917_v52  ;;  %19416 = vmatprep.subr.bf16.mxu0 %v19415_v40  ;;  %v25133_v40 = vld [vmem:[#allocation5 + $0x908] sm:$0xff]  ;;  %v30031_v19 = vand.u32 4294901760, %v24786_v12  ;;  %v30033_v12 = vand.u32 4294901760, %v24807_v51  ;;  %v361_v51 = vld [vmem:[#allocation5 + $0x918] sm:$0xff] }
 0x379   :  { %19408 = vmatprep.subr.bf16.mxu1 %v24938_v2  ;;  %v25145_v41 = vsub.f32 %v25109_v37, %v8392_v15  ;;  %v8344_v43 = vand.u32 4294901760, %v25133_v40  ;;  %v30034_v37 = vand.u32 4294901760, %v24826_v42  ;;  %v30042_v42 = vand.u32 4294901760, %v24899_v55 }
 0x37a   :  { %v25123_v0 = vadd.f32 %v15720_v1, %v5863_v6  ;;  %7955 = vmatmul.mubr.f32.vlgmr.msra.gmra.mrb[50].mxu0 %v24993_v45  ;;  %v30030_v6 = vand.u32 4294901760, %v24784_v26  ;;  %v25150_v1 = vld [vmem:[#allocation5 + $0x998] sm:$0xff]  ;;  %v30032_v26 = vand.u32 4294901760, %v24805_v44  ;;  %v25169_v44 = vsub.f32 %v25126_v17, %v29045_v47 }
 0x37b   :  { %19418 = vmatpush3.bf16.msra.mxu0 %v19417_v14  ;;  %8229 = vmatprep.mubr.f32.mxu0 %v30029_v57  ;;  %v25148_v14 = vld [vmem:[#allocation5 + $0x990] sm:$0xff]  ;;  %v8398_v4 = vand.u32 4294901760, %v25150_v1  ;;  %v30041_v47 = vand.u32 4294901760, %v24879_v21 }
 0x37c   :  { %19410 = vmatpush3.bf16.msra.mxu1 %v24996_v27  ;;  %19420 = vmatprep.subr.bf16.mxu0 %v19419_v39  ;;  %v19423_v13 = vpack.c.bf16 %v30031_v19, %v30030_v6  ;;  %v19425_v10 = vpack.c.bf16 %v30033_v12, %v30032_v26  ;;  %v19427_v39 = vpack.c.bf16 %v30035_v50, %v30034_v37  ;;  %v8395_v25 = vand.u32 4294901760, %v25148_v14  ;;  %v360_v6 = vld [vmem:[#allocation5 + $0x910] sm:$0xff] }
 0x37d   :  { %19412 = vmatprep.subr.bf16.mxu1 %v25022_v34  ;;  %v30037_v19 = vand.u32 4294901760, %v30007_v62  ;;  %v30038_v26 = vand.u32 4294901760, %v24853_v33  ;;  %v30039_v12 = vand.u32 4294901760, %v24874_v58  ;;  %v30040_v50 = vand.u32 4294901760, %v24993_v45  ;;  %v378_v45 = vld [vmem:[#allocation5 + $0x9a0] sm:$0xff] }
 0x37e   :  { %v19433_v60 = vpack.c.bf16 %v30042_v42, %v30041_v47  ;;  %v30043_v62 = vand.u32 4294901760, %v24906_v5  ;;  %v30045_v58 = vand.u32 4294901760, %v24919_v36  ;;  %v25201_v21 = vsub.f32 %v25148_v14, %v8395_v25 }
 0x37f   :  { %19422 = vmatpush3.bf16.msra.mxu0 %v19421_v16  ;;  %v29050_v16 = vand.u32 4294901760, %v25141_v61  ;;  %v19431_v37 = vpack.c.bf16 %v30039_v12, %v30038_v26  ;;  %v8347_v26 = vand.u32 4294901760, %v360_v6  ;;  %v25204_v55 = vsub.f32 %v25150_v1, %v8398_v4 }
 0x380   :  { %19414 = vmatpush3.bf16.msra.mxu1 %v25046_v20  ;;  %19424 = vmatprep.subr.bf16.mxu0 %v19423_v13  ;;  %v19429_v13 = vpack.c.bf16 %v30037_v19, %v30036_v35  ;;  %v30044_v35 = vand.u32 4294901760, %v30011_v23  ;;  %v30046_v19 = vand.u32 4294901760, %v30013_v59  ;;  %v8350_v5 = vand.u32 4294901760, %v361_v51  ;;  %v379_v23 = vld [vmem:[#allocation5 + $0x9a8] sm:$0xff]  ;;  %v57_v59 = vld [vmem:[#allocation2 + $0x98] sm:$0xff] }
 0x381   :  { %19448 = vmatprep.subr.bf16.mxu1 %v24755_v32  ;;  %v25181_v32 = vsub.f32 %v25133_v40, %v8344_v43  ;;  %v8568_v36 = vsub.f32 %v25141_v61, %v29050_v16  ;;  %v30047_v47 = vand.u32 4294901760, %v30015_v3  ;;  %v30049_v14 = vand.u32 4294901760, %v24973_v46 }
 0x382   :  { %v19435_v33 = vpack.c.bf16 %v30044_v35, %v30043_v62  ;;  %v25197_v40 = vpack.c.bf16 %v30046_v19, %v30045_v58  ;;  %v30050_v1 = vand.u32 4294901760, %v24980_v31  ;;  %v30051_v42 = vand.u32 4294901760, %v25145_v41  ;;  %v363_v58 = vld [vmem:[#allocation5 + $0x928] sm:$0xff] }
 0x383   :  { %8063 = vmatmul.mubr.f32.vlgmr.msra.gmra.mrb[50].mxu1 %v30040_v50  ;;  %19426 = vmatpush3.bf16.msra.mxu0 %v19425_v10  ;;  %v30052_v3 = vand.u32 4294901760, %v24986_v38  ;;  %v30054_v46 = vand.u32 4294901760, %v25010_v54  ;;  %v30055_v31 = vand.u32 4294901760, %v25013_v9  ;;  %v25239_v35 = vpack.c.bf16 %v8392_v15, %v8389_v56 }
 0x384   :  { %19450 = vmatpush3.bf16.msra.mxu1 %v30008_v48  ;;  %19428 = vmatprep.subr.bf16.mxu0 %v19427_v39  ;;  %v30048_v48 = vand.u32 4294901760, %v24944_v29  ;;  %v25220_v39 = vpack.c.bf16 %v30050_v1, %v30049_v14  ;;  %v8575_v12 = vsub.f32 %v25145_v41, %v30051_v42  ;;  %v30053_v29 = vand.u32 4294901760, %v24989_v30 }
 0x385   :  { %19452 = vmatprep.subr.bf16.mxu1 %v30009_v53  ;;  %8333 = vmatprep.mubr.f32.mxu1 %v30029_v57  ;;  %v29049_v53 = vand.u32 4294901760, %v25169_v44  ;;  %v25237_v62 = vpack.c.bf16 %v30055_v31, %v30054_v46  ;;  %v362_v57 = vld [vmem:[#allocation5 + $0x920] sm:$0xff]  ;;  %v29048_v19 = vand.u32 4294901760, %v25181_v32  ;;  %v8401_v38 = vand.u32 4294901760, %v378_v45  ;;  %v381_v46 = vld [vmem:[#allocation5 + $0x9b8] sm:$0xff] }
 0x386   :  { %v25214_v10 = vpack.c.bf16 %v30048_v48, %v30047_v47  ;;  %v25231_v50 = vpack.c.bf16 %v30053_v29, %v30052_v3  ;;  %v25242_v47 = vsub.f32 %v360_v6, %v8347_v26  ;;  %v8404_v48 = vand.u32 4294901760, %v379_v23  ;;  %v380_v29 = vld [vmem:[#allocation5 + $0x9b0] sm:$0xff] }
 0x387   :  { %19430 = vmatpush3.bf16.msra.mxu0 %v19429_v13  ;;  %v25244_v30 = vand.u32 4294901760, %v57_v59  ;;  %v25247_v54 = vsub.f32 %v361_v51, %v8350_v5  ;;  %v8569_v9 = vand.u32 4294901760, %v8568_v36  ;;  %v29047_v56 = vand.u32 4294901760, %v25201_v21 }
 0x388   :  { %19454 = vmatpush3.bf16.msra.mxu1 %v24777_v24  ;;  %19432 = vmatprep.subr.bf16.mxu0 %v19431_v37  ;;  %v29046_v15 = vand.u32 4294901760, %v25204_v55  ;;  %v8576_v14 = vand.u32 4294901760, %v8575_v12  ;;  %v8353_v13 = vand.u32 4294901760, %v362_v57  ;;  %v8356_v6 = vand.u32 4294901760, %v363_v58 }
 0x389   :  { %30056 = vst [vmem:[#allocation24_spill] sm:$0xff] %v25244_v30  ;;  %19456 = vmatprep.subr.bf16.mxu1 %v30012_v18  ;;  %v8456_v1 = vsub.f32 %v25169_v44, %v29049_v53  ;;  %v30057_v42 = vand.u32 4294901760, %v25126_v17  ;;  %v25259_v51 = vpack.c.bf16 %v8398_v4, %v8395_v25  ;;  %v25261_v37 = vpack.c.bf16 %v8350_v5, %v8347_v26  ;;  %v364_v4 = vld [vmem:[#allocation5 + $0x930] sm:$0xff] }
 0x38a   :  { %v8463_v36 = vsub.f32 %v25181_v32, %v29048_v19  ;;  %v25266_v18 = vpack.c.bf16 %v8404_v48, %v8401_v38  ;;  %v25268_v12 = vsub.f32 %v378_v45, %v8401_v38  ;;  %v25270_v3 = vsub.f32 %v379_v23, %v8404_v48  ;;  %v383_v19 = vld [vmem:[#allocation5 + $0x9c8] sm:$0xff] }
 0x38b   :  { %v25257_v24 = vpack.c.bf16 %v8344_v43, %v30057_v42  ;;  %30059 = vst [vmem:[#allocation20_spill] sm:$0xff] %v25259_v51  ;;  %19434 = vmatpush3.bf16.msra.mxu0 %v19433_v60  ;;  %v25273_v17 = vsub.f32 %v57_v59, %v25244_v30  ;;  %v8582_v43 = vsub.f32 %v25201_v21, %v29047_v56  ;;  %v365_v60 = vld [vmem:[#allocation5 + $0x938] sm:$0xff]  ;;  %v29052_v26 = vand.u32 4294901760, %v25242_v47  ;;  %v382_v56 = vld [vmem:[#allocation5 + $0x9c0] sm:$0xff] }
 0x38c   :  { %30060 = vst [vmem:[#allocation11_spill] sm:$0xff] %v25266_v18  ;;  %19458 = vmatpush3.bf16.msra.mxu1 %v30014_v7  ;;  %19436 = vmatprep.subr.bf16.mxu0 %v19435_v33  ;;  %v8589_v25 = vsub.f32 %v25204_v55, %v29046_v15  ;;  %v29051_v5 = vand.u32 4294901760, %v25247_v54  ;;  %v25285_v23 = vpack.c.bf16 %v8576_v14, %v8569_v9  ;;  %v8457_v59 = vand.u32 4294901760, %v8456_v1 }
 0x38d   :  { %30058 = vst [vmem:[#allocation21_spill] sm:$0xff] %v25257_v24  ;;  %v15753_v45 = vpop.f32.mrb[38].mxu0  ;;  %19460 = vmatprep.subr.bf16.mxu1 %v30016_v63  ;;  %v25287_v7 = vpack.c.bf16 %v8356_v6, %v8353_v13  ;;  %v25289_v33 = vsub.f32 %v362_v57, %v8353_v13  ;;  %v25291_v38 = vsub.f32 %v363_v58, %v8356_v6  ;;  %v8464_v48 = vand.u32 4294901760, %v8463_v36 }
 0x38e   :  { %v15754_v31 = vpop.f32.mrb[39].mxu0  ;;  %v8407_v42 = vand.u32 4294901760, %v380_v29  ;;  %v8410_v15 = vand.u32 4294901760, %v381_v46  ;;  %v8359_v16 = vand.u32 4294901760, %v364_v4  ;;  %v8362_v63 = vand.u32 4294901760, %v365_v60 }
 0x38f   :  { %30061 = vst [vmem:[#allocation18_spill] sm:$0xff] %v25287_v7  ;;  %v15755_v53 = vadd.f32 %v15754_v31, %v15753_v45  ;;  %19438 = vmatpush3.bf16.msra.mxu0 %v25197_v40  ;;  %v29056_v9 = vand.u32 4294901760, %v25273_v17  ;;  %v8583_v57 = vand.u32 4294901760, %v8582_v43  ;;  %v8590_v14 = vand.u32 4294901760, %v8589_v25 }
 0x390   :  { %19462 = vmatpush3.bf16.msra.mxu1 %v30017_v8  ;;  %19440 = vmatprep.subr.bf16.mxu0 %v25214_v10  ;;  %v8470_v58 = vsub.f32 %v25242_v47, %v29052_v26  ;;  %v8477_v13 = vsub.f32 %v25247_v54, %v29051_v5  ;;  %v8413_v6 = vand.u32 4294901760, %v382_v56  ;;  %v8416_v1 = vand.u32 4294901760, %v383_v19 }
 0x391   :  { %v6233_v40 = vadd.f32 %v15755_v53, %v25123_v0  ;;  %19464 = vmatprep.subr.bf16.mxu1 %v30018_v28  ;;  %v29054_v8 = vand.u32 4294901760, %v25268_v12  ;;  %v25306_v36 = vpack.c.bf16 %v8464_v48, %v8457_v59  ;;  %v25308_v10 = vpack.c.bf16 %v8410_v15, %v8407_v42  ;;  %v366_v0 = vld [vmem:[#allocation5 + $0x940] sm:$0xff]  ;;  %v367_v28 = vld [vmem:[#allocation5 + $0x948] sm:$0xff] }
 0x392   :  { %v25310_v43 = vsub.f32 %v380_v29, %v8407_v42  ;;  %v29053_v25 = vand.u32 4294901760, %v25270_v3  ;;  %v25314_v45 = vsub.f32 %v381_v46, %v8410_v15  ;;  %v25316_v31 = vpack.c.bf16 %v8362_v63, %v8359_v16 }
 0x393   :  { %30062 = vst [vmem:[#allocation13_spill] sm:$0xff] %v25308_v10  ;;  %19442 = vmatpush3.bf16.msra.mxu0 %v25220_v39  ;;  %v29055_v53 = vand.u32 4294901760, %v25289_v33  ;;  %v8439_v59 = vsub.f32 %v25273_v17, %v29056_v9  ;;  %v25324_v29 = vsub.f32 %v364_v4, %v8359_v16  ;;  %v25326_v48 = vsub.f32 %v365_v60, %v8362_v63  ;;  %v384_v63 = vld [vmem:[#allocation5 + $0x9d0] sm:$0xff] }
 0x394   :  { %30063 = vst [vmem:[#allocation16_spill] sm:$0xff] %v25316_v31  ;;  %19466 = vmatpush3.bf16.msra.mxu1 %v30019_v11  ;;  %19444 = vmatprep.subr.bf16.mxu0 %v25231_v50  ;;  %v8471_v39 = vand.u32 4294901760, %v8470_v58  ;;  %v29057_v15 = vand.u32 4294901760, %v25291_v38  ;;  %v25330_v46 = vpack.c.bf16 %v8590_v14, %v8583_v57  ;;  %v8478_v42 = vand.u32 4294901760, %v8477_v13  ;;  %v385_v14 = vld [vmem:[#allocation5 + $0x9d8] sm:$0xff]  ;;  %v368_v58 = vld [vmem:[#allocation5 + $0x950] sm:$0xff] }
 0x395   :  { %30064 = vst [vmem:[#allocation23_spill] sm:$0xff] %v25324_v29  ;;  %30065 = vst [vmem:[#allocation12_spill] sm:$0xff] %v25326_v48  ;;  %19468 = vmatprep.subr.bf16.mxu1 %v30022_v22  ;;  %v25332_v5 = vpack.c.bf16 %v8416_v1, %v8413_v6  ;;  %v8596_v11 = vsub.f32 %v25268_v12, %v29054_v8  ;;  %v25337_v50 = vsub.f32 %v382_v56, %v8413_v6 }
 0x396   :  { %v15788_v26 = vpop.f32.mrb[38].mxu1  ;;  %v8603_v16 = vsub.f32 %v25270_v3, %v29053_v25  ;;  %v8365_v4 = vand.u32 4294901760, %v366_v0  ;;  %v8368_v60 = vand.u32 4294901760, %v367_v28  ;;  %v8484_v57 = vsub.f32 %v25289_v33, %v29055_v53 }
 0x397   :  { %30066 = vst [vmem:[#allocation25_spill] sm:$0xff] %v25332_v5  ;;  %v15789_v22 = vpop.f32.mrb[39].mxu1  ;;  %19446 = vmatpush3.bf16.msra.mxu0 %v25237_v62  ;;  %v8440_v13 = vand.u32 4294901760, %v8439_v59  ;;  %v8491_v25 = vsub.f32 %v25291_v38, %v29057_v15  ;;  %v25356_v53 = vpack.c.bf16 %v8478_v42, %v8471_v39  ;;  %v25358_v9 = vsub.f32 %v383_v19, %v8416_v1  ;;  %v369_v62 = vld [vmem:[#allocation5 + $0x958] sm:$0xff] }
 0x398   :  { %v15790_v6 = vadd.f32 %v15789_v22, %v15788_v26  ;;  %19470 = vmatpush3.bf16.msra.mxu1 %v24917_v52  ;;  %19480 = vmatprep.subr.bf16.mxu0 %v25239_v35  ;;  %v8597_v59 = vand.u32 4294901760, %v8596_v11  ;;  %v8419_v26 = vand.u32 4294901760, %v384_v63  ;;  %v8604_v52 = vand.u32 4294901760, %v8603_v16 }
 0x399   :  { %19472 = vmatprep.subr.bf16.mxu1 %v24938_v2  ;;  %v25363_v56 = vsub.f32 %v366_v0, %v8365_v4  ;;  %v8422_v15 = vand.u32 4294901760, %v385_v14  ;;  %v25366_v8 = vpack.c.bf16 %v8368_v60, %v8365_v4  ;;  %v30068_v2 = vand.u32 4294901760, %v25310_v43 }
 0x39a   :  { %v25360_v22 = vadd.f32 %v15790_v6, %v6233_v40  ;;  %8231 = vmatmul.mubr.f32.vlgmr.msra.gmra.mrb[52].mxu0 %v24970_v49  ;;  %v30069_v1 = vand.u32 4294901760, %v25314_v45  ;;  %v8485_v0 = vand.u32 4294901760, %v8484_v57  ;;  %v8492_v39 = vand.u32 4294901760, %v8491_v25  ;;  %v386_v6 = vld [vmem:[#allocation5 + $0x9e0] sm:$0xff] }
 0x39b   :  { %19482 = vmatpush3.bf16.msra.mxu0 %v25257_v24  ;;  %30067 = vst [vmem:[#allocation19_spill] sm:$0xff] %v25366_v8  ;;  %v8610_v19 = vsub.f32 %v25310_v43, %v30068_v2  ;;  %8441 = vmatprep.mubr.f32.mxu0 %v8440_v13  ;;  %v30070_v42 = vand.u32 4294901760, %v25324_v29  ;;  %v30071_v16 = vand.u32 4294901760, %v25326_v48  ;;  %v387_v2 = vld [vmem:[#allocation5 + $0x9e8] sm:$0xff]  ;;  %v8371_v13 = vand.u32 4294901760, %v368_v58 }
 0x39c   :  { %v8617_v40 = vsub.f32 %v25314_v45, %v30069_v1  ;;  %19474 = vmatpush3.bf16.msra.mxu1 %v24996_v27  ;;  %19484 = vmatprep.subr.bf16.mxu0 %v25259_v51  ;;  %v25383_v1 = vsub.f32 %v367_v28, %v8368_v60  ;;  %v8374_v27 = vand.u32 4294901760, %v369_v62  ;;  %v29066_v51 = vand.u32 4294901760, %v25337_v50 }
 0x39d   :  { %v8498_v11 = vsub.f32 %v25324_v29, %v30070_v42  ;;  %v8505_v4 = vsub.f32 %v25326_v48, %v30071_v16  ;;  %19476 = vmatprep.subr.bf16.mxu1 %v25022_v34  ;;  %v25386_v57 = vpack.c.bf16 %v8604_v52, %v8597_v59  ;;  %v25388_v25 = vpack.c.bf16 %v8422_v15, %v8419_v26 }
 0x39e   :  { %v25390_v24 = vsub.f32 %v384_v63, %v8419_v26  ;;  %v25392_v42 = vsub.f32 %v385_v14, %v8422_v15  ;;  %v8611_v16 = vand.u32 4294901760, %v8610_v19  ;;  %v8618_v48 = vand.u32 4294901760, %v8617_v40  ;;  %v370_v63 = vld [vmem:[#allocation5 + $0x960] sm:$0xff] }
 0x39f   :  { %30072 = vst [vmem:[#allocation15_spill] sm:$0xff] %v25388_v25  ;;  %19486 = vmatpush3.bf16.msra.mxu0 %v25261_v37  ;;  %v8425_v29 = vand.u32 4294901760, %v386_v6  ;;  %v8428_v34 = vand.u32 4294901760, %v387_v2  ;;  %v25397_v28 = vpack.c.bf16 %v8492_v39, %v8485_v0  ;;  %v8499_v60 = vand.u32 4294901760, %v8498_v11  ;;  %v25414_v39 = vld [vmem:[#allocation5 + $0x9f0] sm:$0xff]  ;;  %v25416_v11 = vld [vmem:[#allocation5 + $0x9f8] sm:$0xff] }
 0x3a0   :  { %30073 = vst [vmem:[#allocation22_spill] sm:$0xff] %v25392_v42  ;;  %19478 = vmatpush3.bf16.msra.mxu1 %v25046_v20  ;;  %19488 = vmatprep.subr.bf16.mxu0 %v25266_v18  ;;  %v8506_v59 = vand.u32 4294901760, %v8505_v4  ;;  %v29067_v52 = vand.u32 4294901760, %v25358_v9  ;;  %v25401_v15 = vpack.c.bf16 %v8374_v27, %v8371_v13  ;;  %v25403_v14 = vsub.f32 %v368_v58, %v8371_v13  ;;  %v371_v20 = vld [vmem:[#allocation5 + $0x968] sm:$0xff] }
 0x3a1   :  { %19512 = vmatprep.subr.bf16.mxu1 %v25285_v23  ;;  %v25408_v26 = vsub.f32 %v25337_v50, %v29066_v51  ;;  %v25411_v40 = vsub.f32 %v369_v62, %v8374_v27  ;;  %v29074_v23 = vand.u32 4294901760, %v25390_v24  ;;  %v19523_v4 = vpack.c.bf16 %v8618_v48, %v8611_v16  ;;  %v56_v27 = vld [vmem:[#allocation2 + $0x90] sm:$0xff] }
 0x3a2   :  { %v25422_v13 = vpack.c.bf16 %v8428_v34, %v8425_v29  ;;  %v25424_v51 = vsub.f32 %v386_v6, %v8425_v29  ;;  %v8377_v62 = vand.u32 4294901760, %v370_v63  ;;  %v19525_v0 = vpack.c.bf16 %v8506_v59, %v8499_v60  ;;  %v25440_v60 = vld [vmem:[#allocation5 + $0x970] sm:$0xff] }
 0x3a3   :  { %30074 = vst [vmem:[#allocation17_spill] sm:$0xff] %v25411_v40  ;;  %8335 = vmatmul.mubr.f32.vlgmr.msra.gmra.mrb[52].mxu1 %v24970_v49  ;;  %19490 = vmatpush3.bf16.msra.mxu0 %v25287_v7  ;;  %v25428_v19 = vsub.f32 %v387_v2, %v8428_v34  ;;  %v8631_v49 = vsub.f32 %v25358_v9, %v29067_v52  ;;  %v8380_v58 = vand.u32 4294901760, %v371_v20  ;;  %v8625_v48 = vand.u32 4294901760, %v25408_v26  ;;  %v25442_v2 = vld [vmem:[#allocation5 + $0x978] sm:$0xff] }
 0x3a4   :  { %30075 = vst [vmem:[#allocation14_spill] sm:$0xff] %v25424_v51  ;;  %19514 = vmatpush3.bf16.msra.mxu1 %v25306_v36  ;;  %19492 = vmatprep.subr.bf16.mxu0 %v25308_v10  ;;  %v30076_v29 = vand.u32 4294901760, %v25363_v56  ;;  %v8431_v36 = vand.u32 4294901760, %v25414_v39  ;;  %v8434_v16 = vand.u32 4294901760, %v25416_v11  ;;  %v30077_v34 = vand.u32 4294901760, %v25383_v1 }
 0x3a5   :  { %19516 = vmatprep.subr.bf16.mxu1 %v25330_v46  ;;  %8677 = vmatprep.mubr.f32.mxu1 %v25244_v30  ;;  %v8638_v59 = vsub.f32 %v25390_v24, %v29074_v23  ;;  %v30078_v26 = vand.u32 4294901760, %v25392_v42  ;;  %v25454_v52 = vand.u32 4294901760, %v56_v27  ;;  %v25457_v10 = vsub.f32 %v370_v63, %v8377_v62 }
 0x3a6   :  { %v8512_v6 = vsub.f32 %v25363_v56, %v30076_v29  ;;  %v8519_v46 = vsub.f32 %v25383_v1, %v30077_v34  ;;  %v8632_v23 = vand.u32 4294901760, %v8631_v49  ;;  %v25464_v18 = vsub.f32 %v371_v20, %v8380_v58 }
 0x3a7   :  { %v8645_v29 = vsub.f32 %v25392_v42, %v30078_v26  ;;  %19494 = vmatpush3.bf16.msra.mxu0 %v25316_v31  ;;  %v8383_v26 = vand.u32 4294901760, %v25440_v60  ;;  %v8386_v42 = vand.u32 4294901760, %v25442_v2  ;;  %v25470_v30 = vsub.f32 %v25414_v39, %v8431_v36 }
 0x3a8   :  { %19518 = vmatpush3.bf16.msra.mxu1 %v25356_v53  ;;  %19496 = vmatprep.subr.bf16.mxu0 %v25332_v5  ;;  %v8513_v63 = vand.u32 4294901760, %v8512_v6  ;;  %v25473_v7 = vsub.f32 %v25416_v11, %v8434_v16  ;;  %v8520_v34 = vand.u32 4294901760, %v8519_v46  ;;  %v8639_v5 = vand.u32 4294901760, %v8638_v59 }
 0x3a9   :  { %19520 = vmatprep.subr.bf16.mxu1 %v25386_v57  ;;  %v8646_v49 = vand.u32 4294901760, %v8645_v29  ;;  %v25477_v20 = vsub.f32 %v56_v27, %v25454_v52  ;;  %v25480_v31 = vpack.c.bf16 %v8380_v58, %v8377_v62  ;;  %v30079_v57 = vand.u32 4294901760, %v25403_v14 }
 0x3aa   :  { %v30080_v6 = vand.u32 4294901760, %v25411_v40  ;;  %v30081_v53 = vand.u32 4294901760, %v25424_v51  ;;  %v25494_v27 = vsub.f32 %v25440_v60, %v8383_v26  ;;  %v25497_v58 = vsub.f32 %v25442_v2, %v8386_v42 }
 0x3ab   :  { %19498 = vmatpush3.bf16.msra.mxu0 %v25366_v8  ;;  %v8526_v39 = vsub.f32 %v25403_v14, %v30079_v57  ;;  %v29094_v59 = vand.u32 4294901760, %v25464_v18  ;;  %v19527_v57 = vpack.c.bf16 %v8632_v23, %v8625_v48  ;;  %v19529_v8 = vpack.c.bf16 %v8520_v34, %v8513_v63 }
 0x3ac   :  { %v8533_v11 = vsub.f32 %v25411_v40, %v30080_v6  ;;  %v8652_v46 = vsub.f32 %v25424_v51, %v30081_v53  ;;  %19522 = vmatpush3.bf16.msra.mxu1 %v25397_v28  ;;  %19500 = vmatprep.subr.bf16.mxu0 %v25388_v25  ;;  %v30082_v6 = vand.u32 4294901760, %v25428_v19  ;;  %v29093_v28 = vand.u32 4294901760, %v25470_v30 }
 0x3ad   :  { %v15823_v29 = vpop.f32.mrb[40].mxu0  ;;  %19524 = vmatprep.subr.bf16.mxu1 %v19523_v4  ;;  %v25506_v51 = vpack.c.bf16 %v8434_v16, %v8431_v36  ;;  %v19531_v2 = vpack.c.bf16 %v8646_v49, %v8639_v5  ;;  %v29095_v62 = vand.u32 4294901760, %v25477_v20  ;;  %v8527_v4 = vand.u32 4294901760, %v8526_v39 }
 0x3ae   :  { %v8659_v53 = vsub.f32 %v25428_v19, %v30082_v6  ;;  %v15824_v60 = vpop.f32.mrb[41].mxu0  ;;  %v8534_v23 = vand.u32 4294901760, %v8533_v11  ;;  %v8653_v48 = vand.u32 4294901760, %v8652_v46  ;;  %v30083_v6 = vand.u32 4294901760, %v25457_v10 }
 0x3af   :  { %v15825_v40 = vadd.f32 %v15824_v60, %v15823_v29  ;;  %19502 = vmatpush3.bf16.msra.mxu0 %v25401_v15  ;;  %v8547_v36 = vsub.f32 %v25464_v18, %v29094_v59  ;;  %v29091_v5 = vand.u32 4294901760, %v25494_v27  ;;  %v29092_v16 = vand.u32 4294901760, %v25497_v58 }
 0x3b0   :  { %19526 = vmatpush3.bf16.msra.mxu1 %v19525_v0  ;;  %19504 = vmatprep.subr.bf16.mxu0 %v25422_v13  ;;  %v8540_v25 = vsub.f32 %v25457_v10, %v30083_v6  ;;  %v8660_v63 = vand.u32 4294901760, %v8659_v53  ;;  %v8666_v0 = vsub.f32 %v25470_v30, %v29093_v28  ;;  %v30084_v49 = vand.u32 4294901760, %v25473_v7 }
 0x3b1   :  { %v6509_v34 = vadd.f32 %v15825_v40, %v25360_v22  ;;  %19528 = vmatprep.subr.bf16.mxu1 %v19527_v57  ;;  %v8445_v11 = vsub.f32 %v25477_v20, %v29095_v62  ;;  %v25530_v46 = vpack.c.bf16 %v8386_v42, %v8383_v26  ;;  %v19533_v29 = vpack.c.bf16 %v8534_v23, %v8527_v4 }
 0x3b2   :  { %v8673_v39 = vsub.f32 %v25473_v7, %v30084_v49  ;;  %v19543_v22 = vpack.c.bf16 %v25145_v41, %v25141_v61  ;;  %v8541_v40 = vand.u32 4294901760, %v8540_v25  ;;  %v8548_v57 = vand.u32 4294901760, %v8547_v36 }
 0x3b3   :  { %19506 = vmatpush3.bf16.msra.mxu0 %v25480_v31  ;;  %v8554_v53 = vsub.f32 %v25494_v27, %v29091_v5  ;;  %v8561_v60 = vsub.f32 %v25497_v58, %v29092_v16  ;;  %v19535_v42 = vpack.c.bf16 %v8660_v63, %v8653_v48  ;;  %v8667_v26 = vand.u32 4294901760, %v8666_v0 }
 0x3b4   :  { %19530 = vmatpush3.bf16.msra.mxu1 %v19529_v8  ;;  %19508 = vmatprep.subr.bf16.mxu0 %v25506_v51  ;;  %v8674_v4 = vand.u32 4294901760, %v8673_v39  ;;  %v8446_v6 = vand.u32 4294901760, %v8445_v11  ;;  %v19545_v8 = vpack.c.bf16 %v25181_v32, %v25169_v44  ;;  %v19547_v25 = vpack.c.bf16 %v25204_v55, %v25201_v21 }
 0x3b5   :  { %19532 = vmatprep.subr.bf16.mxu1 %v19531_v2  ;;  %v19537_v5 = vpack.c.bf16 %v8548_v57, %v8541_v40  ;;  %v8555_v16 = vand.u32 4294901760, %v8554_v53  ;;  %v8562_v2 = vand.u32 4294901760, %v8561_v60  ;;  %v19549_v0 = vpack.c.bf16 %v25247_v54, %v25242_v47  ;;  %v30087_v40 = vld [vmem:[#allocation21_spill] sm:$0xff]  ;;  %v30088_v53 = vld [vmem:[#allocation20_spill] sm:$0xff] }
 0x3b6   :  { %v15858_v23 = vpop.f32.mrb[40].mxu1  ;;  %v19539_v48 = vpack.c.bf16 %v8674_v4, %v8667_v26  ;;  %v19551_v11 = vpack.c.bf16 %v25270_v3, %v25268_v12  ;;  %v19559_v57 = vpack.c.bf16 %v25358_v9, %v25337_v50  ;;  %v30089_v60 = vand.u32 4294901760, %v25273_v17  ;;  %v30090_v26 = vld [vmem:[#allocation22_spill] sm:$0xff] }
 0x3b7   :  { %v15859_v49 = vpop.f32.mrb[41].mxu1  ;;  %19510 = vmatpush3.bf16.msra.mxu0 %v25530_v46  ;;  %v19541_v39 = vpack.c.bf16 %v8562_v2, %v8555_v16  ;;  %v30086_v16 = vld [vmem:[#allocation12_spill] sm:$0xff]  ;;  %v19563_v4 = vpack.c.bf16 %v30090_v26, %v25390_v24  ;;  %v30095_v2 = vld [vmem:[#allocation13_spill] sm:$0xff]  ;;  %v30103_v28 = vand.u32 4294901760, %v25181_v32  ;;  %v30106_v32 = vand.u32 4294901760, %v25242_v47 }
 0x3b8   :  { %v15860_v36 = vadd.f32 %v15859_v49, %v15858_v23  ;;  %19534 = vmatpush3.bf16.msra.mxu1 %v19533_v29  ;;  %19544 = vmatprep.subr.bf16.mxu0 %v19543_v22  ;;  %v19553_v29 = vpack.c.bf16 %v25291_v38, %v25289_v33  ;;  %v30091_v23 = vld [vmem:[#allocation11_spill] sm:$0xff] }
 0x3b9   :  { %19536 = vmatprep.subr.bf16.mxu1 %v19535_v42  ;;  %v19561_v42 = vpack.c.bf16 %v25383_v1, %v25363_v56 }
 0x3ba   :  { %v6613_v63 = vadd.f32 %v15860_v36, %v6509_v34  ;;  %8447 = vmatmul.mubr.f32.vlgmr.msra.gmra.mrb[54].mxu0 %v8446_v6  ;;  %v19555_v34 = vpack.c.bf16 %v25314_v45, %v25310_v43  ;;  %v30092_v6 = vld [vmem:[#allocation17_spill] sm:$0xff] }
 0x3bb   :  { %19546 = vmatpush3.bf16.msra.mxu0 %v19545_v8  ;;  %8814 = vmatprep.mubr.f32.mxu0 %v25273_v17  ;;  %v19565_v49 = vpack.c.bf16 %v30092_v6, %v25403_v14  ;;  %v30093_v8 = vld [vmem:[#allocation18_spill] sm:$0xff] }
 0x3bc   :  { %19538 = vmatpush3.bf16.msra.mxu1 %v19537_v5  ;;  %19548 = vmatprep.subr.bf16.mxu0 %v19547_v25  ;;  %v30085_v5 = vld [vmem:[#allocation23_spill] sm:$0xff]  ;;  %v30094_v17 = vld [vmem:[#allocation14_spill] sm:$0xff] }
 0x3bd   :  { %19540 = vmatprep.subr.bf16.mxu1 %v19539_v48  ;;  %v19557_v22 = vpack.c.bf16 %v30086_v16, %v30085_v5  ;;  %v19567_v25 = vpack.c.bf16 %v25428_v19, %v30094_v17 }
 0x3bf   :  { %19550 = vmatpush3.bf16.msra.mxu0 %v19549_v0 }
 0x3c0   :  { %19542 = vmatpush3.bf16.msra.mxu1 %v19541_v39  ;;  %19552 = vmatprep.subr.bf16.mxu0 %v19551_v11  ;;  %v19569_v39 = vpack.c.bf16 %v25464_v18, %v25457_v10  ;;  %v30096_v11 = vld [vmem:[#allocation16_spill] sm:$0xff] }
 0x3c1   :  { %19576 = vmatprep.subr.bf16.mxu1 %v25239_v35 }
 0x3c3   :  { %8679 = vmatmul.mubr.f32.vlgmr.msra.gmra.mrb[54].mxu1 %v25454_v52  ;;  %19554 = vmatpush3.bf16.msra.mxu0 %v19553_v29  ;;  %v19571_v29 = vpack.c.bf16 %v25473_v7, %v25470_v30 }
 0x3c4   :  { %19578 = vmatpush3.bf16.msra.mxu1 %v30087_v40  ;;  %19556 = vmatprep.subr.bf16.mxu0 %v19555_v34 }
 0x3c5   :  { %19580 = vmatprep.subr.bf16.mxu1 %v30088_v53  ;;  %8921 = vmatprep.mubr.f32.mxu1 %v30089_v60  ;;  %v30098_v60 = vld [vmem:[#allocation19_spill] sm:$0xff] }
 0x3c7   :  { %19558 = vmatpush3.bf16.msra.mxu0 %v19557_v22  ;;  %v30097_v22 = vld [vmem:[#allocation25_spill] sm:$0xff] }
 0x3c8   :  { %19582 = vmatpush3.bf16.msra.mxu1 %v25261_v37  ;;  %19560 = vmatprep.subr.bf16.mxu0 %v19559_v57  ;;  %v19573_v57 = vpack.c.bf16 %v25497_v58, %v25494_v27 }
 0x3c9   :  { %19584 = vmatprep.subr.bf16.mxu1 %v30091_v23 }
 0x3cb   :  { %19562 = vmatpush3.bf16.msra.mxu0 %v19561_v42  ;;  %v30099_v42 = vand.u32 4294901760, %v25141_v61  ;;  %v30104_v61 = vand.u32 4294901760, %v25201_v21  ;;  %v30107_v21 = vand.u32 4294901760, %v25247_v54 }
 0x3cc   :  { %19586 = vmatpush3.bf16.msra.mxu1 %v30093_v8  ;;  %19564 = vmatprep.subr.bf16.mxu0 %v19563_v4  ;;  %v30100_v4 = vand.u32 4294901760, %v25145_v41  ;;  %v30105_v41 = vand.u32 4294901760, %v25204_v55  ;;  %v30108_v55 = vld [vmem:[#allocation24_spill] sm:$0xff] }
 0x3cd   :  { %v15893_v36 = vpop.f32.mrb[42].mxu0  ;;  %19588 = vmatprep.subr.bf16.mxu1 %v30095_v2 }
 0x3ce   :  { %v15894_v48 = vpop.f32.mrb[43].mxu0 }
 0x3cf   :  { %v15895_v0 = vadd.f32 %v15894_v48, %v15893_v36  ;;  %19566 = vmatpush3.bf16.msra.mxu0 %v19565_v49  ;;  %v19607_v49 = vpack.c.bf16 %v30100_v4, %v30099_v42  ;;  %v30101_v36 = vld [vmem:[#allocation15_spill] sm:$0xff]  ;;  %v19611_v42 = vpack.c.bf16 %v30105_v41, %v30104_v61  ;;  %v30114_v41 = vand.u32 4294901760, %v25314_v45 }
 0x3d0   :  { %19590 = vmatpush3.bf16.msra.mxu1 %v30096_v11  ;;  %19568 = vmatprep.subr.bf16.mxu0 %v19567_v25  ;;  %v25591_v25 = vld [vmem:[#allocation5 + $0xa80] sm:$0xff]  ;;  %v30115_v45 = vand.u32 4294901760, %v30085_v5 }
 0x3d1   :  { %v6725_v34 = vadd.f32 %v15895_v0, %v6613_v63  ;;  %19592 = vmatprep.subr.bf16.mxu1 %v30097_v22  ;;  %v25593_v63 = vld [vmem:[#allocation5 + $0xa88] sm:$0xff]  ;;  %v9251_v4 = vand.u32 4294901760, %v25591_v25 }
 0x3d3   :  { %19570 = vmatpush3.bf16.msra.mxu0 %v19569_v39  ;;  %v30102_v39 = vand.u32 4294901760, %v25169_v44  ;;  %v25610_v44 = vld [vmem:[#allocation5 + $0xa00] sm:$0xff] }
 0x3d4   :  { %19594 = vmatpush3.bf16.msra.mxu1 %v30098_v60  ;;  %19572 = vmatprep.subr.bf16.mxu0 %v19571_v29  ;;  %v29096_v54 = vand.u32 4294901760, %v25610_v44 }
 0x3d5   :  { %19596 = vmatprep.subr.bf16.mxu1 %v30101_v36  ;;  %v19609_v59 = vpack.c.bf16 %v30103_v28, %v30102_v39  ;;  %v19613_v28 = vpack.c.bf16 %v30107_v21, %v30106_v32  ;;  %v25625_v39 = vsub.f32 %v25591_v25, %v9251_v4 }
 0x3d6   :  { %v15928_v48 = vpop.f32.mrb[42].mxu1 }
 0x3d7   :  { %v15929_v0 = vpop.f32.mrb[43].mxu1  ;;  %19574 = vmatpush3.bf16.msra.mxu0 %v19573_v57  ;;  %v9254_v57 = vand.u32 4294901760, %v25593_v63 }
 0x3d8   :  { %v15930_v29 = vadd.f32 %v15929_v0, %v15928_v48  ;;  %19598 = vmatpush3.bf16.msra.mxu1 %v25401_v15  ;;  %19608 = vmatprep.subr.bf16.mxu0 %v19607_v49  ;;  %v25617_v49 = vld [vmem:[#allocation5 + $0xa08] sm:$0xff]  ;;  %v30110_v48 = vand.u32 4294901760, %v25270_v3  ;;  %v30112_v3 = vand.u32 4294901760, %v25291_v38  ;;  %v393_v38 = vld [vmem:[#allocation5 + $0xa18] sm:$0xff] }
 0x3d9   :  { %19600 = vmatprep.subr.bf16.mxu1 %v25422_v13  ;;  %v25629_v47 = vsub.f32 %v25593_v63, %v9254_v57  ;;  %v9206_v61 = vand.u32 4294901760, %v25617_v49  ;;  %v30113_v63 = vand.u32 4294901760, %v25310_v43  ;;  %v30121_v43 = vand.u32 4294901760, %v25383_v1 }
 0x3da   :  { %v25607_v62 = vadd.f32 %v15930_v29, %v6725_v34  ;;  %8817 = vmatmul.mubr.f32.vlgmr.msra.gmra.mrb[56].mxu0 %v25477_v20  ;;  %v30109_v34 = vand.u32 4294901760, %v25268_v12  ;;  %v25634_v29 = vld [vmem:[#allocation5 + $0xa98] sm:$0xff]  ;;  %v30111_v12 = vand.u32 4294901760, %v25289_v33  ;;  %v25653_v33 = vsub.f32 %v25610_v44, %v29096_v54 }
 0x3db   :  { %19610 = vmatpush3.bf16.msra.mxu0 %v19609_v59  ;;  %9091 = vmatprep.mubr.f32.mxu0 %v30108_v55  ;;  %v25632_v59 = vld [vmem:[#allocation5 + $0xa90] sm:$0xff]  ;;  %v9260_v21 = vand.u32 4294901760, %v25634_v29  ;;  %v30120_v54 = vand.u32 4294901760, %v25363_v56 }
 0x3dc   :  { %19602 = vmatpush3.bf16.msra.mxu1 %v25480_v31  ;;  %19612 = vmatprep.subr.bf16.mxu0 %v19611_v42  ;;  %v19615_v0 = vpack.c.bf16 %v30110_v48, %v30109_v34  ;;  %v19617_v25 = vpack.c.bf16 %v30112_v3, %v30111_v12  ;;  %v19619_v42 = vpack.c.bf16 %v30114_v41, %v30113_v63  ;;  %v9257_v32 = vand.u32 4294901760, %v25632_v59  ;;  %v392_v34 = vld [vmem:[#allocation5 + $0xa10] sm:$0xff] }
 0x3dd   :  { %19604 = vmatprep.subr.bf16.mxu1 %v25506_v51  ;;  %v30116_v48 = vand.u32 4294901760, %v30086_v16  ;;  %v30117_v12 = vand.u32 4294901760, %v25337_v50  ;;  %v30118_v3 = vand.u32 4294901760, %v25358_v9  ;;  %v30119_v41 = vand.u32 4294901760, %v25477_v20  ;;  %v410_v20 = vld [vmem:[#allocation5 + $0xaa0] sm:$0xff] }
 0x3de   :  { %v19625_v5 = vpack.c.bf16 %v30121_v43, %v30120_v54  ;;  %v30122_v16 = vand.u32 4294901760, %v25390_v24  ;;  %v30124_v9 = vand.u32 4294901760, %v25403_v14  ;;  %v25685_v56 = vsub.f32 %v25632_v59, %v9257_v32 }
 0x3df   :  { %19614 = vmatpush3.bf16.msra.mxu0 %v19613_v28  ;;  %v29101_v28 = vand.u32 4294901760, %v25625_v39  ;;  %v19623_v63 = vpack.c.bf16 %v30118_v3, %v30117_v12  ;;  %v9209_v12 = vand.u32 4294901760, %v392_v34  ;;  %v25688_v1 = vsub.f32 %v25634_v29, %v9260_v21 }
 0x3e0   :  { %19606 = vmatpush3.bf16.msra.mxu1 %v25530_v46  ;;  %19616 = vmatprep.subr.bf16.mxu0 %v19615_v0  ;;  %v19621_v0 = vpack.c.bf16 %v30116_v48, %v30115_v45  ;;  %v30123_v45 = vand.u32 4294901760, %v30090_v26  ;;  %v30125_v48 = vand.u32 4294901760, %v30092_v6  ;;  %v9212_v24 = vand.u32 4294901760, %v393_v38  ;;  %v411_v26 = vld [vmem:[#allocation5 + $0xaa8] sm:$0xff] }
 0x3e1   :  { %19640 = vmatprep.subr.bf16.mxu1 %v25239_v35  ;;  %v25665_v35 = vsub.f32 %v25617_v49, %v9206_v61  ;;  %v9430_v14 = vsub.f32 %v25625_v39, %v29101_v28  ;;  %v59_v6 = vld [vmem:[#allocation2 + $0xa8] sm:$0xff]  ;;  %v30126_v54 = vand.u32 4294901760, %v30094_v17  ;;  %v30128_v59 = vand.u32 4294901760, %v25457_v10 }
 0x3e2   :  { %v19627_v50 = vpack.c.bf16 %v30123_v45, %v30122_v16  ;;  %v25681_v49 = vpack.c.bf16 %v30125_v48, %v30124_v9  ;;  %v30129_v29 = vand.u32 4294901760, %v25464_v18  ;;  %v30130_v43 = vand.u32 4294901760, %v25629_v47  ;;  %v395_v9 = vld [vmem:[#allocation5 + $0xa28] sm:$0xff] }
 0x3e3   :  { %8925 = vmatmul.mubr.f32.vlgmr.msra.gmra.mrb[56].mxu1 %v30119_v41  ;;  %19618 = vmatpush3.bf16.msra.mxu0 %v19617_v25  ;;  %v30131_v17 = vand.u32 4294901760, %v25470_v30  ;;  %v30133_v10 = vand.u32 4294901760, %v25494_v27  ;;  %v30134_v18 = vand.u32 4294901760, %v25497_v58  ;;  %v25723_v45 = vpack.c.bf16 %v9254_v57, %v9251_v4 }
 0x3e4   :  { %19642 = vmatpush3.bf16.msra.mxu1 %v30087_v40  ;;  %19620 = vmatprep.subr.bf16.mxu0 %v19619_v42  ;;  %v30127_v40 = vand.u32 4294901760, %v25428_v19  ;;  %v25704_v42 = vpack.c.bf16 %v30129_v29, %v30128_v59  ;;  %v9437_v3 = vsub.f32 %v25629_v47, %v30130_v43  ;;  %v30132_v19 = vand.u32 4294901760, %v25473_v7 }
 0x3e5   :  { %19644 = vmatprep.subr.bf16.mxu1 %v30088_v53  ;;  %9195 = vmatprep.mubr.f32.mxu1 %v30108_v55  ;;  %v29100_v53 = vand.u32 4294901760, %v25653_v33  ;;  %v25721_v16 = vpack.c.bf16 %v30134_v18, %v30133_v10  ;;  %v394_v55 = vld [vmem:[#allocation5 + $0xa20] sm:$0xff]  ;;  %v29099_v48 = vand.u32 4294901760, %v25665_v35  ;;  %v9263_v30 = vand.u32 4294901760, %v410_v20  ;;  %v413_v10 = vld [vmem:[#allocation5 + $0xab8] sm:$0xff] }
 0x3e6   :  { %v25698_v25 = vpack.c.bf16 %v30127_v40, %v30126_v54  ;;  %v25715_v41 = vpack.c.bf16 %v30132_v19, %v30131_v17  ;;  %v25726_v54 = vsub.f32 %v392_v34, %v9209_v12  ;;  %v9266_v40 = vand.u32 4294901760, %v411_v26  ;;  %v412_v19 = vld [vmem:[#allocation5 + $0xab0] sm:$0xff] }
 0x3e7   :  { %19622 = vmatpush3.bf16.msra.mxu0 %v19621_v0  ;;  %v25728_v7 = vand.u32 4294901760, %v59_v6  ;;  %v25731_v27 = vsub.f32 %v393_v38, %v9212_v24  ;;  %v9431_v58 = vand.u32 4294901760, %v9430_v14  ;;  %v29098_v4 = vand.u32 4294901760, %v25685_v56 }
 0x3e8   :  { %19646 = vmatpush3.bf16.msra.mxu1 %v25261_v37  ;;  %19624 = vmatprep.subr.bf16.mxu0 %v19623_v63  ;;  %v29097_v57 = vand.u32 4294901760, %v25688_v1  ;;  %v9438_v59 = vand.u32 4294901760, %v9437_v3  ;;  %v9215_v0 = vand.u32 4294901760, %v394_v55  ;;  %v9218_v34 = vand.u32 4294901760, %v395_v9 }
 0x3e9   :  { %30135 = vst [vmem:[#allocation23_spill] sm:$0xff] %v25728_v7  ;;  %19648 = vmatprep.subr.bf16.mxu1 %v30091_v23  ;;  %v9318_v29 = vsub.f32 %v25653_v33, %v29100_v53  ;;  %v30136_v43 = vand.u32 4294901760, %v25610_v44  ;;  %v25743_v38 = vpack.c.bf16 %v9260_v21, %v9257_v32  ;;  %v25745_v63 = vpack.c.bf16 %v9212_v24, %v9209_v12  ;;  %v396_v21 = vld [vmem:[#allocation5 + $0xa30] sm:$0xff] }
 0x3ea   :  { %v9325_v14 = vsub.f32 %v25665_v35, %v29099_v48  ;;  %v25750_v23 = vpack.c.bf16 %v9266_v40, %v9263_v30  ;;  %v25752_v3 = vsub.f32 %v410_v20, %v9263_v30  ;;  %v25754_v17 = vsub.f32 %v411_v26, %v9266_v40  ;;  %v415_v48 = vld [vmem:[#allocation5 + $0xac8] sm:$0xff] }
 0x3eb   :  { %v25741_v37 = vpack.c.bf16 %v9206_v61, %v30136_v43  ;;  %30138 = vst [vmem:[#allocation21_spill] sm:$0xff] %v25743_v38  ;;  %19626 = vmatpush3.bf16.msra.mxu0 %v19625_v5  ;;  %v25757_v44 = vsub.f32 %v59_v6, %v25728_v7  ;;  %v9444_v61 = vsub.f32 %v25685_v56, %v29098_v4  ;;  %v397_v5 = vld [vmem:[#allocation5 + $0xa38] sm:$0xff]  ;;  %v29103_v12 = vand.u32 4294901760, %v25726_v54  ;;  %v414_v4 = vld [vmem:[#allocation5 + $0xac0] sm:$0xff] }
 0x3ec   :  { %30139 = vst [vmem:[#allocation20_spill] sm:$0xff] %v25750_v23  ;;  %19650 = vmatpush3.bf16.msra.mxu1 %v30093_v8  ;;  %19628 = vmatprep.subr.bf16.mxu0 %v19627_v50  ;;  %v9451_v32 = vsub.f32 %v25688_v1, %v29097_v57  ;;  %v29102_v24 = vand.u32 4294901760, %v25731_v27  ;;  %v25769_v26 = vpack.c.bf16 %v9438_v59, %v9431_v58  ;;  %v9319_v6 = vand.u32 4294901760, %v9318_v29 }
 0x3ed   :  { %30137 = vst [vmem:[#allocation12_spill] sm:$0xff] %v25741_v37  ;;  %v15963_v20 = vpop.f32.mrb[44].mxu0  ;;  %19652 = vmatprep.subr.bf16.mxu1 %v30095_v2  ;;  %v25771_v8 = vpack.c.bf16 %v9218_v34, %v9215_v0  ;;  %v25773_v50 = vsub.f32 %v394_v55, %v9215_v0  ;;  %v25775_v30 = vsub.f32 %v395_v9, %v9218_v34  ;;  %v9326_v40 = vand.u32 4294901760, %v9325_v14 }
 0x3ee   :  { %v15964_v18 = vpop.f32.mrb[45].mxu0  ;;  %v9269_v43 = vand.u32 4294901760, %v412_v19  ;;  %v9272_v57 = vand.u32 4294901760, %v413_v10  ;;  %v9221_v28 = vand.u32 4294901760, %v396_v21  ;;  %v9224_v2 = vand.u32 4294901760, %v397_v5 }
 0x3ef   :  { %30140 = vst [vmem:[#allocation22_spill] sm:$0xff] %v25771_v8  ;;  %v15965_v53 = vadd.f32 %v15964_v18, %v15963_v20  ;;  %19630 = vmatpush3.bf16.msra.mxu0 %v25681_v49  ;;  %v29107_v58 = vand.u32 4294901760, %v25757_v44  ;;  %v9445_v55 = vand.u32 4294901760, %v9444_v61  ;;  %v9452_v59 = vand.u32 4294901760, %v9451_v32 }
 0x3f0   :  { %19654 = vmatpush3.bf16.msra.mxu1 %v30096_v11  ;;  %19632 = vmatprep.subr.bf16.mxu0 %v25698_v25  ;;  %v9332_v9 = vsub.f32 %v25726_v54, %v29103_v12  ;;  %v9339_v0 = vsub.f32 %v25731_v27, %v29102_v24  ;;  %v9275_v34 = vand.u32 4294901760, %v414_v4  ;;  %v9278_v29 = vand.u32 4294901760, %v415_v48 }
 0x3f1   :  { %v7095_v49 = vadd.f32 %v15965_v53, %v25607_v62  ;;  %19656 = vmatprep.subr.bf16.mxu1 %v30097_v22  ;;  %v29105_v11 = vand.u32 4294901760, %v25752_v3  ;;  %v25790_v14 = vpack.c.bf16 %v9326_v40, %v9319_v6  ;;  %v25792_v25 = vpack.c.bf16 %v9272_v57, %v9269_v43  ;;  %v398_v62 = vld [vmem:[#allocation5 + $0xa40] sm:$0xff]  ;;  %v399_v22 = vld [vmem:[#allocation5 + $0xa48] sm:$0xff] }
 0x3f2   :  { %v25794_v61 = vsub.f32 %v412_v19, %v9269_v43  ;;  %v29104_v32 = vand.u32 4294901760, %v25754_v17  ;;  %v25798_v20 = vsub.f32 %v413_v10, %v9272_v57  ;;  %v25800_v18 = vpack.c.bf16 %v9224_v2, %v9221_v28 }
 0x3f3   :  { %30141 = vst [vmem:[#allocation11_spill] sm:$0xff] %v25792_v25  ;;  %19634 = vmatpush3.bf16.msra.mxu0 %v25704_v42  ;;  %v29106_v53 = vand.u32 4294901760, %v25773_v50  ;;  %v9301_v6 = vsub.f32 %v25757_v44, %v29107_v58  ;;  %v25808_v19 = vsub.f32 %v396_v21, %v9221_v28  ;;  %v25810_v40 = vsub.f32 %v397_v5, %v9224_v2  ;;  %v416_v2 = vld [vmem:[#allocation5 + $0xad0] sm:$0xff] }
 0x3f4   :  { %30142 = vst [vmem:[#allocation17_spill] sm:$0xff] %v25800_v18  ;;  %19658 = vmatpush3.bf16.msra.mxu1 %v30098_v60  ;;  %19636 = vmatprep.subr.bf16.mxu0 %v25715_v41  ;;  %v9333_v42 = vand.u32 4294901760, %v9332_v9  ;;  %v29108_v57 = vand.u32 4294901760, %v25775_v30  ;;  %v25814_v10 = vpack.c.bf16 %v9452_v59, %v9445_v55  ;;  %v9340_v43 = vand.u32 4294901760, %v9339_v0  ;;  %v417_v59 = vld [vmem:[#allocation5 + $0xad8] sm:$0xff]  ;;  %v400_v9 = vld [vmem:[#allocation5 + $0xa50] sm:$0xff] }
 0x3f5   :  { %30143 = vst [vmem:[#allocation18_spill] sm:$0xff] %v25808_v19  ;;  %30144 = vst [vmem:[#allocation14_spill] sm:$0xff] %v25810_v40  ;;  %19660 = vmatprep.subr.bf16.mxu1 %v30101_v36  ;;  %v25816_v24 = vpack.c.bf16 %v9278_v29, %v9275_v34  ;;  %v9458_v60 = vsub.f32 %v25752_v3, %v29105_v11  ;;  %v25821_v41 = vsub.f32 %v414_v4, %v9275_v34 }
 0x3f6   :  { %v15998_v12 = vpop.f32.mrb[44].mxu1  ;;  %v9465_v28 = vsub.f32 %v25754_v17, %v29104_v32  ;;  %v9227_v21 = vand.u32 4294901760, %v398_v62  ;;  %v9230_v5 = vand.u32 4294901760, %v399_v22  ;;  %v9346_v55 = vsub.f32 %v25773_v50, %v29106_v53 }
 0x3f7   :  { %30145 = vst [vmem:[#allocation13_spill] sm:$0xff] %v25816_v24  ;;  %v15999_v36 = vpop.f32.mrb[45].mxu1  ;;  %19638 = vmatpush3.bf16.msra.mxu0 %v25721_v16  ;;  %v9302_v0 = vand.u32 4294901760, %v9301_v6  ;;  %v9353_v32 = vsub.f32 %v25775_v30, %v29108_v57  ;;  %v25840_v53 = vpack.c.bf16 %v9340_v43, %v9333_v42  ;;  %v25842_v58 = vsub.f32 %v415_v48, %v9278_v29  ;;  %v401_v16 = vld [vmem:[#allocation5 + $0xa58] sm:$0xff] }
 0x3f8   :  { %v16000_v34 = vadd.f32 %v15999_v36, %v15998_v12  ;;  %19662 = vmatpush3.bf16.msra.mxu1 %v25401_v15  ;;  %19672 = vmatprep.subr.bf16.mxu0 %v25723_v45  ;;  %v9459_v6 = vand.u32 4294901760, %v9458_v60  ;;  %v9281_v12 = vand.u32 4294901760, %v416_v2  ;;  %v9466_v15 = vand.u32 4294901760, %v9465_v28 }
 0x3f9   :  { %19664 = vmatprep.subr.bf16.mxu1 %v25422_v13  ;;  %v25847_v4 = vsub.f32 %v398_v62, %v9227_v21  ;;  %v9284_v57 = vand.u32 4294901760, %v417_v59  ;;  %v25850_v11 = vpack.c.bf16 %v9230_v5, %v9227_v21  ;;  %v30147_v13 = vand.u32 4294901760, %v25794_v61 }
 0x3fa   :  { %v25844_v36 = vadd.f32 %v16000_v34, %v7095_v49  ;;  %9093 = vmatmul.mubr.f32.vlgmr.msra.gmra.mrb[58].mxu0 %v25454_v52  ;;  %v30148_v29 = vand.u32 4294901760, %v25798_v20  ;;  %v9347_v62 = vand.u32 4294901760, %v9346_v55  ;;  %v9354_v42 = vand.u32 4294901760, %v9353_v32  ;;  %v418_v34 = vld [vmem:[#allocation5 + $0xae0] sm:$0xff] }
 0x3fb   :  { %19674 = vmatpush3.bf16.msra.mxu0 %v25741_v37  ;;  %30146 = vst [vmem:[#allocation16_spill] sm:$0xff] %v25850_v11  ;;  %v9472_v48 = vsub.f32 %v25794_v61, %v30147_v13  ;;  %9303 = vmatprep.mubr.f32.mxu0 %v9302_v0  ;;  %v30149_v43 = vand.u32 4294901760, %v25808_v19  ;;  %v30150_v28 = vand.u32 4294901760, %v25810_v40  ;;  %v419_v13 = vld [vmem:[#allocation5 + $0xae8] sm:$0xff]  ;;  %v9233_v0 = vand.u32 4294901760, %v400_v9 }
 0x3fc   :  { %v9479_v49 = vsub.f32 %v25798_v20, %v30148_v29  ;;  %19666 = vmatpush3.bf16.msra.mxu1 %v25480_v31  ;;  %19676 = vmatprep.subr.bf16.mxu0 %v25743_v38  ;;  %v25867_v29 = vsub.f32 %v399_v22, %v9230_v5  ;;  %v9236_v31 = vand.u32 4294901760, %v401_v16  ;;  %v29117_v38 = vand.u32 4294901760, %v25821_v41 }
 0x3fd   :  { %v9360_v60 = vsub.f32 %v25808_v19, %v30149_v43  ;;  %v9367_v21 = vsub.f32 %v25810_v40, %v30150_v28  ;;  %19668 = vmatprep.subr.bf16.mxu1 %v25506_v51  ;;  %v25870_v55 = vpack.c.bf16 %v9466_v15, %v9459_v6  ;;  %v25872_v32 = vpack.c.bf16 %v9284_v57, %v9281_v12 }
 0x3fe   :  { %v25874_v37 = vsub.f32 %v416_v2, %v9281_v12  ;;  %v25876_v43 = vsub.f32 %v417_v59, %v9284_v57  ;;  %v9473_v28 = vand.u32 4294901760, %v9472_v48  ;;  %v9480_v40 = vand.u32 4294901760, %v9479_v49  ;;  %v402_v2 = vld [vmem:[#allocation5 + $0xa60] sm:$0xff] }
 0x3ff   :  { %30151 = vst [vmem:[#allocation25_spill] sm:$0xff] %v25872_v32  ;;  %19678 = vmatpush3.bf16.msra.mxu0 %v25745_v63  ;;  %v9287_v19 = vand.u32 4294901760, %v418_v34  ;;  %v9290_v51 = vand.u32 4294901760, %v419_v13  ;;  %v25881_v22 = vpack.c.bf16 %v9354_v42, %v9347_v62  ;;  %v9361_v5 = vand.u32 4294901760, %v9360_v60  ;;  %v25898_v42 = vld [vmem:[#allocation5 + $0xaf0] sm:$0xff]  ;;  %v25900_v60 = vld [vmem:[#allocation5 + $0xaf8] sm:$0xff] }
 0x400   :  { %30152 = vst [vmem:[#allocation19_spill] sm:$0xff] %v25876_v43  ;;  %19670 = vmatpush3.bf16.msra.mxu1 %v25530_v46  ;;  %19680 = vmatprep.subr.bf16.mxu0 %v25750_v23  ;;  %v9368_v6 = vand.u32 4294901760, %v9367_v21  ;;  %v29118_v15 = vand.u32 4294901760, %v25842_v58  ;;  %v25885_v57 = vpack.c.bf16 %v9236_v31, %v9233_v0  ;;  %v25887_v59 = vsub.f32 %v400_v9, %v9233_v0  ;;  %v403_v46 = vld [vmem:[#allocation5 + $0xa68] sm:$0xff] }
 0x401   :  { %19704 = vmatprep.subr.bf16.mxu1 %v25769_v26  ;;  %v25892_v12 = vsub.f32 %v25821_v41, %v29117_v38  ;;  %v25895_v49 = vsub.f32 %v401_v16, %v9236_v31  ;;  %v29125_v26 = vand.u32 4294901760, %v25874_v37  ;;  %v19715_v21 = vpack.c.bf16 %v9480_v40, %v9473_v28  ;;  %v58_v31 = vld [vmem:[#allocation2 + $0xa0] sm:$0xff] }
 0x402   :  { %v25906_v0 = vpack.c.bf16 %v9290_v51, %v9287_v19  ;;  %v25908_v38 = vsub.f32 %v418_v34, %v9287_v19  ;;  %v9239_v16 = vand.u32 4294901760, %v402_v2  ;;  %v19717_v62 = vpack.c.bf16 %v9368_v6, %v9361_v5  ;;  %v25924_v5 = vld [vmem:[#allocation5 + $0xa70] sm:$0xff] }
 0x403   :  { %30153 = vst [vmem:[#allocation15_spill] sm:$0xff] %v25895_v49  ;;  %9197 = vmatmul.mubr.f32.vlgmr.msra.gmra.mrb[58].mxu1 %v25454_v52  ;;  %19682 = vmatpush3.bf16.msra.mxu0 %v25771_v8  ;;  %v25912_v48 = vsub.f32 %v419_v13, %v9290_v51  ;;  %v9493_v52 = vsub.f32 %v25842_v58, %v29118_v15  ;;  %v9242_v9 = vand.u32 4294901760, %v403_v46  ;;  %v9487_v40 = vand.u32 4294901760, %v25892_v12  ;;  %v25926_v13 = vld [vmem:[#allocation5 + $0xa78] sm:$0xff] }
 0x404   :  { %30154 = vst [vmem:[#allocation24_spill] sm:$0xff] %v25908_v38  ;;  %19706 = vmatpush3.bf16.msra.mxu1 %v25790_v14  ;;  %19684 = vmatprep.subr.bf16.mxu0 %v25792_v25  ;;  %v30155_v19 = vand.u32 4294901760, %v25847_v4  ;;  %v9293_v14 = vand.u32 4294901760, %v25898_v42  ;;  %v9296_v28 = vand.u32 4294901760, %v25900_v60  ;;  %v30156_v51 = vand.u32 4294901760, %v25867_v29 }
 0x405   :  { %19708 = vmatprep.subr.bf16.mxu1 %v25814_v10  ;;  %9539 = vmatprep.mubr.f32.mxu1 %v25728_v7  ;;  %v9500_v6 = vsub.f32 %v25874_v37, %v29125_v26  ;;  %v30157_v12 = vand.u32 4294901760, %v25876_v43  ;;  %v25938_v15 = vand.u32 4294901760, %v58_v31  ;;  %v25941_v25 = vsub.f32 %v402_v2, %v9239_v16 }
 0x406   :  { %v9374_v34 = vsub.f32 %v25847_v4, %v30155_v19  ;;  %v9381_v10 = vsub.f32 %v25867_v29, %v30156_v51  ;;  %v9494_v26 = vand.u32 4294901760, %v9493_v52  ;;  %v25948_v23 = vsub.f32 %v403_v46, %v9242_v9 }
 0x407   :  { %v9507_v19 = vsub.f32 %v25876_v43, %v30157_v12  ;;  %19686 = vmatpush3.bf16.msra.mxu0 %v25800_v18  ;;  %v9245_v12 = vand.u32 4294901760, %v25924_v5  ;;  %v9248_v43 = vand.u32 4294901760, %v25926_v13  ;;  %v25954_v7 = vsub.f32 %v25898_v42, %v9293_v14 }
 0x408   :  { %19710 = vmatpush3.bf16.msra.mxu1 %v25840_v53  ;;  %19688 = vmatprep.subr.bf16.mxu0 %v25816_v24  ;;  %v9375_v2 = vand.u32 4294901760, %v9374_v34  ;;  %v25957_v8 = vsub.f32 %v25900_v60, %v9296_v28  ;;  %v9382_v51 = vand.u32 4294901760, %v9381_v10  ;;  %v9501_v24 = vand.u32 4294901760, %v9500_v6 }
 0x409   :  { %19712 = vmatprep.subr.bf16.mxu1 %v25870_v55  ;;  %v9508_v52 = vand.u32 4294901760, %v9507_v19  ;;  %v25961_v46 = vsub.f32 %v58_v31, %v25938_v15  ;;  %v25964_v18 = vpack.c.bf16 %v9242_v9, %v9239_v16  ;;  %v30158_v55 = vand.u32 4294901760, %v25887_v59 }
 0x40a   :  { %v30159_v34 = vand.u32 4294901760, %v25895_v49  ;;  %v30160_v53 = vand.u32 4294901760, %v25908_v38  ;;  %v25978_v31 = vsub.f32 %v25924_v5, %v9245_v12  ;;  %v25981_v9 = vsub.f32 %v25926_v13, %v9248_v43 }
 0x40b   :  { %19690 = vmatpush3.bf16.msra.mxu0 %v25850_v11  ;;  %v9388_v42 = vsub.f32 %v25887_v59, %v30158_v55  ;;  %v29145_v6 = vand.u32 4294901760, %v25948_v23  ;;  %v19719_v55 = vpack.c.bf16 %v9494_v26, %v9487_v40  ;;  %v19721_v11 = vpack.c.bf16 %v9382_v51, %v9375_v2 }
 0x40c   :  { %v9395_v60 = vsub.f32 %v25895_v49, %v30159_v34  ;;  %v9514_v10 = vsub.f32 %v25908_v38, %v30160_v53  ;;  %19714 = vmatpush3.bf16.msra.mxu1 %v25881_v22  ;;  %19692 = vmatprep.subr.bf16.mxu0 %v25872_v32  ;;  %v30161_v34 = vand.u32 4294901760, %v25912_v48  ;;  %v29144_v22 = vand.u32 4294901760, %v25954_v7 }
 0x40d   :  { %v16033_v19 = vpop.f32.mrb[46].mxu0  ;;  %19716 = vmatprep.subr.bf16.mxu1 %v19715_v21  ;;  %v25990_v38 = vpack.c.bf16 %v9296_v28, %v9293_v14  ;;  %v19723_v13 = vpack.c.bf16 %v9508_v52, %v9501_v24  ;;  %v29146_v16 = vand.u32 4294901760, %v25961_v46  ;;  %v9389_v21 = vand.u32 4294901760, %v9388_v42 }
 0x40e   :  { %v9521_v53 = vsub.f32 %v25912_v48, %v30161_v34  ;;  %v16034_v5 = vpop.f32.mrb[47].mxu0  ;;  %v9396_v26 = vand.u32 4294901760, %v9395_v60  ;;  %v9515_v40 = vand.u32 4294901760, %v9514_v10  ;;  %v30162_v34 = vand.u32 4294901760, %v25941_v25 }
 0x40f   :  { %v16035_v49 = vadd.f32 %v16034_v5, %v16033_v19  ;;  %19694 = vmatpush3.bf16.msra.mxu0 %v25885_v57  ;;  %v9409_v14 = vsub.f32 %v25948_v23, %v29145_v6  ;;  %v29142_v24 = vand.u32 4294901760, %v25978_v31  ;;  %v29143_v28 = vand.u32 4294901760, %v25981_v9 }
 0x410   :  { %19718 = vmatpush3.bf16.msra.mxu1 %v19717_v62  ;;  %19696 = vmatprep.subr.bf16.mxu0 %v25906_v0  ;;  %v9402_v32 = vsub.f32 %v25941_v25, %v30162_v34  ;;  %v9522_v2 = vand.u32 4294901760, %v9521_v53  ;;  %v9528_v62 = vsub.f32 %v25954_v7, %v29144_v22  ;;  %v30163_v52 = vand.u32 4294901760, %v25957_v8 }
 0x411   :  { %v7371_v51 = vadd.f32 %v16035_v49, %v25844_v36  ;;  %19720 = vmatprep.subr.bf16.mxu1 %v19719_v55  ;;  %v9307_v60 = vsub.f32 %v25961_v46, %v29146_v16  ;;  %v26014_v10 = vpack.c.bf16 %v9248_v43, %v9245_v12  ;;  %v19725_v19 = vpack.c.bf16 %v9396_v26, %v9389_v21 }
 0x412   :  { %v9535_v42 = vsub.f32 %v25957_v8, %v30163_v52  ;;  %v19735_v36 = vpack.c.bf16 %v25629_v47, %v25625_v39  ;;  %v9403_v49 = vand.u32 4294901760, %v9402_v32  ;;  %v9410_v55 = vand.u32 4294901760, %v9409_v14 }
 0x413   :  { %19698 = vmatpush3.bf16.msra.mxu0 %v25964_v18  ;;  %v9416_v53 = vsub.f32 %v25978_v31, %v29142_v24  ;;  %v9423_v5 = vsub.f32 %v25981_v9, %v29143_v28  ;;  %v19727_v43 = vpack.c.bf16 %v9522_v2, %v9515_v40  ;;  %v9529_v12 = vand.u32 4294901760, %v9528_v62 }
 0x414   :  { %19722 = vmatpush3.bf16.msra.mxu1 %v19721_v11  ;;  %19700 = vmatprep.subr.bf16.mxu0 %v25990_v38  ;;  %v9536_v21 = vand.u32 4294901760, %v9535_v42  ;;  %v9308_v34 = vand.u32 4294901760, %v9307_v60  ;;  %v19737_v11 = vpack.c.bf16 %v25665_v35, %v25653_v33  ;;  %v19739_v32 = vpack.c.bf16 %v25688_v1, %v25685_v56 }
 0x415   :  { %19724 = vmatprep.subr.bf16.mxu1 %v19723_v13  ;;  %v19729_v24 = vpack.c.bf16 %v9410_v55, %v9403_v49  ;;  %v9417_v28 = vand.u32 4294901760, %v9416_v53  ;;  %v9424_v13 = vand.u32 4294901760, %v9423_v5  ;;  %v19741_v62 = vpack.c.bf16 %v25731_v27, %v25726_v54  ;;  %v30166_v49 = vld [vmem:[#allocation12_spill] sm:$0xff]  ;;  %v30167_v53 = vld [vmem:[#allocation21_spill] sm:$0xff] }
 0x416   :  { %v16068_v26 = vpop.f32.mrb[46].mxu1  ;;  %v19731_v40 = vpack.c.bf16 %v9536_v21, %v9529_v12  ;;  %v19743_v60 = vpack.c.bf16 %v25754_v17, %v25752_v3  ;;  %v19751_v55 = vpack.c.bf16 %v25842_v58, %v25821_v41  ;;  %v30168_v5 = vand.u32 4294901760, %v25757_v44  ;;  %v30169_v12 = vld [vmem:[#allocation19_spill] sm:$0xff] }
 0x417   :  { %v16069_v52 = vpop.f32.mrb[47].mxu1  ;;  %19702 = vmatpush3.bf16.msra.mxu0 %v26014_v10  ;;  %v19733_v42 = vpack.c.bf16 %v9424_v13, %v9417_v28  ;;  %v30165_v28 = vld [vmem:[#allocation14_spill] sm:$0xff]  ;;  %v19755_v21 = vpack.c.bf16 %v30169_v12, %v25874_v37  ;;  %v30174_v13 = vld [vmem:[#allocation11_spill] sm:$0xff]  ;;  %v30182_v22 = vand.u32 4294901760, %v25665_v35  ;;  %v30185_v35 = vand.u32 4294901760, %v25726_v54 }
 0x418   :  { %v16070_v14 = vadd.f32 %v16069_v52, %v16068_v26  ;;  %19726 = vmatpush3.bf16.msra.mxu1 %v19725_v19  ;;  %19736 = vmatprep.subr.bf16.mxu0 %v19735_v36  ;;  %v19745_v19 = vpack.c.bf16 %v25775_v30, %v25773_v50  ;;  %v30170_v26 = vld [vmem:[#allocation20_spill] sm:$0xff] }
 0x419   :  { %19728 = vmatprep.subr.bf16.mxu1 %v19727_v43  ;;  %v19753_v43 = vpack.c.bf16 %v25867_v29, %v25847_v4 }
 0x41a   :  { %v7475_v2 = vadd.f32 %v16070_v14, %v7371_v51  ;;  %9309 = vmatmul.mubr.f32.vlgmr.msra.gmra.mrb[60].mxu0 %v9308_v34  ;;  %v19747_v51 = vpack.c.bf16 %v25798_v20, %v25794_v61  ;;  %v30171_v34 = vld [vmem:[#allocation15_spill] sm:$0xff] }
 0x41b   :  { %19738 = vmatpush3.bf16.msra.mxu0 %v19737_v11  ;;  %9676 = vmatprep.mubr.f32.mxu0 %v25757_v44  ;;  %v19757_v52 = vpack.c.bf16 %v30171_v34, %v25887_v59  ;;  %v30172_v11 = vld [vmem:[#allocation22_spill] sm:$0xff]  ;;  %v30173_v44 = vld [vmem:[#allocation24_spill] sm:$0xff] }
 0x41c   :  { %19730 = vmatpush3.bf16.msra.mxu1 %v19729_v24  ;;  %19740 = vmatprep.subr.bf16.mxu0 %v19739_v32  ;;  %v30164_v24 = vld [vmem:[#allocation18_spill] sm:$0xff]  ;;  %v19759_v32 = vpack.c.bf16 %v25912_v48, %v30173_v44 }
 0x41d   :  { %19732 = vmatprep.subr.bf16.mxu1 %v19731_v40  ;;  %v19749_v36 = vpack.c.bf16 %v30165_v28, %v30164_v24 }
 0x41f   :  { %19742 = vmatpush3.bf16.msra.mxu0 %v19741_v62 }
 0x420   :  { %19734 = vmatpush3.bf16.msra.mxu1 %v19733_v42  ;;  %19744 = vmatprep.subr.bf16.mxu0 %v19743_v60  ;;  %v19761_v42 = vpack.c.bf16 %v25948_v23, %v25941_v25  ;;  %v30175_v60 = vld [vmem:[#allocation17_spill] sm:$0xff] }
 0x421   :  { %19768 = vmatprep.subr.bf16.mxu1 %v25723_v45 }
 0x423   :  { %9541 = vmatmul.mubr.f32.vlgmr.msra.gmra.mrb[60].mxu1 %v25938_v15  ;;  %19746 = vmatpush3.bf16.msra.mxu0 %v19745_v19  ;;  %v19763_v19 = vpack.c.bf16 %v25957_v8, %v25954_v7 }
 0x424   :  { %19770 = vmatpush3.bf16.msra.mxu1 %v30166_v49  ;;  %19748 = vmatprep.subr.bf16.mxu0 %v19747_v51 }
 0x425   :  { %19772 = vmatprep.subr.bf16.mxu1 %v30167_v53  ;;  %9783 = vmatprep.mubr.f32.mxu1 %v30168_v5  ;;  %v30177_v5 = vld [vmem:[#allocation16_spill] sm:$0xff] }
 0x427   :  { %19750 = vmatpush3.bf16.msra.mxu0 %v19749_v36  ;;  %v30176_v36 = vld [vmem:[#allocation13_spill] sm:$0xff] }
 0x428   :  { %19774 = vmatpush3.bf16.msra.mxu1 %v25745_v63  ;;  %19752 = vmatprep.subr.bf16.mxu0 %v19751_v55  ;;  %v19765_v55 = vpack.c.bf16 %v25981_v9, %v25978_v31 }
 0x429   :  { %19776 = vmatprep.subr.bf16.mxu1 %v30170_v26 }
 0x42b   :  { %19754 = vmatpush3.bf16.msra.mxu0 %v19753_v43  ;;  %v30178_v43 = vand.u32 4294901760, %v25625_v39  ;;  %v30183_v39 = vand.u32 4294901760, %v25685_v56  ;;  %v30186_v56 = vand.u32 4294901760, %v25731_v27 }
 0x42c   :  { %19778 = vmatpush3.bf16.msra.mxu1 %v30172_v11  ;;  %19756 = vmatprep.subr.bf16.mxu0 %v19755_v21  ;;  %v30179_v21 = vand.u32 4294901760, %v25629_v47  ;;  %v30184_v47 = vand.u32 4294901760, %v25688_v1  ;;  %v30187_v1 = vld [vmem:[#allocation23_spill] sm:$0xff] }
 0x42d   :  { %v16103_v14 = vpop.f32.mrb[48].mxu0  ;;  %19780 = vmatprep.subr.bf16.mxu1 %v30174_v13 }
 0x42e   :  { %v16104_v40 = vpop.f32.mrb[49].mxu0 }
 0x42f   :  { %v16105_v62 = vadd.f32 %v16104_v40, %v16103_v14  ;;  %19758 = vmatpush3.bf16.msra.mxu0 %v19757_v52  ;;  %v19799_v52 = vpack.c.bf16 %v30179_v21, %v30178_v43  ;;  %v30180_v14 = vld [vmem:[#allocation25_spill] sm:$0xff]  ;;  %v19803_v43 = vpack.c.bf16 %v30184_v47, %v30183_v39  ;;  %v30193_v47 = vand.u32 4294901760, %v25798_v20 }
 0x430   :  { %19782 = vmatpush3.bf16.msra.mxu1 %v30175_v60  ;;  %19760 = vmatprep.subr.bf16.mxu0 %v19759_v32  ;;  %v26075_v32 = vld [vmem:[#allocation5 + $0xb80] sm:$0xff]  ;;  %v30194_v20 = vand.u32 4294901760, %v30164_v24 }
 0x431   :  { %v7587_v51 = vadd.f32 %v16105_v62, %v7475_v2  ;;  %19784 = vmatprep.subr.bf16.mxu1 %v30176_v36  ;;  %v26077_v2 = vld [vmem:[#allocation5 + $0xb88] sm:$0xff]  ;;  %v10113_v21 = vand.u32 4294901760, %v26075_v32 }
 0x433   :  { %19762 = vmatpush3.bf16.msra.mxu0 %v19761_v42  ;;  %v30181_v42 = vand.u32 4294901760, %v25653_v33  ;;  %v26094_v33 = vld [vmem:[#allocation5 + $0xb00] sm:$0xff] }
 0x434   :  { %19786 = vmatpush3.bf16.msra.mxu1 %v30177_v5  ;;  %19764 = vmatprep.subr.bf16.mxu0 %v19763_v19  ;;  %v29147_v27 = vand.u32 4294901760, %v26094_v33 }
 0x435   :  { %19788 = vmatprep.subr.bf16.mxu1 %v30180_v14  ;;  %v19801_v6 = vpack.c.bf16 %v30182_v22, %v30181_v42  ;;  %v19805_v22 = vpack.c.bf16 %v30186_v56, %v30185_v35  ;;  %v26109_v42 = vsub.f32 %v26075_v32, %v10113_v21 }
 0x436   :  { %v16138_v40 = vpop.f32.mrb[48].mxu1 }
 0x437   :  { %v16139_v62 = vpop.f32.mrb[49].mxu1  ;;  %19766 = vmatpush3.bf16.msra.mxu0 %v19765_v55  ;;  %v10116_v55 = vand.u32 4294901760, %v26077_v2 }
 0x438   :  { %v16140_v19 = vadd.f32 %v16139_v62, %v16138_v40  ;;  %19790 = vmatpush3.bf16.msra.mxu1 %v25885_v57  ;;  %19800 = vmatprep.subr.bf16.mxu0 %v19799_v52  ;;  %v26101_v52 = vld [vmem:[#allocation5 + $0xb08] sm:$0xff]  ;;  %v30189_v40 = vand.u32 4294901760, %v25754_v17  ;;  %v30191_v17 = vand.u32 4294901760, %v25775_v30  ;;  %v425_v30 = vld [vmem:[#allocation5 + $0xb18] sm:$0xff] }
 0x439   :  { %19792 = vmatprep.subr.bf16.mxu1 %v25906_v0  ;;  %v26113_v54 = vsub.f32 %v26077_v2, %v10116_v55  ;;  %v10068_v39 = vand.u32 4294901760, %v26101_v52  ;;  %v30192_v2 = vand.u32 4294901760, %v25794_v61  ;;  %v30200_v61 = vand.u32 4294901760, %v25867_v29 }
 0x43a   :  { %v26091_v16 = vadd.f32 %v16140_v19, %v7587_v51  ;;  %9679 = vmatmul.mubr.f32.vlgmr.msra.gmra.mrb[62].mxu0 %v25961_v46  ;;  %v30188_v51 = vand.u32 4294901760, %v25752_v3  ;;  %v26118_v19 = vld [vmem:[#allocation5 + $0xb98] sm:$0xff]  ;;  %v30190_v3 = vand.u32 4294901760, %v25773_v50  ;;  %v26137_v50 = vsub.f32 %v26094_v33, %v29147_v27 }
 0x43b   :  { %19802 = vmatpush3.bf16.msra.mxu0 %v19801_v6  ;;  %9953 = vmatprep.mubr.f32.mxu0 %v30187_v1  ;;  %v26116_v6 = vld [vmem:[#allocation5 + $0xb90] sm:$0xff]  ;;  %v10122_v56 = vand.u32 4294901760, %v26118_v19  ;;  %v30199_v27 = vand.u32 4294901760, %v25847_v4 }
 0x43c   :  { %19794 = vmatpush3.bf16.msra.mxu1 %v25964_v18  ;;  %19804 = vmatprep.subr.bf16.mxu0 %v19803_v43  ;;  %v19807_v62 = vpack.c.bf16 %v30189_v40, %v30188_v51  ;;  %v19809_v32 = vpack.c.bf16 %v30191_v17, %v30190_v3  ;;  %v19811_v43 = vpack.c.bf16 %v30193_v47, %v30192_v2  ;;  %v10119_v35 = vand.u32 4294901760, %v26116_v6  ;;  %v424_v51 = vld [vmem:[#allocation5 + $0xb10] sm:$0xff] }
 0x43d   :  { %19796 = vmatprep.subr.bf16.mxu1 %v25990_v38  ;;  %v30195_v40 = vand.u32 4294901760, %v30165_v28  ;;  %v30196_v3 = vand.u32 4294901760, %v25821_v41  ;;  %v30197_v17 = vand.u32 4294901760, %v25842_v58  ;;  %v30198_v47 = vand.u32 4294901760, %v25961_v46  ;;  %v442_v46 = vld [vmem:[#allocation5 + $0xba0] sm:$0xff] }
 0x43e   :  { %v19817_v24 = vpack.c.bf16 %v30200_v61, %v30199_v27  ;;  %v30201_v28 = vand.u32 4294901760, %v25874_v37  ;;  %v30203_v58 = vand.u32 4294901760, %v25887_v59  ;;  %v26169_v4 = vsub.f32 %v26116_v6, %v10119_v35 }
 0x43f   :  { %19806 = vmatpush3.bf16.msra.mxu0 %v19805_v22  ;;  %v29152_v22 = vand.u32 4294901760, %v26109_v42  ;;  %v19815_v2 = vpack.c.bf16 %v30197_v17, %v30196_v3  ;;  %v10071_v3 = vand.u32 4294901760, %v424_v51  ;;  %v26172_v29 = vsub.f32 %v26118_v19, %v10122_v56 }
 0x440   :  { %19798 = vmatpush3.bf16.msra.mxu1 %v26014_v10  ;;  %19808 = vmatprep.subr.bf16.mxu0 %v19807_v62  ;;  %v19813_v62 = vpack.c.bf16 %v30195_v40, %v30194_v20  ;;  %v30202_v20 = vand.u32 4294901760, %v30169_v12  ;;  %v30204_v40 = vand.u32 4294901760, %v30171_v34  ;;  %v10074_v37 = vand.u32 4294901760, %v425_v30  ;;  %v443_v12 = vld [vmem:[#allocation5 + $0xba8] sm:$0xff]  ;;  %v61_v34 = vld [vmem:[#allocation2 + $0xb8] sm:$0xff] }
 0x441   :  { %19832 = vmatprep.subr.bf16.mxu1 %v25723_v45  ;;  %v26149_v45 = vsub.f32 %v26101_v52, %v10068_v39  ;;  %v10292_v59 = vsub.f32 %v26109_v42, %v29152_v22  ;;  %v30205_v27 = vand.u32 4294901760, %v30173_v44  ;;  %v30207_v6 = vand.u32 4294901760, %v25941_v25 }
 0x442   :  { %v19819_v41 = vpack.c.bf16 %v30202_v20, %v30201_v28  ;;  %v26165_v52 = vpack.c.bf16 %v30204_v40, %v30203_v58  ;;  %v30208_v19 = vand.u32 4294901760, %v25948_v23  ;;  %v30209_v61 = vand.u32 4294901760, %v26113_v54  ;;  %v427_v58 = vld [vmem:[#allocation5 + $0xb28] sm:$0xff] }
 0x443   :  { %9787 = vmatmul.mubr.f32.vlgmr.msra.gmra.mrb[62].mxu1 %v30198_v47  ;;  %19810 = vmatpush3.bf16.msra.mxu0 %v19809_v32  ;;  %v30210_v44 = vand.u32 4294901760, %v25954_v7  ;;  %v30212_v25 = vand.u32 4294901760, %v25978_v31  ;;  %v30213_v23 = vand.u32 4294901760, %v25981_v9  ;;  %v26207_v20 = vpack.c.bf16 %v10116_v55, %v10113_v21 }
 0x444   :  { %19834 = vmatpush3.bf16.msra.mxu1 %v30166_v49  ;;  %19812 = vmatprep.subr.bf16.mxu0 %v19811_v43  ;;  %v30206_v49 = vand.u32 4294901760, %v25912_v48  ;;  %v26188_v43 = vpack.c.bf16 %v30208_v19, %v30207_v6  ;;  %v10299_v17 = vsub.f32 %v26113_v54, %v30209_v61  ;;  %v30211_v48 = vand.u32 4294901760, %v25957_v8 }
 0x445   :  { %19836 = vmatprep.subr.bf16.mxu1 %v30167_v53  ;;  %10057 = vmatprep.mubr.f32.mxu1 %v30187_v1  ;;  %v29151_v53 = vand.u32 4294901760, %v26137_v50  ;;  %v26205_v28 = vpack.c.bf16 %v30213_v23, %v30212_v25  ;;  %v426_v1 = vld [vmem:[#allocation5 + $0xb20] sm:$0xff]  ;;  %v29150_v40 = vand.u32 4294901760, %v26149_v45  ;;  %v10125_v7 = vand.u32 4294901760, %v442_v46  ;;  %v445_v25 = vld [vmem:[#allocation5 + $0xbb8] sm:$0xff] }
 0x446   :  { %v26182_v32 = vpack.c.bf16 %v30206_v49, %v30205_v27  ;;  %v26199_v47 = vpack.c.bf16 %v30211_v48, %v30210_v44  ;;  %v26210_v27 = vsub.f32 %v424_v51, %v10071_v3  ;;  %v10128_v49 = vand.u32 4294901760, %v443_v12  ;;  %v444_v48 = vld [vmem:[#allocation5 + $0xbb0] sm:$0xff] }
 0x447   :  { %19814 = vmatpush3.bf16.msra.mxu0 %v19813_v62  ;;  %v26212_v8 = vand.u32 4294901760, %v61_v34  ;;  %v26215_v31 = vsub.f32 %v425_v30, %v10074_v37  ;;  %v10293_v9 = vand.u32 4294901760, %v10292_v59  ;;  %v29149_v21 = vand.u32 4294901760, %v26169_v4 }
 0x448   :  { %19838 = vmatpush3.bf16.msra.mxu1 %v25745_v63  ;;  %19816 = vmatprep.subr.bf16.mxu0 %v19815_v2  ;;  %v29148_v55 = vand.u32 4294901760, %v26172_v29  ;;  %v10300_v6 = vand.u32 4294901760, %v10299_v17  ;;  %v10077_v62 = vand.u32 4294901760, %v426_v1  ;;  %v10080_v51 = vand.u32 4294901760, %v427_v58 }
 0x449   :  { %30214 = vst [vmem:[#allocation18_spill] sm:$0xff] %v26212_v8  ;;  %19840 = vmatprep.subr.bf16.mxu1 %v30170_v26  ;;  %v10180_v19 = vsub.f32 %v26137_v50, %v29151_v53  ;;  %v30215_v61 = vand.u32 4294901760, %v26094_v33  ;;  %v26227_v30 = vpack.c.bf16 %v10122_v56, %v10119_v35  ;;  %v26229_v2 = vpack.c.bf16 %v10074_v37, %v10071_v3  ;;  %v428_v56 = vld [vmem:[#allocation5 + $0xb30] sm:$0xff] }
 0x44a   :  { %v10187_v59 = vsub.f32 %v26149_v45, %v29150_v40  ;;  %v26234_v26 = vpack.c.bf16 %v10128_v49, %v10125_v7  ;;  %v26236_v17 = vsub.f32 %v442_v46, %v10125_v7  ;;  %v26238_v44 = vsub.f32 %v443_v12, %v10128_v49  ;;  %v447_v40 = vld [vmem:[#allocation5 + $0xbc8] sm:$0xff] }
 0x44b   :  { %v26225_v63 = vpack.c.bf16 %v10068_v39, %v30215_v61  ;;  %30217 = vst [vmem:[#allocation12_spill] sm:$0xff] %v26227_v30  ;;  %19818 = vmatpush3.bf16.msra.mxu0 %v19817_v24  ;;  %v26241_v33 = vsub.f32 %v61_v34, %v26212_v8  ;;  %v10306_v39 = vsub.f32 %v26169_v4, %v29149_v21  ;;  %v429_v24 = vld [vmem:[#allocation5 + $0xb38] sm:$0xff]  ;;  %v29154_v3 = vand.u32 4294901760, %v26210_v27  ;;  %v446_v21 = vld [vmem:[#allocation5 + $0xbc0] sm:$0xff] }
 0x44c   :  { %30218 = vst [vmem:[#allocation21_spill] sm:$0xff] %v26234_v26  ;;  %19842 = vmatpush3.bf16.msra.mxu1 %v30172_v11  ;;  %19820 = vmatprep.subr.bf16.mxu0 %v19819_v41  ;;  %v10313_v35 = vsub.f32 %v26172_v29, %v29148_v55  ;;  %v29153_v37 = vand.u32 4294901760, %v26215_v31  ;;  %v26253_v12 = vpack.c.bf16 %v10300_v6, %v10293_v9  ;;  %v10181_v34 = vand.u32 4294901760, %v10180_v19 }
 0x44d   :  { %30216 = vst [vmem:[#allocation14_spill] sm:$0xff] %v26225_v63  ;;  %v16173_v46 = vpop.f32.mrb[50].mxu0  ;;  %19844 = vmatprep.subr.bf16.mxu1 %v30174_v13  ;;  %v26255_v11 = vpack.c.bf16 %v10080_v51, %v10077_v62  ;;  %v26257_v41 = vsub.f32 %v426_v1, %v10077_v62  ;;  %v26259_v7 = vsub.f32 %v427_v58, %v10080_v51  ;;  %v10188_v49 = vand.u32 4294901760, %v10187_v59 }
 0x44e   :  { %v16174_v23 = vpop.f32.mrb[51].mxu0  ;;  %v10131_v61 = vand.u32 4294901760, %v444_v48  ;;  %v10134_v55 = vand.u32 4294901760, %v445_v25  ;;  %v10083_v22 = vand.u32 4294901760, %v428_v56  ;;  %v10086_v13 = vand.u32 4294901760, %v429_v24 }
 0x44f   :  { %30219 = vst [vmem:[#allocation19_spill] sm:$0xff] %v26255_v11  ;;  %v16175_v53 = vadd.f32 %v16174_v23, %v16173_v46  ;;  %19822 = vmatpush3.bf16.msra.mxu0 %v26165_v52  ;;  %v29158_v9 = vand.u32 4294901760, %v26241_v33  ;;  %v10307_v1 = vand.u32 4294901760, %v10306_v39  ;;  %v10314_v6 = vand.u32 4294901760, %v10313_v35 }
 0x450   :  { %19846 = vmatpush3.bf16.msra.mxu1 %v30175_v60  ;;  %19824 = vmatprep.subr.bf16.mxu0 %v26182_v32  ;;  %v10194_v58 = vsub.f32 %v26210_v27, %v29154_v3  ;;  %v10201_v62 = vsub.f32 %v26215_v31, %v29153_v37  ;;  %v10137_v51 = vand.u32 4294901760, %v446_v21  ;;  %v10140_v19 = vand.u32 4294901760, %v447_v40 }
 0x451   :  { %v7957_v52 = vadd.f32 %v16175_v53, %v26091_v16  ;;  %19848 = vmatprep.subr.bf16.mxu1 %v30176_v36  ;;  %v29156_v60 = vand.u32 4294901760, %v26236_v17  ;;  %v26274_v59 = vpack.c.bf16 %v10188_v49, %v10181_v34  ;;  %v26276_v32 = vpack.c.bf16 %v10134_v55, %v10131_v61  ;;  %v430_v16 = vld [vmem:[#allocation5 + $0xb40] sm:$0xff]  ;;  %v431_v36 = vld [vmem:[#allocation5 + $0xb48] sm:$0xff] }
 0x452   :  { %v26278_v39 = vsub.f32 %v444_v48, %v10131_v61  ;;  %v29155_v35 = vand.u32 4294901760, %v26238_v44  ;;  %v26282_v46 = vsub.f32 %v445_v25, %v10134_v55  ;;  %v26284_v23 = vpack.c.bf16 %v10086_v13, %v10083_v22 }
 0x453   :  { %30220 = vst [vmem:[#allocation20_spill] sm:$0xff] %v26276_v32  ;;  %19826 = vmatpush3.bf16.msra.mxu0 %v26188_v43  ;;  %v29157_v53 = vand.u32 4294901760, %v26257_v41  ;;  %v10163_v34 = vsub.f32 %v26241_v33, %v29158_v9  ;;  %v26292_v48 = vsub.f32 %v428_v56, %v10083_v22  ;;  %v26294_v49 = vsub.f32 %v429_v24, %v10086_v13  ;;  %v448_v13 = vld [vmem:[#allocation5 + $0xbd0] sm:$0xff] }
 0x454   :  { %30221 = vst [vmem:[#allocation15_spill] sm:$0xff] %v26284_v23  ;;  %19850 = vmatpush3.bf16.msra.mxu1 %v30177_v5  ;;  %19828 = vmatprep.subr.bf16.mxu0 %v26199_v47  ;;  %v10195_v43 = vand.u32 4294901760, %v10194_v58  ;;  %v29159_v55 = vand.u32 4294901760, %v26259_v7  ;;  %v26298_v25 = vpack.c.bf16 %v10314_v6, %v10307_v1  ;;  %v10202_v61 = vand.u32 4294901760, %v10201_v62  ;;  %v449_v6 = vld [vmem:[#allocation5 + $0xbd8] sm:$0xff]  ;;  %v432_v58 = vld [vmem:[#allocation5 + $0xb50] sm:$0xff] }
 0x455   :  { %30222 = vst [vmem:[#allocation22_spill] sm:$0xff] %v26292_v48  ;;  %30223 = vst [vmem:[#allocation24_spill] sm:$0xff] %v26294_v49  ;;  %19852 = vmatprep.subr.bf16.mxu1 %v30180_v14  ;;  %v26300_v37 = vpack.c.bf16 %v10140_v19, %v10137_v51  ;;  %v10320_v5 = vsub.f32 %v26236_v17, %v29156_v60  ;;  %v26305_v47 = vsub.f32 %v446_v21, %v10137_v51 }
 0x456   :  { %v16208_v3 = vpop.f32.mrb[50].mxu1  ;;  %v10327_v22 = vsub.f32 %v26238_v44, %v29155_v35  ;;  %v10089_v56 = vand.u32 4294901760, %v430_v16  ;;  %v10092_v24 = vand.u32 4294901760, %v431_v36  ;;  %v10208_v1 = vsub.f32 %v26257_v41, %v29157_v53 }
 0x457   :  { %30224 = vst [vmem:[#allocation11_spill] sm:$0xff] %v26300_v37  ;;  %v16209_v14 = vpop.f32.mrb[51].mxu1  ;;  %19830 = vmatpush3.bf16.msra.mxu0 %v26205_v28  ;;  %v10164_v62 = vand.u32 4294901760, %v10163_v34  ;;  %v10215_v35 = vsub.f32 %v26259_v7, %v29159_v55  ;;  %v26324_v53 = vpack.c.bf16 %v10202_v61, %v10195_v43  ;;  %v26326_v9 = vsub.f32 %v447_v40, %v10140_v19  ;;  %v433_v28 = vld [vmem:[#allocation5 + $0xb58] sm:$0xff] }
 0x458   :  { %v16210_v51 = vadd.f32 %v16209_v14, %v16208_v3  ;;  %19854 = vmatpush3.bf16.msra.mxu1 %v25885_v57  ;;  %19864 = vmatprep.subr.bf16.mxu0 %v26207_v20  ;;  %v10321_v34 = vand.u32 4294901760, %v10320_v5  ;;  %v10143_v3 = vand.u32 4294901760, %v448_v13  ;;  %v10328_v57 = vand.u32 4294901760, %v10327_v22 }
 0x459   :  { %19856 = vmatprep.subr.bf16.mxu1 %v25906_v0  ;;  %v26331_v21 = vsub.f32 %v430_v16, %v10089_v56  ;;  %v10146_v55 = vand.u32 4294901760, %v449_v6  ;;  %v26334_v60 = vpack.c.bf16 %v10092_v24, %v10089_v56  ;;  %v30226_v0 = vand.u32 4294901760, %v26278_v39 }
 0x45a   :  { %v26328_v14 = vadd.f32 %v16210_v51, %v7957_v52  ;;  %9955 = vmatmul.mubr.f32.vlgmr.msra.gmra.mrb[64].mxu0 %v25938_v15  ;;  %v30227_v19 = vand.u32 4294901760, %v26282_v46  ;;  %v10209_v16 = vand.u32 4294901760, %v10208_v1  ;;  %v10216_v43 = vand.u32 4294901760, %v10215_v35  ;;  %v450_v51 = vld [vmem:[#allocation5 + $0xbe0] sm:$0xff] }
 0x45b   :  { %19866 = vmatpush3.bf16.msra.mxu0 %v26225_v63  ;;  %30225 = vst [vmem:[#allocation17_spill] sm:$0xff] %v26334_v60  ;;  %v10334_v40 = vsub.f32 %v26278_v39, %v30226_v0  ;;  %10165 = vmatprep.mubr.f32.mxu0 %v10164_v62  ;;  %v30228_v61 = vand.u32 4294901760, %v26292_v48  ;;  %v30229_v22 = vand.u32 4294901760, %v26294_v49  ;;  %v451_v0 = vld [vmem:[#allocation5 + $0xbe8] sm:$0xff]  ;;  %v10095_v62 = vand.u32 4294901760, %v432_v58 }
 0x45c   :  { %v10341_v52 = vsub.f32 %v26282_v46, %v30227_v19  ;;  %19858 = vmatpush3.bf16.msra.mxu1 %v25964_v18  ;;  %19868 = vmatprep.subr.bf16.mxu0 %v26227_v30  ;;  %v26351_v19 = vsub.f32 %v431_v36, %v10092_v24  ;;  %v10098_v18 = vand.u32 4294901760, %v433_v28  ;;  %v29168_v30 = vand.u32 4294901760, %v26305_v47 }
 0x45d   :  { %v10222_v5 = vsub.f32 %v26292_v48, %v30228_v61  ;;  %v10229_v56 = vsub.f32 %v26294_v49, %v30229_v22  ;;  %19860 = vmatprep.subr.bf16.mxu1 %v25990_v38  ;;  %v26354_v1 = vpack.c.bf16 %v10328_v57, %v10321_v34  ;;  %v26356_v35 = vpack.c.bf16 %v10146_v55, %v10143_v3 }
 0x45e   :  { %v26358_v63 = vsub.f32 %v448_v13, %v10143_v3  ;;  %v26360_v61 = vsub.f32 %v449_v6, %v10146_v55  ;;  %v10335_v22 = vand.u32 4294901760, %v10334_v40  ;;  %v10342_v49 = vand.u32 4294901760, %v10341_v52  ;;  %v434_v13 = vld [vmem:[#allocation5 + $0xb60] sm:$0xff] }
 0x45f   :  { %30230 = vst [vmem:[#allocation13_spill] sm:$0xff] %v26356_v35  ;;  %19870 = vmatpush3.bf16.msra.mxu0 %v26229_v2  ;;  %v10149_v48 = vand.u32 4294901760, %v450_v51  ;;  %v10152_v38 = vand.u32 4294901760, %v451_v0  ;;  %v26365_v36 = vpack.c.bf16 %v10216_v43, %v10209_v16  ;;  %v10223_v24 = vand.u32 4294901760, %v10222_v5  ;;  %v26382_v43 = vld [vmem:[#allocation5 + $0xbf0] sm:$0xff]  ;;  %v26384_v5 = vld [vmem:[#allocation5 + $0xbf8] sm:$0xff] }
 0x460   :  { %30231 = vst [vmem:[#allocation16_spill] sm:$0xff] %v26360_v61  ;;  %19862 = vmatpush3.bf16.msra.mxu1 %v26014_v10  ;;  %19872 = vmatprep.subr.bf16.mxu0 %v26234_v26  ;;  %v10230_v34 = vand.u32 4294901760, %v10229_v56  ;;  %v29169_v57 = vand.u32 4294901760, %v26326_v9  ;;  %v26369_v55 = vpack.c.bf16 %v10098_v18, %v10095_v62  ;;  %v26371_v6 = vsub.f32 %v432_v58, %v10095_v62  ;;  %v435_v10 = vld [vmem:[#allocation5 + $0xb68] sm:$0xff] }
 0x461   :  { %19896 = vmatprep.subr.bf16.mxu1 %v26253_v12  ;;  %v26376_v3 = vsub.f32 %v26305_v47, %v29168_v30  ;;  %v26379_v52 = vsub.f32 %v433_v28, %v10098_v18  ;;  %v29176_v12 = vand.u32 4294901760, %v26358_v63  ;;  %v19907_v56 = vpack.c.bf16 %v10342_v49, %v10335_v22  ;;  %v60_v18 = vld [vmem:[#allocation2 + $0xb0] sm:$0xff] }
 0x462   :  { %v26390_v62 = vpack.c.bf16 %v10152_v38, %v10149_v48  ;;  %v26392_v30 = vsub.f32 %v450_v51, %v10149_v48  ;;  %v10101_v28 = vand.u32 4294901760, %v434_v13  ;;  %v19909_v16 = vpack.c.bf16 %v10230_v34, %v10223_v24  ;;  %v26408_v24 = vld [vmem:[#allocation5 + $0xb70] sm:$0xff] }
 0x463   :  { %30232 = vst [vmem:[#allocation25_spill] sm:$0xff] %v26379_v52  ;;  %10059 = vmatmul.mubr.f32.vlgmr.msra.gmra.mrb[64].mxu1 %v25938_v15  ;;  %19874 = vmatpush3.bf16.msra.mxu0 %v26255_v11  ;;  %v26396_v40 = vsub.f32 %v451_v0, %v10152_v38  ;;  %v10355_v15 = vsub.f32 %v26326_v9, %v29169_v57  ;;  %v10104_v58 = vand.u32 4294901760, %v435_v10  ;;  %v10349_v49 = vand.u32 4294901760, %v26376_v3  ;;  %v26410_v0 = vld [vmem:[#allocation5 + $0xb78] sm:$0xff] }
 0x464   :  { %30233 = vst [vmem:[#allocation23_spill] sm:$0xff] %v26392_v30  ;;  %19898 = vmatpush3.bf16.msra.mxu1 %v26274_v59  ;;  %19876 = vmatprep.subr.bf16.mxu0 %v26276_v32  ;;  %v30234_v48 = vand.u32 4294901760, %v26331_v21  ;;  %v10155_v59 = vand.u32 4294901760, %v26382_v43  ;;  %v10158_v22 = vand.u32 4294901760, %v26384_v5  ;;  %v30235_v38 = vand.u32 4294901760, %v26351_v19 }
 0x465   :  { %19900 = vmatprep.subr.bf16.mxu1 %v26298_v25  ;;  %10401 = vmatprep.mubr.f32.mxu1 %v26212_v8  ;;  %v10362_v34 = vsub.f32 %v26358_v63, %v29176_v12  ;;  %v30236_v3 = vand.u32 4294901760, %v26360_v61  ;;  %v26422_v57 = vand.u32 4294901760, %v60_v18  ;;  %v26425_v32 = vsub.f32 %v434_v13, %v10101_v28 }
 0x466   :  { %v10236_v51 = vsub.f32 %v26331_v21, %v30234_v48  ;;  %v10243_v25 = vsub.f32 %v26351_v19, %v30235_v38  ;;  %v10356_v12 = vand.u32 4294901760, %v10355_v15  ;;  %v26432_v26 = vsub.f32 %v435_v10, %v10104_v58 }
 0x467   :  { %v10369_v48 = vsub.f32 %v26360_v61, %v30236_v3  ;;  %19878 = vmatpush3.bf16.msra.mxu0 %v26284_v23  ;;  %v10107_v3 = vand.u32 4294901760, %v26408_v24  ;;  %v10110_v61 = vand.u32 4294901760, %v26410_v0  ;;  %v26438_v8 = vsub.f32 %v26382_v43, %v10155_v59 }
 0x468   :  { %19902 = vmatpush3.bf16.msra.mxu1 %v26324_v53  ;;  %19880 = vmatprep.subr.bf16.mxu0 %v26300_v37  ;;  %v10237_v13 = vand.u32 4294901760, %v10236_v51  ;;  %v26441_v11 = vsub.f32 %v26384_v5, %v10158_v22  ;;  %v10244_v38 = vand.u32 4294901760, %v10243_v25  ;;  %v10363_v37 = vand.u32 4294901760, %v10362_v34 }
 0x469   :  { %19904 = vmatprep.subr.bf16.mxu1 %v26354_v1  ;;  %v10370_v15 = vand.u32 4294901760, %v10369_v48  ;;  %v26445_v10 = vsub.f32 %v60_v18, %v26422_v57  ;;  %v26448_v23 = vpack.c.bf16 %v10104_v58, %v10101_v28  ;;  %v30237_v1 = vand.u32 4294901760, %v26371_v6 }
 0x46a   :  { %v30238_v51 = vand.u32 4294901760, %v26379_v52  ;;  %v30239_v53 = vand.u32 4294901760, %v26392_v30  ;;  %v26462_v18 = vsub.f32 %v26408_v24, %v10107_v3  ;;  %v26465_v58 = vsub.f32 %v26410_v0, %v10110_v61 }
 0x46b   :  { %19882 = vmatpush3.bf16.msra.mxu0 %v26334_v60  ;;  %v10250_v43 = vsub.f32 %v26371_v6, %v30237_v1  ;;  %v29196_v34 = vand.u32 4294901760, %v26432_v26  ;;  %v19911_v1 = vpack.c.bf16 %v10356_v12, %v10349_v49  ;;  %v19913_v60 = vpack.c.bf16 %v10244_v38, %v10237_v13 }
 0x46c   :  { %v10257_v5 = vsub.f32 %v26379_v52, %v30238_v51  ;;  %v10376_v25 = vsub.f32 %v26392_v30, %v30239_v53  ;;  %19906 = vmatpush3.bf16.msra.mxu1 %v26365_v36  ;;  %19884 = vmatprep.subr.bf16.mxu0 %v26356_v35  ;;  %v30240_v51 = vand.u32 4294901760, %v26396_v40  ;;  %v29195_v36 = vand.u32 4294901760, %v26438_v8 }
 0x46d   :  { %v16243_v48 = vpop.f32.mrb[52].mxu0  ;;  %19908 = vmatprep.subr.bf16.mxu1 %v19907_v56  ;;  %v26474_v30 = vpack.c.bf16 %v10158_v22, %v10155_v59  ;;  %v19915_v0 = vpack.c.bf16 %v10370_v15, %v10363_v37  ;;  %v29197_v28 = vand.u32 4294901760, %v26445_v10  ;;  %v10251_v56 = vand.u32 4294901760, %v10250_v43 }
 0x46e   :  { %v10383_v53 = vsub.f32 %v26396_v40, %v30240_v51  ;;  %v16244_v24 = vpop.f32.mrb[53].mxu0  ;;  %v10258_v12 = vand.u32 4294901760, %v10257_v5  ;;  %v10377_v49 = vand.u32 4294901760, %v10376_v25  ;;  %v30241_v51 = vand.u32 4294901760, %v26425_v32 }
 0x46f   :  { %v16245_v52 = vadd.f32 %v16244_v24, %v16243_v48  ;;  %19886 = vmatpush3.bf16.msra.mxu0 %v26369_v55  ;;  %v10271_v59 = vsub.f32 %v26432_v26, %v29196_v34  ;;  %v29193_v37 = vand.u32 4294901760, %v26462_v18  ;;  %v29194_v22 = vand.u32 4294901760, %v26465_v58 }
 0x470   :  { %19910 = vmatpush3.bf16.msra.mxu1 %v19909_v16  ;;  %19888 = vmatprep.subr.bf16.mxu0 %v26390_v62  ;;  %v10264_v35 = vsub.f32 %v26425_v32, %v30241_v51  ;;  %v10384_v13 = vand.u32 4294901760, %v10383_v53  ;;  %v10390_v16 = vsub.f32 %v26438_v8, %v29195_v36  ;;  %v30242_v15 = vand.u32 4294901760, %v26441_v11 }
 0x471   :  { %v8233_v38 = vadd.f32 %v16245_v52, %v26328_v14  ;;  %19912 = vmatprep.subr.bf16.mxu1 %v19911_v1  ;;  %v10169_v5 = vsub.f32 %v26445_v10, %v29197_v28  ;;  %v26498_v25 = vpack.c.bf16 %v10110_v61, %v10107_v3  ;;  %v19917_v48 = vpack.c.bf16 %v10258_v12, %v10251_v56 }
 0x472   :  { %v10397_v43 = vsub.f32 %v26441_v11, %v30242_v15  ;;  %v19927_v14 = vpack.c.bf16 %v26113_v54, %v26109_v42  ;;  %v10265_v52 = vand.u32 4294901760, %v10264_v35  ;;  %v10272_v1 = vand.u32 4294901760, %v10271_v59 }
 0x473   :  { %19890 = vmatpush3.bf16.msra.mxu0 %v26448_v23  ;;  %v10278_v53 = vsub.f32 %v26462_v18, %v29193_v37  ;;  %v10285_v24 = vsub.f32 %v26465_v58, %v29194_v22  ;;  %v19919_v61 = vpack.c.bf16 %v10384_v13, %v10377_v49  ;;  %v10391_v3 = vand.u32 4294901760, %v10390_v16 }
 0x474   :  { %19914 = vmatpush3.bf16.msra.mxu1 %v19913_v60  ;;  %19892 = vmatprep.subr.bf16.mxu0 %v26474_v30  ;;  %v10398_v56 = vand.u32 4294901760, %v10397_v43  ;;  %v10170_v51 = vand.u32 4294901760, %v10169_v5  ;;  %v19929_v60 = vpack.c.bf16 %v26149_v45, %v26137_v50  ;;  %v19931_v35 = vpack.c.bf16 %v26172_v29, %v26169_v4 }
 0x475   :  { %19916 = vmatprep.subr.bf16.mxu1 %v19915_v0  ;;  %v19921_v37 = vpack.c.bf16 %v10272_v1, %v10265_v52  ;;  %v10279_v22 = vand.u32 4294901760, %v10278_v53  ;;  %v10286_v0 = vand.u32 4294901760, %v10285_v24  ;;  %v19933_v16 = vpack.c.bf16 %v26215_v31, %v26210_v27  ;;  %v30245_v52 = vld [vmem:[#allocation14_spill] sm:$0xff]  ;;  %v30246_v53 = vld [vmem:[#allocation12_spill] sm:$0xff] }
 0x476   :  { %v16278_v12 = vpop.f32.mrb[52].mxu1  ;;  %v19923_v49 = vpack.c.bf16 %v10398_v56, %v10391_v3  ;;  %v19935_v5 = vpack.c.bf16 %v26238_v44, %v26236_v17  ;;  %v19943_v1 = vpack.c.bf16 %v26326_v9, %v26305_v47  ;;  %v30247_v24 = vand.u32 4294901760, %v26241_v33  ;;  %v30248_v3 = vld [vmem:[#allocation16_spill] sm:$0xff] }
 0x477   :  { %v16279_v15 = vpop.f32.mrb[53].mxu1  ;;  %19894 = vmatpush3.bf16.msra.mxu0 %v26498_v25  ;;  %v19925_v43 = vpack.c.bf16 %v10286_v0, %v10279_v22  ;;  %v30244_v22 = vld [vmem:[#allocation24_spill] sm:$0xff]  ;;  %v19947_v56 = vpack.c.bf16 %v30248_v3, %v26358_v63  ;;  %v30261_v36 = vand.u32 4294901760, %v26149_v45  ;;  %v30264_v45 = vand.u32 4294901760, %v26210_v27 }
 0x478   :  { %v16280_v59 = vadd.f32 %v16279_v15, %v16278_v12  ;;  %19918 = vmatpush3.bf16.msra.mxu1 %v19917_v48  ;;  %19928 = vmatprep.subr.bf16.mxu0 %v19927_v14  ;;  %v19937_v48 = vpack.c.bf16 %v26259_v7, %v26257_v41  ;;  %v30249_v12 = vld [vmem:[#allocation21_spill] sm:$0xff]  ;;  %v30253_v0 = vld [vmem:[#allocation20_spill] sm:$0xff] }
 0x479   :  { %19920 = vmatprep.subr.bf16.mxu1 %v19919_v61  ;;  %v19945_v61 = vpack.c.bf16 %v26351_v19, %v26331_v21 }
 0x47a   :  { %v8337_v13 = vadd.f32 %v16280_v59, %v8233_v38  ;;  %10171 = vmatmul.mubr.f32.vlgmr.msra.gmra.mrb[66].mxu0 %v10170_v51  ;;  %v19939_v38 = vpack.c.bf16 %v26282_v46, %v26278_v39  ;;  %v30250_v51 = vld [vmem:[#allocation25_spill] sm:$0xff] }
 0x47b   :  { %19930 = vmatpush3.bf16.msra.mxu0 %v19929_v60  ;;  %10538 = vmatprep.mubr.f32.mxu0 %v26241_v33  ;;  %v19949_v15 = vpack.c.bf16 %v30250_v51, %v26371_v6  ;;  %v30251_v60 = vld [vmem:[#allocation19_spill] sm:$0xff] }
 0x47c   :  { %19922 = vmatpush3.bf16.msra.mxu1 %v19921_v37  ;;  %19932 = vmatprep.subr.bf16.mxu0 %v19931_v35  ;;  %v30243_v37 = vld [vmem:[#allocation22_spill] sm:$0xff]  ;;  %v30252_v33 = vld [vmem:[#allocation23_spill] sm:$0xff] }
 0x47d   :  { %19924 = vmatprep.subr.bf16.mxu1 %v19923_v49  ;;  %v19941_v14 = vpack.c.bf16 %v30244_v22, %v30243_v37  ;;  %v19951_v35 = vpack.c.bf16 %v26396_v40, %v30252_v33 }
 0x47f   :  { %19934 = vmatpush3.bf16.msra.mxu0 %v19933_v16 }
 0x480   :  { %19926 = vmatpush3.bf16.msra.mxu1 %v19925_v43  ;;  %19936 = vmatprep.subr.bf16.mxu0 %v19935_v5  ;;  %v19953_v43 = vpack.c.bf16 %v26432_v26, %v26425_v32  ;;  %v30254_v5 = vld [vmem:[#allocation15_spill] sm:$0xff] }
 0x481   :  { %19960 = vmatprep.subr.bf16.mxu1 %v26207_v20 }
 0x483   :  { %10403 = vmatmul.mubr.f32.vlgmr.msra.gmra.mrb[66].mxu1 %v26422_v57  ;;  %19938 = vmatpush3.bf16.msra.mxu0 %v19937_v48  ;;  %v19955_v48 = vpack.c.bf16 %v26441_v11, %v26438_v8 }
 0x484   :  { %19962 = vmatpush3.bf16.msra.mxu1 %v30245_v52  ;;  %19940 = vmatprep.subr.bf16.mxu0 %v19939_v38 }
 0x485   :  { %19964 = vmatprep.subr.bf16.mxu1 %v30246_v53  ;;  %10645 = vmatprep.mubr.f32.mxu1 %v30247_v24  ;;  %v30256_v24 = vld [vmem:[#allocation17_spill] sm:$0xff] }
 0x487   :  { %19942 = vmatpush3.bf16.msra.mxu0 %v19941_v14  ;;  %v30255_v14 = vld [vmem:[#allocation11_spill] sm:$0xff] }
 0x488   :  { %19966 = vmatpush3.bf16.msra.mxu1 %v26229_v2  ;;  %19944 = vmatprep.subr.bf16.mxu0 %v19943_v1  ;;  %v19957_v1 = vpack.c.bf16 %v26465_v58, %v26462_v18 }
 0x489   :  { %19968 = vmatprep.subr.bf16.mxu1 %v30249_v12 }
 0x48b   :  { %19946 = vmatpush3.bf16.msra.mxu0 %v19945_v61  ;;  %v30257_v61 = vand.u32 4294901760, %v26109_v42  ;;  %v30262_v42 = vand.u32 4294901760, %v26169_v4  ;;  %v30265_v4 = vand.u32 4294901760, %v26215_v31 }
 0x48c   :  { %19970 = vmatpush3.bf16.msra.mxu1 %v30251_v60  ;;  %19948 = vmatprep.subr.bf16.mxu0 %v19947_v56  ;;  %v30258_v56 = vand.u32 4294901760, %v26113_v54  ;;  %v30263_v54 = vand.u32 4294901760, %v26172_v29  ;;  %v30266_v29 = vld [vmem:[#allocation18_spill] sm:$0xff] }
 0x48d   :  { %v16313_v59 = vpop.f32.mrb[54].mxu0  ;;  %19972 = vmatprep.subr.bf16.mxu1 %v30253_v0 }
 0x48e   :  { %v16314_v49 = vpop.f32.mrb[55].mxu0 }
 0x48f   :  { %v16315_v16 = vadd.f32 %v16314_v49, %v16313_v59  ;;  %19950 = vmatpush3.bf16.msra.mxu0 %v19949_v15  ;;  %v19991_v15 = vpack.c.bf16 %v30258_v56, %v30257_v61  ;;  %v30259_v59 = vld [vmem:[#allocation13_spill] sm:$0xff]  ;;  %v19995_v61 = vpack.c.bf16 %v30263_v54, %v30262_v42  ;;  %v30272_v54 = vand.u32 4294901760, %v26282_v46 }
 0x490   :  { %19974 = vmatpush3.bf16.msra.mxu1 %v30254_v5  ;;  %19952 = vmatprep.subr.bf16.mxu0 %v19951_v35  ;;  %v26559_v35 = vld [vmem:[#allocation5 + $0xc80] sm:$0xff]  ;;  %v30273_v46 = vand.u32 4294901760, %v30243_v37 }
 0x491   :  { %v8449_v38 = vadd.f32 %v16315_v16, %v8337_v13  ;;  %19976 = vmatprep.subr.bf16.mxu1 %v30255_v14  ;;  %v26561_v13 = vld [vmem:[#allocation5 + $0xc88] sm:$0xff]  ;;  %v10975_v56 = vand.u32 4294901760, %v26559_v35 }
 0x493   :  { %19954 = vmatpush3.bf16.msra.mxu0 %v19953_v43  ;;  %v30260_v43 = vand.u32 4294901760, %v26137_v50  ;;  %v26578_v50 = vld [vmem:[#allocation5 + $0xc00] sm:$0xff] }
 0x494   :  { %19978 = vmatpush3.bf16.msra.mxu1 %v30256_v24  ;;  %19956 = vmatprep.subr.bf16.mxu0 %v19955_v48  ;;  %v29198_v31 = vand.u32 4294901760, %v26578_v50 }
 0x495   :  { %19980 = vmatprep.subr.bf16.mxu1 %v30259_v59  ;;  %v19993_v34 = vpack.c.bf16 %v30261_v36, %v30260_v43  ;;  %v19997_v36 = vpack.c.bf16 %v30265_v4, %v30264_v45  ;;  %v26593_v43 = vsub.f32 %v26559_v35, %v10975_v56 }
 0x496   :  { %v16348_v49 = vpop.f32.mrb[54].mxu1 }
 0x497   :  { %v16349_v16 = vpop.f32.mrb[55].mxu1  ;;  %19958 = vmatpush3.bf16.msra.mxu0 %v19957_v1  ;;  %v10978_v1 = vand.u32 4294901760, %v26561_v13 }
 0x498   :  { %v16350_v48 = vadd.f32 %v16349_v16, %v16348_v49  ;;  %19982 = vmatpush3.bf16.msra.mxu1 %v26369_v55  ;;  %19992 = vmatprep.subr.bf16.mxu0 %v19991_v15  ;;  %v26585_v15 = vld [vmem:[#allocation5 + $0xc08] sm:$0xff]  ;;  %v30268_v49 = vand.u32 4294901760, %v26238_v44  ;;  %v30270_v44 = vand.u32 4294901760, %v26259_v7  ;;  %v457_v7 = vld [vmem:[#allocation5 + $0xc18] sm:$0xff] }
 0x499   :  { %19984 = vmatprep.subr.bf16.mxu1 %v26390_v62  ;;  %v26597_v27 = vsub.f32 %v26561_v13, %v10978_v1  ;;  %v10930_v42 = vand.u32 4294901760, %v26585_v15  ;;  %v30271_v13 = vand.u32 4294901760, %v26278_v39  ;;  %v30279_v39 = vand.u32 4294901760, %v26351_v19 }
 0x49a   :  { %v26575_v28 = vadd.f32 %v16350_v48, %v8449_v38  ;;  %10541 = vmatmul.mubr.f32.vlgmr.msra.gmra.mrb[68].mxu0 %v26445_v10  ;;  %v30267_v38 = vand.u32 4294901760, %v26236_v17  ;;  %v26602_v48 = vld [vmem:[#allocation5 + $0xc98] sm:$0xff]  ;;  %v30269_v17 = vand.u32 4294901760, %v26257_v41  ;;  %v26621_v41 = vsub.f32 %v26578_v50, %v29198_v31 }
 0x49b   :  { %19994 = vmatpush3.bf16.msra.mxu0 %v19993_v34  ;;  %10815 = vmatprep.mubr.f32.mxu0 %v30266_v29  ;;  %v26600_v34 = vld [vmem:[#allocation5 + $0xc90] sm:$0xff]  ;;  %v10984_v4 = vand.u32 4294901760, %v26602_v48  ;;  %v30278_v31 = vand.u32 4294901760, %v26331_v21 }
 0x49c   :  { %19986 = vmatpush3.bf16.msra.mxu1 %v26448_v23  ;;  %19996 = vmatprep.subr.bf16.mxu0 %v19995_v61  ;;  %v19999_v16 = vpack.c.bf16 %v30268_v49, %v30267_v38  ;;  %v20001_v35 = vpack.c.bf16 %v30270_v44, %v30269_v17  ;;  %v20003_v61 = vpack.c.bf16 %v30272_v54, %v30271_v13  ;;  %v10981_v45 = vand.u32 4294901760, %v26600_v34  ;;  %v456_v38 = vld [vmem:[#allocation5 + $0xc10] sm:$0xff] }
 0x49d   :  { %19988 = vmatprep.subr.bf16.mxu1 %v26474_v30  ;;  %v30274_v49 = vand.u32 4294901760, %v30244_v22  ;;  %v30275_v17 = vand.u32 4294901760, %v26305_v47  ;;  %v30276_v44 = vand.u32 4294901760, %v26326_v9  ;;  %v30277_v54 = vand.u32 4294901760, %v26445_v10  ;;  %v474_v10 = vld [vmem:[#allocation5 + $0xca0] sm:$0xff] }
 0x49e   :  { %v20009_v37 = vpack.c.bf16 %v30279_v39, %v30278_v31  ;;  %v30280_v22 = vand.u32 4294901760, %v26358_v63  ;;  %v30282_v9 = vand.u32 4294901760, %v26371_v6  ;;  %v26653_v21 = vsub.f32 %v26600_v34, %v10981_v45 }
 0x49f   :  { %19998 = vmatpush3.bf16.msra.mxu0 %v19997_v36  ;;  %v29203_v36 = vand.u32 4294901760, %v26593_v43  ;;  %v20007_v13 = vpack.c.bf16 %v30276_v44, %v30275_v17  ;;  %v10933_v17 = vand.u32 4294901760, %v456_v38  ;;  %v26656_v19 = vsub.f32 %v26602_v48, %v10984_v4 }
 0x4a0   :  { %19990 = vmatpush3.bf16.msra.mxu1 %v26498_v25  ;;  %20000 = vmatprep.subr.bf16.mxu0 %v19999_v16  ;;  %v20005_v16 = vpack.c.bf16 %v30274_v49, %v30273_v46  ;;  %v30281_v46 = vand.u32 4294901760, %v30248_v3  ;;  %v30283_v49 = vand.u32 4294901760, %v30250_v51  ;;  %v10936_v63 = vand.u32 4294901760, %v457_v7  ;;  %v475_v3 = vld [vmem:[#allocation5 + $0xca8] sm:$0xff] }
 0x4a1   :  { %20024 = vmatprep.subr.bf16.mxu1 %v26207_v20  ;;  %v26633_v20 = vsub.f32 %v26585_v15, %v10930_v42  ;;  %v11154_v6 = vsub.f32 %v26593_v43, %v29203_v36  ;;  %v63_v51 = vld [vmem:[#allocation2 + $0xc8] sm:$0xff]  ;;  %v30284_v31 = vand.u32 4294901760, %v30252_v33  ;;  %v30286_v34 = vand.u32 4294901760, %v26425_v32 }
 0x4a2   :  { %v20011_v47 = vpack.c.bf16 %v30281_v46, %v30280_v22  ;;  %v26649_v15 = vpack.c.bf16 %v30283_v49, %v30282_v9  ;;  %v30287_v48 = vand.u32 4294901760, %v26432_v26  ;;  %v30288_v39 = vand.u32 4294901760, %v26597_v27  ;;  %v459_v9 = vld [vmem:[#allocation5 + $0xc28] sm:$0xff] }
 0x4a3   :  { %10649 = vmatmul.mubr.f32.vlgmr.msra.gmra.mrb[68].mxu1 %v30277_v54  ;;  %20002 = vmatpush3.bf16.msra.mxu0 %v20001_v35  ;;  %v30289_v33 = vand.u32 4294901760, %v26438_v8  ;;  %v30291_v32 = vand.u32 4294901760, %v26462_v18  ;;  %v30292_v26 = vand.u32 4294901760, %v26465_v58  ;;  %v26691_v46 = vpack.c.bf16 %v10978_v1, %v10975_v56 }
 0x4a4   :  { %20026 = vmatpush3.bf16.msra.mxu1 %v30245_v52  ;;  %20004 = vmatprep.subr.bf16.mxu0 %v20003_v61  ;;  %v30285_v52 = vand.u32 4294901760, %v26396_v40  ;;  %v26672_v61 = vpack.c.bf16 %v30287_v48, %v30286_v34  ;;  %v11161_v44 = vsub.f32 %v26597_v27, %v30288_v39  ;;  %v30290_v40 = vand.u32 4294901760, %v26441_v11 }
 0x4a5   :  { %20028 = vmatprep.subr.bf16.mxu1 %v30246_v53  ;;  %10919 = vmatprep.mubr.f32.mxu1 %v30266_v29  ;;  %v29202_v53 = vand.u32 4294901760, %v26621_v41  ;;  %v26689_v22 = vpack.c.bf16 %v30292_v26, %v30291_v32  ;;  %v458_v29 = vld [vmem:[#allocation5 + $0xc20] sm:$0xff]  ;;  %v29201_v49 = vand.u32 4294901760, %v26633_v20  ;;  %v10987_v8 = vand.u32 4294901760, %v474_v10  ;;  %v477_v32 = vld [vmem:[#allocation5 + $0xcb8] sm:$0xff] }
 0x4a6   :  { %v26666_v35 = vpack.c.bf16 %v30285_v52, %v30284_v31  ;;  %v26683_v54 = vpack.c.bf16 %v30290_v40, %v30289_v33  ;;  %v26694_v31 = vsub.f32 %v456_v38, %v10933_v17  ;;  %v10990_v52 = vand.u32 4294901760, %v475_v3  ;;  %v476_v40 = vld [vmem:[#allocation5 + $0xcb0] sm:$0xff] }
 0x4a7   :  { %20006 = vmatpush3.bf16.msra.mxu0 %v20005_v16  ;;  %v26696_v11 = vand.u32 4294901760, %v63_v51  ;;  %v26699_v18 = vsub.f32 %v457_v7, %v10936_v63  ;;  %v11155_v58 = vand.u32 4294901760, %v11154_v6  ;;  %v29200_v56 = vand.u32 4294901760, %v26653_v21 }
 0x4a8   :  { %20030 = vmatpush3.bf16.msra.mxu1 %v26229_v2  ;;  %20008 = vmatprep.subr.bf16.mxu0 %v20007_v13  ;;  %v29199_v1 = vand.u32 4294901760, %v26656_v19  ;;  %v11162_v34 = vand.u32 4294901760, %v11161_v44  ;;  %v10939_v16 = vand.u32 4294901760, %v458_v29  ;;  %v10942_v38 = vand.u32 4294901760, %v459_v9 }
 0x4a9   :  { %30293 = vst [vmem:[#allocation22_spill] sm:$0xff] %v26696_v11  ;;  %20032 = vmatprep.subr.bf16.mxu1 %v30249_v12  ;;  %v11042_v48 = vsub.f32 %v26621_v41, %v29202_v53  ;;  %v30294_v39 = vand.u32 4294901760, %v26578_v50  ;;  %v26711_v7 = vpack.c.bf16 %v10984_v4, %v10981_v45  ;;  %v26713_v13 = vpack.c.bf16 %v10936_v63, %v10933_v17  ;;  %v460_v4 = vld [vmem:[#allocation5 + $0xc30] sm:$0xff] }
 0x4aa   :  { %v11049_v6 = vsub.f32 %v26633_v20, %v29201_v49  ;;  %v26718_v12 = vpack.c.bf16 %v10990_v52, %v10987_v8  ;;  %v26720_v44 = vsub.f32 %v474_v10, %v10987_v8  ;;  %v26722_v33 = vsub.f32 %v475_v3, %v10990_v52  ;;  %v479_v49 = vld [vmem:[#allocation5 + $0xcc8] sm:$0xff] }
 0x4ab   :  { %v26709_v2 = vpack.c.bf16 %v10930_v42, %v30294_v39  ;;  %30296 = vst [vmem:[#allocation14_spill] sm:$0xff] %v26711_v7  ;;  %20010 = vmatpush3.bf16.msra.mxu0 %v20009_v37  ;;  %v26725_v50 = vsub.f32 %v63_v51, %v26696_v11  ;;  %v11168_v42 = vsub.f32 %v26653_v21, %v29200_v56  ;;  %v461_v37 = vld [vmem:[#allocation5 + $0xc38] sm:$0xff]  ;;  %v29205_v17 = vand.u32 4294901760, %v26694_v31  ;;  %v478_v56 = vld [vmem:[#allocation5 + $0xcc0] sm:$0xff] }
 0x4ac   :  { %30297 = vst [vmem:[#allocation12_spill] sm:$0xff] %v26718_v12  ;;  %20034 = vmatpush3.bf16.msra.mxu1 %v30251_v60  ;;  %20012 = vmatprep.subr.bf16.mxu0 %v20011_v47  ;;  %v11175_v45 = vsub.f32 %v26656_v19, %v29199_v1  ;;  %v29204_v63 = vand.u32 4294901760, %v26699_v18  ;;  %v26737_v3 = vpack.c.bf16 %v11162_v34, %v11155_v58  ;;  %v11043_v51 = vand.u32 4294901760, %v11042_v48 }
 0x4ad   :  { %30295 = vst [vmem:[#allocation24_spill] sm:$0xff] %v26709_v2  ;;  %v16383_v10 = vpop.f32.mrb[56].mxu0  ;;  %20036 = vmatprep.subr.bf16.mxu1 %v30253_v0  ;;  %v26739_v60 = vpack.c.bf16 %v10942_v38, %v10939_v16  ;;  %v26741_v47 = vsub.f32 %v458_v29, %v10939_v16  ;;  %v26743_v8 = vsub.f32 %v459_v9, %v10942_v38  ;;  %v11050_v52 = vand.u32 4294901760, %v11049_v6 }
 0x4ae   :  { %v16384_v26 = vpop.f32.mrb[57].mxu0  ;;  %v10993_v39 = vand.u32 4294901760, %v476_v40  ;;  %v10996_v1 = vand.u32 4294901760, %v477_v32  ;;  %v10945_v36 = vand.u32 4294901760, %v460_v4  ;;  %v10948_v0 = vand.u32 4294901760, %v461_v37 }
 0x4af   :  { %30298 = vst [vmem:[#allocation16_spill] sm:$0xff] %v26739_v60  ;;  %v16385_v53 = vadd.f32 %v16384_v26, %v16383_v10  ;;  %20014 = vmatpush3.bf16.msra.mxu0 %v26649_v15  ;;  %v29209_v58 = vand.u32 4294901760, %v26725_v50  ;;  %v11169_v29 = vand.u32 4294901760, %v11168_v42  ;;  %v11176_v34 = vand.u32 4294901760, %v11175_v45 }
 0x4b0   :  { %20038 = vmatpush3.bf16.msra.mxu1 %v30254_v5  ;;  %20016 = vmatprep.subr.bf16.mxu0 %v26666_v35  ;;  %v11056_v9 = vsub.f32 %v26694_v31, %v29205_v17  ;;  %v11063_v16 = vsub.f32 %v26699_v18, %v29204_v63  ;;  %v10999_v38 = vand.u32 4294901760, %v478_v56  ;;  %v11002_v48 = vand.u32 4294901760, %v479_v49 }
 0x4b1   :  { %v8819_v15 = vadd.f32 %v16385_v53, %v26575_v28  ;;  %20040 = vmatprep.subr.bf16.mxu1 %v30255_v14  ;;  %v29207_v5 = vand.u32 4294901760, %v26720_v44  ;;  %v26758_v6 = vpack.c.bf16 %v11050_v52, %v11043_v51  ;;  %v26760_v35 = vpack.c.bf16 %v10996_v1, %v10993_v39  ;;  %v462_v28 = vld [vmem:[#allocation5 + $0xc40] sm:$0xff]  ;;  %v463_v14 = vld [vmem:[#allocation5 + $0xc48] sm:$0xff] }
 0x4b2   :  { %v26762_v42 = vsub.f32 %v476_v40, %v10993_v39  ;;  %v29206_v45 = vand.u32 4294901760, %v26722_v33  ;;  %v26766_v10 = vsub.f32 %v477_v32, %v10996_v1  ;;  %v26768_v26 = vpack.c.bf16 %v10948_v0, %v10945_v36 }
 0x4b3   :  { %30299 = vst [vmem:[#allocation21_spill] sm:$0xff] %v26760_v35  ;;  %20018 = vmatpush3.bf16.msra.mxu0 %v26672_v61  ;;  %v29208_v53 = vand.u32 4294901760, %v26741_v47  ;;  %v11025_v51 = vsub.f32 %v26725_v50, %v29209_v58  ;;  %v26776_v40 = vsub.f32 %v460_v4, %v10945_v36  ;;  %v26778_v52 = vsub.f32 %v461_v37, %v10948_v0  ;;  %v480_v0 = vld [vmem:[#allocation5 + $0xcd0] sm:$0xff] }
 0x4b4   :  { %30300 = vst [vmem:[#allocation25_spill] sm:$0xff] %v26768_v26  ;;  %20042 = vmatpush3.bf16.msra.mxu1 %v30256_v24  ;;  %20020 = vmatprep.subr.bf16.mxu0 %v26683_v54  ;;  %v11057_v61 = vand.u32 4294901760, %v11056_v9  ;;  %v29210_v1 = vand.u32 4294901760, %v26743_v8  ;;  %v26782_v32 = vpack.c.bf16 %v11176_v34, %v11169_v29  ;;  %v11064_v39 = vand.u32 4294901760, %v11063_v16  ;;  %v481_v34 = vld [vmem:[#allocation5 + $0xcd8] sm:$0xff]  ;;  %v464_v9 = vld [vmem:[#allocation5 + $0xc50] sm:$0xff] }
 0x4b5   :  { %30301 = vst [vmem:[#allocation19_spill] sm:$0xff] %v26776_v40  ;;  %30302 = vst [vmem:[#allocation23_spill] sm:$0xff] %v26778_v52  ;;  %20044 = vmatprep.subr.bf16.mxu1 %v30259_v59  ;;  %v26784_v63 = vpack.c.bf16 %v11002_v48, %v10999_v38  ;;  %v11182_v24 = vsub.f32 %v26720_v44, %v29207_v5  ;;  %v26789_v54 = vsub.f32 %v478_v56, %v10999_v38 }
 0x4b6   :  { %v16418_v17 = vpop.f32.mrb[56].mxu1  ;;  %v11189_v36 = vsub.f32 %v26722_v33, %v29206_v45  ;;  %v10951_v4 = vand.u32 4294901760, %v462_v28  ;;  %v10954_v37 = vand.u32 4294901760, %v463_v14  ;;  %v11070_v29 = vsub.f32 %v26741_v47, %v29208_v53 }
 0x4b7   :  { %30303 = vst [vmem:[#allocation20_spill] sm:$0xff] %v26784_v63  ;;  %v16419_v59 = vpop.f32.mrb[57].mxu1  ;;  %20022 = vmatpush3.bf16.msra.mxu0 %v26689_v22  ;;  %v11026_v16 = vand.u32 4294901760, %v11025_v51  ;;  %v11077_v45 = vsub.f32 %v26743_v8, %v29210_v1  ;;  %v26808_v53 = vpack.c.bf16 %v11064_v39, %v11057_v61  ;;  %v26810_v58 = vsub.f32 %v479_v49, %v11002_v48  ;;  %v465_v22 = vld [vmem:[#allocation5 + $0xc58] sm:$0xff] }
 0x4b8   :  { %v16420_v38 = vadd.f32 %v16419_v59, %v16418_v17  ;;  %20046 = vmatpush3.bf16.msra.mxu1 %v26369_v55  ;;  %20056 = vmatprep.subr.bf16.mxu0 %v26691_v46  ;;  %v11183_v51 = vand.u32 4294901760, %v11182_v24  ;;  %v11005_v17 = vand.u32 4294901760, %v480_v0  ;;  %v11190_v55 = vand.u32 4294901760, %v11189_v36 }
 0x4b9   :  { %20048 = vmatprep.subr.bf16.mxu1 %v26390_v62  ;;  %v26815_v56 = vsub.f32 %v462_v28, %v10951_v4  ;;  %v11008_v1 = vand.u32 4294901760, %v481_v34  ;;  %v26818_v5 = vpack.c.bf16 %v10954_v37, %v10951_v4  ;;  %v30305_v62 = vand.u32 4294901760, %v26762_v42 }
 0x4ba   :  { %v26812_v59 = vadd.f32 %v16420_v38, %v8819_v15  ;;  %10817 = vmatmul.mubr.f32.vlgmr.msra.gmra.mrb[70].mxu0 %v26422_v57  ;;  %v30306_v48 = vand.u32 4294901760, %v26766_v10  ;;  %v11071_v28 = vand.u32 4294901760, %v11070_v29  ;;  %v11078_v61 = vand.u32 4294901760, %v11077_v45  ;;  %v482_v38 = vld [vmem:[#allocation5 + $0xce0] sm:$0xff] }
 0x4bb   :  { %20058 = vmatpush3.bf16.msra.mxu0 %v26709_v2  ;;  %30304 = vst [vmem:[#allocation15_spill] sm:$0xff] %v26818_v5  ;;  %v11196_v49 = vsub.f32 %v26762_v42, %v30305_v62  ;;  %11027 = vmatprep.mubr.f32.mxu0 %v11026_v16  ;;  %v30307_v39 = vand.u32 4294901760, %v26776_v40  ;;  %v30308_v36 = vand.u32 4294901760, %v26778_v52  ;;  %v483_v62 = vld [vmem:[#allocation5 + $0xce8] sm:$0xff]  ;;  %v10957_v16 = vand.u32 4294901760, %v464_v9 }
 0x4bc   :  { %v11203_v15 = vsub.f32 %v26766_v10, %v30306_v48  ;;  %20050 = vmatpush3.bf16.msra.mxu1 %v26448_v23  ;;  %20060 = vmatprep.subr.bf16.mxu0 %v26711_v7  ;;  %v26835_v48 = vsub.f32 %v463_v14, %v10954_v37  ;;  %v10960_v23 = vand.u32 4294901760, %v465_v22  ;;  %v29219_v7 = vand.u32 4294901760, %v26789_v54 }
 0x4bd   :  { %v11084_v24 = vsub.f32 %v26776_v40, %v30307_v39  ;;  %v11091_v4 = vsub.f32 %v26778_v52, %v30308_v36  ;;  %20052 = vmatprep.subr.bf16.mxu1 %v26474_v30  ;;  %v26838_v29 = vpack.c.bf16 %v11190_v55, %v11183_v51  ;;  %v26840_v45 = vpack.c.bf16 %v11008_v1, %v11005_v17 }
 0x4be   :  { %v26842_v2 = vsub.f32 %v480_v0, %v11005_v17  ;;  %v26844_v39 = vsub.f32 %v481_v34, %v11008_v1  ;;  %v11197_v36 = vand.u32 4294901760, %v11196_v49  ;;  %v11204_v52 = vand.u32 4294901760, %v11203_v15  ;;  %v466_v0 = vld [vmem:[#allocation5 + $0xc60] sm:$0xff] }
 0x4bf   :  { %30309 = vst [vmem:[#allocation11_spill] sm:$0xff] %v26840_v45  ;;  %20062 = vmatpush3.bf16.msra.mxu0 %v26713_v13  ;;  %v11011_v40 = vand.u32 4294901760, %v482_v38  ;;  %v11014_v30 = vand.u32 4294901760, %v483_v62  ;;  %v26849_v14 = vpack.c.bf16 %v11078_v61, %v11071_v28  ;;  %v11085_v37 = vand.u32 4294901760, %v11084_v24  ;;  %v26866_v61 = vld [vmem:[#allocation5 + $0xcf0] sm:$0xff]  ;;  %v26868_v24 = vld [vmem:[#allocation5 + $0xcf8] sm:$0xff] }
 0x4c0   :  { %30310 = vst [vmem:[#allocation17_spill] sm:$0xff] %v26844_v39  ;;  %20054 = vmatpush3.bf16.msra.mxu1 %v26498_v25  ;;  %20064 = vmatprep.subr.bf16.mxu0 %v26718_v12  ;;  %v11092_v51 = vand.u32 4294901760, %v11091_v4  ;;  %v29220_v55 = vand.u32 4294901760, %v26810_v58  ;;  %v26853_v1 = vpack.c.bf16 %v10960_v23, %v10957_v16  ;;  %v26855_v34 = vsub.f32 %v464_v9, %v10957_v16  ;;  %v467_v25 = vld [vmem:[#allocation5 + $0xc68] sm:$0xff] }
 0x4c1   :  { %20088 = vmatprep.subr.bf16.mxu1 %v26737_v3  ;;  %v26860_v17 = vsub.f32 %v26789_v54, %v29219_v7  ;;  %v26863_v15 = vsub.f32 %v465_v22, %v10960_v23  ;;  %v29227_v3 = vand.u32 4294901760, %v26842_v2  ;;  %v20099_v4 = vpack.c.bf16 %v11204_v52, %v11197_v36  ;;  %v62_v23 = vld [vmem:[#allocation2 + $0xc0] sm:$0xff] }
 0x4c2   :  { %v26874_v16 = vpack.c.bf16 %v11014_v30, %v11011_v40  ;;  %v26876_v7 = vsub.f32 %v482_v38, %v11011_v40  ;;  %v10963_v22 = vand.u32 4294901760, %v466_v0  ;;  %v20101_v28 = vpack.c.bf16 %v11092_v51, %v11085_v37  ;;  %v26892_v37 = vld [vmem:[#allocation5 + $0xc70] sm:$0xff] }
 0x4c3   :  { %30311 = vst [vmem:[#allocation13_spill] sm:$0xff] %v26863_v15  ;;  %10921 = vmatmul.mubr.f32.vlgmr.msra.gmra.mrb[70].mxu1 %v26422_v57  ;;  %20066 = vmatpush3.bf16.msra.mxu0 %v26739_v60  ;;  %v26880_v49 = vsub.f32 %v483_v62, %v11014_v30  ;;  %v11217_v57 = vsub.f32 %v26810_v58, %v29220_v55  ;;  %v10966_v9 = vand.u32 4294901760, %v467_v25  ;;  %v11211_v52 = vand.u32 4294901760, %v26860_v17  ;;  %v26894_v62 = vld [vmem:[#allocation5 + $0xc78] sm:$0xff] }
 0x4c4   :  { %30312 = vst [vmem:[#allocation18_spill] sm:$0xff] %v26876_v7  ;;  %20090 = vmatpush3.bf16.msra.mxu1 %v26758_v6  ;;  %20068 = vmatprep.subr.bf16.mxu0 %v26760_v35  ;;  %v30313_v40 = vand.u32 4294901760, %v26815_v56  ;;  %v11017_v6 = vand.u32 4294901760, %v26866_v61  ;;  %v11020_v36 = vand.u32 4294901760, %v26868_v24  ;;  %v30314_v30 = vand.u32 4294901760, %v26835_v48 }
 0x4c5   :  { %20092 = vmatprep.subr.bf16.mxu1 %v26782_v32  ;;  %11263 = vmatprep.mubr.f32.mxu1 %v26696_v11  ;;  %v11224_v51 = vsub.f32 %v26842_v2, %v29227_v3  ;;  %v30315_v17 = vand.u32 4294901760, %v26844_v39  ;;  %v26906_v55 = vand.u32 4294901760, %v62_v23  ;;  %v26909_v35 = vsub.f32 %v466_v0, %v10963_v22 }
 0x4c6   :  { %v11098_v38 = vsub.f32 %v26815_v56, %v30313_v40  ;;  %v11105_v32 = vsub.f32 %v26835_v48, %v30314_v30  ;;  %v11218_v3 = vand.u32 4294901760, %v11217_v57  ;;  %v26916_v12 = vsub.f32 %v467_v25, %v10966_v9 }
 0x4c7   :  { %v11231_v40 = vsub.f32 %v26844_v39, %v30315_v17  ;;  %20070 = vmatpush3.bf16.msra.mxu0 %v26768_v26  ;;  %v10969_v17 = vand.u32 4294901760, %v26892_v37  ;;  %v10972_v39 = vand.u32 4294901760, %v26894_v62  ;;  %v26922_v11 = vsub.f32 %v26866_v61, %v11017_v6 }
 0x4c8   :  { %20094 = vmatpush3.bf16.msra.mxu1 %v26808_v53  ;;  %20072 = vmatprep.subr.bf16.mxu0 %v26784_v63  ;;  %v11099_v0 = vand.u32 4294901760, %v11098_v38  ;;  %v26925_v60 = vsub.f32 %v26868_v24, %v11020_v36  ;;  %v11106_v30 = vand.u32 4294901760, %v11105_v32  ;;  %v11225_v63 = vand.u32 4294901760, %v11224_v51 }
 0x4c9   :  { %20096 = vmatprep.subr.bf16.mxu1 %v26838_v29  ;;  %v11232_v57 = vand.u32 4294901760, %v11231_v40  ;;  %v26929_v25 = vsub.f32 %v62_v23, %v26906_v55  ;;  %v26932_v26 = vpack.c.bf16 %v10966_v9, %v10963_v22  ;;  %v30316_v29 = vand.u32 4294901760, %v26855_v34 }
 0x4ca   :  { %v30317_v38 = vand.u32 4294901760, %v26863_v15  ;;  %v30318_v53 = vand.u32 4294901760, %v26876_v7  ;;  %v26946_v23 = vsub.f32 %v26892_v37, %v10969_v17  ;;  %v26949_v9 = vsub.f32 %v26894_v62, %v10972_v39 }
 0x4cb   :  { %20074 = vmatpush3.bf16.msra.mxu0 %v26818_v5  ;;  %v11112_v61 = vsub.f32 %v26855_v34, %v30316_v29  ;;  %v29247_v51 = vand.u32 4294901760, %v26916_v12  ;;  %v20103_v29 = vpack.c.bf16 %v11218_v3, %v11211_v52  ;;  %v20105_v5 = vpack.c.bf16 %v11106_v30, %v11099_v0 }
 0x4cc   :  { %v11119_v24 = vsub.f32 %v26863_v15, %v30317_v38  ;;  %v11238_v32 = vsub.f32 %v26876_v7, %v30318_v53  ;;  %20098 = vmatpush3.bf16.msra.mxu1 %v26849_v14  ;;  %20076 = vmatprep.subr.bf16.mxu0 %v26840_v45  ;;  %v30319_v38 = vand.u32 4294901760, %v26880_v49  ;;  %v29246_v14 = vand.u32 4294901760, %v26922_v11 }
 0x4cd   :  { %v16453_v40 = vpop.f32.mrb[58].mxu0  ;;  %20100 = vmatprep.subr.bf16.mxu1 %v20099_v4  ;;  %v26958_v7 = vpack.c.bf16 %v11020_v36, %v11017_v6  ;;  %v20107_v62 = vpack.c.bf16 %v11232_v57, %v11225_v63  ;;  %v29248_v22 = vand.u32 4294901760, %v26929_v25  ;;  %v11113_v4 = vand.u32 4294901760, %v11112_v61 }
 0x4ce   :  { %v11245_v53 = vsub.f32 %v26880_v49, %v30319_v38  ;;  %v16454_v37 = vpop.f32.mrb[59].mxu0  ;;  %v11120_v3 = vand.u32 4294901760, %v11119_v24  ;;  %v11239_v52 = vand.u32 4294901760, %v11238_v32  ;;  %v30320_v38 = vand.u32 4294901760, %v26909_v35 }
 0x4cf   :  { %v16455_v15 = vadd.f32 %v16454_v37, %v16453_v40  ;;  %20078 = vmatpush3.bf16.msra.mxu0 %v26853_v1  ;;  %v11133_v6 = vsub.f32 %v26916_v12, %v29247_v51  ;;  %v29244_v63 = vand.u32 4294901760, %v26946_v23  ;;  %v29245_v36 = vand.u32 4294901760, %v26949_v9 }
 0x4d0   :  { %20102 = vmatpush3.bf16.msra.mxu1 %v20101_v28  ;;  %20080 = vmatprep.subr.bf16.mxu0 %v26874_v16  ;;  %v11126_v45 = vsub.f32 %v26909_v35, %v30320_v38  ;;  %v11246_v0 = vand.u32 4294901760, %v11245_v53  ;;  %v11252_v28 = vsub.f32 %v26922_v11, %v29246_v14  ;;  %v30321_v57 = vand.u32 4294901760, %v26925_v60 }
 0x4d1   :  { %v9095_v30 = vadd.f32 %v16455_v15, %v26812_v59  ;;  %20104 = vmatprep.subr.bf16.mxu1 %v20103_v29  ;;  %v11031_v24 = vsub.f32 %v26929_v25, %v29248_v22  ;;  %v26982_v32 = vpack.c.bf16 %v10972_v39, %v10969_v17  ;;  %v20109_v40 = vpack.c.bf16 %v11120_v3, %v11113_v4 }
 0x4d2   :  { %v11259_v61 = vsub.f32 %v26925_v60, %v30321_v57  ;;  %v20119_v59 = vpack.c.bf16 %v26597_v27, %v26593_v43  ;;  %v11127_v15 = vand.u32 4294901760, %v11126_v45  ;;  %v11134_v29 = vand.u32 4294901760, %v11133_v6 }
 0x4d3   :  { %20082 = vmatpush3.bf16.msra.mxu0 %v26932_v26  ;;  %v11140_v53 = vsub.f32 %v26946_v23, %v29244_v63  ;;  %v11147_v37 = vsub.f32 %v26949_v9, %v29245_v36  ;;  %v20111_v39 = vpack.c.bf16 %v11246_v0, %v11239_v52  ;;  %v11253_v17 = vand.u32 4294901760, %v11252_v28 }
 0x4d4   :  { %20106 = vmatpush3.bf16.msra.mxu1 %v20105_v5  ;;  %20084 = vmatprep.subr.bf16.mxu0 %v26958_v7  ;;  %v11260_v4 = vand.u32 4294901760, %v11259_v61  ;;  %v11032_v38 = vand.u32 4294901760, %v11031_v24  ;;  %v20121_v5 = vpack.c.bf16 %v26633_v20, %v26621_v41  ;;  %v20123_v45 = vpack.c.bf16 %v26656_v19, %v26653_v21 }
 0x4d5   :  { %20108 = vmatprep.subr.bf16.mxu1 %v20107_v62  ;;  %v20113_v63 = vpack.c.bf16 %v11134_v29, %v11127_v15  ;;  %v11141_v36 = vand.u32 4294901760, %v11140_v53  ;;  %v11148_v62 = vand.u32 4294901760, %v11147_v37  ;;  %v20125_v28 = vpack.c.bf16 %v26699_v18, %v26694_v31  ;;  %v30324_v15 = vld [vmem:[#allocation24_spill] sm:$0xff]  ;;  %v30325_v53 = vld [vmem:[#allocation14_spill] sm:$0xff] }
 0x4d6   :  { %v16488_v3 = vpop.f32.mrb[58].mxu1  ;;  %v20115_v52 = vpack.c.bf16 %v11260_v4, %v11253_v17  ;;  %v20127_v24 = vpack.c.bf16 %v26722_v33, %v26720_v44  ;;  %v20135_v29 = vpack.c.bf16 %v26810_v58, %v26789_v54  ;;  %v30326_v37 = vand.u32 4294901760, %v26725_v50  ;;  %v30327_v17 = vld [vmem:[#allocation17_spill] sm:$0xff] }
 0x4d7   :  { %v16489_v57 = vpop.f32.mrb[59].mxu1  ;;  %20086 = vmatpush3.bf16.msra.mxu0 %v26982_v32  ;;  %v20117_v61 = vpack.c.bf16 %v11148_v62, %v11141_v36  ;;  %v30323_v36 = vld [vmem:[#allocation23_spill] sm:$0xff]  ;;  %v20139_v4 = vpack.c.bf16 %v30327_v17, %v26842_v2  ;;  %v30332_v62 = vld [vmem:[#allocation21_spill] sm:$0xff]  ;;  %v30340_v14 = vand.u32 4294901760, %v26633_v20  ;;  %v30343_v20 = vand.u32 4294901760, %v26694_v31 }
 0x4d8   :  { %v16490_v6 = vadd.f32 %v16489_v57, %v16488_v3  ;;  %20110 = vmatpush3.bf16.msra.mxu1 %v20109_v40  ;;  %20120 = vmatprep.subr.bf16.mxu0 %v20119_v59  ;;  %v20129_v40 = vpack.c.bf16 %v26743_v8, %v26741_v47  ;;  %v30328_v3 = vld [vmem:[#allocation12_spill] sm:$0xff] }
 0x4d9   :  { %20112 = vmatprep.subr.bf16.mxu1 %v20111_v39  ;;  %v20137_v39 = vpack.c.bf16 %v26835_v48, %v26815_v56 }
 0x4da   :  { %v9199_v0 = vadd.f32 %v16490_v6, %v9095_v30  ;;  %11033 = vmatmul.mubr.f32.vlgmr.msra.gmra.mrb[72].mxu0 %v11032_v38  ;;  %v20131_v30 = vpack.c.bf16 %v26766_v10, %v26762_v42  ;;  %v30329_v38 = vld [vmem:[#allocation13_spill] sm:$0xff] }
 0x4db   :  { %20122 = vmatpush3.bf16.msra.mxu0 %v20121_v5  ;;  %11400 = vmatprep.mubr.f32.mxu0 %v26725_v50  ;;  %v20141_v57 = vpack.c.bf16 %v30329_v38, %v26855_v34  ;;  %v30330_v5 = vld [vmem:[#allocation16_spill] sm:$0xff]  ;;  %v30331_v50 = vld [vmem:[#allocation18_spill] sm:$0xff] }
 0x4dc   :  { %20114 = vmatpush3.bf16.msra.mxu1 %v20113_v63  ;;  %20124 = vmatprep.subr.bf16.mxu0 %v20123_v45  ;;  %v30322_v63 = vld [vmem:[#allocation19_spill] sm:$0xff]  ;;  %v20143_v45 = vpack.c.bf16 %v26880_v49, %v30331_v50 }
 0x4dd   :  { %20116 = vmatprep.subr.bf16.mxu1 %v20115_v52  ;;  %v20133_v59 = vpack.c.bf16 %v30323_v36, %v30322_v63 }
 0x4df   :  { %20126 = vmatpush3.bf16.msra.mxu0 %v20125_v28 }
 0x4e0   :  { %20118 = vmatpush3.bf16.msra.mxu1 %v20117_v61  ;;  %20128 = vmatprep.subr.bf16.mxu0 %v20127_v24  ;;  %v20145_v61 = vpack.c.bf16 %v26916_v12, %v26909_v35  ;;  %v30333_v24 = vld [vmem:[#allocation25_spill] sm:$0xff] }
 0x4e1   :  { %20152 = vmatprep.subr.bf16.mxu1 %v26691_v46 }
 0x4e3   :  { %11265 = vmatmul.mubr.f32.vlgmr.msra.gmra.mrb[72].mxu1 %v26906_v55  ;;  %20130 = vmatpush3.bf16.msra.mxu0 %v20129_v40  ;;  %v20147_v40 = vpack.c.bf16 %v26925_v60, %v26922_v11 }
 0x4e4   :  { %20154 = vmatpush3.bf16.msra.mxu1 %v30324_v15  ;;  %20132 = vmatprep.subr.bf16.mxu0 %v20131_v30 }
 0x4e5   :  { %20156 = vmatprep.subr.bf16.mxu1 %v30325_v53  ;;  %11507 = vmatprep.mubr.f32.mxu1 %v30326_v37  ;;  %v30335_v37 = vld [vmem:[#allocation15_spill] sm:$0xff] }
 0x4e7   :  { %20134 = vmatpush3.bf16.msra.mxu0 %v20133_v59  ;;  %v30334_v59 = vld [vmem:[#allocation20_spill] sm:$0xff] }
 0x4e8   :  { %20158 = vmatpush3.bf16.msra.mxu1 %v26713_v13  ;;  %20136 = vmatprep.subr.bf16.mxu0 %v20135_v29  ;;  %v20149_v29 = vpack.c.bf16 %v26949_v9, %v26946_v23 }
 0x4e9   :  { %20160 = vmatprep.subr.bf16.mxu1 %v30328_v3 }
 0x4eb   :  { %20138 = vmatpush3.bf16.msra.mxu0 %v20137_v39  ;;  %v30336_v39 = vand.u32 4294901760, %v26593_v43  ;;  %v30341_v43 = vand.u32 4294901760, %v26653_v21  ;;  %v30344_v21 = vand.u32 4294901760, %v26699_v18 }
 0x4ec   :  { %20162 = vmatpush3.bf16.msra.mxu1 %v30330_v5  ;;  %20140 = vmatprep.subr.bf16.mxu0 %v20139_v4  ;;  %v30337_v4 = vand.u32 4294901760, %v26597_v27  ;;  %v30342_v27 = vand.u32 4294901760, %v26656_v19  ;;  %v30345_v19 = vld [vmem:[#allocation22_spill] sm:$0xff] }
 0x4ed   :  { %v16523_v6 = vpop.f32.mrb[60].mxu0  ;;  %20164 = vmatprep.subr.bf16.mxu1 %v30332_v62 }
 0x4ee   :  { %v16524_v52 = vpop.f32.mrb[61].mxu0 }
 0x4ef   :  { %v16525_v28 = vadd.f32 %v16524_v52, %v16523_v6  ;;  %20142 = vmatpush3.bf16.msra.mxu0 %v20141_v57  ;;  %v20183_v57 = vpack.c.bf16 %v30337_v4, %v30336_v39  ;;  %v30338_v6 = vld [vmem:[#allocation11_spill] sm:$0xff]  ;;  %v20187_v39 = vpack.c.bf16 %v30342_v27, %v30341_v43  ;;  %v30351_v27 = vand.u32 4294901760, %v26766_v10 }
 0x4f0   :  { %20166 = vmatpush3.bf16.msra.mxu1 %v30333_v24  ;;  %20144 = vmatprep.subr.bf16.mxu0 %v20143_v45  ;;  %v27043_v45 = vld [vmem:[#allocation5 + $0xd80] sm:$0xff]  ;;  %v30352_v10 = vand.u32 4294901760, %v30322_v63 }
 0x4f1   :  { %v9311_v30 = vadd.f32 %v16525_v28, %v9199_v0  ;;  %20168 = vmatprep.subr.bf16.mxu1 %v30334_v59  ;;  %v27045_v0 = vld [vmem:[#allocation5 + $0xd88] sm:$0xff]  ;;  %v11837_v4 = vand.u32 4294901760, %v27043_v45 }
 0x4f3   :  { %20146 = vmatpush3.bf16.msra.mxu0 %v20145_v61  ;;  %v30339_v61 = vand.u32 4294901760, %v26621_v41  ;;  %v27062_v41 = vld [vmem:[#allocation5 + $0xd00] sm:$0xff] }
 0x4f4   :  { %20170 = vmatpush3.bf16.msra.mxu1 %v30335_v37  ;;  %20148 = vmatprep.subr.bf16.mxu0 %v20147_v40  ;;  %v29249_v18 = vand.u32 4294901760, %v27062_v41 }
 0x4f5   :  { %20172 = vmatprep.subr.bf16.mxu1 %v30338_v6  ;;  %v20185_v51 = vpack.c.bf16 %v30340_v14, %v30339_v61  ;;  %v20189_v14 = vpack.c.bf16 %v30344_v21, %v30343_v20  ;;  %v27077_v61 = vsub.f32 %v27043_v45, %v11837_v4 }
 0x4f6   :  { %v16558_v52 = vpop.f32.mrb[60].mxu1 }
 0x4f7   :  { %v16559_v28 = vpop.f32.mrb[61].mxu1  ;;  %20150 = vmatpush3.bf16.msra.mxu0 %v20149_v29  ;;  %v11840_v29 = vand.u32 4294901760, %v27045_v0 }
 0x4f8   :  { %v16560_v40 = vadd.f32 %v16559_v28, %v16558_v52  ;;  %20174 = vmatpush3.bf16.msra.mxu1 %v26853_v1  ;;  %20184 = vmatprep.subr.bf16.mxu0 %v20183_v57  ;;  %v27069_v57 = vld [vmem:[#allocation5 + $0xd08] sm:$0xff]  ;;  %v30347_v52 = vand.u32 4294901760, %v26722_v33  ;;  %v30349_v33 = vand.u32 4294901760, %v26743_v8  ;;  %v489_v8 = vld [vmem:[#allocation5 + $0xd18] sm:$0xff] }
 0x4f9   :  { %20176 = vmatprep.subr.bf16.mxu1 %v26874_v16  ;;  %v27081_v31 = vsub.f32 %v27045_v0, %v11840_v29  ;;  %v11792_v43 = vand.u32 4294901760, %v27069_v57  ;;  %v30350_v0 = vand.u32 4294901760, %v26762_v42  ;;  %v30358_v42 = vand.u32 4294901760, %v26835_v48 }
 0x4fa   :  { %v27059_v22 = vadd.f32 %v16560_v40, %v9311_v30  ;;  %11403 = vmatmul.mubr.f32.vlgmr.msra.gmra.mrb[74].mxu0 %v26929_v25  ;;  %v30346_v30 = vand.u32 4294901760, %v26720_v44  ;;  %v27086_v40 = vld [vmem:[#allocation5 + $0xd98] sm:$0xff]  ;;  %v30348_v44 = vand.u32 4294901760, %v26741_v47  ;;  %v27105_v47 = vsub.f32 %v27062_v41, %v29249_v18 }
 0x4fb   :  { %20186 = vmatpush3.bf16.msra.mxu0 %v20185_v51  ;;  %11677 = vmatprep.mubr.f32.mxu0 %v30345_v19  ;;  %v27084_v51 = vld [vmem:[#allocation5 + $0xd90] sm:$0xff]  ;;  %v11846_v21 = vand.u32 4294901760, %v27086_v40  ;;  %v30357_v18 = vand.u32 4294901760, %v26815_v56 }
 0x4fc   :  { %20178 = vmatpush3.bf16.msra.mxu1 %v26932_v26  ;;  %20188 = vmatprep.subr.bf16.mxu0 %v20187_v39  ;;  %v20191_v28 = vpack.c.bf16 %v30347_v52, %v30346_v30  ;;  %v20193_v45 = vpack.c.bf16 %v30349_v33, %v30348_v44  ;;  %v20195_v39 = vpack.c.bf16 %v30351_v27, %v30350_v0  ;;  %v11843_v20 = vand.u32 4294901760, %v27084_v51  ;;  %v488_v30 = vld [vmem:[#allocation5 + $0xd10] sm:$0xff] }
 0x4fd   :  { %20180 = vmatprep.subr.bf16.mxu1 %v26958_v7  ;;  %v30353_v52 = vand.u32 4294901760, %v30323_v36  ;;  %v30354_v44 = vand.u32 4294901760, %v26789_v54  ;;  %v30355_v33 = vand.u32 4294901760, %v26810_v58  ;;  %v30356_v27 = vand.u32 4294901760, %v26929_v25  ;;  %v506_v25 = vld [vmem:[#allocation5 + $0xda0] sm:$0xff] }
 0x4fe   :  { %v20201_v63 = vpack.c.bf16 %v30358_v42, %v30357_v18  ;;  %v30359_v36 = vand.u32 4294901760, %v26842_v2  ;;  %v30361_v58 = vand.u32 4294901760, %v26855_v34  ;;  %v27137_v56 = vsub.f32 %v27084_v51, %v11843_v20 }
 0x4ff   :  { %20190 = vmatpush3.bf16.msra.mxu0 %v20189_v14  ;;  %v29254_v14 = vand.u32 4294901760, %v27077_v61  ;;  %v20199_v0 = vpack.c.bf16 %v30355_v33, %v30354_v44  ;;  %v11795_v44 = vand.u32 4294901760, %v488_v30  ;;  %v27140_v48 = vsub.f32 %v27086_v40, %v11846_v21 }
 0x500   :  { %20182 = vmatpush3.bf16.msra.mxu1 %v26982_v32  ;;  %20192 = vmatprep.subr.bf16.mxu0 %v20191_v28  ;;  %v20197_v28 = vpack.c.bf16 %v30353_v52, %v30352_v10  ;;  %v30360_v10 = vand.u32 4294901760, %v30327_v17  ;;  %v30362_v52 = vand.u32 4294901760, %v30329_v38  ;;  %v11798_v2 = vand.u32 4294901760, %v489_v8  ;;  %v507_v17 = vld [vmem:[#allocation5 + $0xda8] sm:$0xff]  ;;  %v65_v38 = vld [vmem:[#allocation2 + $0xd8] sm:$0xff] }
 0x501   :  { %20216 = vmatprep.subr.bf16.mxu1 %v26691_v46  ;;  %v27117_v46 = vsub.f32 %v27069_v57, %v11792_v43  ;;  %v12016_v34 = vsub.f32 %v27077_v61, %v29254_v14  ;;  %v30363_v18 = vand.u32 4294901760, %v30331_v50  ;;  %v30365_v51 = vand.u32 4294901760, %v26909_v35 }
 0x502   :  { %v20203_v54 = vpack.c.bf16 %v30360_v10, %v30359_v36  ;;  %v27133_v57 = vpack.c.bf16 %v30362_v52, %v30361_v58  ;;  %v30366_v40 = vand.u32 4294901760, %v26916_v12  ;;  %v30367_v42 = vand.u32 4294901760, %v27081_v31  ;;  %v491_v58 = vld [vmem:[#allocation5 + $0xd28] sm:$0xff] }
 0x503   :  { %11511 = vmatmul.mubr.f32.vlgmr.msra.gmra.mrb[74].mxu1 %v30356_v27  ;;  %20194 = vmatpush3.bf16.msra.mxu0 %v20193_v45  ;;  %v30368_v50 = vand.u32 4294901760, %v26922_v11  ;;  %v30370_v35 = vand.u32 4294901760, %v26946_v23  ;;  %v30371_v12 = vand.u32 4294901760, %v26949_v9  ;;  %v27175_v10 = vpack.c.bf16 %v11840_v29, %v11837_v4 }
 0x504   :  { %20218 = vmatpush3.bf16.msra.mxu1 %v30324_v15  ;;  %20196 = vmatprep.subr.bf16.mxu0 %v20195_v39  ;;  %v30364_v15 = vand.u32 4294901760, %v26880_v49  ;;  %v27156_v39 = vpack.c.bf16 %v30366_v40, %v30365_v51  ;;  %v12023_v33 = vsub.f32 %v27081_v31, %v30367_v42  ;;  %v30369_v49 = vand.u32 4294901760, %v26925_v60 }
 0x505   :  { %20220 = vmatprep.subr.bf16.mxu1 %v30325_v53  ;;  %11781 = vmatprep.mubr.f32.mxu1 %v30345_v19  ;;  %v29253_v53 = vand.u32 4294901760, %v27105_v47  ;;  %v27173_v36 = vpack.c.bf16 %v30371_v12, %v30370_v35  ;;  %v490_v19 = vld [vmem:[#allocation5 + $0xd20] sm:$0xff]  ;;  %v29252_v52 = vand.u32 4294901760, %v27117_v46  ;;  %v11849_v11 = vand.u32 4294901760, %v506_v25  ;;  %v509_v35 = vld [vmem:[#allocation5 + $0xdb8] sm:$0xff] }
 0x506   :  { %v27150_v45 = vpack.c.bf16 %v30364_v15, %v30363_v18  ;;  %v27167_v27 = vpack.c.bf16 %v30369_v49, %v30368_v50  ;;  %v27178_v18 = vsub.f32 %v488_v30, %v11795_v44  ;;  %v11852_v15 = vand.u32 4294901760, %v507_v17  ;;  %v508_v49 = vld [vmem:[#allocation5 + $0xdb0] sm:$0xff] }
 0x507   :  { %20198 = vmatpush3.bf16.msra.mxu0 %v20197_v28  ;;  %v27180_v60 = vand.u32 4294901760, %v65_v38  ;;  %v27183_v23 = vsub.f32 %v489_v8, %v11798_v2  ;;  %v12017_v9 = vand.u32 4294901760, %v12016_v34  ;;  %v29251_v4 = vand.u32 4294901760, %v27137_v56 }
 0x508   :  { %20222 = vmatpush3.bf16.msra.mxu1 %v26713_v13  ;;  %20200 = vmatprep.subr.bf16.mxu0 %v20199_v0  ;;  %v29250_v29 = vand.u32 4294901760, %v27140_v48  ;;  %v12024_v51 = vand.u32 4294901760, %v12023_v33  ;;  %v11801_v28 = vand.u32 4294901760, %v490_v19  ;;  %v11804_v30 = vand.u32 4294901760, %v491_v58 }
 0x509   :  { %30372 = vst [vmem:[#allocation19_spill] sm:$0xff] %v27180_v60  ;;  %20224 = vmatprep.subr.bf16.mxu1 %v30328_v3  ;;  %v11904_v40 = vsub.f32 %v27105_v47, %v29253_v53  ;;  %v30373_v42 = vand.u32 4294901760, %v27062_v41  ;;  %v27195_v8 = vpack.c.bf16 %v11846_v21, %v11843_v20  ;;  %v27197_v0 = vpack.c.bf16 %v11798_v2, %v11795_v44  ;;  %v492_v21 = vld [vmem:[#allocation5 + $0xd30] sm:$0xff] }
 0x50a   :  { %v11911_v34 = vsub.f32 %v27117_v46, %v29252_v52  ;;  %v27202_v3 = vpack.c.bf16 %v11852_v15, %v11849_v11  ;;  %v27204_v33 = vsub.f32 %v506_v25, %v11849_v11  ;;  %v27206_v50 = vsub.f32 %v507_v17, %v11852_v15  ;;  %v511_v52 = vld [vmem:[#allocation5 + $0xdc8] sm:$0xff] }
 0x50b   :  { %v27193_v13 = vpack.c.bf16 %v11792_v43, %v30373_v42  ;;  %30375 = vst [vmem:[#allocation24_spill] sm:$0xff] %v27195_v8  ;;  %20202 = vmatpush3.bf16.msra.mxu0 %v20201_v63  ;;  %v27209_v41 = vsub.f32 %v65_v38, %v27180_v60  ;;  %v12030_v43 = vsub.f32 %v27137_v56, %v29251_v4  ;;  %v493_v63 = vld [vmem:[#allocation5 + $0xd38] sm:$0xff]  ;;  %v29256_v44 = vand.u32 4294901760, %v27178_v18  ;;  %v510_v4 = vld [vmem:[#allocation5 + $0xdc0] sm:$0xff] }
 0x50c   :  { %30376 = vst [vmem:[#allocation14_spill] sm:$0xff] %v27202_v3  ;;  %20226 = vmatpush3.bf16.msra.mxu1 %v30330_v5  ;;  %20204 = vmatprep.subr.bf16.mxu0 %v20203_v54  ;;  %v12037_v20 = vsub.f32 %v27140_v48, %v29250_v29  ;;  %v29255_v2 = vand.u32 4294901760, %v27183_v23  ;;  %v27221_v17 = vpack.c.bf16 %v12024_v51, %v12017_v9  ;;  %v11905_v38 = vand.u32 4294901760, %v11904_v40 }
 0x50d   :  { %30374 = vst [vmem:[#allocation23_spill] sm:$0xff] %v27193_v13  ;;  %v16593_v25 = vpop.f32.mrb[62].mxu0  ;;  %20228 = vmatprep.subr.bf16.mxu1 %v30332_v62  ;;  %v27223_v5 = vpack.c.bf16 %v11804_v30, %v11801_v28  ;;  %v27225_v54 = vsub.f32 %v490_v19, %v11801_v28  ;;  %v27227_v11 = vsub.f32 %v491_v58, %v11804_v30  ;;  %v11912_v15 = vand.u32 4294901760, %v11911_v34 }
 0x50e   :  { %v16594_v12 = vpop.f32.mrb[63].mxu0  ;;  %v11855_v42 = vand.u32 4294901760, %v508_v49  ;;  %v11858_v29 = vand.u32 4294901760, %v509_v35  ;;  %v11807_v14 = vand.u32 4294901760, %v492_v21  ;;  %v11810_v62 = vand.u32 4294901760, %v493_v63 }
 0x50f   :  { %30377 = vst [vmem:[#allocation17_spill] sm:$0xff] %v27223_v5  ;;  %v16595_v53 = vadd.f32 %v16594_v12, %v16593_v25  ;;  %20206 = vmatpush3.bf16.msra.mxu0 %v27133_v57  ;;  %v29260_v9 = vand.u32 4294901760, %v27209_v41  ;;  %v12031_v19 = vand.u32 4294901760, %v12030_v43  ;;  %v12038_v51 = vand.u32 4294901760, %v12037_v20 }
 0x510   :  { %20230 = vmatpush3.bf16.msra.mxu1 %v30333_v24  ;;  %20208 = vmatprep.subr.bf16.mxu0 %v27150_v45  ;;  %v11918_v58 = vsub.f32 %v27178_v18, %v29256_v44  ;;  %v11925_v28 = vsub.f32 %v27183_v23, %v29255_v2  ;;  %v11861_v30 = vand.u32 4294901760, %v510_v4  ;;  %v11864_v40 = vand.u32 4294901760, %v511_v52 }
 0x511   :  { %v9681_v57 = vadd.f32 %v16595_v53, %v27059_v22  ;;  %20232 = vmatprep.subr.bf16.mxu1 %v30334_v59  ;;  %v29258_v24 = vand.u32 4294901760, %v27204_v33  ;;  %v27242_v34 = vpack.c.bf16 %v11912_v15, %v11905_v38  ;;  %v27244_v45 = vpack.c.bf16 %v11858_v29, %v11855_v42  ;;  %v494_v22 = vld [vmem:[#allocation5 + $0xd40] sm:$0xff]  ;;  %v495_v59 = vld [vmem:[#allocation5 + $0xd48] sm:$0xff] }
 0x512   :  { %v27246_v43 = vsub.f32 %v508_v49, %v11855_v42  ;;  %v29257_v20 = vand.u32 4294901760, %v27206_v50  ;;  %v27250_v25 = vsub.f32 %v509_v35, %v11858_v29  ;;  %v27252_v12 = vpack.c.bf16 %v11810_v62, %v11807_v14 }
 0x513   :  { %30378 = vst [vmem:[#allocation12_spill] sm:$0xff] %v27244_v45  ;;  %20210 = vmatpush3.bf16.msra.mxu0 %v27156_v39  ;;  %v29259_v53 = vand.u32 4294901760, %v27225_v54  ;;  %v11887_v38 = vsub.f32 %v27209_v41, %v29260_v9  ;;  %v27260_v49 = vsub.f32 %v492_v21, %v11807_v14  ;;  %v27262_v15 = vsub.f32 %v493_v63, %v11810_v62  ;;  %v512_v62 = vld [vmem:[#allocation5 + $0xdd0] sm:$0xff] }
 0x514   :  { %30379 = vst [vmem:[#allocation13_spill] sm:$0xff] %v27252_v12  ;;  %20234 = vmatpush3.bf16.msra.mxu1 %v30335_v37  ;;  %20212 = vmatprep.subr.bf16.mxu0 %v27167_v27  ;;  %v11919_v39 = vand.u32 4294901760, %v11918_v58  ;;  %v29261_v29 = vand.u32 4294901760, %v27227_v11  ;;  %v27266_v35 = vpack.c.bf16 %v12038_v51, %v12031_v19  ;;  %v11926_v42 = vand.u32 4294901760, %v11925_v28  ;;  %v513_v51 = vld [vmem:[#allocation5 + $0xdd8] sm:$0xff]  ;;  %v496_v58 = vld [vmem:[#allocation5 + $0xd50] sm:$0xff] }
 0x515   :  { %30380 = vst [vmem:[#allocation16_spill] sm:$0xff] %v27260_v49  ;;  %30381 = vst [vmem:[#allocation18_spill] sm:$0xff] %v27262_v15  ;;  %20236 = vmatprep.subr.bf16.mxu1 %v30338_v6  ;;  %v27268_v2 = vpack.c.bf16 %v11864_v40, %v11861_v30  ;;  %v12044_v37 = vsub.f32 %v27204_v33, %v29258_v24  ;;  %v27273_v27 = vsub.f32 %v510_v4, %v11861_v30 }
 0x516   :  { %v16628_v44 = vpop.f32.mrb[62].mxu1  ;;  %v12051_v14 = vsub.f32 %v27206_v50, %v29257_v20  ;;  %v11813_v21 = vand.u32 4294901760, %v494_v22  ;;  %v11816_v63 = vand.u32 4294901760, %v495_v59  ;;  %v11932_v19 = vsub.f32 %v27225_v54, %v29259_v53 }
 0x517   :  { %30382 = vst [vmem:[#allocation21_spill] sm:$0xff] %v27268_v2  ;;  %v16629_v6 = vpop.f32.mrb[63].mxu1  ;;  %20214 = vmatpush3.bf16.msra.mxu0 %v27173_v36  ;;  %v11888_v28 = vand.u32 4294901760, %v11887_v38  ;;  %v11939_v20 = vsub.f32 %v27227_v11, %v29261_v29  ;;  %v27292_v53 = vpack.c.bf16 %v11926_v42, %v11919_v39  ;;  %v27294_v9 = vsub.f32 %v511_v52, %v11864_v40  ;;  %v497_v36 = vld [vmem:[#allocation5 + $0xd58] sm:$0xff] }
 0x518   :  { %v16630_v30 = vadd.f32 %v16629_v6, %v16628_v44  ;;  %20238 = vmatpush3.bf16.msra.mxu1 %v26853_v1  ;;  %20248 = vmatprep.subr.bf16.mxu0 %v27175_v10  ;;  %v12045_v38 = vand.u32 4294901760, %v12044_v37  ;;  %v11867_v44 = vand.u32 4294901760, %v512_v62  ;;  %v12052_v1 = vand.u32 4294901760, %v12051_v14 }
 0x519   :  { %20240 = vmatprep.subr.bf16.mxu1 %v26874_v16  ;;  %v27299_v4 = vsub.f32 %v494_v22, %v11813_v21  ;;  %v11870_v29 = vand.u32 4294901760, %v513_v51  ;;  %v27302_v24 = vpack.c.bf16 %v11816_v63, %v11813_v21  ;;  %v30384_v16 = vand.u32 4294901760, %v27246_v43 }
 0x51a   :  { %v27296_v6 = vadd.f32 %v16630_v30, %v9681_v57  ;;  %11679 = vmatmul.mubr.f32.vlgmr.msra.gmra.mrb[76].mxu0 %v26906_v55  ;;  %v30385_v40 = vand.u32 4294901760, %v27250_v25  ;;  %v11933_v22 = vand.u32 4294901760, %v11932_v19  ;;  %v11940_v39 = vand.u32 4294901760, %v11939_v20  ;;  %v514_v30 = vld [vmem:[#allocation5 + $0xde0] sm:$0xff] }
 0x51b   :  { %20250 = vmatpush3.bf16.msra.mxu0 %v27193_v13  ;;  %30383 = vst [vmem:[#allocation25_spill] sm:$0xff] %v27302_v24  ;;  %v12058_v52 = vsub.f32 %v27246_v43, %v30384_v16  ;;  %11889 = vmatprep.mubr.f32.mxu0 %v11888_v28  ;;  %v30386_v42 = vand.u32 4294901760, %v27260_v49  ;;  %v30387_v14 = vand.u32 4294901760, %v27262_v15  ;;  %v515_v16 = vld [vmem:[#allocation5 + $0xde8] sm:$0xff]  ;;  %v11819_v28 = vand.u32 4294901760, %v496_v58 }
 0x51c   :  { %v12065_v57 = vsub.f32 %v27250_v25, %v30385_v40  ;;  %20242 = vmatpush3.bf16.msra.mxu1 %v26932_v26  ;;  %20252 = vmatprep.subr.bf16.mxu0 %v27195_v8  ;;  %v27319_v40 = vsub.f32 %v495_v59, %v11816_v63  ;;  %v11822_v26 = vand.u32 4294901760, %v497_v36  ;;  %v29270_v8 = vand.u32 4294901760, %v27273_v27 }
 0x51d   :  { %v11946_v37 = vsub.f32 %v27260_v49, %v30386_v42  ;;  %v11953_v21 = vsub.f32 %v27262_v15, %v30387_v14  ;;  %20244 = vmatprep.subr.bf16.mxu1 %v26958_v7  ;;  %v27322_v19 = vpack.c.bf16 %v12052_v1, %v12045_v38  ;;  %v27324_v20 = vpack.c.bf16 %v11870_v29, %v11867_v44 }
 0x51e   :  { %v27326_v13 = vsub.f32 %v512_v62, %v11867_v44  ;;  %v27328_v42 = vsub.f32 %v513_v51, %v11870_v29  ;;  %v12059_v14 = vand.u32 4294901760, %v12058_v52  ;;  %v12066_v15 = vand.u32 4294901760, %v12065_v57  ;;  %v498_v62 = vld [vmem:[#allocation5 + $0xd60] sm:$0xff] }
 0x51f   :  { %30388 = vst [vmem:[#allocation20_spill] sm:$0xff] %v27324_v20  ;;  %20254 = vmatpush3.bf16.msra.mxu0 %v27197_v0  ;;  %v11873_v49 = vand.u32 4294901760, %v514_v30  ;;  %v11876_v7 = vand.u32 4294901760, %v515_v16  ;;  %v27333_v59 = vpack.c.bf16 %v11940_v39, %v11933_v22  ;;  %v11947_v63 = vand.u32 4294901760, %v11946_v37  ;;  %v27350_v39 = vld [vmem:[#allocation5 + $0xdf0] sm:$0xff]  ;;  %v27352_v37 = vld [vmem:[#allocation5 + $0xdf8] sm:$0xff] }
 0x520   :  { %30389 = vst [vmem:[#allocation15_spill] sm:$0xff] %v27328_v42  ;;  %20246 = vmatpush3.bf16.msra.mxu1 %v26982_v32  ;;  %20256 = vmatprep.subr.bf16.mxu0 %v27202_v3  ;;  %v11954_v38 = vand.u32 4294901760, %v11953_v21  ;;  %v29271_v1 = vand.u32 4294901760, %v27294_v9  ;;  %v27337_v29 = vpack.c.bf16 %v11822_v26, %v11819_v28  ;;  %v27339_v51 = vsub.f32 %v496_v58, %v11819_v28  ;;  %v499_v32 = vld [vmem:[#allocation5 + $0xd68] sm:$0xff] }
 0x521   :  { %20280 = vmatprep.subr.bf16.mxu1 %v27221_v17  ;;  %v27344_v44 = vsub.f32 %v27273_v27, %v29270_v8  ;;  %v27347_v57 = vsub.f32 %v497_v36, %v11822_v26  ;;  %v29278_v17 = vand.u32 4294901760, %v27326_v13  ;;  %v20291_v21 = vpack.c.bf16 %v12066_v15, %v12059_v14  ;;  %v64_v26 = vld [vmem:[#allocation2 + $0xd0] sm:$0xff] }
 0x522   :  { %v27358_v28 = vpack.c.bf16 %v11876_v7, %v11873_v49  ;;  %v27360_v8 = vsub.f32 %v514_v30, %v11873_v49  ;;  %v11825_v36 = vand.u32 4294901760, %v498_v62  ;;  %v20293_v22 = vpack.c.bf16 %v11954_v38, %v11947_v63  ;;  %v27376_v63 = vld [vmem:[#allocation5 + $0xd70] sm:$0xff] }
 0x523   :  { %30390 = vst [vmem:[#allocation11_spill] sm:$0xff] %v27347_v57  ;;  %11783 = vmatmul.mubr.f32.vlgmr.msra.gmra.mrb[76].mxu1 %v26906_v55  ;;  %20258 = vmatpush3.bf16.msra.mxu0 %v27223_v5  ;;  %v27364_v52 = vsub.f32 %v515_v16, %v11876_v7  ;;  %v12079_v55 = vsub.f32 %v27294_v9, %v29271_v1  ;;  %v11828_v58 = vand.u32 4294901760, %v499_v32  ;;  %v12073_v15 = vand.u32 4294901760, %v27344_v44  ;;  %v27378_v16 = vld [vmem:[#allocation5 + $0xd78] sm:$0xff] }
 0x524   :  { %30391 = vst [vmem:[#allocation22_spill] sm:$0xff] %v27360_v8  ;;  %20282 = vmatpush3.bf16.msra.mxu1 %v27242_v34  ;;  %20260 = vmatprep.subr.bf16.mxu0 %v27244_v45  ;;  %v30392_v49 = vand.u32 4294901760, %v27299_v4  ;;  %v11879_v34 = vand.u32 4294901760, %v27350_v39  ;;  %v11882_v14 = vand.u32 4294901760, %v27352_v37  ;;  %v30393_v7 = vand.u32 4294901760, %v27319_v40 }
 0x525   :  { %20284 = vmatprep.subr.bf16.mxu1 %v27266_v35  ;;  %12125 = vmatprep.mubr.f32.mxu1 %v27180_v60  ;;  %v12086_v38 = vsub.f32 %v27326_v13, %v29278_v17  ;;  %v30394_v44 = vand.u32 4294901760, %v27328_v42  ;;  %v27390_v1 = vand.u32 4294901760, %v64_v26  ;;  %v27393_v45 = vsub.f32 %v498_v62, %v11825_v36 }
 0x526   :  { %v11960_v30 = vsub.f32 %v27299_v4, %v30392_v49  ;;  %v11967_v35 = vsub.f32 %v27319_v40, %v30393_v7  ;;  %v12080_v17 = vand.u32 4294901760, %v12079_v55  ;;  %v27400_v3 = vsub.f32 %v499_v32, %v11828_v58 }
 0x527   :  { %v12093_v49 = vsub.f32 %v27328_v42, %v30394_v44  ;;  %20262 = vmatpush3.bf16.msra.mxu0 %v27252_v12  ;;  %v11831_v44 = vand.u32 4294901760, %v27376_v63  ;;  %v11834_v42 = vand.u32 4294901760, %v27378_v16  ;;  %v27406_v60 = vsub.f32 %v27350_v39, %v11879_v34 }
 0x528   :  { %20286 = vmatpush3.bf16.msra.mxu1 %v27292_v53  ;;  %20264 = vmatprep.subr.bf16.mxu0 %v27268_v2  ;;  %v11961_v62 = vand.u32 4294901760, %v11960_v30  ;;  %v27409_v5 = vsub.f32 %v27352_v37, %v11882_v14  ;;  %v11968_v7 = vand.u32 4294901760, %v11967_v35  ;;  %v12087_v2 = vand.u32 4294901760, %v12086_v38 }
 0x529   :  { %20288 = vmatprep.subr.bf16.mxu1 %v27322_v19  ;;  %v12094_v55 = vand.u32 4294901760, %v12093_v49  ;;  %v27413_v32 = vsub.f32 %v64_v26, %v27390_v1  ;;  %v27416_v12 = vpack.c.bf16 %v11828_v58, %v11825_v36  ;;  %v30395_v19 = vand.u32 4294901760, %v27339_v51 }
 0x52a   :  { %v30396_v30 = vand.u32 4294901760, %v27347_v57  ;;  %v30397_v53 = vand.u32 4294901760, %v27360_v8  ;;  %v27430_v26 = vsub.f32 %v27376_v63, %v11831_v44  ;;  %v27433_v58 = vsub.f32 %v27378_v16, %v11834_v42 }
 0x52b   :  { %20266 = vmatpush3.bf16.msra.mxu0 %v27302_v24  ;;  %v11974_v39 = vsub.f32 %v27339_v51, %v30395_v19  ;;  %v29298_v38 = vand.u32 4294901760, %v27400_v3  ;;  %v20295_v19 = vpack.c.bf16 %v12080_v17, %v12073_v15  ;;  %v20297_v24 = vpack.c.bf16 %v11968_v7, %v11961_v62 }
 0x52c   :  { %v11981_v37 = vsub.f32 %v27347_v57, %v30396_v30  ;;  %v12100_v35 = vsub.f32 %v27360_v8, %v30397_v53  ;;  %20290 = vmatpush3.bf16.msra.mxu1 %v27333_v59  ;;  %20268 = vmatprep.subr.bf16.mxu0 %v27324_v20  ;;  %v30398_v30 = vand.u32 4294901760, %v27364_v52  ;;  %v29297_v59 = vand.u32 4294901760, %v27406_v60 }
 0x52d   :  { %v16663_v49 = vpop.f32.mrb[64].mxu0  ;;  %20292 = vmatprep.subr.bf16.mxu1 %v20291_v21  ;;  %v27442_v8 = vpack.c.bf16 %v11882_v14, %v11879_v34  ;;  %v20299_v16 = vpack.c.bf16 %v12094_v55, %v12087_v2  ;;  %v29299_v36 = vand.u32 4294901760, %v27413_v32  ;;  %v11975_v21 = vand.u32 4294901760, %v11974_v39 }
 0x52e   :  { %v12107_v53 = vsub.f32 %v27364_v52, %v30398_v30  ;;  %v16664_v63 = vpop.f32.mrb[65].mxu0  ;;  %v11982_v17 = vand.u32 4294901760, %v11981_v37  ;;  %v12101_v15 = vand.u32 4294901760, %v12100_v35  ;;  %v30399_v30 = vand.u32 4294901760, %v27393_v45 }
 0x52f   :  { %v16665_v57 = vadd.f32 %v16664_v63, %v16663_v49  ;;  %20270 = vmatpush3.bf16.msra.mxu0 %v27337_v29  ;;  %v11995_v34 = vsub.f32 %v27400_v3, %v29298_v38  ;;  %v29295_v2 = vand.u32 4294901760, %v27430_v26  ;;  %v29296_v14 = vand.u32 4294901760, %v27433_v58 }
 0x530   :  { %20294 = vmatpush3.bf16.msra.mxu1 %v20293_v22  ;;  %20272 = vmatprep.subr.bf16.mxu0 %v27358_v28  ;;  %v11988_v20 = vsub.f32 %v27393_v45, %v30399_v30  ;;  %v12108_v62 = vand.u32 4294901760, %v12107_v53  ;;  %v12114_v22 = vsub.f32 %v27406_v60, %v29297_v59  ;;  %v30400_v55 = vand.u32 4294901760, %v27409_v5 }
 0x531   :  { %v9957_v7 = vadd.f32 %v16665_v57, %v27296_v6  ;;  %20296 = vmatprep.subr.bf16.mxu1 %v20295_v19  ;;  %v11893_v37 = vsub.f32 %v27413_v32, %v29299_v36  ;;  %v27466_v35 = vpack.c.bf16 %v11834_v42, %v11831_v44  ;;  %v20301_v49 = vpack.c.bf16 %v11982_v17, %v11975_v21 }
 0x532   :  { %v12121_v39 = vsub.f32 %v27409_v5, %v30400_v55  ;;  %v20311_v6 = vpack.c.bf16 %v27081_v31, %v27077_v61  ;;  %v11989_v57 = vand.u32 4294901760, %v11988_v20  ;;  %v11996_v19 = vand.u32 4294901760, %v11995_v34 }
 0x533   :  { %20274 = vmatpush3.bf16.msra.mxu0 %v27416_v12  ;;  %v12002_v53 = vsub.f32 %v27430_v26, %v29295_v2  ;;  %v12009_v63 = vsub.f32 %v27433_v58, %v29296_v14  ;;  %v20303_v42 = vpack.c.bf16 %v12108_v62, %v12101_v15  ;;  %v12115_v44 = vand.u32 4294901760, %v12114_v22 }
 0x534   :  { %20298 = vmatpush3.bf16.msra.mxu1 %v20297_v24  ;;  %20276 = vmatprep.subr.bf16.mxu0 %v27442_v8  ;;  %v12122_v21 = vand.u32 4294901760, %v12121_v39  ;;  %v11894_v30 = vand.u32 4294901760, %v11893_v37  ;;  %v20313_v24 = vpack.c.bf16 %v27117_v46, %v27105_v47  ;;  %v20315_v20 = vpack.c.bf16 %v27140_v48, %v27137_v56 }
 0x535   :  { %20300 = vmatprep.subr.bf16.mxu1 %v20299_v16  ;;  %v20305_v2 = vpack.c.bf16 %v11996_v19, %v11989_v57  ;;  %v12003_v14 = vand.u32 4294901760, %v12002_v53  ;;  %v12010_v16 = vand.u32 4294901760, %v12009_v63  ;;  %v20317_v22 = vpack.c.bf16 %v27183_v23, %v27178_v18  ;;  %v30403_v57 = vld [vmem:[#allocation23_spill] sm:$0xff]  ;;  %v30404_v53 = vld [vmem:[#allocation24_spill] sm:$0xff] }
 0x536   :  { %v16698_v17 = vpop.f32.mrb[64].mxu1  ;;  %v20307_v15 = vpack.c.bf16 %v12122_v21, %v12115_v44  ;;  %v20319_v37 = vpack.c.bf16 %v27206_v50, %v27204_v33  ;;  %v20327_v19 = vpack.c.bf16 %v27294_v9, %v27273_v27  ;;  %v30405_v63 = vand.u32 4294901760, %v27209_v41  ;;  %v30406_v44 = vld [vmem:[#allocation15_spill] sm:$0xff] }
 0x537   :  { %v16699_v55 = vpop.f32.mrb[65].mxu1  ;;  %20278 = vmatpush3.bf16.msra.mxu0 %v27466_v35  ;;  %v20309_v39 = vpack.c.bf16 %v12010_v16, %v12003_v14  ;;  %v30402_v14 = vld [vmem:[#allocation18_spill] sm:$0xff]  ;;  %v20331_v21 = vpack.c.bf16 %v30406_v44, %v27326_v13  ;;  %v30411_v16 = vld [vmem:[#allocation12_spill] sm:$0xff]  ;;  %v30419_v59 = vand.u32 4294901760, %v27117_v46  ;;  %v30422_v46 = vand.u32 4294901760, %v27178_v18 }
 0x538   :  { %v16700_v34 = vadd.f32 %v16699_v55, %v16698_v17  ;;  %20302 = vmatpush3.bf16.msra.mxu1 %v20301_v49  ;;  %20312 = vmatprep.subr.bf16.mxu0 %v20311_v6  ;;  %v20321_v49 = vpack.c.bf16 %v27227_v11, %v27225_v54  ;;  %v30407_v17 = vld [vmem:[#allocation14_spill] sm:$0xff] }
 0x539   :  { %20304 = vmatprep.subr.bf16.mxu1 %v20303_v42  ;;  %v20329_v42 = vpack.c.bf16 %v27319_v40, %v27299_v4 }
 0x53a   :  { %v10061_v62 = vadd.f32 %v16700_v34, %v9957_v7  ;;  %11895 = vmatmul.mubr.f32.vlgmr.msra.gmra.mrb[78].mxu0 %v11894_v30  ;;  %v20323_v7 = vpack.c.bf16 %v27250_v25, %v27246_v43  ;;  %v30408_v30 = vld [vmem:[#allocation11_spill] sm:$0xff] }
 0x53b   :  { %20314 = vmatpush3.bf16.msra.mxu0 %v20313_v24  ;;  %12262 = vmatprep.mubr.f32.mxu0 %v27209_v41  ;;  %v20333_v55 = vpack.c.bf16 %v30408_v30, %v27339_v51  ;;  %v30409_v24 = vld [vmem:[#allocation17_spill] sm:$0xff]  ;;  %v30410_v41 = vld [vmem:[#allocation22_spill] sm:$0xff] }
 0x53c   :  { %20306 = vmatpush3.bf16.msra.mxu1 %v20305_v2  ;;  %20316 = vmatprep.subr.bf16.mxu0 %v20315_v20  ;;  %v30401_v2 = vld [vmem:[#allocation16_spill] sm:$0xff]  ;;  %v20335_v20 = vpack.c.bf16 %v27364_v52, %v30410_v41 }
 0x53d   :  { %20308 = vmatprep.subr.bf16.mxu1 %v20307_v15  ;;  %v20325_v6 = vpack.c.bf16 %v30402_v14, %v30401_v2 }
 0x53f   :  { %20318 = vmatpush3.bf16.msra.mxu0 %v20317_v22 }
 0x540   :  { %20310 = vmatpush3.bf16.msra.mxu1 %v20309_v39  ;;  %20320 = vmatprep.subr.bf16.mxu0 %v20319_v37  ;;  %v20337_v39 = vpack.c.bf16 %v27400_v3, %v27393_v45  ;;  %v30412_v37 = vld [vmem:[#allocation13_spill] sm:$0xff] }
 0x541   :  { %20344 = vmatprep.subr.bf16.mxu1 %v27175_v10 }
 0x543   :  { %12127 = vmatmul.mubr.f32.vlgmr.msra.gmra.mrb[78].mxu1 %v27390_v1  ;;  %20322 = vmatpush3.bf16.msra.mxu0 %v20321_v49  ;;  %v20339_v49 = vpack.c.bf16 %v27409_v5, %v27406_v60 }
 0x544   :  { %20346 = vmatpush3.bf16.msra.mxu1 %v30403_v57  ;;  %20324 = vmatprep.subr.bf16.mxu0 %v20323_v7 }
 0x545   :  { %20348 = vmatprep.subr.bf16.mxu1 %v30404_v53  ;;  %12369 = vmatprep.mubr.f32.mxu1 %v30405_v63  ;;  %v30414_v63 = vld [vmem:[#allocation25_spill] sm:$0xff] }
 0x547   :  { %20326 = vmatpush3.bf16.msra.mxu0 %v20325_v6  ;;  %v30413_v6 = vld [vmem:[#allocation21_spill] sm:$0xff] }
 0x548   :  { %20350 = vmatpush3.bf16.msra.mxu1 %v27197_v0  ;;  %20328 = vmatprep.subr.bf16.mxu0 %v20327_v19  ;;  %v20341_v19 = vpack.c.bf16 %v27433_v58, %v27430_v26 }
 0x549   :  { %20352 = vmatprep.subr.bf16.mxu1 %v30407_v17 }
 0x54b   :  { %20330 = vmatpush3.bf16.msra.mxu0 %v20329_v42  ;;  %v30415_v42 = vand.u32 4294901760, %v27077_v61  ;;  %v30420_v61 = vand.u32 4294901760, %v27137_v56  ;;  %v30423_v56 = vand.u32 4294901760, %v27183_v23 }
 0x54c   :  { %20354 = vmatpush3.bf16.msra.mxu1 %v30409_v24  ;;  %20332 = vmatprep.subr.bf16.mxu0 %v20331_v21  ;;  %v30416_v21 = vand.u32 4294901760, %v27081_v31  ;;  %v30421_v31 = vand.u32 4294901760, %v27140_v48  ;;  %v30424_v48 = vld [vmem:[#allocation19_spill] sm:$0xff] }
 0x54d   :  { %v16733_v34 = vpop.f32.mrb[66].mxu0  ;;  %20356 = vmatprep.subr.bf16.mxu1 %v30411_v16 }
 0x54e   :  { %v16734_v15 = vpop.f32.mrb[67].mxu0 }
 0x54f   :  { %v16735_v22 = vadd.f32 %v16734_v15, %v16733_v34  ;;  %20334 = vmatpush3.bf16.msra.mxu0 %v20333_v55  ;;  %v20375_v55 = vpack.c.bf16 %v30416_v21, %v30415_v42  ;;  %v30417_v34 = vld [vmem:[#allocation20_spill] sm:$0xff]  ;;  %v20379_v42 = vpack.c.bf16 %v30421_v31, %v30420_v61  ;;  %v30430_v31 = vand.u32 4294901760, %v27250_v25 }
 0x550   :  { %20358 = vmatpush3.bf16.msra.mxu1 %v30412_v37  ;;  %20336 = vmatprep.subr.bf16.mxu0 %v20335_v20  ;;  %v27527_v20 = vld [vmem:[#allocation5 + $0xe80] sm:$0xff]  ;;  %v30431_v25 = vand.u32 4294901760, %v30401_v2 }
 0x551   :  { %v10173_v7 = vadd.f32 %v16735_v22, %v10061_v62  ;;  %20360 = vmatprep.subr.bf16.mxu1 %v30413_v6  ;;  %v27529_v62 = vld [vmem:[#allocation5 + $0xe88] sm:$0xff]  ;;  %v12699_v21 = vand.u32 4294901760, %v27527_v20 }
 0x553   :  { %20338 = vmatpush3.bf16.msra.mxu0 %v20337_v39  ;;  %v30418_v39 = vand.u32 4294901760, %v27105_v47  ;;  %v27546_v47 = vld [vmem:[#allocation5 + $0xe00] sm:$0xff] }
 0x554   :  { %20362 = vmatpush3.bf16.msra.mxu1 %v30414_v63  ;;  %20340 = vmatprep.subr.bf16.mxu0 %v20339_v49  ;;  %v29300_v23 = vand.u32 4294901760, %v27546_v47 }
 0x555   :  { %20364 = vmatprep.subr.bf16.mxu1 %v30417_v34  ;;  %v20377_v38 = vpack.c.bf16 %v30419_v59, %v30418_v39  ;;  %v20381_v59 = vpack.c.bf16 %v30423_v56, %v30422_v46  ;;  %v27561_v39 = vsub.f32 %v27527_v20, %v12699_v21 }
 0x556   :  { %v16768_v15 = vpop.f32.mrb[66].mxu1 }
 0x557   :  { %v16769_v22 = vpop.f32.mrb[67].mxu1  ;;  %20342 = vmatpush3.bf16.msra.mxu0 %v20341_v19  ;;  %v12702_v19 = vand.u32 4294901760, %v27529_v62 }
 0x558   :  { %v16770_v49 = vadd.f32 %v16769_v22, %v16768_v15  ;;  %20366 = vmatpush3.bf16.msra.mxu1 %v27337_v29  ;;  %20376 = vmatprep.subr.bf16.mxu0 %v20375_v55  ;;  %v27553_v55 = vld [vmem:[#allocation5 + $0xe08] sm:$0xff]  ;;  %v30426_v15 = vand.u32 4294901760, %v27206_v50  ;;  %v30428_v50 = vand.u32 4294901760, %v27227_v11  ;;  %v521_v11 = vld [vmem:[#allocation5 + $0xe18] sm:$0xff] }
 0x559   :  { %20368 = vmatprep.subr.bf16.mxu1 %v27358_v28  ;;  %v27565_v18 = vsub.f32 %v27529_v62, %v12702_v19  ;;  %v12654_v61 = vand.u32 4294901760, %v27553_v55  ;;  %v30429_v62 = vand.u32 4294901760, %v27246_v43  ;;  %v30437_v43 = vand.u32 4294901760, %v27319_v40 }
 0x55a   :  { %v27543_v36 = vadd.f32 %v16770_v49, %v10173_v7  ;;  %12265 = vmatmul.mubr.f32.vlgmr.msra.gmra.mrb[80].mxu0 %v27413_v32  ;;  %v30425_v7 = vand.u32 4294901760, %v27204_v33  ;;  %v27570_v49 = vld [vmem:[#allocation5 + $0xe98] sm:$0xff]  ;;  %v30427_v33 = vand.u32 4294901760, %v27225_v54  ;;  %v27589_v54 = vsub.f32 %v27546_v47, %v29300_v23 }
 0x55b   :  { %20378 = vmatpush3.bf16.msra.mxu0 %v20377_v38  ;;  %12539 = vmatprep.mubr.f32.mxu0 %v30424_v48  ;;  %v27568_v38 = vld [vmem:[#allocation5 + $0xe90] sm:$0xff]  ;;  %v12708_v56 = vand.u32 4294901760, %v27570_v49  ;;  %v30436_v23 = vand.u32 4294901760, %v27299_v4 }
 0x55c   :  { %20370 = vmatpush3.bf16.msra.mxu1 %v27416_v12  ;;  %20380 = vmatprep.subr.bf16.mxu0 %v20379_v42  ;;  %v20383_v22 = vpack.c.bf16 %v30426_v15, %v30425_v7  ;;  %v20385_v20 = vpack.c.bf16 %v30428_v50, %v30427_v33  ;;  %v20387_v42 = vpack.c.bf16 %v30430_v31, %v30429_v62  ;;  %v12705_v46 = vand.u32 4294901760, %v27568_v38  ;;  %v520_v7 = vld [vmem:[#allocation5 + $0xe10] sm:$0xff] }
 0x55d   :  { %20372 = vmatprep.subr.bf16.mxu1 %v27442_v8  ;;  %v30432_v15 = vand.u32 4294901760, %v30402_v14  ;;  %v30433_v33 = vand.u32 4294901760, %v27273_v27  ;;  %v30434_v50 = vand.u32 4294901760, %v27294_v9  ;;  %v30435_v31 = vand.u32 4294901760, %v27413_v32  ;;  %v538_v32 = vld [vmem:[#allocation5 + $0xea0] sm:$0xff] }
 0x55e   :  { %v20393_v2 = vpack.c.bf16 %v30437_v43, %v30436_v23  ;;  %v30438_v14 = vand.u32 4294901760, %v27326_v13  ;;  %v30440_v9 = vand.u32 4294901760, %v27339_v51  ;;  %v27621_v4 = vsub.f32 %v27568_v38, %v12705_v46 }
 0x55f   :  { %20382 = vmatpush3.bf16.msra.mxu0 %v20381_v59  ;;  %v29305_v59 = vand.u32 4294901760, %v27561_v39  ;;  %v20391_v62 = vpack.c.bf16 %v30434_v50, %v30433_v33  ;;  %v12657_v33 = vand.u32 4294901760, %v520_v7  ;;  %v27624_v40 = vsub.f32 %v27570_v49, %v12708_v56 }
 0x560   :  { %20374 = vmatpush3.bf16.msra.mxu1 %v27466_v35  ;;  %20384 = vmatprep.subr.bf16.mxu0 %v20383_v22  ;;  %v20389_v22 = vpack.c.bf16 %v30432_v15, %v30431_v25  ;;  %v30439_v25 = vand.u32 4294901760, %v30406_v44  ;;  %v30441_v15 = vand.u32 4294901760, %v30408_v30  ;;  %v12660_v13 = vand.u32 4294901760, %v521_v11  ;;  %v539_v44 = vld [vmem:[#allocation5 + $0xea8] sm:$0xff] }
 0x561   :  { %20408 = vmatprep.subr.bf16.mxu1 %v27175_v10  ;;  %v27601_v10 = vsub.f32 %v27553_v55, %v12654_v61  ;;  %v12878_v51 = vsub.f32 %v27561_v39, %v29305_v59  ;;  %v67_v30 = vld [vmem:[#allocation2 + $0xe8] sm:$0xff]  ;;  %v30442_v23 = vand.u32 4294901760, %v30410_v41  ;;  %v30444_v38 = vand.u32 4294901760, %v27393_v45 }
 0x562   :  { %v20395_v27 = vpack.c.bf16 %v30439_v25, %v30438_v14  ;;  %v27617_v55 = vpack.c.bf16 %v30441_v15, %v30440_v9  ;;  %v30445_v49 = vand.u32 4294901760, %v27400_v3  ;;  %v30446_v43 = vand.u32 4294901760, %v27565_v18  ;;  %v523_v9 = vld [vmem:[#allocation5 + $0xe28] sm:$0xff] }
 0x563   :  { %12373 = vmatmul.mubr.f32.vlgmr.msra.gmra.mrb[80].mxu1 %v30435_v31  ;;  %20386 = vmatpush3.bf16.msra.mxu0 %v20385_v20  ;;  %v30447_v41 = vand.u32 4294901760, %v27406_v60  ;;  %v30449_v45 = vand.u32 4294901760, %v27430_v26  ;;  %v30450_v3 = vand.u32 4294901760, %v27433_v58  ;;  %v27659_v25 = vpack.c.bf16 %v12702_v19, %v12699_v21 }
 0x564   :  { %20410 = vmatpush3.bf16.msra.mxu1 %v30403_v57  ;;  %20388 = vmatprep.subr.bf16.mxu0 %v20387_v42  ;;  %v30443_v57 = vand.u32 4294901760, %v27364_v52  ;;  %v27640_v42 = vpack.c.bf16 %v30445_v49, %v30444_v38  ;;  %v12885_v50 = vsub.f32 %v27565_v18, %v30446_v43  ;;  %v30448_v52 = vand.u32 4294901760, %v27409_v5 }
 0x565   :  { %20412 = vmatprep.subr.bf16.mxu1 %v30404_v53  ;;  %12643 = vmatprep.mubr.f32.mxu1 %v30424_v48  ;;  %v29304_v53 = vand.u32 4294901760, %v27589_v54  ;;  %v27657_v14 = vpack.c.bf16 %v30450_v3, %v30449_v45  ;;  %v522_v48 = vld [vmem:[#allocation5 + $0xe20] sm:$0xff]  ;;  %v29303_v15 = vand.u32 4294901760, %v27601_v10  ;;  %v12711_v60 = vand.u32 4294901760, %v538_v32  ;;  %v541_v45 = vld [vmem:[#allocation5 + $0xeb8] sm:$0xff] }
 0x566   :  { %v27634_v20 = vpack.c.bf16 %v30443_v57, %v30442_v23  ;;  %v27651_v31 = vpack.c.bf16 %v30448_v52, %v30447_v41  ;;  %v27662_v23 = vsub.f32 %v520_v7, %v12657_v33  ;;  %v12714_v57 = vand.u32 4294901760, %v539_v44  ;;  %v540_v52 = vld [vmem:[#allocation5 + $0xeb0] sm:$0xff] }
 0x567   :  { %20390 = vmatpush3.bf16.msra.mxu0 %v20389_v22  ;;  %v27664_v5 = vand.u32 4294901760, %v67_v30  ;;  %v27667_v26 = vsub.f32 %v521_v11, %v12660_v13  ;;  %v12879_v58 = vand.u32 4294901760, %v12878_v51  ;;  %v29302_v21 = vand.u32 4294901760, %v27621_v4 }
 0x568   :  { %20414 = vmatpush3.bf16.msra.mxu1 %v27197_v0  ;;  %20392 = vmatprep.subr.bf16.mxu0 %v20391_v62  ;;  %v29301_v19 = vand.u32 4294901760, %v27624_v40  ;;  %v12886_v38 = vand.u32 4294901760, %v12885_v50  ;;  %v12663_v22 = vand.u32 4294901760, %v522_v48  ;;  %v12666_v7 = vand.u32 4294901760, %v523_v9 }
 0x569   :  { %30451 = vst [vmem:[#allocation16_spill] sm:$0xff] %v27664_v5  ;;  %20416 = vmatprep.subr.bf16.mxu1 %v30407_v17  ;;  %v12766_v49 = vsub.f32 %v27589_v54, %v29304_v53  ;;  %v30452_v43 = vand.u32 4294901760, %v27546_v47  ;;  %v27679_v11 = vpack.c.bf16 %v12708_v56, %v12705_v46  ;;  %v27681_v62 = vpack.c.bf16 %v12660_v13, %v12657_v33  ;;  %v524_v56 = vld [vmem:[#allocation5 + $0xe30] sm:$0xff] }
 0x56a   :  { %v12773_v51 = vsub.f32 %v27601_v10, %v29303_v15  ;;  %v27686_v17 = vpack.c.bf16 %v12714_v57, %v12711_v60  ;;  %v27688_v50 = vsub.f32 %v538_v32, %v12711_v60  ;;  %v27690_v41 = vsub.f32 %v539_v44, %v12714_v57  ;;  %v543_v15 = vld [vmem:[#allocation5 + $0xec8] sm:$0xff] }
 0x56b   :  { %v27677_v0 = vpack.c.bf16 %v12654_v61, %v30452_v43  ;;  %30454 = vst [vmem:[#allocation23_spill] sm:$0xff] %v27679_v11  ;;  %20394 = vmatpush3.bf16.msra.mxu0 %v20393_v2  ;;  %v27693_v47 = vsub.f32 %v67_v30, %v27664_v5  ;;  %v12892_v61 = vsub.f32 %v27621_v4, %v29302_v21  ;;  %v525_v2 = vld [vmem:[#allocation5 + $0xe38] sm:$0xff]  ;;  %v29307_v33 = vand.u32 4294901760, %v27662_v23  ;;  %v542_v21 = vld [vmem:[#allocation5 + $0xec0] sm:$0xff] }
 0x56c   :  { %30455 = vst [vmem:[#allocation24_spill] sm:$0xff] %v27686_v17  ;;  %20418 = vmatpush3.bf16.msra.mxu1 %v30409_v24  ;;  %20396 = vmatprep.subr.bf16.mxu0 %v20395_v27  ;;  %v12899_v46 = vsub.f32 %v27624_v40, %v29301_v19  ;;  %v29306_v13 = vand.u32 4294901760, %v27667_v26  ;;  %v27705_v44 = vpack.c.bf16 %v12886_v38, %v12879_v58  ;;  %v12767_v30 = vand.u32 4294901760, %v12766_v49 }
 0x56d   :  { %30453 = vst [vmem:[#allocation18_spill] sm:$0xff] %v27677_v0  ;;  %v16803_v32 = vpop.f32.mrb[68].mxu0  ;;  %20420 = vmatprep.subr.bf16.mxu1 %v30411_v16  ;;  %v27707_v24 = vpack.c.bf16 %v12666_v7, %v12663_v22  ;;  %v27709_v27 = vsub.f32 %v522_v48, %v12663_v22  ;;  %v27711_v60 = vsub.f32 %v523_v9, %v12666_v7  ;;  %v12774_v57 = vand.u32 4294901760, %v12773_v51 }
 0x56e   :  { %v16804_v3 = vpop.f32.mrb[69].mxu0  ;;  %v12717_v43 = vand.u32 4294901760, %v540_v52  ;;  %v12720_v19 = vand.u32 4294901760, %v541_v45  ;;  %v12669_v59 = vand.u32 4294901760, %v524_v56  ;;  %v12672_v16 = vand.u32 4294901760, %v525_v2 }
 0x56f   :  { %30456 = vst [vmem:[#allocation15_spill] sm:$0xff] %v27707_v24  ;;  %v16805_v53 = vadd.f32 %v16804_v3, %v16803_v32  ;;  %20398 = vmatpush3.bf16.msra.mxu0 %v27617_v55  ;;  %v29311_v58 = vand.u32 4294901760, %v27693_v47  ;;  %v12893_v48 = vand.u32 4294901760, %v12892_v61  ;;  %v12900_v38 = vand.u32 4294901760, %v12899_v46 }
 0x570   :  { %20422 = vmatpush3.bf16.msra.mxu1 %v30412_v37  ;;  %20400 = vmatprep.subr.bf16.mxu0 %v27634_v20  ;;  %v12780_v9 = vsub.f32 %v27662_v23, %v29307_v33  ;;  %v12787_v22 = vsub.f32 %v27667_v26, %v29306_v13  ;;  %v12723_v7 = vand.u32 4294901760, %v542_v21  ;;  %v12726_v49 = vand.u32 4294901760, %v543_v15 }
 0x571   :  { %v10543_v55 = vadd.f32 %v16805_v53, %v27543_v36  ;;  %20424 = vmatprep.subr.bf16.mxu1 %v30413_v6  ;;  %v29309_v37 = vand.u32 4294901760, %v27688_v50  ;;  %v27726_v51 = vpack.c.bf16 %v12774_v57, %v12767_v30  ;;  %v27728_v20 = vpack.c.bf16 %v12720_v19, %v12717_v43  ;;  %v526_v36 = vld [vmem:[#allocation5 + $0xe40] sm:$0xff]  ;;  %v527_v6 = vld [vmem:[#allocation5 + $0xe48] sm:$0xff] }
 0x572   :  { %v27730_v61 = vsub.f32 %v540_v52, %v12717_v43  ;;  %v29308_v46 = vand.u32 4294901760, %v27690_v41  ;;  %v27734_v32 = vsub.f32 %v541_v45, %v12720_v19  ;;  %v27736_v3 = vpack.c.bf16 %v12672_v16, %v12669_v59 }
 0x573   :  { %30457 = vst [vmem:[#allocation14_spill] sm:$0xff] %v27728_v20  ;;  %20402 = vmatpush3.bf16.msra.mxu0 %v27640_v42  ;;  %v29310_v53 = vand.u32 4294901760, %v27709_v27  ;;  %v12749_v30 = vsub.f32 %v27693_v47, %v29311_v58  ;;  %v27744_v52 = vsub.f32 %v524_v56, %v12669_v59  ;;  %v27746_v57 = vsub.f32 %v525_v2, %v12672_v16  ;;  %v544_v16 = vld [vmem:[#allocation5 + $0xed0] sm:$0xff] }
 0x574   :  { %30458 = vst [vmem:[#allocation11_spill] sm:$0xff] %v27736_v3  ;;  %20426 = vmatpush3.bf16.msra.mxu1 %v30414_v63  ;;  %20404 = vmatprep.subr.bf16.mxu0 %v27651_v31  ;;  %v12781_v42 = vand.u32 4294901760, %v12780_v9  ;;  %v29312_v19 = vand.u32 4294901760, %v27711_v60  ;;  %v27750_v45 = vpack.c.bf16 %v12900_v38, %v12893_v48  ;;  %v12788_v43 = vand.u32 4294901760, %v12787_v22  ;;  %v545_v38 = vld [vmem:[#allocation5 + $0xed8] sm:$0xff]  ;;  %v528_v9 = vld [vmem:[#allocation5 + $0xe50] sm:$0xff] }
 0x575   :  { %30459 = vst [vmem:[#allocation17_spill] sm:$0xff] %v27744_v52  ;;  %30460 = vst [vmem:[#allocation22_spill] sm:$0xff] %v27746_v57  ;;  %20428 = vmatprep.subr.bf16.mxu1 %v30417_v34  ;;  %v27752_v13 = vpack.c.bf16 %v12726_v49, %v12723_v7  ;;  %v12906_v63 = vsub.f32 %v27688_v50, %v29309_v37  ;;  %v27757_v31 = vsub.f32 %v542_v21, %v12723_v7 }
 0x576   :  { %v16838_v33 = vpop.f32.mrb[68].mxu1  ;;  %v12913_v59 = vsub.f32 %v27690_v41, %v29308_v46  ;;  %v12675_v56 = vand.u32 4294901760, %v526_v36  ;;  %v12678_v2 = vand.u32 4294901760, %v527_v6  ;;  %v12794_v48 = vsub.f32 %v27709_v27, %v29310_v53 }
 0x577   :  { %30461 = vst [vmem:[#allocation12_spill] sm:$0xff] %v27752_v13  ;;  %v16839_v34 = vpop.f32.mrb[69].mxu1  ;;  %20406 = vmatpush3.bf16.msra.mxu0 %v27657_v14  ;;  %v12750_v22 = vand.u32 4294901760, %v12749_v30  ;;  %v12801_v46 = vsub.f32 %v27711_v60, %v29312_v19  ;;  %v27776_v53 = vpack.c.bf16 %v12788_v43, %v12781_v42  ;;  %v27778_v58 = vsub.f32 %v543_v15, %v12726_v49  ;;  %v529_v14 = vld [vmem:[#allocation5 + $0xe58] sm:$0xff] }
 0x578   :  { %v16840_v7 = vadd.f32 %v16839_v34, %v16838_v33  ;;  %20430 = vmatpush3.bf16.msra.mxu1 %v27337_v29  ;;  %20440 = vmatprep.subr.bf16.mxu0 %v27659_v25  ;;  %v12907_v30 = vand.u32 4294901760, %v12906_v63  ;;  %v12729_v33 = vand.u32 4294901760, %v544_v16  ;;  %v12914_v29 = vand.u32 4294901760, %v12913_v59 }
 0x579   :  { %20432 = vmatprep.subr.bf16.mxu1 %v27358_v28  ;;  %v27783_v21 = vsub.f32 %v526_v36, %v12675_v56  ;;  %v12732_v19 = vand.u32 4294901760, %v545_v38  ;;  %v27786_v37 = vpack.c.bf16 %v12678_v2, %v12675_v56  ;;  %v30463_v28 = vand.u32 4294901760, %v27730_v61 }
 0x57a   :  { %v27780_v34 = vadd.f32 %v16840_v7, %v10543_v55  ;;  %12541 = vmatmul.mubr.f32.vlgmr.msra.gmra.mrb[82].mxu0 %v27390_v1  ;;  %v30464_v49 = vand.u32 4294901760, %v27734_v32  ;;  %v12795_v36 = vand.u32 4294901760, %v12794_v48  ;;  %v12802_v42 = vand.u32 4294901760, %v12801_v46  ;;  %v546_v7 = vld [vmem:[#allocation5 + $0xee0] sm:$0xff] }
 0x57b   :  { %20442 = vmatpush3.bf16.msra.mxu0 %v27677_v0  ;;  %30462 = vst [vmem:[#allocation13_spill] sm:$0xff] %v27786_v37  ;;  %v12920_v15 = vsub.f32 %v27730_v61, %v30463_v28  ;;  %12751 = vmatprep.mubr.f32.mxu0 %v12750_v22  ;;  %v30465_v43 = vand.u32 4294901760, %v27744_v52  ;;  %v30466_v59 = vand.u32 4294901760, %v27746_v57  ;;  %v547_v28 = vld [vmem:[#allocation5 + $0xee8] sm:$0xff]  ;;  %v12681_v22 = vand.u32 4294901760, %v528_v9 }
 0x57c   :  { %v12927_v55 = vsub.f32 %v27734_v32, %v30464_v49  ;;  %20434 = vmatpush3.bf16.msra.mxu1 %v27416_v12  ;;  %20444 = vmatprep.subr.bf16.mxu0 %v27679_v11  ;;  %v27803_v49 = vsub.f32 %v527_v6, %v12678_v2  ;;  %v12684_v12 = vand.u32 4294901760, %v529_v14  ;;  %v29321_v11 = vand.u32 4294901760, %v27757_v31 }
 0x57d   :  { %v12808_v63 = vsub.f32 %v27744_v52, %v30465_v43  ;;  %v12815_v56 = vsub.f32 %v27746_v57, %v30466_v59  ;;  %20436 = vmatprep.subr.bf16.mxu1 %v27442_v8  ;;  %v27806_v48 = vpack.c.bf16 %v12914_v29, %v12907_v30  ;;  %v27808_v46 = vpack.c.bf16 %v12732_v19, %v12729_v33 }
 0x57e   :  { %v27810_v0 = vsub.f32 %v544_v16, %v12729_v33  ;;  %v27812_v43 = vsub.f32 %v545_v38, %v12732_v19  ;;  %v12921_v59 = vand.u32 4294901760, %v12920_v15  ;;  %v12928_v57 = vand.u32 4294901760, %v12927_v55  ;;  %v530_v16 = vld [vmem:[#allocation5 + $0xe60] sm:$0xff] }
 0x57f   :  { %30467 = vst [vmem:[#allocation21_spill] sm:$0xff] %v27808_v46  ;;  %20446 = vmatpush3.bf16.msra.mxu0 %v27681_v62  ;;  %v12735_v52 = vand.u32 4294901760, %v546_v7  ;;  %v12738_v8 = vand.u32 4294901760, %v547_v28  ;;  %v27817_v6 = vpack.c.bf16 %v12802_v42, %v12795_v36  ;;  %v12809_v2 = vand.u32 4294901760, %v12808_v63  ;;  %v27834_v42 = vld [vmem:[#allocation5 + $0xef0] sm:$0xff]  ;;  %v27836_v63 = vld [vmem:[#allocation5 + $0xef8] sm:$0xff] }
 0x580   :  { %30468 = vst [vmem:[#allocation25_spill] sm:$0xff] %v27812_v43  ;;  %20438 = vmatpush3.bf16.msra.mxu1 %v27466_v35  ;;  %20448 = vmatprep.subr.bf16.mxu0 %v27686_v17  ;;  %v12816_v30 = vand.u32 4294901760, %v12815_v56  ;;  %v29322_v29 = vand.u32 4294901760, %v27778_v58  ;;  %v27821_v19 = vpack.c.bf16 %v12684_v12, %v12681_v22  ;;  %v27823_v38 = vsub.f32 %v528_v9, %v12681_v22  ;;  %v531_v35 = vld [vmem:[#allocation5 + $0xe68] sm:$0xff] }
 0x581   :  { %20472 = vmatprep.subr.bf16.mxu1 %v27705_v44  ;;  %v27828_v33 = vsub.f32 %v27757_v31, %v29321_v11  ;;  %v27831_v55 = vsub.f32 %v529_v14, %v12684_v12  ;;  %v29329_v44 = vand.u32 4294901760, %v27810_v0  ;;  %v20483_v56 = vpack.c.bf16 %v12928_v57, %v12921_v59  ;;  %v66_v12 = vld [vmem:[#allocation2 + $0xe0] sm:$0xff] }
 0x582   :  { %v27842_v22 = vpack.c.bf16 %v12738_v8, %v12735_v52  ;;  %v27844_v11 = vsub.f32 %v546_v7, %v12735_v52  ;;  %v12687_v14 = vand.u32 4294901760, %v530_v16  ;;  %v20485_v36 = vpack.c.bf16 %v12816_v30, %v12809_v2  ;;  %v27860_v2 = vld [vmem:[#allocation5 + $0xe70] sm:$0xff] }
 0x583   :  { %30469 = vst [vmem:[#allocation20_spill] sm:$0xff] %v27831_v55  ;;  %12645 = vmatmul.mubr.f32.vlgmr.msra.gmra.mrb[82].mxu1 %v27390_v1  ;;  %20450 = vmatpush3.bf16.msra.mxu0 %v27707_v24  ;;  %v27848_v15 = vsub.f32 %v547_v28, %v12738_v8  ;;  %v12941_v1 = vsub.f32 %v27778_v58, %v29322_v29  ;;  %v12690_v9 = vand.u32 4294901760, %v531_v35  ;;  %v12935_v57 = vand.u32 4294901760, %v27828_v33  ;;  %v27862_v28 = vld [vmem:[#allocation5 + $0xe78] sm:$0xff] }
 0x584   :  { %30470 = vst [vmem:[#allocation19_spill] sm:$0xff] %v27844_v11  ;;  %20474 = vmatpush3.bf16.msra.mxu1 %v27726_v51  ;;  %20452 = vmatprep.subr.bf16.mxu0 %v27728_v20  ;;  %v30471_v52 = vand.u32 4294901760, %v27783_v21  ;;  %v12741_v51 = vand.u32 4294901760, %v27834_v42  ;;  %v12744_v59 = vand.u32 4294901760, %v27836_v63  ;;  %v30472_v8 = vand.u32 4294901760, %v27803_v49 }
 0x585   :  { %20476 = vmatprep.subr.bf16.mxu1 %v27750_v45  ;;  %12987 = vmatprep.mubr.f32.mxu1 %v27664_v5  ;;  %v12948_v30 = vsub.f32 %v27810_v0, %v29329_v44  ;;  %v30473_v33 = vand.u32 4294901760, %v27812_v43  ;;  %v27874_v29 = vand.u32 4294901760, %v66_v12  ;;  %v27877_v20 = vsub.f32 %v530_v16, %v12687_v14 }
 0x586   :  { %v12822_v7 = vsub.f32 %v27783_v21, %v30471_v52  ;;  %v12829_v45 = vsub.f32 %v27803_v49, %v30472_v8  ;;  %v12942_v44 = vand.u32 4294901760, %v12941_v1  ;;  %v27884_v17 = vsub.f32 %v531_v35, %v12690_v9 }
 0x587   :  { %v12955_v52 = vsub.f32 %v27812_v43, %v30473_v33  ;;  %20454 = vmatpush3.bf16.msra.mxu0 %v27736_v3  ;;  %v12693_v33 = vand.u32 4294901760, %v27860_v2  ;;  %v12696_v43 = vand.u32 4294901760, %v27862_v28  ;;  %v27890_v5 = vsub.f32 %v27834_v42, %v12741_v51 }
 0x588   :  { %20478 = vmatpush3.bf16.msra.mxu1 %v27776_v53  ;;  %20456 = vmatprep.subr.bf16.mxu0 %v27752_v13  ;;  %v12823_v16 = vand.u32 4294901760, %v12822_v7  ;;  %v27893_v24 = vsub.f32 %v27836_v63, %v12744_v59  ;;  %v12830_v8 = vand.u32 4294901760, %v12829_v45  ;;  %v12949_v13 = vand.u32 4294901760, %v12948_v30 }
 0x589   :  { %20480 = vmatprep.subr.bf16.mxu1 %v27806_v48  ;;  %v12956_v1 = vand.u32 4294901760, %v12955_v52  ;;  %v27897_v35 = vsub.f32 %v66_v12, %v27874_v29  ;;  %v27900_v3 = vpack.c.bf16 %v12690_v9, %v12687_v14  ;;  %v30474_v48 = vand.u32 4294901760, %v27823_v38 }
 0x58a   :  { %v30475_v7 = vand.u32 4294901760, %v27831_v55  ;;  %v30476_v53 = vand.u32 4294901760, %v27844_v11  ;;  %v27914_v12 = vsub.f32 %v27860_v2, %v12693_v33  ;;  %v27917_v9 = vsub.f32 %v27862_v28, %v12696_v43 }
 0x58b   :  { %20458 = vmatpush3.bf16.msra.mxu0 %v27786_v37  ;;  %v12836_v42 = vsub.f32 %v27823_v38, %v30474_v48  ;;  %v29349_v30 = vand.u32 4294901760, %v27884_v17  ;;  %v20487_v48 = vpack.c.bf16 %v12942_v44, %v12935_v57  ;;  %v20489_v37 = vpack.c.bf16 %v12830_v8, %v12823_v16 }
 0x58c   :  { %v12843_v63 = vsub.f32 %v27831_v55, %v30475_v7  ;;  %v12962_v45 = vsub.f32 %v27844_v11, %v30476_v53  ;;  %20482 = vmatpush3.bf16.msra.mxu1 %v27817_v6  ;;  %20460 = vmatprep.subr.bf16.mxu0 %v27808_v46  ;;  %v30477_v7 = vand.u32 4294901760, %v27848_v15  ;;  %v29348_v6 = vand.u32 4294901760, %v27890_v5 }
 0x58d   :  { %v16873_v52 = vpop.f32.mrb[70].mxu0  ;;  %20484 = vmatprep.subr.bf16.mxu1 %v20483_v56  ;;  %v27926_v11 = vpack.c.bf16 %v12744_v59, %v12741_v51  ;;  %v20491_v28 = vpack.c.bf16 %v12956_v1, %v12949_v13  ;;  %v29350_v14 = vand.u32 4294901760, %v27897_v35  ;;  %v12837_v56 = vand.u32 4294901760, %v12836_v42 }
 0x58e   :  { %v12969_v53 = vsub.f32 %v27848_v15, %v30477_v7  ;;  %v16874_v2 = vpop.f32.mrb[71].mxu0  ;;  %v12844_v44 = vand.u32 4294901760, %v12843_v63  ;;  %v12963_v57 = vand.u32 4294901760, %v12962_v45  ;;  %v30478_v7 = vand.u32 4294901760, %v27877_v20 }
 0x58f   :  { %v16875_v55 = vadd.f32 %v16874_v2, %v16873_v52  ;;  %20462 = vmatpush3.bf16.msra.mxu0 %v27821_v19  ;;  %v12857_v51 = vsub.f32 %v27884_v17, %v29349_v30  ;;  %v29346_v13 = vand.u32 4294901760, %v27914_v12  ;;  %v29347_v59 = vand.u32 4294901760, %v27917_v9 }
 0x590   :  { %20486 = vmatpush3.bf16.msra.mxu1 %v20485_v36  ;;  %20464 = vmatprep.subr.bf16.mxu0 %v27842_v22  ;;  %v12850_v46 = vsub.f32 %v27877_v20, %v30478_v7  ;;  %v12970_v16 = vand.u32 4294901760, %v12969_v53  ;;  %v12976_v36 = vsub.f32 %v27890_v5, %v29348_v6  ;;  %v30479_v1 = vand.u32 4294901760, %v27893_v24 }
 0x591   :  { %v10819_v8 = vadd.f32 %v16875_v55, %v27780_v34  ;;  %20488 = vmatprep.subr.bf16.mxu1 %v20487_v48  ;;  %v12755_v63 = vsub.f32 %v27897_v35, %v29350_v14  ;;  %v27950_v45 = vpack.c.bf16 %v12696_v43, %v12693_v33  ;;  %v20493_v52 = vpack.c.bf16 %v12844_v44, %v12837_v56 }
 0x592   :  { %v12983_v42 = vsub.f32 %v27893_v24, %v30479_v1  ;;  %v20503_v34 = vpack.c.bf16 %v27565_v18, %v27561_v39  ;;  %v12851_v55 = vand.u32 4294901760, %v12850_v46  ;;  %v12858_v48 = vand.u32 4294901760, %v12857_v51 }
 0x593   :  { %20466 = vmatpush3.bf16.msra.mxu0 %v27900_v3  ;;  %v12864_v53 = vsub.f32 %v27914_v12, %v29346_v13  ;;  %v12871_v2 = vsub.f32 %v27917_v9, %v29347_v59  ;;  %v20495_v43 = vpack.c.bf16 %v12970_v16, %v12963_v57  ;;  %v12977_v33 = vand.u32 4294901760, %v12976_v36 }
 0x594   :  { %20490 = vmatpush3.bf16.msra.mxu1 %v20489_v37  ;;  %20468 = vmatprep.subr.bf16.mxu0 %v27926_v11  ;;  %v12984_v56 = vand.u32 4294901760, %v12983_v42  ;;  %v12756_v7 = vand.u32 4294901760, %v12755_v63  ;;  %v20505_v37 = vpack.c.bf16 %v27601_v10, %v27589_v54  ;;  %v20507_v46 = vpack.c.bf16 %v27624_v40, %v27621_v4 }
 0x595   :  { %20492 = vmatprep.subr.bf16.mxu1 %v20491_v28  ;;  %v20497_v13 = vpack.c.bf16 %v12858_v48, %v12851_v55  ;;  %v12865_v59 = vand.u32 4294901760, %v12864_v53  ;;  %v12872_v28 = vand.u32 4294901760, %v12871_v2  ;;  %v20509_v36 = vpack.c.bf16 %v27667_v26, %v27662_v23  ;;  %v30482_v55 = vld [vmem:[#allocation18_spill] sm:$0xff]  ;;  %v30483_v53 = vld [vmem:[#allocation23_spill] sm:$0xff] }
 0x596   :  { %v16908_v44 = vpop.f32.mrb[70].mxu1  ;;  %v20499_v57 = vpack.c.bf16 %v12984_v56, %v12977_v33  ;;  %v20511_v63 = vpack.c.bf16 %v27690_v41, %v27688_v50  ;;  %v20519_v48 = vpack.c.bf16 %v27778_v58, %v27757_v31  ;;  %v30484_v2 = vand.u32 4294901760, %v27693_v47  ;;  %v30485_v33 = vld [vmem:[#allocation25_spill] sm:$0xff] }
 0x597   :  { %v16909_v1 = vpop.f32.mrb[71].mxu1  ;;  %20470 = vmatpush3.bf16.msra.mxu0 %v27950_v45  ;;  %v20501_v42 = vpack.c.bf16 %v12872_v28, %v12865_v59  ;;  %v30481_v59 = vld [vmem:[#allocation22_spill] sm:$0xff]  ;;  %v20523_v56 = vpack.c.bf16 %v30485_v33, %v27810_v0  ;;  %v30498_v6 = vand.u32 4294901760, %v27601_v10  ;;  %v30501_v10 = vand.u32 4294901760, %v27662_v23 }
 0x598   :  { %v16910_v51 = vadd.f32 %v16909_v1, %v16908_v44  ;;  %20494 = vmatpush3.bf16.msra.mxu1 %v20493_v52  ;;  %20504 = vmatprep.subr.bf16.mxu0 %v20503_v34  ;;  %v20513_v52 = vpack.c.bf16 %v27711_v60, %v27709_v27  ;;  %v30486_v44 = vld [vmem:[#allocation24_spill] sm:$0xff]  ;;  %v30490_v28 = vld [vmem:[#allocation14_spill] sm:$0xff] }
 0x599   :  { %20496 = vmatprep.subr.bf16.mxu1 %v20495_v43  ;;  %v20521_v43 = vpack.c.bf16 %v27803_v49, %v27783_v21 }
 0x59a   :  { %v10923_v16 = vadd.f32 %v16910_v51, %v10819_v8  ;;  %12757 = vmatmul.mubr.f32.vlgmr.msra.gmra.mrb[84].mxu0 %v12756_v7  ;;  %v20515_v8 = vpack.c.bf16 %v27734_v32, %v27730_v61  ;;  %v30487_v7 = vld [vmem:[#allocation20_spill] sm:$0xff] }
 0x59b   :  { %20506 = vmatpush3.bf16.msra.mxu0 %v20505_v37  ;;  %13124 = vmatprep.mubr.f32.mxu0 %v27693_v47  ;;  %v20525_v1 = vpack.c.bf16 %v30487_v7, %v27823_v38  ;;  %v30488_v37 = vld [vmem:[#allocation15_spill] sm:$0xff] }
 0x59c   :  { %20498 = vmatpush3.bf16.msra.mxu1 %v20497_v13  ;;  %20508 = vmatprep.subr.bf16.mxu0 %v20507_v46  ;;  %v30480_v13 = vld [vmem:[#allocation17_spill] sm:$0xff]  ;;  %v30489_v47 = vld [vmem:[#allocation19_spill] sm:$0xff] }
 0x59d   :  { %20500 = vmatprep.subr.bf16.mxu1 %v20499_v57  ;;  %v20517_v34 = vpack.c.bf16 %v30481_v59, %v30480_v13  ;;  %v20527_v46 = vpack.c.bf16 %v27848_v15, %v30489_v47 }
 0x59f   :  { %20510 = vmatpush3.bf16.msra.mxu0 %v20509_v36 }
 0x5a0   :  { %20502 = vmatpush3.bf16.msra.mxu1 %v20501_v42  ;;  %20512 = vmatprep.subr.bf16.mxu0 %v20511_v63  ;;  %v20529_v42 = vpack.c.bf16 %v27884_v17, %v27877_v20  ;;  %v30491_v63 = vld [vmem:[#allocation11_spill] sm:$0xff] }
 0x5a1   :  { %20536 = vmatprep.subr.bf16.mxu1 %v27659_v25 }
 0x5a3   :  { %12989 = vmatmul.mubr.f32.vlgmr.msra.gmra.mrb[84].mxu1 %v27874_v29  ;;  %20514 = vmatpush3.bf16.msra.mxu0 %v20513_v52  ;;  %v20531_v52 = vpack.c.bf16 %v27893_v24, %v27890_v5 }
 0x5a4   :  { %20538 = vmatpush3.bf16.msra.mxu1 %v30482_v55  ;;  %20516 = vmatprep.subr.bf16.mxu0 %v20515_v8 }
 0x5a5   :  { %20540 = vmatprep.subr.bf16.mxu1 %v30483_v53  ;;  %13231 = vmatprep.mubr.f32.mxu1 %v30484_v2  ;;  %v30493_v2 = vld [vmem:[#allocation13_spill] sm:$0xff] }
 0x5a7   :  { %20518 = vmatpush3.bf16.msra.mxu0 %v20517_v34  ;;  %v30492_v34 = vld [vmem:[#allocation12_spill] sm:$0xff] }
 0x5a8   :  { %20542 = vmatpush3.bf16.msra.mxu1 %v27681_v62  ;;  %20520 = vmatprep.subr.bf16.mxu0 %v20519_v48  ;;  %v20533_v48 = vpack.c.bf16 %v27917_v9, %v27914_v12 }
 0x5a9   :  { %20544 = vmatprep.subr.bf16.mxu1 %v30486_v44 }
 0x5ab   :  { %20522 = vmatpush3.bf16.msra.mxu0 %v20521_v43  ;;  %v30494_v43 = vand.u32 4294901760, %v27561_v39  ;;  %v30499_v39 = vand.u32 4294901760, %v27621_v4  ;;  %v30502_v4 = vand.u32 4294901760, %v27667_v26 }
 0x5ac   :  { %20546 = vmatpush3.bf16.msra.mxu1 %v30488_v37  ;;  %20524 = vmatprep.subr.bf16.mxu0 %v20523_v56  ;;  %v30495_v56 = vand.u32 4294901760, %v27565_v18  ;;  %v30500_v18 = vand.u32 4294901760, %v27624_v40  ;;  %v30503_v40 = vld [vmem:[#allocation16_spill] sm:$0xff] }
 0x5ad   :  { %v16943_v51 = vpop.f32.mrb[72].mxu0  ;;  %20548 = vmatprep.subr.bf16.mxu1 %v30490_v28 }
 0x5ae   :  { %v16944_v57 = vpop.f32.mrb[73].mxu0 }
 0x5af   :  { %v16945_v36 = vadd.f32 %v16944_v57, %v16943_v51  ;;  %20526 = vmatpush3.bf16.msra.mxu0 %v20525_v1  ;;  %v20567_v1 = vpack.c.bf16 %v30495_v56, %v30494_v43  ;;  %v30496_v51 = vld [vmem:[#allocation21_spill] sm:$0xff]  ;;  %v20571_v43 = vpack.c.bf16 %v30500_v18, %v30499_v39  ;;  %v30509_v18 = vand.u32 4294901760, %v27734_v32 }
 0x5b0   :  { %20550 = vmatpush3.bf16.msra.mxu1 %v30491_v63  ;;  %20528 = vmatprep.subr.bf16.mxu0 %v20527_v46  ;;  %v28011_v46 = vld [vmem:[#allocation5 + $0xf80] sm:$0xff]  ;;  %v30510_v32 = vand.u32 4294901760, %v30480_v13 }
 0x5b1   :  { %v11035_v8 = vadd.f32 %v16945_v36, %v10923_v16  ;;  %20552 = vmatprep.subr.bf16.mxu1 %v30492_v34  ;;  %v28013_v16 = vld [vmem:[#allocation5 + $0xf88] sm:$0xff]  ;;  %v13561_v56 = vand.u32 4294901760, %v28011_v46 }
 0x5b3   :  { %20530 = vmatpush3.bf16.msra.mxu0 %v20529_v42  ;;  %v30497_v42 = vand.u32 4294901760, %v27589_v54  ;;  %v28030_v54 = vld [vmem:[#allocation5 + $0xf00] sm:$0xff] }
 0x5b4   :  { %20554 = vmatpush3.bf16.msra.mxu1 %v30493_v2  ;;  %20532 = vmatprep.subr.bf16.mxu0 %v20531_v52  ;;  %v29351_v26 = vand.u32 4294901760, %v28030_v54 }
 0x5b5   :  { %20556 = vmatprep.subr.bf16.mxu1 %v30496_v51  ;;  %v20569_v30 = vpack.c.bf16 %v30498_v6, %v30497_v42  ;;  %v20573_v6 = vpack.c.bf16 %v30502_v4, %v30501_v10  ;;  %v28045_v42 = vsub.f32 %v28011_v46, %v13561_v56 }
 0x5b6   :  { %v16978_v57 = vpop.f32.mrb[72].mxu1 }
 0x5b7   :  { %v16979_v36 = vpop.f32.mrb[73].mxu1  ;;  %20534 = vmatpush3.bf16.msra.mxu0 %v20533_v48  ;;  %v13564_v48 = vand.u32 4294901760, %v28013_v16 }
 0x5b8   :  { %v16980_v52 = vadd.f32 %v16979_v36, %v16978_v57  ;;  %20558 = vmatpush3.bf16.msra.mxu1 %v27821_v19  ;;  %20568 = vmatprep.subr.bf16.mxu0 %v20567_v1  ;;  %v28037_v1 = vld [vmem:[#allocation5 + $0xf08] sm:$0xff]  ;;  %v30505_v57 = vand.u32 4294901760, %v27690_v41  ;;  %v30507_v41 = vand.u32 4294901760, %v27711_v60  ;;  %v553_v60 = vld [vmem:[#allocation5 + $0xf18] sm:$0xff] }
 0x5b9   :  { %20560 = vmatprep.subr.bf16.mxu1 %v27842_v22  ;;  %v28049_v23 = vsub.f32 %v28013_v16, %v13564_v48  ;;  %v13516_v39 = vand.u32 4294901760, %v28037_v1  ;;  %v30508_v16 = vand.u32 4294901760, %v27730_v61  ;;  %v30516_v61 = vand.u32 4294901760, %v27803_v49 }
 0x5ba   :  { %v28027_v14 = vadd.f32 %v16980_v52, %v11035_v8  ;;  %13127 = vmatmul.mubr.f32.vlgmr.msra.gmra.mrb[86].mxu0 %v27897_v35  ;;  %v30504_v8 = vand.u32 4294901760, %v27688_v50  ;;  %v28054_v52 = vld [vmem:[#allocation5 + $0xf98] sm:$0xff]  ;;  %v30506_v50 = vand.u32 4294901760, %v27709_v27  ;;  %v28073_v27 = vsub.f32 %v28030_v54, %v29351_v26 }
 0x5bb   :  { %20570 = vmatpush3.bf16.msra.mxu0 %v20569_v30  ;;  %13401 = vmatprep.mubr.f32.mxu0 %v30503_v40  ;;  %v28052_v30 = vld [vmem:[#allocation5 + $0xf90] sm:$0xff]  ;;  %v13570_v4 = vand.u32 4294901760, %v28054_v52  ;;  %v30515_v26 = vand.u32 4294901760, %v27783_v21 }
 0x5bc   :  { %20562 = vmatpush3.bf16.msra.mxu1 %v27900_v3  ;;  %20572 = vmatprep.subr.bf16.mxu0 %v20571_v43  ;;  %v20575_v36 = vpack.c.bf16 %v30505_v57, %v30504_v8  ;;  %v20577_v46 = vpack.c.bf16 %v30507_v41, %v30506_v50  ;;  %v20579_v43 = vpack.c.bf16 %v30509_v18, %v30508_v16  ;;  %v13567_v10 = vand.u32 4294901760, %v28052_v30  ;;  %v552_v8 = vld [vmem:[#allocation5 + $0xf10] sm:$0xff] }
 0x5bd   :  { %20564 = vmatprep.subr.bf16.mxu1 %v27926_v11  ;;  %v30511_v57 = vand.u32 4294901760, %v30481_v59  ;;  %v30512_v50 = vand.u32 4294901760, %v27757_v31  ;;  %v30513_v41 = vand.u32 4294901760, %v27778_v58  ;;  %v30514_v18 = vand.u32 4294901760, %v27897_v35  ;;  %v570_v35 = vld [vmem:[#allocation5 + $0xfa0] sm:$0xff] }
 0x5be   :  { %v20585_v13 = vpack.c.bf16 %v30516_v61, %v30515_v26  ;;  %v30517_v59 = vand.u32 4294901760, %v27810_v0  ;;  %v30519_v58 = vand.u32 4294901760, %v27823_v38  ;;  %v28105_v21 = vsub.f32 %v28052_v30, %v13567_v10 }
 0x5bf   :  { %20574 = vmatpush3.bf16.msra.mxu0 %v20573_v6  ;;  %v29356_v6 = vand.u32 4294901760, %v28045_v42  ;;  %v20583_v16 = vpack.c.bf16 %v30513_v41, %v30512_v50  ;;  %v13519_v50 = vand.u32 4294901760, %v552_v8  ;;  %v28108_v49 = vsub.f32 %v28054_v52, %v13570_v4 }
 0x5c0   :  { %20566 = vmatpush3.bf16.msra.mxu1 %v27950_v45  ;;  %20576 = vmatprep.subr.bf16.mxu0 %v20575_v36  ;;  %v20581_v36 = vpack.c.bf16 %v30511_v57, %v30510_v32  ;;  %v30518_v32 = vand.u32 4294901760, %v30485_v33  ;;  %v30520_v57 = vand.u32 4294901760, %v30487_v7  ;;  %v13522_v0 = vand.u32 4294901760, %v553_v60  ;;  %v571_v33 = vld [vmem:[#allocation5 + $0xfa8] sm:$0xff]  ;;  %v69_v7 = vld [vmem:[#allocation2 + $0xf8] sm:$0xff] }
 0x5c1   :  { %20600 = vmatprep.subr.bf16.mxu1 %v27659_v25  ;;  %v28085_v25 = vsub.f32 %v28037_v1, %v13516_v39  ;;  %v13740_v38 = vsub.f32 %v28045_v42, %v29356_v6  ;;  %v30521_v26 = vand.u32 4294901760, %v30489_v47  ;;  %v30523_v30 = vand.u32 4294901760, %v27877_v20 }
 0x5c2   :  { %v20587_v31 = vpack.c.bf16 %v30518_v32, %v30517_v59  ;;  %v28101_v1 = vpack.c.bf16 %v30520_v57, %v30519_v58  ;;  %v30524_v52 = vand.u32 4294901760, %v27884_v17  ;;  %v30525_v61 = vand.u32 4294901760, %v28049_v23  ;;  %v555_v58 = vld [vmem:[#allocation5 + $0xf28] sm:$0xff] }
 0x5c3   :  { %13235 = vmatmul.mubr.f32.vlgmr.msra.gmra.mrb[86].mxu1 %v30514_v18  ;;  %20578 = vmatpush3.bf16.msra.mxu0 %v20577_v46  ;;  %v30526_v47 = vand.u32 4294901760, %v27890_v5  ;;  %v30528_v20 = vand.u32 4294901760, %v27914_v12  ;;  %v30529_v17 = vand.u32 4294901760, %v27917_v9  ;;  %v28143_v32 = vpack.c.bf16 %v13564_v48, %v13561_v56 }
 0x5c4   :  { %20602 = vmatpush3.bf16.msra.mxu1 %v30482_v55  ;;  %20580 = vmatprep.subr.bf16.mxu0 %v20579_v43  ;;  %v30522_v55 = vand.u32 4294901760, %v27848_v15  ;;  %v28124_v43 = vpack.c.bf16 %v30524_v52, %v30523_v30  ;;  %v13747_v41 = vsub.f32 %v28049_v23, %v30525_v61  ;;  %v30527_v15 = vand.u32 4294901760, %v27893_v24 }
 0x5c5   :  { %20604 = vmatprep.subr.bf16.mxu1 %v30483_v53  ;;  %13505 = vmatprep.mubr.f32.mxu1 %v30503_v40  ;;  %v29355_v53 = vand.u32 4294901760, %v28073_v27  ;;  %v28141_v59 = vpack.c.bf16 %v30529_v17, %v30528_v20  ;;  %v554_v40 = vld [vmem:[#allocation5 + $0xf20] sm:$0xff]  ;;  %v29354_v57 = vand.u32 4294901760, %v28085_v25  ;;  %v13573_v5 = vand.u32 4294901760, %v570_v35  ;;  %v573_v20 = vld [vmem:[#allocation5 + $0xfb8] sm:$0xff] }
 0x5c6   :  { %v28118_v46 = vpack.c.bf16 %v30522_v55, %v30521_v26  ;;  %v28135_v18 = vpack.c.bf16 %v30527_v15, %v30526_v47  ;;  %v28146_v26 = vsub.f32 %v552_v8, %v13519_v50  ;;  %v13576_v55 = vand.u32 4294901760, %v571_v33  ;;  %v572_v15 = vld [vmem:[#allocation5 + $0xfb0] sm:$0xff] }
 0x5c7   :  { %20582 = vmatpush3.bf16.msra.mxu0 %v20581_v36  ;;  %v28148_v24 = vand.u32 4294901760, %v69_v7  ;;  %v28151_v12 = vsub.f32 %v553_v60, %v13522_v0  ;;  %v13741_v9 = vand.u32 4294901760, %v13740_v38  ;;  %v29353_v56 = vand.u32 4294901760, %v28105_v21 }
 0x5c8   :  { %20606 = vmatpush3.bf16.msra.mxu1 %v27681_v62  ;;  %20584 = vmatprep.subr.bf16.mxu0 %v20583_v16  ;;  %v29352_v48 = vand.u32 4294901760, %v28108_v49  ;;  %v13748_v30 = vand.u32 4294901760, %v13747_v41  ;;  %v13525_v36 = vand.u32 4294901760, %v554_v40  ;;  %v13528_v8 = vand.u32 4294901760, %v555_v58 }
 0x5c9   :  { %30530 = vst [vmem:[#allocation17_spill] sm:$0xff] %v28148_v24  ;;  %20608 = vmatprep.subr.bf16.mxu1 %v30486_v44  ;;  %v13628_v52 = vsub.f32 %v28073_v27, %v29355_v53  ;;  %v30531_v61 = vand.u32 4294901760, %v28030_v54  ;;  %v28163_v60 = vpack.c.bf16 %v13570_v4, %v13567_v10  ;;  %v28165_v16 = vpack.c.bf16 %v13522_v0, %v13519_v50  ;;  %v556_v4 = vld [vmem:[#allocation5 + $0xf30] sm:$0xff] }
 0x5ca   :  { %v13635_v38 = vsub.f32 %v28085_v25, %v29354_v57  ;;  %v28170_v44 = vpack.c.bf16 %v13576_v55, %v13573_v5  ;;  %v28172_v41 = vsub.f32 %v570_v35, %v13573_v5  ;;  %v28174_v47 = vsub.f32 %v571_v33, %v13576_v55  ;;  %v575_v57 = vld [vmem:[#allocation5 + $0xfc8] sm:$0xff] }
 0x5cb   :  { %v28161_v62 = vpack.c.bf16 %v13516_v39, %v30531_v61  ;;  %30533 = vst [vmem:[#allocation18_spill] sm:$0xff] %v28163_v60  ;;  %20586 = vmatpush3.bf16.msra.mxu0 %v20585_v13  ;;  %v28177_v54 = vsub.f32 %v69_v7, %v28148_v24  ;;  %v13754_v39 = vsub.f32 %v28105_v21, %v29353_v56  ;;  %v557_v13 = vld [vmem:[#allocation5 + $0xf38] sm:$0xff]  ;;  %v29358_v50 = vand.u32 4294901760, %v28146_v26  ;;  %v574_v56 = vld [vmem:[#allocation5 + $0xfc0] sm:$0xff] }
 0x5cc   :  { %30534 = vst [vmem:[#allocation23_spill] sm:$0xff] %v28170_v44  ;;  %20610 = vmatpush3.bf16.msra.mxu1 %v30488_v37  ;;  %20588 = vmatprep.subr.bf16.mxu0 %v20587_v31  ;;  %v13761_v10 = vsub.f32 %v28108_v49, %v29352_v48  ;;  %v29357_v0 = vand.u32 4294901760, %v28151_v12  ;;  %v28189_v33 = vpack.c.bf16 %v13748_v30, %v13741_v9  ;;  %v13629_v7 = vand.u32 4294901760, %v13628_v52 }
 0x5cd   :  { %30532 = vst [vmem:[#allocation22_spill] sm:$0xff] %v28161_v62  ;;  %v17013_v35 = vpop.f32.mrb[74].mxu0  ;;  %20612 = vmatprep.subr.bf16.mxu1 %v30490_v28  ;;  %v28191_v37 = vpack.c.bf16 %v13528_v8, %v13525_v36  ;;  %v28193_v31 = vsub.f32 %v554_v40, %v13525_v36  ;;  %v28195_v5 = vsub.f32 %v555_v58, %v13528_v8  ;;  %v13636_v55 = vand.u32 4294901760, %v13635_v38 }
 0x5ce   :  { %v17014_v17 = vpop.f32.mrb[75].mxu0  ;;  %v13579_v61 = vand.u32 4294901760, %v572_v15  ;;  %v13582_v48 = vand.u32 4294901760, %v573_v20  ;;  %v13531_v6 = vand.u32 4294901760, %v556_v4  ;;  %v13534_v28 = vand.u32 4294901760, %v557_v13 }
 0x5cf   :  { %30535 = vst [vmem:[#allocation25_spill] sm:$0xff] %v28191_v37  ;;  %v17015_v53 = vadd.f32 %v17014_v17, %v17013_v35  ;;  %20590 = vmatpush3.bf16.msra.mxu0 %v28101_v1  ;;  %v29362_v9 = vand.u32 4294901760, %v28177_v54  ;;  %v13755_v40 = vand.u32 4294901760, %v13754_v39  ;;  %v13762_v30 = vand.u32 4294901760, %v13761_v10 }
 0x5d0   :  { %20614 = vmatpush3.bf16.msra.mxu1 %v30491_v63  ;;  %20592 = vmatprep.subr.bf16.mxu0 %v28118_v46  ;;  %v13642_v58 = vsub.f32 %v28146_v26, %v29358_v50  ;;  %v13649_v36 = vsub.f32 %v28151_v12, %v29357_v0  ;;  %v13585_v8 = vand.u32 4294901760, %v574_v56  ;;  %v13588_v52 = vand.u32 4294901760, %v575_v57 }
 0x5d1   :  { %v11405_v1 = vadd.f32 %v17015_v53, %v28027_v14  ;;  %20616 = vmatprep.subr.bf16.mxu1 %v30492_v34  ;;  %v29360_v63 = vand.u32 4294901760, %v28172_v41  ;;  %v28210_v38 = vpack.c.bf16 %v13636_v55, %v13629_v7  ;;  %v28212_v46 = vpack.c.bf16 %v13582_v48, %v13579_v61  ;;  %v558_v14 = vld [vmem:[#allocation5 + $0xf40] sm:$0xff]  ;;  %v559_v34 = vld [vmem:[#allocation5 + $0xf48] sm:$0xff] }
 0x5d2   :  { %v28214_v39 = vsub.f32 %v572_v15, %v13579_v61  ;;  %v29359_v10 = vand.u32 4294901760, %v28174_v47  ;;  %v28218_v35 = vsub.f32 %v573_v20, %v13582_v48  ;;  %v28220_v17 = vpack.c.bf16 %v13534_v28, %v13531_v6 }
 0x5d3   :  { %30536 = vst [vmem:[#allocation24_spill] sm:$0xff] %v28212_v46  ;;  %20594 = vmatpush3.bf16.msra.mxu0 %v28124_v43  ;;  %v29361_v53 = vand.u32 4294901760, %v28193_v31  ;;  %v13611_v7 = vsub.f32 %v28177_v54, %v29362_v9  ;;  %v28228_v15 = vsub.f32 %v556_v4, %v13531_v6  ;;  %v28230_v55 = vsub.f32 %v557_v13, %v13534_v28  ;;  %v576_v28 = vld [vmem:[#allocation5 + $0xfd0] sm:$0xff] }
 0x5d4   :  { %30537 = vst [vmem:[#allocation20_spill] sm:$0xff] %v28220_v17  ;;  %20618 = vmatpush3.bf16.msra.mxu1 %v30493_v2  ;;  %20596 = vmatprep.subr.bf16.mxu0 %v28135_v18  ;;  %v13643_v43 = vand.u32 4294901760, %v13642_v58  ;;  %v29363_v48 = vand.u32 4294901760, %v28195_v5  ;;  %v28234_v20 = vpack.c.bf16 %v13762_v30, %v13755_v40  ;;  %v13650_v61 = vand.u32 4294901760, %v13649_v36  ;;  %v577_v30 = vld [vmem:[#allocation5 + $0xfd8] sm:$0xff]  ;;  %v560_v58 = vld [vmem:[#allocation5 + $0xf50] sm:$0xff] }
 0x5d5   :  { %30538 = vst [vmem:[#allocation15_spill] sm:$0xff] %v28228_v15  ;;  %30539 = vst [vmem:[#allocation19_spill] sm:$0xff] %v28230_v55  ;;  %20620 = vmatprep.subr.bf16.mxu1 %v30496_v51  ;;  %v28236_v0 = vpack.c.bf16 %v13588_v52, %v13585_v8  ;;  %v13768_v2 = vsub.f32 %v28172_v41, %v29360_v63  ;;  %v28241_v18 = vsub.f32 %v574_v56, %v13585_v8 }
 0x5d6   :  { %v17048_v50 = vpop.f32.mrb[74].mxu1  ;;  %v13775_v6 = vsub.f32 %v28174_v47, %v29359_v10  ;;  %v13537_v4 = vand.u32 4294901760, %v558_v14  ;;  %v13540_v13 = vand.u32 4294901760, %v559_v34  ;;  %v13656_v40 = vsub.f32 %v28193_v31, %v29361_v53 }
 0x5d7   :  { %30540 = vst [vmem:[#allocation14_spill] sm:$0xff] %v28236_v0  ;;  %v17049_v51 = vpop.f32.mrb[75].mxu1  ;;  %20598 = vmatpush3.bf16.msra.mxu0 %v28141_v59  ;;  %v13612_v36 = vand.u32 4294901760, %v13611_v7  ;;  %v13663_v10 = vsub.f32 %v28195_v5, %v29363_v48  ;;  %v28260_v53 = vpack.c.bf16 %v13650_v61, %v13643_v43  ;;  %v28262_v9 = vsub.f32 %v575_v57, %v13588_v52  ;;  %v561_v59 = vld [vmem:[#allocation5 + $0xf58] sm:$0xff] }
 0x5d8   :  { %v17050_v8 = vadd.f32 %v17049_v51, %v17048_v50  ;;  %20622 = vmatpush3.bf16.msra.mxu1 %v27821_v19  ;;  %20632 = vmatprep.subr.bf16.mxu0 %v28143_v32  ;;  %v13769_v7 = vand.u32 4294901760, %v13768_v2  ;;  %v13591_v50 = vand.u32 4294901760, %v576_v28  ;;  %v13776_v19 = vand.u32 4294901760, %v13775_v6 }
 0x5d9   :  { %20624 = vmatprep.subr.bf16.mxu1 %v27842_v22  ;;  %v28267_v56 = vsub.f32 %v558_v14, %v13537_v4  ;;  %v13594_v48 = vand.u32 4294901760, %v577_v30  ;;  %v28270_v63 = vpack.c.bf16 %v13540_v13, %v13537_v4  ;;  %v30542_v22 = vand.u32 4294901760, %v28214_v39 }
 0x5da   :  { %v28264_v51 = vadd.f32 %v17050_v8, %v11405_v1  ;;  %13403 = vmatmul.mubr.f32.vlgmr.msra.gmra.mrb[88].mxu0 %v27874_v29  ;;  %v30543_v52 = vand.u32 4294901760, %v28218_v35  ;;  %v13657_v14 = vand.u32 4294901760, %v13656_v40  ;;  %v13664_v43 = vand.u32 4294901760, %v13663_v10  ;;  %v578_v8 = vld [vmem:[#allocation5 + $0xfe0] sm:$0xff] }
 0x5db   :  { %20634 = vmatpush3.bf16.msra.mxu0 %v28161_v62  ;;  %30541 = vst [vmem:[#allocation11_spill] sm:$0xff] %v28270_v63  ;;  %v13782_v57 = vsub.f32 %v28214_v39, %v30542_v22  ;;  %13613 = vmatprep.mubr.f32.mxu0 %v13612_v36  ;;  %v30544_v61 = vand.u32 4294901760, %v28228_v15  ;;  %v30545_v6 = vand.u32 4294901760, %v28230_v55  ;;  %v579_v22 = vld [vmem:[#allocation5 + $0xfe8] sm:$0xff]  ;;  %v13543_v36 = vand.u32 4294901760, %v560_v58 }
 0x5dc   :  { %v13789_v1 = vsub.f32 %v28218_v35, %v30543_v52  ;;  %20626 = vmatpush3.bf16.msra.mxu1 %v27900_v3  ;;  %20636 = vmatprep.subr.bf16.mxu0 %v28163_v60  ;;  %v28287_v52 = vsub.f32 %v559_v34, %v13540_v13  ;;  %v13546_v3 = vand.u32 4294901760, %v561_v59  ;;  %v29372_v60 = vand.u32 4294901760, %v28241_v18 }
 0x5dd   :  { %v13670_v2 = vsub.f32 %v28228_v15, %v30544_v61  ;;  %v13677_v4 = vsub.f32 %v28230_v55, %v30545_v6  ;;  %20628 = vmatprep.subr.bf16.mxu1 %v27926_v11  ;;  %v28290_v40 = vpack.c.bf16 %v13776_v19, %v13769_v7  ;;  %v28292_v10 = vpack.c.bf16 %v13594_v48, %v13591_v50 }
 0x5de   :  { %v28294_v62 = vsub.f32 %v576_v28, %v13591_v50  ;;  %v28296_v61 = vsub.f32 %v577_v30, %v13594_v48  ;;  %v13783_v6 = vand.u32 4294901760, %v13782_v57  ;;  %v13790_v55 = vand.u32 4294901760, %v13789_v1  ;;  %v562_v28 = vld [vmem:[#allocation5 + $0xf60] sm:$0xff] }
 0x5df   :  { %30546 = vst [vmem:[#allocation12_spill] sm:$0xff] %v28292_v10  ;;  %20638 = vmatpush3.bf16.msra.mxu0 %v28165_v16  ;;  %v13597_v15 = vand.u32 4294901760, %v578_v8  ;;  %v13600_v11 = vand.u32 4294901760, %v579_v22  ;;  %v28301_v34 = vpack.c.bf16 %v13664_v43, %v13657_v14  ;;  %v13671_v13 = vand.u32 4294901760, %v13670_v2  ;;  %v28318_v43 = vld [vmem:[#allocation5 + $0xff0] sm:$0xff]  ;;  %v28320_v2 = vld [vmem:[#allocation5 + $0xff8] sm:$0xff] }
 0x5e0   :  { %30547 = vst [vmem:[#allocation13_spill] sm:$0xff] %v28296_v61  ;;  %20630 = vmatpush3.bf16.msra.mxu1 %v27950_v45  ;;  %20640 = vmatprep.subr.bf16.mxu0 %v28170_v44  ;;  %v13678_v7 = vand.u32 4294901760, %v13677_v4  ;;  %v29373_v19 = vand.u32 4294901760, %v28262_v9  ;;  %v28305_v48 = vpack.c.bf16 %v13546_v3, %v13543_v36  ;;  %v28307_v30 = vsub.f32 %v560_v58, %v13543_v36  ;;  %v563_v45 = vld [vmem:[#allocation5 + $0xf68] sm:$0xff] }
 0x5e1   :  { %20664 = vmatprep.subr.bf16.mxu1 %v28189_v33  ;;  %v28312_v50 = vsub.f32 %v28241_v18, %v29372_v60  ;;  %v28315_v1 = vsub.f32 %v561_v59, %v13546_v3  ;;  %v29380_v33 = vand.u32 4294901760, %v28294_v62  ;;  %v20675_v4 = vpack.c.bf16 %v13790_v55, %v13783_v6  ;;  %v68_v3 = vld [vmem:[#allocation2 + $0xf0] sm:$0xff] }
 0x5e2   :  { %v28326_v36 = vpack.c.bf16 %v13600_v11, %v13597_v15  ;;  %v28328_v60 = vsub.f32 %v578_v8, %v13597_v15  ;;  %v13549_v59 = vand.u32 4294901760, %v562_v28  ;;  %v20677_v14 = vpack.c.bf16 %v13678_v7, %v13671_v13  ;;  %v28344_v13 = vld [vmem:[#allocation5 + $0xf70] sm:$0xff] }
 0x5e3   :  { %30548 = vst [vmem:[#allocation21_spill] sm:$0xff] %v28315_v1  ;;  %13507 = vmatmul.mubr.f32.vlgmr.msra.gmra.mrb[88].mxu1 %v27874_v29  ;;  %20642 = vmatpush3.bf16.msra.mxu0 %v28191_v37  ;;  %v28332_v57 = vsub.f32 %v579_v22, %v13600_v11  ;;  %v13803_v29 = vsub.f32 %v28262_v9, %v29373_v19  ;;  %v13552_v58 = vand.u32 4294901760, %v563_v45  ;;  %v13797_v55 = vand.u32 4294901760, %v28312_v50  ;;  %v28346_v22 = vld [vmem:[#allocation5 + $0xf78] sm:$0xff] }
 0x5e4   :  { %30549 = vst [vmem:[#allocation16_spill] sm:$0xff] %v28328_v60  ;;  %20666 = vmatpush3.bf16.msra.mxu1 %v28210_v38  ;;  %20644 = vmatprep.subr.bf16.mxu0 %v28212_v46  ;;  %v30550_v15 = vand.u32 4294901760, %v28267_v56  ;;  %v13603_v38 = vand.u32 4294901760, %v28318_v43  ;;  %v13606_v6 = vand.u32 4294901760, %v28320_v2  ;;  %v30551_v11 = vand.u32 4294901760, %v28287_v52 }
 0x5e5   :  { %20668 = vmatprep.subr.bf16.mxu1 %v28234_v20  ;;  %13849 = vmatprep.mubr.f32.mxu1 %v28148_v24  ;;  %v13810_v7 = vsub.f32 %v28294_v62, %v29380_v33  ;;  %v30552_v50 = vand.u32 4294901760, %v28296_v61  ;;  %v28358_v19 = vand.u32 4294901760, %v68_v3  ;;  %v28361_v46 = vsub.f32 %v562_v28, %v13549_v59 }
 0x5e6   :  { %v13684_v8 = vsub.f32 %v28267_v56, %v30550_v15  ;;  %v13691_v20 = vsub.f32 %v28287_v52, %v30551_v11  ;;  %v13804_v33 = vand.u32 4294901760, %v13803_v29  ;;  %v28368_v44 = vsub.f32 %v563_v45, %v13552_v58 }
 0x5e7   :  { %v13817_v15 = vsub.f32 %v28296_v61, %v30552_v50  ;;  %20646 = vmatpush3.bf16.msra.mxu0 %v28220_v17  ;;  %v13555_v50 = vand.u32 4294901760, %v28344_v13  ;;  %v13558_v61 = vand.u32 4294901760, %v28346_v22  ;;  %v28374_v24 = vsub.f32 %v28318_v43, %v13603_v38 }
 0x5e8   :  { %20670 = vmatpush3.bf16.msra.mxu1 %v28260_v53  ;;  %20648 = vmatprep.subr.bf16.mxu0 %v28236_v0  ;;  %v13685_v28 = vand.u32 4294901760, %v13684_v8  ;;  %v28377_v37 = vsub.f32 %v28320_v2, %v13606_v6  ;;  %v13692_v11 = vand.u32 4294901760, %v13691_v20  ;;  %v13811_v0 = vand.u32 4294901760, %v13810_v7 }
 0x5e9   :  { %20672 = vmatprep.subr.bf16.mxu1 %v28290_v40  ;;  %v13818_v29 = vand.u32 4294901760, %v13817_v15  ;;  %v28381_v45 = vsub.f32 %v68_v3, %v28358_v19  ;;  %v28384_v17 = vpack.c.bf16 %v13552_v58, %v13549_v59  ;;  %v30553_v40 = vand.u32 4294901760, %v28307_v30 }
 0x5ea   :  { %v30554_v8 = vand.u32 4294901760, %v28315_v1  ;;  %v30555_v53 = vand.u32 4294901760, %v28328_v60  ;;  %v28398_v3 = vsub.f32 %v28344_v13, %v13555_v50  ;;  %v28401_v58 = vsub.f32 %v28346_v22, %v13558_v61 }
 0x5eb   :  { %20650 = vmatpush3.bf16.msra.mxu0 %v28270_v63  ;;  %v13698_v43 = vsub.f32 %v28307_v30, %v30553_v40  ;;  %v13718_v7 = vand.u32 4294901760, %v28368_v44  ;;  %v20679_v40 = vpack.c.bf16 %v13804_v33, %v13797_v55  ;;  %v20681_v63 = vpack.c.bf16 %v13692_v11, %v13685_v28 }
 0x5ec   :  { %v13705_v2 = vsub.f32 %v28315_v1, %v30554_v8  ;;  %v13824_v20 = vsub.f32 %v28328_v60, %v30555_v53  ;;  %20674 = vmatpush3.bf16.msra.mxu1 %v28301_v34  ;;  %20652 = vmatprep.subr.bf16.mxu0 %v28292_v10  ;;  %v30556_v8 = vand.u32 4294901760, %v28332_v57  ;;  %v29399_v34 = vand.u32 4294901760, %v28374_v24 }
 0x5ed   :  { %v17083_v15 = vpop.f32.mrb[76].mxu0  ;;  %20676 = vmatprep.subr.bf16.mxu1 %v20675_v4  ;;  %v28410_v60 = vpack.c.bf16 %v13606_v6, %v13603_v38  ;;  %v20683_v22 = vpack.c.bf16 %v13818_v29, %v13811_v0  ;;  %v13616_v59 = vand.u32 4294901760, %v28381_v45  ;;  %v13699_v4 = vand.u32 4294901760, %v13698_v43 }
 0x5ee   :  { %v13831_v53 = vsub.f32 %v28332_v57, %v30556_v8  ;;  %v17084_v13 = vpop.f32.mrb[77].mxu0  ;;  %v13706_v33 = vand.u32 4294901760, %v13705_v2  ;;  %v13825_v55 = vand.u32 4294901760, %v13824_v20  ;;  %v30557_v8 = vand.u32 4294901760, %v28361_v46 }
 0x5ef   :  { %v17085_v1 = vadd.f32 %v17084_v13, %v17083_v15  ;;  %20654 = vmatpush3.bf16.msra.mxu0 %v28305_v48  ;;  %v13719_v38 = vsub.f32 %v28368_v44, %v13718_v7  ;;  %v29397_v0 = vand.u32 4294901760, %v28398_v3  ;;  %v29398_v6 = vand.u32 4294901760, %v28401_v58 }
 0x5f0   :  { %20678 = vmatpush3.bf16.msra.mxu1 %v20677_v14  ;;  %20656 = vmatprep.subr.bf16.mxu0 %v28326_v36  ;;  %v13712_v10 = vsub.f32 %v28361_v46, %v30557_v8  ;;  %v13832_v28 = vand.u32 4294901760, %v13831_v53  ;;  %v13838_v14 = vsub.f32 %v28374_v24, %v29399_v34  ;;  %v30558_v29 = vand.u32 4294901760, %v28377_v37 }
 0x5f1   :  { %v11681_v11 = vadd.f32 %v17085_v1, %v28264_v51  ;;  %20680 = vmatprep.subr.bf16.mxu1 %v20679_v40  ;;  %v13617_v2 = vsub.f32 %v28381_v45, %v13616_v59  ;;  %v28434_v20 = vpack.c.bf16 %v13558_v61, %v13555_v50  ;;  %v20685_v15 = vpack.c.bf16 %v13706_v33, %v13699_v4 }
 0x5f2   :  { %v13845_v43 = vsub.f32 %v28377_v37, %v30558_v29  ;;  %v20695_v51 = vpack.c.bf16 %v28049_v23, %v28045_v42  ;;  %v13713_v1 = vand.u32 4294901760, %v13712_v10  ;;  %v13720_v40 = vand.u32 4294901760, %v13719_v38 }
 0x5f3   :  { %20658 = vmatpush3.bf16.msra.mxu0 %v28384_v17  ;;  %v13726_v53 = vsub.f32 %v28398_v3, %v29397_v0  ;;  %v13733_v13 = vsub.f32 %v28401_v58, %v29398_v6  ;;  %v20687_v61 = vpack.c.bf16 %v13832_v28, %v13825_v55  ;;  %v13839_v50 = vand.u32 4294901760, %v13838_v14 }
 0x5f4   :  { %20682 = vmatpush3.bf16.msra.mxu1 %v20681_v63  ;;  %20660 = vmatprep.subr.bf16.mxu0 %v28410_v60  ;;  %v13846_v4 = vand.u32 4294901760, %v13845_v43  ;;  %v13618_v8 = vand.u32 4294901760, %v13617_v2  ;;  %v20697_v63 = vpack.c.bf16 %v28085_v25, %v28073_v27  ;;  %v20699_v10 = vpack.c.bf16 %v28108_v49, %v28105_v21 }
 0x5f5   :  { %20684 = vmatprep.subr.bf16.mxu1 %v20683_v22  ;;  %v20689_v0 = vpack.c.bf16 %v13720_v40, %v13713_v1  ;;  %v13727_v6 = vand.u32 4294901760, %v13726_v53  ;;  %v13734_v22 = vand.u32 4294901760, %v13733_v13  ;;  %v20701_v14 = vpack.c.bf16 %v28151_v12, %v28146_v26  ;;  %v30561_v1 = vld [vmem:[#allocation22_spill] sm:$0xff] }
 0x5f6   :  { %v17118_v33 = vpop.f32.mrb[76].mxu1  ;;  %v20691_v55 = vpack.c.bf16 %v13846_v4, %v13839_v50  ;;  %v20703_v2 = vpack.c.bf16 %v28174_v47, %v28172_v41  ;;  %v20711_v40 = vpack.c.bf16 %v28262_v9, %v28241_v18  ;;  %v30562_v53 = vld [vmem:[#allocation18_spill] sm:$0xff]  ;;  %v30563_v13 = vand.u32 4294901760, %v28177_v54  ;;  %v30564_v50 = vld [vmem:[#allocation13_spill] sm:$0xff] }
 0x5f7   :  { %v17119_v29 = vpop.f32.mrb[77].mxu1  ;;  %20662 = vmatpush3.bf16.msra.mxu0 %v28434_v20  ;;  %v20693_v43 = vpack.c.bf16 %v13734_v22, %v13727_v6  ;;  %v30560_v6 = vld [vmem:[#allocation19_spill] sm:$0xff]  ;;  %v20715_v4 = vpack.c.bf16 %v30564_v50, %v28294_v62  ;;  %v30569_v22 = vld [vmem:[#allocation24_spill] sm:$0xff] }
 0x5f8   :  { %v17120_v38 = vadd.f32 %v17119_v29, %v17118_v33  ;;  %20686 = vmatpush3.bf16.msra.mxu1 %v20685_v15  ;;  %20696 = vmatprep.subr.bf16.mxu0 %v20695_v51  ;;  %v20705_v15 = vpack.c.bf16 %v28195_v5, %v28193_v31  ;;  %v30565_v33 = vld [vmem:[#allocation23_spill] sm:$0xff] }
 0x5f9   :  { %20688 = vmatprep.subr.bf16.mxu1 %v20687_v61  ;;  %v20713_v61 = vpack.c.bf16 %v28287_v52, %v28267_v56 }
 0x5fa   :  { %v11785_v28 = vadd.f32 %v17120_v38, %v11681_v11  ;;  %13619 = vmatmul.mubr.f32.vlgmr.msra.gmra.mrb[90].mxu0 %v13618_v8  ;;  %v20707_v11 = vpack.c.bf16 %v28218_v35, %v28214_v39  ;;  %v30566_v8 = vld [vmem:[#allocation21_spill] sm:$0xff] }
 0x5fb   :  { %20698 = vmatpush3.bf16.msra.mxu0 %v20697_v63  ;;  %13986 = vmatprep.mubr.f32.mxu0 %v28177_v54  ;;  %v20717_v29 = vpack.c.bf16 %v30566_v8, %v28307_v30  ;;  %v30567_v63 = vld [vmem:[#allocation25_spill] sm:$0xff]  ;;  %v30568_v54 = vld [vmem:[#allocation16_spill] sm:$0xff] }
 0x5fc   :  { %20690 = vmatpush3.bf16.msra.mxu1 %v20689_v0  ;;  %20700 = vmatprep.subr.bf16.mxu0 %v20699_v10  ;;  %v30559_v0 = vld [vmem:[#allocation15_spill] sm:$0xff]  ;;  %v20719_v10 = vpack.c.bf16 %v28332_v57, %v30568_v54 }
 0x5fd   :  { %20692 = vmatprep.subr.bf16.mxu1 %v20691_v55  ;;  %v20709_v51 = vpack.c.bf16 %v30560_v6, %v30559_v0 }
 0x5ff   :  { %20702 = vmatpush3.bf16.msra.mxu0 %v20701_v14 }
 0x600   :  { %20694 = vmatpush3.bf16.msra.mxu1 %v20693_v43  ;;  %20704 = vmatprep.subr.bf16.mxu0 %v20703_v2  ;;  %v20721_v43 = vpack.c.bf16 %v28368_v44, %v28361_v46  ;;  %v30570_v2 = vld [vmem:[#allocation20_spill] sm:$0xff] }
 0x601   :  { %20728 = vmatprep.subr.bf16.mxu1 %v28143_v32 }
 0x603   :  { %13851 = vmatmul.mubr.f32.vlgmr.msra.gmra.mrb[90].mxu1 %v28358_v19  ;;  %20706 = vmatpush3.bf16.msra.mxu0 %v20705_v15  ;;  %v20723_v15 = vpack.c.bf16 %v28377_v37, %v28374_v24 }
 0x604   :  { %20730 = vmatpush3.bf16.msra.mxu1 %v30561_v1  ;;  %20708 = vmatprep.subr.bf16.mxu0 %v20707_v11 }
 0x605   :  { %20732 = vmatprep.subr.bf16.mxu1 %v30562_v53  ;;  %14093 = vmatprep.mubr.f32.mxu1 %v30563_v13  ;;  %v30572_v13 = vld [vmem:[#allocation11_spill] sm:$0xff] }
 0x607   :  { %20710 = vmatpush3.bf16.msra.mxu0 %v20709_v51  ;;  %v30571_v51 = vld [vmem:[#allocation14_spill] sm:$0xff] }
 0x608   :  { %20734 = vmatpush3.bf16.msra.mxu1 %v28165_v16  ;;  %20712 = vmatprep.subr.bf16.mxu0 %v20711_v40  ;;  %v20725_v40 = vpack.c.bf16 %v28401_v58, %v28398_v3 }
 0x609   :  { %20736 = vmatprep.subr.bf16.mxu1 %v30565_v33 }
 0x60b   :  { %20714 = vmatpush3.bf16.msra.mxu0 %v20713_v61  ;;  %v30573_v61 = vand.u32 4294901760, %v28045_v42  ;;  %v30579_v42 = vand.u32 4294901760, %v28108_v49  ;;  %v30584_v49 = vand.u32 4294901760, %v28174_v47  ;;  %v30590_v47 = vand.u32 4294901760, %v30560_v6 }
 0x60c   :  { %20738 = vmatpush3.bf16.msra.mxu1 %v30567_v63  ;;  %20716 = vmatprep.subr.bf16.mxu0 %v20715_v4  ;;  %v30574_v4 = vand.u32 4294901760, %v28049_v23 }
 0x60d   :  { %v17153_v38 = vpop.f32.mrb[78].mxu0  ;;  %20740 = vmatprep.subr.bf16.mxu1 %v30569_v22 }
 0x60e   :  { %v17154_v55 = vpop.f32.mrb[79].mxu0 }
 0x60f   :  { %v17155_v14 = vadd.f32 %v17154_v55, %v17153_v38  ;;  %20718 = vmatpush3.bf16.msra.mxu0 %v20717_v29  ;;  %v20759_v29 = vpack.c.bf16 %v30574_v4, %v30573_v61  ;;  %v30575_v38 = vld [vmem:[#allocation12_spill] sm:$0xff]  ;;  %v30582_v4 = vld [vmem:[#allocation17_spill] sm:$0xff] }
 0x610   :  { %20742 = vmatpush3.bf16.msra.mxu1 %v30570_v2  ;;  %20720 = vmatprep.subr.bf16.mxu0 %v20719_v10 }
 0x611   :  { %v11897_v11 = vadd.f32 %v17155_v14, %v11785_v28  ;;  %20744 = vmatprep.subr.bf16.mxu1 %v30571_v51  ;;  %v30576_v28 = vand.u32 4294901760, %v28073_v27  ;;  %v30577_v14 = vand.u32 4294901760, %v28085_v25  ;;  %v30580_v27 = vand.u32 4294901760, %v28146_v26 }
 0x612   :  { %v30581_v25 = vand.u32 4294901760, %v28151_v12  ;;  %v30586_v26 = vand.u32 4294901760, %v28195_v5  ;;  %v30587_v12 = vand.u32 4294901760, %v28214_v39  ;;  %v30591_v5 = vand.u32 4294901760, %v28241_v18 }
 0x613   :  { %20722 = vmatpush3.bf16.msra.mxu0 %v20721_v43  ;;  %v20761_v43 = vpack.c.bf16 %v30577_v14, %v30576_v28  ;;  %v30592_v39 = vand.u32 4294901760, %v28262_v9  ;;  %v30596_v18 = vand.u32 4294901760, %v30564_v50  ;;  %v30597_v9 = vand.u32 4294901760, %v28307_v30 }
 0x614   :  { %20746 = vmatpush3.bf16.msra.mxu1 %v30572_v13  ;;  %20724 = vmatprep.subr.bf16.mxu0 %v20723_v15  ;;  %v30578_v15 = vand.u32 4294901760, %v28105_v21  ;;  %v30583_v21 = vand.u32 4294901760, %v28172_v41  ;;  %v30589_v41 = vand.u32 4294901760, %v30559_v0  ;;  %v30595_v0 = vand.u32 4294901760, %v28294_v62 }
 0x615   :  { %20748 = vmatprep.subr.bf16.mxu1 %v30575_v38  ;;  %v30605_v14 = vand.u32 4294901760, %v28401_v58 }
 0x616   :  { %v17188_v10 = vpop.f32.mrb[78].mxu1  ;;  %v20763_v23 = vpack.c.bf16 %v30579_v42, %v30578_v15  ;;  %v20779_v6 = vpack.c.bf16 %v30596_v18, %v30595_v0 }
 0x617   :  { %v17189_v55 = vpop.f32.mrb[79].mxu1  ;;  %20726 = vmatpush3.bf16.msra.mxu0 %v20725_v40  ;;  %v20765_v40 = vpack.c.bf16 %v30581_v25, %v30580_v27 }
 0x618   :  { %v17190_v34 = vadd.f32 %v17189_v55, %v17188_v10  ;;  %20750 = vmatpush3.bf16.msra.mxu1 %v28305_v48  ;;  %20760 = vmatprep.subr.bf16.mxu0 %v20759_v29  ;;  %v20767_v29 = vpack.c.bf16 %v30584_v49, %v30583_v21  ;;  %v30588_v10 = vand.u32 4294901760, %v28218_v35  ;;  %v20775_v35 = vpack.c.bf16 %v30592_v39, %v30591_v5 }
 0x619   :  { %20752 = vmatprep.subr.bf16.mxu1 %v28326_v36 }
 0x61a   :  { %v12129_v61 = vadd.f32 %v17190_v34, %v11897_v11  ;;  %13989 = vmatmul.mubr.f32.vlgmr.msra.gmra.mrb[92].mxu0 %v28381_v45  ;;  %v30585_v34 = vand.u32 4294901760, %v28193_v31  ;;  %v20771_v55 = vpack.c.bf16 %v30588_v10, %v30587_v12  ;;  %v20773_v31 = vpack.c.bf16 %v30590_v47, %v30589_v41 }
 0x61b   :  { %20762 = vmatpush3.bf16.msra.mxu0 %v20761_v43  ;;  %14263 = vmatprep.mubr.f32.mxu0 %v30582_v4  ;;  %v30594_v45 = vand.u32 4294901760, %v28287_v52 }
 0x61c   :  { %20754 = vmatpush3.bf16.msra.mxu1 %v28384_v17  ;;  %20764 = vmatprep.subr.bf16.mxu0 %v20763_v23  ;;  %v20769_v11 = vpack.c.bf16 %v30586_v26, %v30585_v34 }
 0x61d   :  { %20756 = vmatprep.subr.bf16.mxu1 %v28410_v60 }
 0x61f   :  { %20766 = vmatpush3.bf16.msra.mxu0 %v20765_v40 }
 0x620   :  { %20758 = vmatpush3.bf16.msra.mxu1 %v28434_v20  ;;  %20768 = vmatprep.subr.bf16.mxu0 %v20767_v29 }
 0x621   :  { %20792 = vmatprep.subr.bf16.mxu1 %v28143_v32  ;;  %v30593_v32 = vand.u32 4294901760, %v28267_v56  ;;  %v30599_v56 = vand.u32 4294901760, %v30568_v54 }
 0x623   :  { %14097 = vmatmul.mubr.f32.vlgmr.msra.gmra.mrb[92].mxu1 %v13616_v59  ;;  %20770 = vmatpush3.bf16.msra.mxu0 %v20769_v11  ;;  %v20777_v59 = vpack.c.bf16 %v30594_v45, %v30593_v32 }
 0x624   :  { %20794 = vmatpush3.bf16.msra.mxu1 %v30561_v1  ;;  %20772 = vmatprep.subr.bf16.mxu0 %v20771_v55  ;;  %v30598_v1 = vand.u32 4294901760, %v30566_v8  ;;  %v30602_v8 = vand.u32 4294901760, %v28374_v24 }
 0x625   :  { %20796 = vmatprep.subr.bf16.mxu1 %v30562_v53  ;;  %14367 = vmatprep.mubr.f32.mxu1 %v30582_v4 }
 0x626   :  { %v20781_v53 = vpack.c.bf16 %v30598_v1, %v30597_v9 }
 0x627   :  { %20774 = vmatpush3.bf16.msra.mxu0 %v20773_v31 }
 0x628   :  { %20798 = vmatpush3.bf16.msra.mxu1 %v28165_v16  ;;  %20776 = vmatprep.subr.bf16.mxu0 %v20775_v35  ;;  %v30600_v16 = vand.u32 4294901760, %v28332_v57 }
 0x629   :  { %20800 = vmatprep.subr.bf16.mxu1 %v30565_v33  ;;  %v30601_v33 = vand.u32 4294901760, %v28361_v46 }
 0x62a   :  { %v20783_v52 = vpack.c.bf16 %v30600_v16, %v30599_v56 }
 0x62b   :  { %20778 = vmatpush3.bf16.msra.mxu0 %v20777_v59  ;;  %v20785_v30 = vpack.c.bf16 %v13718_v7, %v30601_v33 }
 0x62c   :  { %20802 = vmatpush3.bf16.msra.mxu1 %v30567_v63  ;;  %20780 = vmatprep.subr.bf16.mxu0 %v20779_v6  ;;  %v30603_v63 = vand.u32 4294901760, %v28377_v37 }
 0x62d   :  { %v17223_v62 = vpop.f32.mrb[80].mxu0  ;;  %20804 = vmatprep.subr.bf16.mxu1 %v30569_v22  ;;  %v30604_v22 = vand.u32 4294901760, %v28398_v3 }
 0x62e   :  { %v17224_v50 = vpop.f32.mrb[81].mxu0  ;;  %v20787_v57 = vpack.c.bf16 %v30603_v63, %v30602_v8 }
 0x62f   :  { %v17225_v28 = vadd.f32 %v17224_v50, %v17223_v62  ;;  %20782 = vmatpush3.bf16.msra.mxu0 %v20781_v53  ;;  %v20789_v46 = vpack.c.bf16 %v30605_v14, %v30604_v22 }
 0x630   :  { %20806 = vmatpush3.bf16.msra.mxu1 %v30570_v2  ;;  %20784 = vmatprep.subr.bf16.mxu0 %v20783_v52 }
 0x631   :  { %v12267_v54 = vadd.f32 %v17225_v28, %v12129_v61  ;;  %20808 = vmatprep.subr.bf16.mxu1 %v30571_v51 }
 0x633   :  { %20786 = vmatpush3.bf16.msra.mxu0 %v20785_v30 }
 0x634   :  { %20810 = vmatpush3.bf16.msra.mxu1 %v30572_v13  ;;  %20788 = vmatprep.subr.bf16.mxu0 %v20787_v57 }
 0x635   :  { %20812 = vmatprep.subr.bf16.mxu1 %v30575_v38 }
 0x636   :  { %v17258_v44 = vpop.f32.mrb[80].mxu1 }
 0x637   :  { %v17259_v7 = vpop.f32.mrb[81].mxu1  ;;  %20790 = vmatpush3.bf16.msra.mxu0 %v20789_v46 }
 0x638   :  { %v17260_v24 = vadd.f32 %v17259_v7, %v17258_v44  ;;  %20814 = vmatpush3.bf16.msra.mxu1 %v28305_v48 }
 0x639   :  { %20816 = vmatprep.subr.bf16.mxu1 %v28326_v36 }
 0x63a   :  { %v12375_v37 = vadd.f32 %v17260_v24, %v12267_v54  ;;  %14265 = vmatmul.mubr.f32.vlgmr.msra.gmra.mrb[94].mxu0 %v28358_v19 }
 0x63c   :  { %20818 = vmatpush3.bf16.msra.mxu1 %v28384_v17 }
 0x63d   :  { %20820 = vmatprep.subr.bf16.mxu1 %v28410_v60 }
 0x640   :  { %20822 = vmatpush3.bf16.msra.mxu1 %v28434_v20 }
 0x643   :  { %14369 = vmatmul.mubr.f32.vlgmr.msra.gmra.mrb[94].mxu1 %v28358_v19 }
 0x64d   :  { %v17293_v3 = vpop.f32.mrb[82].mxu0 }
 0x64e   :  { %v17294_v58 = vpop.f32.mrb[83].mxu0 }
 0x64f   :  { %v17295_v2 = vadd.f32 %v17294_v58, %v17293_v3 }
 0x651   :  { %v12543_v51 = vadd.f32 %v17295_v2, %v12375_v37 }
 0x656   :  { %v17328_v13 = vpop.f32.mrb[82].mxu1 }
 0x657   :  { %v17329_v38 = vpop.f32.mrb[83].mxu1 }
 0x658   :  { %v17330_v48 = vadd.f32 %v17329_v38, %v17328_v13 }
 0x65a   :  { %v12647_v43 = vadd.f32 %v17330_v48, %v12543_v51 }
 0x66d   :  { %v17363_v36 = vpop.f32.mrb[84].mxu0 }
 0x66e   :  { %v17364_v15 = vpop.f32.mrb[85].mxu0 }
 0x66f   :  { %v17365_v42 = vadd.f32 %v17364_v15, %v17363_v36 }
 0x671   :  { %v12759_v23 = vadd.f32 %v17365_v42, %v12647_v43 }
 0x676   :  { %v17398_v61 = vpop.f32.mrb[84].mxu1 }
 0x677   :  { %v17399_v17 = vpop.f32.mrb[85].mxu1 }
 0x678   :  { %v17400_v27 = vadd.f32 %v17399_v17, %v17398_v61 }
 0x67a   :  { %v12991_v60 = vadd.f32 %v17400_v27, %v12759_v23 }
 0x68d   :  { %v17433_v25 = vpop.f32.mrb[86].mxu0 }
 0x68e   :  { %v17434_v20 = vpop.f32.mrb[87].mxu0 }
 0x68f   :  { %v17435_v40 = vadd.f32 %v17434_v20, %v17433_v25 }
 0x691   :  { %v13129_v19 = vadd.f32 %v17435_v40, %v12991_v60 }
 0x696   :  { %v17468_v4 = vpop.f32.mrb[86].mxu1 }
 0x697   :  { %v17469_v21 = vpop.f32.mrb[87].mxu1 }
 0x698   :  { %v17470_v49 = vadd.f32 %v17469_v21, %v17468_v4 }
 0x69a   :  { %v13237_v29 = vadd.f32 %v17470_v49, %v13129_v19 }
 0x6ad   :  { %v17503_v34 = vpop.f32.mrb[88].mxu0 }
 0x6ae   :  { %v17504_v26 = vpop.f32.mrb[89].mxu0 }
 0x6af   :  { %v17505_v11 = vadd.f32 %v17504_v26, %v17503_v34 }
 0x6b1   :  { %v13405_v12 = vadd.f32 %v17505_v11, %v13237_v29 }
 0x6b6   :  { %v17538_v10 = vpop.f32.mrb[88].mxu1 }
 0x6b7   :  { %v17539_v55 = vpop.f32.mrb[89].mxu1 }
 0x6b8   :  { %v17540_v41 = vadd.f32 %v17539_v55, %v17538_v10 }
 0x6ba   :  { %v13509_v47 = vadd.f32 %v17540_v41, %v13405_v12 }
 0x6cd   :  { %v17573_v31 = vpop.f32.mrb[90].mxu0 }
 0x6ce   :  { %v17574_v5 = vpop.f32.mrb[91].mxu0 }
 0x6cf   :  { %v17575_v39 = vadd.f32 %v17574_v5, %v17573_v31 }
 0x6d1   :  { %v13621_v35 = vadd.f32 %v17575_v39, %v13509_v47 }
 0x6d6   :  { %v17608_v32 = vpop.f32.mrb[90].mxu1 }
 0x6d7   :  { %v17609_v45 = vpop.f32.mrb[91].mxu1 }
 0x6d8   :  { %v17610_v59 = vadd.f32 %v17609_v45, %v17608_v32 }
 0x6da   :  { %v13853_v0 = vadd.f32 %v17610_v59, %v13621_v35 }
 0x6ed   :  { %v17643_v18 = vpop.f32.mrb[92].mxu0 }
 0x6ee   :  { %v17644_v6 = vpop.f32.mrb[93].mxu0 }
 0x6ef   :  { %v17645_v9 = vadd.f32 %v17644_v6, %v17643_v18 }
 0x6f1   :  { %v13991_v1 = vadd.f32 %v17645_v9, %v13853_v0 }
 0x6f6   :  { %v17678_v53 = vpop.f32.mrb[92].mxu1 }
 0x6f7   :  { %v17679_v56 = vpop.f32.mrb[93].mxu1 }
 0x6f8   :  { %v17680_v16 = vadd.f32 %v17679_v56, %v17678_v53 }
 0x6fa   :  { %v14099_v52 = vadd.f32 %v17680_v16, %v13991_v1 }
 0x70d   :  { %v17713_v62 = vpop.f32.mrb[94].mxu0 }
 0x70e   :  { %v17714_v50 = vpop.f32.mrb[95].mxu0 }
 0x70f   :  { %v17715_v28 = vadd.f32 %v17714_v50, %v17713_v62 }
 0x711   :  { %v14267_v33 = vadd.f32 %v17715_v28, %v14099_v52 }
 0x716   :  { %v17748_v30 = vpop.f32.mrb[94].mxu1 }
 0x717   :  { %v17749_v8 = vpop.f32.mrb[95].mxu1 }
 0x718   :  { %v17750_v63 = vadd.f32 %v17749_v8, %v17748_v30 }
 0x71a   :  { %v14371_v57 = vadd.f32 %v17750_v63, %v14267_v33 }
 0x71c   :  { %14374 = vst [vmem:[#allocation7] sm:$0xff] %v14371_v57 }
 0x71d   :  { %20883 = shalt.err (!%p20880_p6)
}
 0x71e   :  { %s20884_s10 = scalar_lea.hbm %s28597_s2, 128 }
 0x71f   :  { %p20885_p7 = scmp.ne.s32.totalorder %s28597_s2, %s20884_s10  ;;  %p20888_p8 = scmp.lt.u32.totalorder %s20884_s10, %s28597_s2 }
 0x721   :  { %p20890_p9 = pnand %p20888_p8, %p20885_p7 }
 0x723   :  { %20893 = shalt.err (!%p20890_p9)
}
 0x724   :  { %14384 = dma.vmem_to_hbm [thread:$0]  %s14382_s6, 128, %s28597_s2, [#allocation4]  }
 0x725   :  { %20898 = dma.done.wait [#allocation4], 128  }
 0x726   :  { %20899 = vsyncadd [#allocation4], 4294967168 }
 0x727   :  { %14388 = vsyncpa [#allocation3], 1 }
 0x728   :  { %14389 = vsyncpa [#allocation6], 1 }
 0x729   :  { %14390 = vsyncpa [#allocation4], 1 }

</bundles_post_ra>
